<compile_context>
chip_gen: v7x
topology: tpu7x:2x2x1
jax: 0.10.0
libtpu: 0.0.40
codegen_flags: <defaults>
</compile_context>

<pallas_src>
import jax
import jax.numpy as jnp
from jax.experimental import pallas as pl
from jax.experimental.pallas import tpu as pltpu


def _round_up(x, m):
    return ((x + m - 1) // m) * m


# ----------------------------------------------------------------------------
# Pallas kernel 1: out = relu(x @ w + b), tiled over M (used for conv1/conv2).
#   x: (M, K) bf16, w: (K, N) bf16, b: (1, N) f32 -> out: (M, N) bf16
# ----------------------------------------------------------------------------
def _matmul_bias_relu_kernel(x_ref, w_ref, b_ref, o_ref):
    acc = jnp.dot(x_ref[...], w_ref[...], preferred_element_type=jnp.float32)
    acc = jnp.maximum(acc + b_ref[...], 0.0)
    o_ref[...] = acc.astype(o_ref.dtype)


def matmul_bias_relu(x, w, b, *, block_m=1024):
    M, K = x.shape
    K2, N = w.shape
    assert K == K2
    # Big tiles for roofline, but keep >= 2 "parallel" grid steps so v7x's
    # two TensorCores both get work (bm is always a multiple of 8 or == M).
    bm = min(block_m, M, _round_up(pl.cdiv(M, 2), 8))
    grid = (pl.cdiv(M, bm),)
    cost = pl.CostEstimate(
        flops=2 * M * K * N,
        transcendentals=0,
        bytes_accessed=2 * (M * K + K * N + M * N) + 4 * N,
    )
    return pl.pallas_call(
        _matmul_bias_relu_kernel,
        out_shape=jax.ShapeDtypeStruct((M, N), jnp.bfloat16),
        grid=grid,
        in_specs=[
            pl.BlockSpec((bm, K), lambda i: (i, 0)),  # activation tile (pipelined)
            pl.BlockSpec((K, N), lambda i: (0, 0)),   # weights: grid-invariant
            pl.BlockSpec((1, N), lambda i: (0, 0)),   # bias: grid-invariant
        ],
        out_specs=pl.BlockSpec((bm, N), lambda i: (i, 0)),
        compiler_params=pltpu.CompilerParams(
            dimension_semantics=("parallel",),
            vmem_limit_bytes=32 * 1024 * 1024,
        ),
        cost_estimate=cost,
    )(x, w, b)


# ----------------------------------------------------------------------------
# Pallas kernel 2: fused conv3 (3x3, stride 1, in-kernel patch gather)
#                  + fc4 + relu + fc5, tiled over the batch.
#   h2: (bb, 9, 9, 64) bf16   conv2 output tile (NHWC)
#   w3: (9, 64, 64)    bf16   conv3 taps, t = i*3 + j, laid out (tap, C, OC)
#   b3: (1, 64)        f32
#   w4: (3136, 512)    bf16   K ordered (H, W, C) to match the NHWC flatten
#   b4: (1, 512)       f32
#   w5: (512, N)       bf16
#   b5: (1, N)         f32
#   out: (bb, N)       f32
#   flat_ref: VMEM scratch (bb, 3136) bf16 -- conv3 output flattened lane-major
# ----------------------------------------------------------------------------
def _conv3_fc_kernel(h_ref, w3_ref, b3_ref, w4_ref, b4_ref, w5_ref, b5_ref,
                     o_ref, flat_ref):
    bb = h_ref.shape[0]

    # conv3 as tap accumulation: 9 dots of K=64 on statically sliced windows.
    # Row index of acc is (b * 49 + oh * 7 + ow).
    acc = jnp.zeros((bb * 49, 64), jnp.float32)
    for t in range(9):
        i, j = t // 3, t % 3
        patch = h_ref[:, i:i + 7, j:j + 7, :]            # (bb, 7, 7, 64) bf16
        acc = acc + jnp.dot(patch.reshape(bb * 49, 64), w3_ref[t],
                            preferred_element_type=jnp.float32)
    h3 = jnp.maximum(acc + b3_ref[...], 0.0).astype(jnp.bfloat16)  # (bb*49, 64)
    h3 = h3.reshape(bb, 49, 64)

    # Flatten (H, W, C) into the lane-major (bb, 3136) scratch so fc4 runs as
    # a single full-K MXU matmul; the intermediate never leaves VMEM.
    for p in range(49):
        flat_ref[:, p * 64:(p + 1) * 64] = h3[:, p, :]

    h4 = jnp.dot(flat_ref[...], w4_ref[...], preferred_element_type=jnp.float32)
    h4 = jnp.maximum(h4 + b4_ref[...], 0.0).astype(jnp.bfloat16)   # (bb, 512)
    out = jnp.dot(h4, w5_ref[...], preferred_element_type=jnp.float32)
    o_ref[...] = (out + b5_ref[...]).astype(o_ref.dtype)


def conv3_fc_fused(h2, w3, b3, w4, b4, w5, b5, *, block_b=128):
    B = h2.shape[0]
    assert h2.shape[1:] == (9, 9, 64)
    N = w5.shape[1]
    # Batch tile: multiple of 8 (or == B), capped so v7x keeps >= 2 grid steps.
    bb = min(block_b, B, _round_up(pl.cdiv(B, 2), 8))
    grid = (pl.cdiv(B, bb),)
    cost = pl.CostEstimate(
        flops=2 * B * (49 * 576 * 64 + 3136 * 512 + 512 * N),
        transcendentals=0,
        bytes_accessed=2 * (B * 81 * 64 + 9 * 64 * 64 + 3136 * 512 + 512 * N)
        + 4 * (64 + 512 + N + B * N),
    )
    return pl.pallas_call(
        _conv3_fc_kernel,
        out_shape=jax.ShapeDtypeStruct((B, N), jnp.float32),
        grid=grid,
        in_specs=[
            pl.BlockSpec((bb, 9, 9, 64), lambda i: (i, 0, 0, 0)),  # conv2 out tile
            pl.BlockSpec((9, 64, 64), lambda i: (0, 0, 0)),        # conv3 weights
            pl.BlockSpec((1, 64), lambda i: (0, 0)),
            pl.BlockSpec((3136, 512), lambda i: (0, 0)),           # fc4 weights (VMEM-resident)
            pl.BlockSpec((1, 512), lambda i: (0, 0)),
            pl.BlockSpec((512, N), lambda i: (0, 0)),
            pl.BlockSpec((1, N), lambda i: (0, 0)),
        ],
        out_specs=pl.BlockSpec((bb, N), lambda i: (i, 0)),
        scratch_shapes=[pltpu.VMEM((bb, 49 * 64), jnp.bfloat16)],
        compiler_params=pltpu.CompilerParams(
            dimension_semantics=("parallel",),
            vmem_limit_bytes=40 * 1024 * 1024,   # headroom under v7x's 64 MiB
        ),
        cost_estimate=cost,
    )(h2, w3, b3, w4, b4, w5, b5)


# ----------------------------------------------------------------------------
# Glue: im2col for strided VALID convolution on NHWC input (conv1/conv2 only).
# K axis is ordered (KH, KW, C) to match the pre-packed conv weights.
# ----------------------------------------------------------------------------
def im2col_nhwc(x, kh, kw, sh, sw):
    B, H, W, C = x.shape
    oh = (H - kh) // sh + 1
    ow = (W - kw) // sw + 1
    cols = []
    for i in range(kh):
        for j in range(kw):
            cols.append(x[:, i:i + sh * oh:sh, j:j + sw * ow:sw, :])  # (B,oh,ow,C)
    patches = jnp.concatenate(cols, axis=-1)          # (B, oh, ow, kh*kw*C)
    return patches.reshape(B * oh * ow, kh * kw * C), oh, ow


# ----------------------------------------------------------------------------
# Parameter construction (torch layouts, deterministic fan-in-scaled uniform).
# ----------------------------------------------------------------------------
def _uniform(key, shape, fan_in):
    bound = 1.0 / jnp.sqrt(jnp.asarray(fan_in, jnp.float32))
    return jax.random.uniform(key, shape, jnp.float32, -bound, bound)


def init_actor_cnn_params(key, in_channels, out_channels, log_std_init=0.0):
    ks = jax.random.split(key, 10)
    p = {}
    p["log_std"] = jnp.ones((out_channels,), jnp.float32) * log_std_init  # unused in fwd
    p["conv1_w"] = _uniform(ks[0], (32, in_channels, 8, 8), in_channels * 8 * 8)
    p["conv1_b"] = _uniform(ks[1], (32,), in_channels * 8 * 8)
    p["conv2_w"] = _uniform(ks[2], (64, 32, 4, 4), 32 * 4 * 4)
    p["conv2_b"] = _uniform(ks[3], (64,), 32 * 4 * 4)
    p["conv3_w"] = _uniform(ks[4], (64, 64, 3, 3), 64 * 3 * 3)
    p["conv3_b"] = _uniform(ks[5], (64,), 64 * 3 * 3)
    p["fc4_w"] = _uniform(ks[6], (512, 64 * 7 * 7), 64 * 7 * 7)   # torch (out, in)
    p["fc4_b"] = _uniform(ks[7], (512,), 64 * 7 * 7)
    p["fc5_w"] = _uniform(ks[8], (out_channels, 512), 512)
    p["fc5_b"] = _uniform(ks[9], (out_channels,), 512)
    return p


def prepare_params(params):
    """One-time repack of torch-layout weights into MXU-RHS (K, N) bf16 layout."""
    prep = {}

    def pack_conv(w, b):
        oc, c, kh, kw = w.shape
        # (OC, C, KH, KW) -> (KH, KW, C, OC) -> (KH*KW*C, OC): matches im2col K order.
        wp = jnp.transpose(w, (2, 3, 1, 0)).reshape(kh * kw * c, oc).astype(jnp.bfloat16)
        return wp, b.reshape(1, oc).astype(jnp.float32)

    prep["conv1_w"], prep["conv1_b"] = pack_conv(params["conv1_w"], params["conv1_b"])
    prep["conv2_w"], prep["conv2_b"] = pack_conv(params["conv2_w"], params["conv2_b"])

    # conv3 packed per-tap for the fused kernel: (OC, C, 3, 3) -> (3, 3, C, OC)
    # -> (9, C, OC); tap index t = i*3 + j matches the in-kernel gather loop.
    w3 = jnp.transpose(params["conv3_w"], (2, 3, 1, 0)).reshape(9, 64, 64)
    prep["conv3_w"] = w3.astype(jnp.bfloat16)
    prep["conv3_b"] = params["conv3_b"].reshape(1, 64).astype(jnp.float32)

    # fc4: torch (512, 3136) where input flatten order is (C=64, H=7, W=7).
    # Repack K to the (H, W, C) order produced by the in-kernel NHWC flatten.
    w4 = params["fc4_w"].reshape(512, 64, 7, 7)                    # (N, C, H, W)
    w4 = jnp.transpose(w4, (2, 3, 1, 0)).reshape(7 * 7 * 64, 512)  # (H*W*C, N)
    prep["fc4_w"] = w4.astype(jnp.bfloat16)
    prep["fc4_b"] = params["fc4_b"].reshape(1, 512).astype(jnp.float32)
    prep["fc5_w"] = params["fc5_w"].T.astype(jnp.bfloat16)         # (512, out)
    prep["fc5_b"] = params["fc5_b"].reshape(1, -1).astype(jnp.float32)
    return prep


# ----------------------------------------------------------------------------
# Forward pass (matches ActorCNN.forward). Takes prepared (packed) params.
# ----------------------------------------------------------------------------
def actor_cnn_forward(prep, x):
    # x: (B, in_channels, 84, 84) NCHW -- fc4's 64*7*7 input forces 84x84 spatial.
    B = x.shape[0]
    h = jnp.transpose(x, (0, 2, 3, 1)).astype(jnp.bfloat16)        # NCHW -> NHWC, once
    p, oh, ow = im2col_nhwc(h, 8, 8, 4, 4)
    h = matmul_bias_relu(p, prep["conv1_w"], prep["conv1_b"]).reshape(B, oh, ow, 32)
    p, oh, ow = im2col_nhwc(h, 4, 4, 2, 2)
    h = matmul_bias_relu(p, prep["conv2_w"], prep["conv2_b"]).reshape(B, oh, ow, 64)
    # conv3 (in-kernel 3x3 patch gather) + fc4 + relu + fc5 fused in one kernel:
    # conv3 output, flatten, and the (B, 512) intermediate never touch HBM.
    return conv3_fc_fused(h, prep["conv3_w"], prep["conv3_b"],
                          prep["fc4_w"], prep["fc4_b"],
                          prep["fc5_w"], prep["fc5_b"])


# Pure-JAX f32 reference (PyTorch semantics) for sanity checking.
def actor_cnn_reference(params, x):
    def conv(x, w, b, s):
        y = jax.lax.conv_general_dilated(
            x, w, window_strides=s, padding="VALID",
            dimension_numbers=("NCHW", "OIHW", "NCHW"))
        return jax.nn.relu(y + b[None, :, None, None])
    h = conv(x, params["conv1_w"], params["conv1_b"], (4, 4))
    h = conv(h, params["conv2_w"], params["conv2_b"], (2, 2))
    h = conv(h, params["conv3_w"], params["conv3_b"], (1, 1))
    h = h.reshape(x.shape[0], -1)
    h = jax.nn.relu(h @ params["fc4_w"].T + params["fc4_b"])
    return h @ params["fc5_w"].T + params["fc5_b"]


if __name__ == "__main__":
    key = jax.random.PRNGKey(0)
    k_param, k_x = jax.random.split(key)

    in_channels = 4
    out_channels = 6
    batch = 2

    params = init_actor_cnn_params(k_param, in_channels, out_channels, log_std_init=0.0)
    prep = prepare_params(params)           # one-time weight repack (outside jit)

    # Spatial 84x84 is required by fc4's 64*7*7 input size (standard Atari input).
    x = jax.random.uniform(k_x, (batch, in_channels, 84, 84), jnp.float32)

    fwd = jax.jit(actor_cnn_forward)
    out = jax.block_until_ready(fwd(prep, x))
    assert out.shape == (batch, out_channels)

    ref = actor_cnn_reference(params, x)
    max_diff = float(jnp.max(jnp.abs(out - ref)))
    assert jnp.allclose(out, ref, rtol=5e-2, atol=5e-2), f"mismatch vs reference (max {max_diff})"

    print("KERNEL_OK")
</pallas_src>

<mosaic_0001>
module attributes {stable_mosaic.version = 11 : i64} {
  func.func @_matmul_bias_relu_kernel(%arg0: i32, %arg1: memref<400x256xbf16, #tpu.memory_space<vmem>>, %arg2: memref<256x32xbf16, #tpu.memory_space<vmem>>, %arg3: memref<1x32xf32, #tpu.memory_space<vmem>>, %arg4: memref<400x32xbf16, #tpu.memory_space<vmem>>) attributes {dimension_semantics = [#tpu.dimension_semantics<parallel>], iteration_bounds = array<i64: 2>, scalar_prefetch = 0 : i64, scratch_operands = 0 : i64, tpu.core_type = #tpu.core_type<tc>, window_params = [{transform_indices = @transform_0, window_bounds = array<i64: 400, 256>}, {pipeline_mode = #tpu.pipeline_mode<synchronous>, transform_indices = @transform_1, window_bounds = array<i64: 256, 32>}, {pipeline_mode = #tpu.pipeline_mode<synchronous>, transform_indices = @transform_2, window_bounds = array<i64: 1, 32>}, {transform_indices = @transform_3, window_bounds = array<i64: 400, 32>}]} {
    %c0 = arith.constant 0 : index
    %c0_0 = arith.constant 0 : index
    %0 = vector.load %arg1[%c0, %c0_0] : memref<400x256xbf16, #tpu.memory_space<vmem>>, vector<400x256xbf16>
    %c0_1 = arith.constant 0 : index
    %c0_2 = arith.constant 0 : index
    %1 = vector.load %arg2[%c0_1, %c0_2] : memref<256x32xbf16, #tpu.memory_space<vmem>>, vector<256x32xbf16>
    %cst = arith.constant dense<0.000000e+00> : vector<400x32xf32>
    %2 = tpu.matmul %0, %1, %cst {dimension_numbers = #tpu.dot_dimension_numbers<[1], [0], [0], [1], [0, 0, 1, 1], [], []>} : vector<400x256xbf16>, vector<256x32xbf16>, vector<400x32xf32> -> vector<400x32xf32>
    %c0_3 = arith.constant 0 : index
    %c0_4 = arith.constant 0 : index
    %3 = vector.load %arg3[%c0_3, %c0_4] : memref<1x32xf32, #tpu.memory_space<vmem>>, vector<1x32xf32>
    %4 = vector.broadcast %3 : vector<1x32xf32> to vector<400x32xf32>
    %5 = arith.addf %2, %4 : vector<400x32xf32>
    %cst_5 = arith.constant 0.000000e+00 : f32
    %6 = vector.broadcast %cst_5 : f32 to vector<400x32xf32>
    %7 = arith.maximumf %5, %6 : vector<400x32xf32>
    %8 = arith.truncf %7 : vector<400x32xf32> to vector<400x32xbf16>
    %c0_6 = arith.constant 0 : index
    %c0_7 = arith.constant 0 : index
    %9 = vector.load %arg4[%c0_6, %c0_7] : memref<400x32xbf16, #tpu.memory_space<vmem>>, vector<400x32xbf16>
    tpu.vector_store %arg4[%c0_6, %c0_7], %8 {strides = array<i32>} : memref<400x32xbf16, #tpu.memory_space<vmem>>, vector<400x32xbf16>,
    return
  }
  func.func @transform_0(%arg0: i32) -> (i32, i32) {
    %c0_i32 = arith.constant 0 : i32
    %c0_i32_0 = arith.constant 0 : i32
    return %arg0, %c0_i32 : i32, i32
  }
  func.func @transform_1(%arg0: i32) -> (i32, i32) {
    %c0_i32 = arith.constant 0 : i32
    %c0_i32_0 = arith.constant 0 : i32
    %c0_i32_1 = arith.constant 0 : i32
    return %c0_i32, %c0_i32_0 : i32, i32
  }
  func.func @transform_2(%arg0: i32) -> (i32, i32) {
    %c0_i32 = arith.constant 0 : i32
    %c0_i32_0 = arith.constant 0 : i32
    %c0_i32_1 = arith.constant 0 : i32
    return %c0_i32, %c0_i32_0 : i32, i32
  }
  func.func @transform_3(%arg0: i32) -> (i32, i32) {
    %c0_i32 = arith.constant 0 : i32
    %c0_i32_0 = arith.constant 0 : i32
    return %arg0, %c0_i32 : i32, i32
  }
}

module attributes {stable_mosaic.version = 11 : i64} {
  func.func @_matmul_bias_relu_kernel(%arg0: i32, %arg1: memref<88x512xbf16, #tpu.memory_space<vmem>>, %arg2: memref<512x64xbf16, #tpu.memory_space<vmem>>, %arg3: memref<1x64xf32, #tpu.memory_space<vmem>>, %arg4: memref<88x64xbf16, #tpu.memory_space<vmem>>) attributes {dimension_semantics = [#tpu.dimension_semantics<parallel>], iteration_bounds = array<i64: 2>, scalar_prefetch = 0 : i64, scratch_operands = 0 : i64, tpu.core_type = #tpu.core_type<tc>, window_params = [{transform_indices = @transform_0, window_bounds = array<i64: 88, 512>}, {pipeline_mode = #tpu.pipeline_mode<synchronous>, transform_indices = @transform_1, window_bounds = array<i64: 512, 64>}, {pipeline_mode = #tpu.pipeline_mode<synchronous>, transform_indices = @transform_2, window_bounds = array<i64: 1, 64>}, {transform_indices = @transform_3, window_bounds = array<i64: 88, 64>}]} {
    %c0 = arith.constant 0 : index
    %c0_0 = arith.constant 0 : index
    %0 = vector.load %arg1[%c0, %c0_0] : memref<88x512xbf16, #tpu.memory_space<vmem>>, vector<88x512xbf16>
    %c0_1 = arith.constant 0 : index
    %c0_2 = arith.constant 0 : index
    %1 = vector.load %arg2[%c0_1, %c0_2] : memref<512x64xbf16, #tpu.memory_space<vmem>>, vector<512x64xbf16>
    %cst = arith.constant dense<0.000000e+00> : vector<88x64xf32>
    %2 = tpu.matmul %0, %1, %cst {dimension_numbers = #tpu.dot_dimension_numbers<[1], [0], [0], [1], [0, 0, 1, 1], [], []>} : vector<88x512xbf16>, vector<512x64xbf16>, vector<88x64xf32> -> vector<88x64xf32>
    %c0_3 = arith.constant 0 : index
    %c0_4 = arith.constant 0 : index
    %3 = vector.load %arg3[%c0_3, %c0_4] : memref<1x64xf32, #tpu.memory_space<vmem>>, vector<1x64xf32>
    %4 = vector.broadcast %3 : vector<1x64xf32> to vector<88x64xf32>
    %5 = arith.addf %2, %4 : vector<88x64xf32>
    %cst_5 = arith.constant 0.000000e+00 : f32
    %6 = vector.broadcast %cst_5 : f32 to vector<88x64xf32>
    %7 = arith.maximumf %5, %6 : vector<88x64xf32>
    %8 = arith.truncf %7 : vector<88x64xf32> to vector<88x64xbf16>
    %c0_6 = arith.constant 0 : index
    %c0_7 = arith.constant 0 : index
    %9 = vector.load %arg4[%c0_6, %c0_7] : memref<88x64xbf16, #tpu.memory_space<vmem>>, vector<88x64xbf16>
    tpu.vector_store %arg4[%c0_6, %c0_7], %8 {strides = array<i32>} : memref<88x64xbf16, #tpu.memory_space<vmem>>, vector<88x64xbf16>,
    return
  }
  func.func @transform_0(%arg0: i32) -> (i32, i32) {
    %c0_i32 = arith.constant 0 : i32
    %c0_i32_0 = arith.constant 0 : i32
    return %arg0, %c0_i32 : i32, i32
  }
  func.func @transform_1(%arg0: i32) -> (i32, i32) {
    %c0_i32 = arith.constant 0 : i32
    %c0_i32_0 = arith.constant 0 : i32
    %c0_i32_1 = arith.constant 0 : i32
    return %c0_i32, %c0_i32_0 : i32, i32
  }
  func.func @transform_2(%arg0: i32) -> (i32, i32) {
    %c0_i32 = arith.constant 0 : i32
    %c0_i32_0 = arith.constant 0 : i32
    %c0_i32_1 = arith.constant 0 : i32
    return %c0_i32, %c0_i32_0 : i32, i32
  }
  func.func @transform_3(%arg0: i32) -> (i32, i32) {
    %c0_i32 = arith.constant 0 : i32
    %c0_i32_0 = arith.constant 0 : i32
    return %arg0, %c0_i32 : i32, i32
  }
}

module attributes {stable_mosaic.version = 11 : i64} {
  func.func @_conv3_fc_kernel(%arg0: i32, %arg1: memref<2x9x9x64xbf16, #tpu.memory_space<vmem>>, %arg2: memref<9x64x64xbf16, #tpu.memory_space<vmem>>, %arg3: memref<1x64xf32, #tpu.memory_space<vmem>>, %arg4: memref<3136x512xbf16, #tpu.memory_space<vmem>>, %arg5: memref<1x512xf32, #tpu.memory_space<vmem>>, %arg6: memref<512x6xbf16, #tpu.memory_space<vmem>>, %arg7: memref<1x6xf32, #tpu.memory_space<vmem>>, %arg8: memref<2x6xf32, #tpu.memory_space<vmem>>, %arg9: memref<2x3136xbf16, #tpu.memory_space<vmem>>) attributes {dimension_semantics = [#tpu.dimension_semantics<parallel>], iteration_bounds = array<i64: 1>, scalar_prefetch = 0 : i64, scratch_operands = 1 : i64, tpu.core_type = #tpu.core_type<tc>, window_params = [{transform_indices = @transform_0, window_bounds = array<i64: 2, 9, 9, 64>}, {pipeline_mode = #tpu.pipeline_mode<synchronous>, transform_indices = @transform_1, window_bounds = array<i64: 9, 64, 64>}, {pipeline_mode = #tpu.pipeline_mode<synchronous>, transform_indices = @transform_2, window_bounds = array<i64: 1, 64>}, {pipeline_mode = #tpu.pipeline_mode<synchronous>, transform_indices = @transform_3, window_bounds = array<i64: 3136, 512>}, {pipeline_mode = #tpu.pipeline_mode<synchronous>, transform_indices = @transform_4, window_bounds = array<i64: 1, 512>}, {pipeline_mode = #tpu.pipeline_mode<synchronous>, transform_indices = @transform_5, window_bounds = array<i64: 512, 6>}, {pipeline_mode = #tpu.pipeline_mode<synchronous>, transform_indices = @transform_6, window_bounds = array<i64: 1, 6>}, {transform_indices = @transform_7, window_bounds = array<i64: 2, 6>}]} {
    %cst = arith.constant 0.000000e+00 : f32
    %0 = vector.broadcast %cst : f32 to vector<98x64xf32>
    %c0 = arith.constant 0 : index
    %c0_0 = arith.constant 0 : index
    %c0_1 = arith.constant 0 : index
    %c0_2 = arith.constant 0 : index
    %1 = vector.load %arg1[%c0, %c0_0, %c0_1, %c0_2] : memref<2x9x9x64xbf16, #tpu.memory_space<vmem>>, vector<2x7x7x64xbf16>
    %2 = vector.shape_cast %1 : vector<2x7x7x64xbf16> to vector<98x64xbf16>
    %c0_3 = arith.constant 0 : index
    %c0_4 = arith.constant 0 : index
    %c0_5 = arith.constant 0 : index
    %3 = vector.load %arg2[%c0_3, %c0_4, %c0_5] : memref<9x64x64xbf16, #tpu.memory_space<vmem>>, vector<1x64x64xbf16>
    %4 = vector.shape_cast %3 : vector<1x64x64xbf16> to vector<64x64xbf16>
    %cst_6 = arith.constant dense<0.000000e+00> : vector<98x64xf32>
    %5 = tpu.matmul %2, %4, %cst_6 {dimension_numbers = #tpu.dot_dimension_numbers<[1], [0], [0], [1], [0, 0, 1, 1], [], []>} : vector<98x64xbf16>, vector<64x64xbf16>, vector<98x64xf32> -> vector<98x64xf32>
    %6 = arith.addf %0, %5 : vector<98x64xf32>
    %c0_7 = arith.constant 0 : index
    %c0_8 = arith.constant 0 : index
    %c1 = arith.constant 1 : index
    %c0_9 = arith.constant 0 : index
    %7 = vector.load %arg1[%c0_7, %c0_8, %c1, %c0_9] : memref<2x9x9x64xbf16, #tpu.memory_space<vmem>>, vector<2x7x7x64xbf16>
    %8 = vector.shape_cast %7 : vector<2x7x7x64xbf16> to vector<98x64xbf16>
    %c1_10 = arith.constant 1 : index
    %c0_11 = arith.constant 0 : index
    %c0_12 = arith.constant 0 : index
    %9 = vector.load %arg2[%c1_10, %c0_11, %c0_12] : memref<9x64x64xbf16, #tpu.memory_space<vmem>>, vector<1x64x64xbf16>
    %10 = vector.shape_cast %9 : vector<1x64x64xbf16> to vector<64x64xbf16>
    %cst_13 = arith.constant dense<0.000000e+00> : vector<98x64xf32>
    %11 = tpu.matmul %8, %10, %cst_13 {dimension_numbers = #tpu.dot_dimension_numbers<[1], [0], [0], [1], [0, 0, 1, 1], [], []>} : vector<98x64xbf16>, vector<64x64xbf16>, vector<98x64xf32> -> vector<98x64xf32>
    %12 = arith.addf %6, %11 : vector<98x64xf32>
    %c0_14 = arith.constant 0 : index
    %c0_15 = arith.constant 0 : index
    %c2 = arith.constant 2 : index
    %c0_16 = arith.constant 0 : index
    %13 = vector.load %arg1[%c0_14, %c0_15, %c2, %c0_16] : memref<2x9x9x64xbf16, #tpu.memory_space<vmem>>, vector<2x7x7x64xbf16>
    %14 = vector.shape_cast %13 : vector<2x7x7x64xbf16> to vector<98x64xbf16>
    %c2_17 = arith.constant 2 : index
    %c0_18 = arith.constant 0 : index
    %c0_19 = arith.constant 0 : index
    %15 = vector.load %arg2[%c2_17, %c0_18, %c0_19] : memref<9x64x64xbf16, #tpu.memory_space<vmem>>, vector<1x64x64xbf16>
    %16 = vector.shape_cast %15 : vector<1x64x64xbf16> to vector<64x64xbf16>
    %cst_20 = arith.constant dense<0.000000e+00> : vector<98x64xf32>
    %17 = tpu.matmul %14, %16, %cst_20 {dimension_numbers = #tpu.dot_dimension_numbers<[1], [0], [0], [1], [0, 0, 1, 1], [], []>} : vector<98x64xbf16>, vector<64x64xbf16>, vector<98x64xf32> -> vector<98x64xf32>
    %18 = arith.addf %12, %17 : vector<98x64xf32>
    %c0_21 = arith.constant 0 : index
    %c1_22 = arith.constant 1 : index
    %c0_23 = arith.constant 0 : index
    %c0_24 = arith.constant 0 : index
    %19 = vector.load %arg1[%c0_21, %c1_22, %c0_23, %c0_24] : memref<2x9x9x64xbf16, #tpu.memory_space<vmem>>, vector<2x7x7x64xbf16>
    %20 = vector.shape_cast %19 : vector<2x7x7x64xbf16> to vector<98x64xbf16>
    %c3 = arith.constant 3 : index
    %c0_25 = arith.constant 0 : index
    %c0_26 = arith.constant 0 : index
    %21 = vector.load %arg2[%c3, %c0_25, %c0_26] : memref<9x64x64xbf16, #tpu.memory_space<vmem>>, vector<1x64x64xbf16>
    %22 = vector.shape_cast %21 : vector<1x64x64xbf16> to vector<64x64xbf16>
    %cst_27 = arith.constant dense<0.000000e+00> : vector<98x64xf32>
    %23 = tpu.matmul %20, %22, %cst_27 {dimension_numbers = #tpu.dot_dimension_numbers<[1], [0], [0], [1], [0, 0, 1, 1], [], []>} : vector<98x64xbf16>, vector<64x64xbf16>, vector<98x64xf32> -> vector<98x64xf32>
    %24 = arith.addf %18, %23 : vector<98x64xf32>
    %c0_28 = arith.constant 0 : index
    %c1_29 = arith.constant 1 : index
    %c1_30 = arith.constant 1 : index
    %c0_31 = arith.constant 0 : index
    %25 = vector.load %arg1[%c0_28, %c1_29, %c1_30, %c0_31] : memref<2x9x9x64xbf16, #tpu.memory_space<vmem>>, vector<2x7x7x64xbf16>
    %26 = vector.shape_cast %25 : vector<2x7x7x64xbf16> to vector<98x64xbf16>
    %c4 = arith.constant 4 : index
    %c0_32 = arith.constant 0 : index
    %c0_33 = arith.constant 0 : index
    %27 = vector.load %arg2[%c4, %c0_32, %c0_33] : memref<9x64x64xbf16, #tpu.memory_space<vmem>>, vector<1x64x64xbf16>
    %28 = vector.shape_cast %27 : vector<1x64x64xbf16> to vector<64x64xbf16>
    %cst_34 = arith.constant dense<0.000000e+00> : vector<98x64xf32>
    %29 = tpu.matmul %26, %28, %cst_34 {dimension_numbers = #tpu.dot_dimension_numbers<[1], [0], [0], [1], [0, 0, 1, 1], [], []>} : vector<98x64xbf16>, vector<64x64xbf16>, vector<98x64xf32> -> vector<98x64xf32>
    %30 = arith.addf %24, %29 : vector<98x64xf32>
    %c0_35 = arith.constant 0 : index
    %c1_36 = arith.constant 1 : index
    %c2_37 = arith.constant 2 : index
    %c0_38 = arith.constant 0 : index
    %31 = vector.load %arg1[%c0_35, %c1_36, %c2_37, %c0_38] : memref<2x9x9x64xbf16, #tpu.memory_space<vmem>>, vector<2x7x7x64xbf16>
    %32 = vector.shape_cast %31 : vector<2x7x7x64xbf16> to vector<98x64xbf16>
    %c5 = arith.constant 5 : index
    %c0_39 = arith.constant 0 : index
    %c0_40 = arith.constant 0 : index
    %33 = vector.load %arg2[%c5, %c0_39, %c0_40] : memref<9x64x64xbf16, #tpu.memory_space<vmem>>, vector<1x64x64xbf16>
    %34 = vector.shape_cast %33 : vector<1x64x64xbf16> to vector<64x64xbf16>
    %cst_41 = arith.constant dense<0.000000e+00> : vector<98x64xf32>
    %35 = tpu.matmul %32, %34, %cst_41 {dimension_numbers = #tpu.dot_dimension_numbers<[1], [0], [0], [1], [0, 0, 1, 1], [], []>} : vector<98x64xbf16>, vector<64x64xbf16>, vector<98x64xf32> -> vector<98x64xf32>
    %36 = arith.addf %30, %35 : vector<98x64xf32>
    %c0_42 = arith.constant 0 : index
    %c2_43 = arith.constant 2 : index
    %c0_44 = arith.constant 0 : index
    %c0_45 = arith.constant 0 : index
    %37 = vector.load %arg1[%c0_42, %c2_43, %c0_44, %c0_45] : memref<2x9x9x64xbf16, #tpu.memory_space<vmem>>, vector<2x7x7x64xbf16>
    %38 = vector.shape_cast %37 : vector<2x7x7x64xbf16> to vector<98x64xbf16>
    %c6 = arith.constant 6 : index
    %c0_46 = arith.constant 0 : index
    %c0_47 = arith.constant 0 : index
    %39 = vector.load %arg2[%c6, %c0_46, %c0_47] : memref<9x64x64xbf16, #tpu.memory_space<vmem>>, vector<1x64x64xbf16>
    %40 = vector.shape_cast %39 : vector<1x64x64xbf16> to vector<64x64xbf16>
    %cst_48 = arith.constant dense<0.000000e+00> : vector<98x64xf32>
    %41 = tpu.matmul %38, %40, %cst_48 {dimension_numbers = #tpu.dot_dimension_numbers<[1], [0], [0], [1], [0, 0, 1, 1], [], []>} : vector<98x64xbf16>, vector<64x64xbf16>, vector<98x64xf32> -> vector<98x64xf32>
    %42 = arith.addf %36, %41 : vector<98x64xf32>
    %c0_49 = arith.constant 0 : index
    %c2_50 = arith.constant 2 : index
    %c1_51 = arith.constant 1 : index
    %c0_52 = arith.constant 0 : index
    %43 = vector.load %arg1[%c0_49, %c2_50, %c1_51, %c0_52] : memref<2x9x9x64xbf16, #tpu.memory_space<vmem>>, vector<2x7x7x64xbf16>
    %44 = vector.shape_cast %43 : vector<2x7x7x64xbf16> to vector<98x64xbf16>
    %c7 = arith.constant 7 : index
    %c0_53 = arith.constant 0 : index
    %c0_54 = arith.constant 0 : index
    %45 = vector.load %arg2[%c7, %c0_53, %c0_54] : memref<9x64x64xbf16, #tpu.memory_space<vmem>>, vector<1x64x64xbf16>
    %46 = vector.shape_cast %45 : vector<1x64x64xbf16> to vector<64x64xbf16>
    %cst_55 = arith.constant dense<0.000000e+00> : vector<98x64xf32>
    %47 = tpu.matmul %44, %46, %cst_55 {dimension_numbers = #tpu.dot_dimension_numbers<[1], [0], [0], [1], [0, 0, 1, 1], [], []>} : vector<98x64xbf16>, vector<64x64xbf16>, vector<98x64xf32> -> vector<98x64xf32>
    %48 = arith.addf %42, %47 : vector<98x64xf32>
    %c0_56 = arith.constant 0 : index
    %c2_57 = arith.constant 2 : index
    %c2_58 = arith.constant 2 : index
    %c0_59 = arith.constant 0 : index
    %49 = vector.load %arg1[%c0_56, %c2_57, %c2_58, %c0_59] : memref<2x9x9x64xbf16, #tpu.memory_space<vmem>>, vector<2x7x7x64xbf16>
    %50 = vector.shape_cast %49 : vector<2x7x7x64xbf16> to vector<98x64xbf16>
    %c8 = arith.constant 8 : index
    %c0_60 = arith.constant 0 : index
    %c0_61 = arith.constant 0 : index
    %51 = vector.load %arg2[%c8, %c0_60, %c0_61] : memref<9x64x64xbf16, #tpu.memory_space<vmem>>, vector<1x64x64xbf16>
    %52 = vector.shape_cast %51 : vector<1x64x64xbf16> to vector<64x64xbf16>
    %cst_62 = arith.constant dense<0.000000e+00> : vector<98x64xf32>
    %53 = tpu.matmul %50, %52, %cst_62 {dimension_numbers = #tpu.dot_dimension_numbers<[1], [0], [0], [1], [0, 0, 1, 1], [], []>} : vector<98x64xbf16>, vector<64x64xbf16>, vector<98x64xf32> -> vector<98x64xf32>
    %54 = arith.addf %48, %53 : vector<98x64xf32>
    %c0_63 = arith.constant 0 : index
    %c0_64 = arith.constant 0 : index
    %55 = vector.load %arg3[%c0_63, %c0_64] : memref<1x64xf32, #tpu.memory_space<vmem>>, vector<1x64xf32>
    %56 = vector.broadcast %55 : vector<1x64xf32> to vector<98x64xf32>
    %57 = arith.addf %54, %56 : vector<98x64xf32>
    %cst_65 = arith.constant 0.000000e+00 : f32
    %58 = vector.broadcast %cst_65 : f32 to vector<98x64xf32>
    %59 = arith.maximumf %57, %58 : vector<98x64xf32>
    %60 = arith.truncf %59 : vector<98x64xf32> to vector<98x64xbf16>
    %61 = vector.shape_cast %60 : vector<98x64xbf16> to vector<2x49x64xbf16>
    %62 = vector.extract_strided_slice %61 {offsets = [0, 0, 0], sizes = [2, 1, 64], strides = [1, 1, 1]} : vector<2x49x64xbf16> to vector<2x1x64xbf16>
    %63 = vector.shape_cast %62 : vector<2x1x64xbf16> to vector<2x64xbf16>
    %c0_66 = arith.constant 0 : index
    %c0_67 = arith.constant 0 : index
    %64 = vector.load %arg9[%c0_66, %c0_67] : memref<2x3136xbf16, #tpu.memory_space<vmem>>, vector<2x64xbf16>
    tpu.vector_store %arg9[%c0_66, %c0_67], %63 {strides = array<i32>} : memref<2x3136xbf16, #tpu.memory_space<vmem>>, vector<2x64xbf16>,
    %65 = vector.extract_strided_slice %61 {offsets = [0, 1, 0], sizes = [2, 1, 64], strides = [1, 1, 1]} : vector<2x49x64xbf16> to vector<2x1x64xbf16>
    %66 = vector.shape_cast %65 : vector<2x1x64xbf16> to vector<2x64xbf16>
    %c0_68 = arith.constant 0 : index
    %c64 = arith.constant 64 : index
    %67 = vector.load %arg9[%c0_68, %c64] : memref<2x3136xbf16, #tpu.memory_space<vmem>>, vector<2x64xbf16>
    tpu.vector_store %arg9[%c0_68, %c64], %66 {strides = array<i32>} : memref<2x3136xbf16, #tpu.memory_space<vmem>>, vector<2x64xbf16>,
    %68 = vector.extract_strided_slice %61 {offsets = [0, 2, 0], sizes = [2, 1, 64], strides = [1, 1, 1]} : vector<2x49x64xbf16> to vector<2x1x64xbf16>
    %69 = vector.shape_cast %68 : vector<2x1x64xbf16> to vector<2x64xbf16>
    %c0_69 = arith.constant 0 : index
    %c128 = arith.constant 128 : index
    %70 = vector.load %arg9[%c0_69, %c128] : memref<2x3136xbf16, #tpu.memory_space<vmem>>, vector<2x64xbf16>
    tpu.vector_store %arg9[%c0_69, %c128], %69 {strides = array<i32>} : memref<2x3136xbf16, #tpu.memory_space<vmem>>, vector<2x64xbf16>,
    %71 = vector.extract_strided_slice %61 {offsets = [0, 3, 0], sizes = [2, 1, 64], strides = [1, 1, 1]} : vector<2x49x64xbf16> to vector<2x1x64xbf16>
    %72 = vector.shape_cast %71 : vector<2x1x64xbf16> to vector<2x64xbf16>
    %c0_70 = arith.constant 0 : index
    %c192 = arith.constant 192 : index
    %73 = vector.load %arg9[%c0_70, %c192] : memref<2x3136xbf16, #tpu.memory_space<vmem>>, vector<2x64xbf16>
    tpu.vector_store %arg9[%c0_70, %c192], %72 {strides = array<i32>} : memref<2x3136xbf16, #tpu.memory_space<vmem>>, vector<2x64xbf16>,
    %74 = vector.extract_strided_slice %61 {offsets = [0, 4, 0], sizes = [2, 1, 64], strides = [1, 1, 1]} : vector<2x49x64xbf16> to vector<2x1x64xbf16>
    %75 = vector.shape_cast %74 : vector<2x1x64xbf16> to vector<2x64xbf16>
    %c0_71 = arith.constant 0 : index
    %c256 = arith.constant 256 : index
    %76 = vector.load %arg9[%c0_71, %c256] : memref<2x3136xbf16, #tpu.memory_space<vmem>>, vector<2x64xbf16>
    tpu.vector_store %arg9[%c0_71, %c256], %75 {strides = array<i32>} : memref<2x3136xbf16, #tpu.memory_space<vmem>>, vector<2x64xbf16>,
    %77 = vector.extract_strided_slice %61 {offsets = [0, 5, 0], sizes = [2, 1, 64], strides = [1, 1, 1]} : vector<2x49x64xbf16> to vector<2x1x64xbf16>
    %78 = vector.shape_cast %77 : vector<2x1x64xbf16> to vector<2x64xbf16>
    %c0_72 = arith.constant 0 : index
    %c320 = arith.constant 320 : index
    %79 = vector.load %arg9[%c0_72, %c320] : memref<2x3136xbf16, #tpu.memory_space<vmem>>, vector<2x64xbf16>
    tpu.vector_store %arg9[%c0_72, %c320], %78 {strides = array<i32>} : memref<2x3136xbf16, #tpu.memory_space<vmem>>, vector<2x64xbf16>,
    %80 = vector.extract_strided_slice %61 {offsets = [0, 6, 0], sizes = [2, 1, 64], strides = [1, 1, 1]} : vector<2x49x64xbf16> to vector<2x1x64xbf16>
    %81 = vector.shape_cast %80 : vector<2x1x64xbf16> to vector<2x64xbf16>
    %c0_73 = arith.constant 0 : index
    %c384 = arith.constant 384 : index
    %82 = vector.load %arg9[%c0_73, %c384] : memref<2x3136xbf16, #tpu.memory_space<vmem>>, vector<2x64xbf16>
    tpu.vector_store %arg9[%c0_73, %c384], %81 {strides = array<i32>} : memref<2x3136xbf16, #tpu.memory_space<vmem>>, vector<2x64xbf16>,
    %83 = vector.extract_strided_slice %61 {offsets = [0, 7, 0], sizes = [2, 1, 64], strides = [1, 1, 1]} : vector<2x49x64xbf16> to vector<2x1x64xbf16>
    %84 = vector.shape_cast %83 : vector<2x1x64xbf16> to vector<2x64xbf16>
    %c0_74 = arith.constant 0 : index
    %c448 = arith.constant 448 : index
    %85 = vector.load %arg9[%c0_74, %c448] : memref<2x3136xbf16, #tpu.memory_space<vmem>>, vector<2x64xbf16>
    tpu.vector_store %arg9[%c0_74, %c448], %84 {strides = array<i32>} : memref<2x3136xbf16, #tpu.memory_space<vmem>>, vector<2x64xbf16>,
    %86 = vector.extract_strided_slice %61 {offsets = [0, 8, 0], sizes = [2, 1, 64], strides = [1, 1, 1]} : vector<2x49x64xbf16> to vector<2x1x64xbf16>
    %87 = vector.shape_cast %86 : vector<2x1x64xbf16> to vector<2x64xbf16>
    %c0_75 = arith.constant 0 : index
    %c512 = arith.constant 512 : index
    %88 = vector.load %arg9[%c0_75, %c512] : memref<2x3136xbf16, #tpu.memory_space<vmem>>, vector<2x64xbf16>
    tpu.vector_store %arg9[%c0_75, %c512], %87 {strides = array<i32>} : memref<2x3136xbf16, #tpu.memory_space<vmem>>, vector<2x64xbf16>,
    %89 = vector.extract_strided_slice %61 {offsets = [0, 9, 0], sizes = [2, 1, 64], strides = [1, 1, 1]} : vector<2x49x64xbf16> to vector<2x1x64xbf16>
    %90 = vector.shape_cast %89 : vector<2x1x64xbf16> to vector<2x64xbf16>
    %c0_76 = arith.constant 0 : index
    %c576 = arith.constant 576 : index
    %91 = vector.load %arg9[%c0_76, %c576] : memref<2x3136xbf16, #tpu.memory_space<vmem>>, vector<2x64xbf16>
    tpu.vector_store %arg9[%c0_76, %c576], %90 {strides = array<i32>} : memref<2x3136xbf16, #tpu.memory_space<vmem>>, vector<2x64xbf16>,
    %92 = vector.extract_strided_slice %61 {offsets = [0, 10, 0], sizes = [2, 1, 64], strides = [1, 1, 1]} : vector<2x49x64xbf16> to vector<2x1x64xbf16>
    %93 = vector.shape_cast %92 : vector<2x1x64xbf16> to vector<2x64xbf16>
    %c0_77 = arith.constant 0 : index
    %c640 = arith.constant 640 : index
    %94 = vector.load %arg9[%c0_77, %c640] : memref<2x3136xbf16, #tpu.memory_space<vmem>>, vector<2x64xbf16>
    tpu.vector_store %arg9[%c0_77, %c640], %93 {strides = array<i32>} : memref<2x3136xbf16, #tpu.memory_space<vmem>>, vector<2x64xbf16>,
    %95 = vector.extract_strided_slice %61 {offsets = [0, 11, 0], sizes = [2, 1, 64], strides = [1, 1, 1]} : vector<2x49x64xbf16> to vector<2x1x64xbf16>
    %96 = vector.shape_cast %95 : vector<2x1x64xbf16> to vector<2x64xbf16>
    %c0_78 = arith.constant 0 : index
    %c704 = arith.constant 704 : index
    %97 = vector.load %arg9[%c0_78, %c704] : memref<2x3136xbf16, #tpu.memory_space<vmem>>, vector<2x64xbf16>
    tpu.vector_store %arg9[%c0_78, %c704], %96 {strides = array<i32>} : memref<2x3136xbf16, #tpu.memory_space<vmem>>, vector<2x64xbf16>,
    %98 = vector.extract_strided_slice %61 {offsets = [0, 12, 0], sizes = [2, 1, 64], strides = [1, 1, 1]} : vector<2x49x64xbf16> to vector<2x1x64xbf16>
    %99 = vector.shape_cast %98 : vector<2x1x64xbf16> to vector<2x64xbf16>
    %c0_79 = arith.constant 0 : index
    %c768 = arith.constant 768 : index
    %100 = vector.load %arg9[%c0_79, %c768] : memref<2x3136xbf16, #tpu.memory_space<vmem>>, vector<2x64xbf16>
    tpu.vector_store %arg9[%c0_79, %c768], %99 {strides = array<i32>} : memref<2x3136xbf16, #tpu.memory_space<vmem>>, vector<2x64xbf16>,
    %101 = vector.extract_strided_slice %61 {offsets = [0, 13, 0], sizes = [2, 1, 64], strides = [1, 1, 1]} : vector<2x49x64xbf16> to vector<2x1x64xbf16>
    %102 = vector.shape_cast %101 : vector<2x1x64xbf16> to vector<2x64xbf16>
    %c0_80 = arith.constant 0 : index
    %c832 = arith.constant 832 : index
    %103 = vector.load %arg9[%c0_80, %c832] : memref<2x3136xbf16, #tpu.memory_space<vmem>>, vector<2x64xbf16>
    tpu.vector_store %arg9[%c0_80, %c832], %102 {strides = array<i32>} : memref<2x3136xbf16, #tpu.memory_space<vmem>>, vector<2x64xbf16>,
    %104 = vector.extract_strided_slice %61 {offsets = [0, 14, 0], sizes = [2, 1, 64], strides = [1, 1, 1]} : vector<2x49x64xbf16> to vector<2x1x64xbf16>
    %105 = vector.shape_cast %104 : vector<2x1x64xbf16> to vector<2x64xbf16>
    %c0_81 = arith.constant 0 : index
    %c896 = arith.constant 896 : index
    %106 = vector.load %arg9[%c0_81, %c896] : memref<2x3136xbf16, #tpu.memory_space<vmem>>, vector<2x64xbf16>
    tpu.vector_store %arg9[%c0_81, %c896], %105 {strides = array<i32>} : memref<2x3136xbf16, #tpu.memory_space<vmem>>, vector<2x64xbf16>,
    %107 = vector.extract_strided_slice %61 {offsets = [0, 15, 0], sizes = [2, 1, 64], strides = [1, 1, 1]} : vector<2x49x64xbf16> to vector<2x1x64xbf16>
    %108 = vector.shape_cast %107 : vector<2x1x64xbf16> to vector<2x64xbf16>
    %c0_82 = arith.constant 0 : index
    %c960 = arith.constant 960 : index
    %109 = vector.load %arg9[%c0_82, %c960] : memref<2x3136xbf16, #tpu.memory_space<vmem>>, vector<2x64xbf16>
    tpu.vector_store %arg9[%c0_82, %c960], %108 {strides = array<i32>} : memref<2x3136xbf16, #tpu.memory_space<vmem>>, vector<2x64xbf16>,
    %110 = vector.extract_strided_slice %61 {offsets = [0, 16, 0], sizes = [2, 1, 64], strides = [1, 1, 1]} : vector<2x49x64xbf16> to vector<2x1x64xbf16>
    %111 = vector.shape_cast %110 : vector<2x1x64xbf16> to vector<2x64xbf16>
    %c0_83 = arith.constant 0 : index
    %c1024 = arith.constant 1024 : index
    %112 = vector.load %arg9[%c0_83, %c1024] : memref<2x3136xbf16, #tpu.memory_space<vmem>>, vector<2x64xbf16>
    tpu.vector_store %arg9[%c0_83, %c1024], %111 {strides = array<i32>} : memref<2x3136xbf16, #tpu.memory_space<vmem>>, vector<2x64xbf16>,
    %113 = vector.extract_strided_slice %61 {offsets = [0, 17, 0], sizes = [2, 1, 64], strides = [1, 1, 1]} : vector<2x49x64xbf16> to vector<2x1x64xbf16>
    %114 = vector.shape_cast %113 : vector<2x1x64xbf16> to vector<2x64xbf16>
    %c0_84 = arith.constant 0 : index
    %c1088 = arith.constant 1088 : index
    %115 = vector.load %arg9[%c0_84, %c1088] : memref<2x3136xbf16, #tpu.memory_space<vmem>>, vector<2x64xbf16>
    tpu.vector_store %arg9[%c0_84, %c1088], %114 {strides = array<i32>} : memref<2x3136xbf16, #tpu.memory_space<vmem>>, vector<2x64xbf16>,
    %116 = vector.extract_strided_slice %61 {offsets = [0, 18, 0], sizes = [2, 1, 64], strides = [1, 1, 1]} : vector<2x49x64xbf16> to vector<2x1x64xbf16>
    %117 = vector.shape_cast %116 : vector<2x1x64xbf16> to vector<2x64xbf16>
    %c0_85 = arith.constant 0 : index
    %c1152 = arith.constant 1152 : index
    %118 = vector.load %arg9[%c0_85, %c1152] : memref<2x3136xbf16, #tpu.memory_space<vmem>>, vector<2x64xbf16>
    tpu.vector_store %arg9[%c0_85, %c1152], %117 {strides = array<i32>} : memref<2x3136xbf16, #tpu.memory_space<vmem>>, vector<2x64xbf16>,
    %119 = vector.extract_strided_slice %61 {offsets = [0, 19, 0], sizes = [2, 1, 64], strides = [1, 1, 1]} : vector<2x49x64xbf16> to vector<2x1x64xbf16>
    %120 = vector.shape_cast %119 : vector<2x1x64xbf16> to vector<2x64xbf16>
    %c0_86 = arith.constant 0 : index
    %c1216 = arith.constant 1216 : index
    %121 = vector.load %arg9[%c0_86, %c1216] : memref<2x3136xbf16, #tpu.memory_space<vmem>>, vector<2x64xbf16>
    tpu.vector_store %arg9[%c0_86, %c1216], %120 {strides = array<i32>} : memref<2x3136xbf16, #tpu.memory_space<vmem>>, vector<2x64xbf16>,
    %122 = vector.extract_strided_slice %61 {offsets = [0, 20, 0], sizes = [2, 1, 64], strides = [1, 1, 1]} : vector<2x49x64xbf16> to vector<2x1x64xbf16>
    %123 = vector.shape_cast %122 : vector<2x1x64xbf16> to vector<2x64xbf16>
    %c0_87 = arith.constant 0 : index
    %c1280 = arith.constant 1280 : index
    %124 = vector.load %arg9[%c0_87, %c1280] : memref<2x3136xbf16, #tpu.memory_space<vmem>>, vector<2x64xbf16>
    tpu.vector_store %arg9[%c0_87, %c1280], %123 {strides = array<i32>} : memref<2x3136xbf16, #tpu.memory_space<vmem>>, vector<2x64xbf16>,
    %125 = vector.extract_strided_slice %61 {offsets = [0, 21, 0], sizes = [2, 1, 64], strides = [1, 1, 1]} : vector<2x49x64xbf16> to vector<2x1x64xbf16>
    %126 = vector.shape_cast %125 : vector<2x1x64xbf16> to vector<2x64xbf16>
    %c0_88 = arith.constant 0 : index
    %c1344 = arith.constant 1344 : index
    %127 = vector.load %arg9[%c0_88, %c1344] : memref<2x3136xbf16, #tpu.memory_space<vmem>>, vector<2x64xbf16>
    tpu.vector_store %arg9[%c0_88, %c1344], %126 {strides = array<i32>} : memref<2x3136xbf16, #tpu.memory_space<vmem>>, vector<2x64xbf16>,
    %128 = vector.extract_strided_slice %61 {offsets = [0, 22, 0], sizes = [2, 1, 64], strides = [1, 1, 1]} : vector<2x49x64xbf16> to vector<2x1x64xbf16>
    %129 = vector.shape_cast %128 : vector<2x1x64xbf16> to vector<2x64xbf16>
    %c0_89 = arith.constant 0 : index
    %c1408 = arith.constant 1408 : index
    %130 = vector.load %arg9[%c0_89, %c1408] : memref<2x3136xbf16, #tpu.memory_space<vmem>>, vector<2x64xbf16>
    tpu.vector_store %arg9[%c0_89, %c1408], %129 {strides = array<i32>} : memref<2x3136xbf16, #tpu.memory_space<vmem>>, vector<2x64xbf16>,
    %131 = vector.extract_strided_slice %61 {offsets = [0, 23, 0], sizes = [2, 1, 64], strides = [1, 1, 1]} : vector<2x49x64xbf16> to vector<2x1x64xbf16>
    %132 = vector.shape_cast %131 : vector<2x1x64xbf16> to vector<2x64xbf16>
    %c0_90 = arith.constant 0 : index
    %c1472 = arith.constant 1472 : index
    %133 = vector.load %arg9[%c0_90, %c1472] : memref<2x3136xbf16, #tpu.memory_space<vmem>>, vector<2x64xbf16>
    tpu.vector_store %arg9[%c0_90, %c1472], %132 {strides = array<i32>} : memref<2x3136xbf16, #tpu.memory_space<vmem>>, vector<2x64xbf16>,
    %134 = vector.extract_strided_slice %61 {offsets = [0, 24, 0], sizes = [2, 1, 64], strides = [1, 1, 1]} : vector<2x49x64xbf16> to vector<2x1x64xbf16>
    %135 = vector.shape_cast %134 : vector<2x1x64xbf16> to vector<2x64xbf16>
    %c0_91 = arith.constant 0 : index
    %c1536 = arith.constant 1536 : index
    %136 = vector.load %arg9[%c0_91, %c1536] : memref<2x3136xbf16, #tpu.memory_space<vmem>>, vector<2x64xbf16>
    tpu.vector_store %arg9[%c0_91, %c1536], %135 {strides = array<i32>} : memref<2x3136xbf16, #tpu.memory_space<vmem>>, vector<2x64xbf16>,
    %137 = vector.extract_strided_slice %61 {offsets = [0, 25, 0], sizes = [2, 1, 64], strides = [1, 1, 1]} : vector<2x49x64xbf16> to vector<2x1x64xbf16>
    %138 = vector.shape_cast %137 : vector<2x1x64xbf16> to vector<2x64xbf16>
    %c0_92 = arith.constant 0 : index
    %c1600 = arith.constant 1600 : index
    %139 = vector.load %arg9[%c0_92, %c1600] : memref<2x3136xbf16, #tpu.memory_space<vmem>>, vector<2x64xbf16>
    tpu.vector_store %arg9[%c0_92, %c1600], %138 {strides = array<i32>} : memref<2x3136xbf16, #tpu.memory_space<vmem>>, vector<2x64xbf16>,
    %140 = vector.extract_strided_slice %61 {offsets = [0, 26, 0], sizes = [2, 1, 64], strides = [1, 1, 1]} : vector<2x49x64xbf16> to vector<2x1x64xbf16>
    %141 = vector.shape_cast %140 : vector<2x1x64xbf16> to vector<2x64xbf16>
    %c0_93 = arith.constant 0 : index
    %c1664 = arith.constant 1664 : index
    %142 = vector.load %arg9[%c0_93, %c1664] : memref<2x3136xbf16, #tpu.memory_space<vmem>>, vector<2x64xbf16>
    tpu.vector_store %arg9[%c0_93, %c1664], %141 {strides = array<i32>} : memref<2x3136xbf16, #tpu.memory_space<vmem>>, vector<2x64xbf16>,
    %143 = vector.extract_strided_slice %61 {offsets = [0, 27, 0], sizes = [2, 1, 64], strides = [1, 1, 1]} : vector<2x49x64xbf16> to vector<2x1x64xbf16>
    %144 = vector.shape_cast %143 : vector<2x1x64xbf16> to vector<2x64xbf16>
    %c0_94 = arith.constant 0 : index
    %c1728 = arith.constant 1728 : index
    %145 = vector.load %arg9[%c0_94, %c1728] : memref<2x3136xbf16, #tpu.memory_space<vmem>>, vector<2x64xbf16>
    tpu.vector_store %arg9[%c0_94, %c1728], %144 {strides = array<i32>} : memref<2x3136xbf16, #tpu.memory_space<vmem>>, vector<2x64xbf16>,
    %146 = vector.extract_strided_slice %61 {offsets = [0, 28, 0], sizes = [2, 1, 64], strides = [1, 1, 1]} : vector<2x49x64xbf16> to vector<2x1x64xbf16>
    %147 = vector.shape_cast %146 : vector<2x1x64xbf16> to vector<2x64xbf16>
    %c0_95 = arith.constant 0 : index
    %c1792 = arith.constant 1792 : index
    %148 = vector.load %arg9[%c0_95, %c1792] : memref<2x3136xbf16, #tpu.memory_space<vmem>>, vector<2x64xbf16>
    tpu.vector_store %arg9[%c0_95, %c1792], %147 {strides = array<i32>} : memref<2x3136xbf16, #tpu.memory_space<vmem>>, vector<2x64xbf16>,
    %149 = vector.extract_strided_slice %61 {offsets = [0, 29, 0], sizes = [2, 1, 64], strides = [1, 1, 1]} : vector<2x49x64xbf16> to vector<2x1x64xbf16>
    %150 = vector.shape_cast %149 : vector<2x1x64xbf16> to vector<2x64xbf16>
    %c0_96 = arith.constant 0 : index
    %c1856 = arith.constant 1856 : index
    %151 = vector.load %arg9[%c0_96, %c1856] : memref<2x3136xbf16, #tpu.memory_space<vmem>>, vector<2x64xbf16>
    tpu.vector_store %arg9[%c0_96, %c1856], %150 {strides = array<i32>} : memref<2x3136xbf16, #tpu.memory_space<vmem>>, vector<2x64xbf16>,
    %152 = vector.extract_strided_slice %61 {offsets = [0, 30, 0], sizes = [2, 1, 64], strides = [1, 1, 1]} : vector<2x49x64xbf16> to vector<2x1x64xbf16>
    %153 = vector.shape_cast %152 : vector<2x1x64xbf16> to vector<2x64xbf16>
    %c0_97 = arith.constant 0 : index
    %c1920 = arith.constant 1920 : index
    %154 = vector.load %arg9[%c0_97, %c1920] : memref<2x3136xbf16, #tpu.memory_space<vmem>>, vector<2x64xbf16>
    tpu.vector_store %arg9[%c0_97, %c1920], %153 {strides = array<i32>} : memref<2x3136xbf16, #tpu.memory_space<vmem>>, vector<2x64xbf16>,
    %155 = vector.extract_strided_slice %61 {offsets = [0, 31, 0], sizes = [2, 1, 64], strides = [1, 1, 1]} : vector<2x49x64xbf16> to vector<2x1x64xbf16>
    %156 = vector.shape_cast %155 : vector<2x1x64xbf16> to vector<2x64xbf16>
    %c0_98 = arith.constant 0 : index
    %c1984 = arith.constant 1984 : index
    %157 = vector.load %arg9[%c0_98, %c1984] : memref<2x3136xbf16, #tpu.memory_space<vmem>>, vector<2x64xbf16>
    tpu.vector_store %arg9[%c0_98, %c1984], %156 {strides = array<i32>} : memref<2x3136xbf16, #tpu.memory_space<vmem>>, vector<2x64xbf16>,
    %158 = vector.extract_strided_slice %61 {offsets = [0, 32, 0], sizes = [2, 1, 64], strides = [1, 1, 1]} : vector<2x49x64xbf16> to vector<2x1x64xbf16>
    %159 = vector.shape_cast %158 : vector<2x1x64xbf16> to vector<2x64xbf16>
    %c0_99 = arith.constant 0 : index
    %c2048 = arith.constant 2048 : index
    %160 = vector.load %arg9[%c0_99, %c2048] : memref<2x3136xbf16, #tpu.memory_space<vmem>>, vector<2x64xbf16>
    tpu.vector_store %arg9[%c0_99, %c2048], %159 {strides = array<i32>} : memref<2x3136xbf16, #tpu.memory_space<vmem>>, vector<2x64xbf16>,
    %161 = vector.extract_strided_slice %61 {offsets = [0, 33, 0], sizes = [2, 1, 64], strides = [1, 1, 1]} : vector<2x49x64xbf16> to vector<2x1x64xbf16>
    %162 = vector.shape_cast %161 : vector<2x1x64xbf16> to vector<2x64xbf16>
    %c0_100 = arith.constant 0 : index
    %c2112 = arith.constant 2112 : index
    %163 = vector.load %arg9[%c0_100, %c2112] : memref<2x3136xbf16, #tpu.memory_space<vmem>>, vector<2x64xbf16>
    tpu.vector_store %arg9[%c0_100, %c2112], %162 {strides = array<i32>} : memref<2x3136xbf16, #tpu.memory_space<vmem>>, vector<2x64xbf16>,
    %164 = vector.extract_strided_slice %61 {offsets = [0, 34, 0], sizes = [2, 1, 64], strides = [1, 1, 1]} : vector<2x49x64xbf16> to vector<2x1x64xbf16>
    %165 = vector.shape_cast %164 : vector<2x1x64xbf16> to vector<2x64xbf16>
    %c0_101 = arith.constant 0 : index
    %c2176 = arith.constant 2176 : index
    %166 = vector.load %arg9[%c0_101, %c2176] : memref<2x3136xbf16, #tpu.memory_space<vmem>>, vector<2x64xbf16>
    tpu.vector_store %arg9[%c0_101, %c2176], %165 {strides = array<i32>} : memref<2x3136xbf16, #tpu.memory_space<vmem>>, vector<2x64xbf16>,
    %167 = vector.extract_strided_slice %61 {offsets = [0, 35, 0], sizes = [2, 1, 64], strides = [1, 1, 1]} : vector<2x49x64xbf16> to vector<2x1x64xbf16>
    %168 = vector.shape_cast %167 : vector<2x1x64xbf16> to vector<2x64xbf16>
    %c0_102 = arith.constant 0 : index
    %c2240 = arith.constant 2240 : index
    %169 = vector.load %arg9[%c0_102, %c2240] : memref<2x3136xbf16, #tpu.memory_space<vmem>>, vector<2x64xbf16>
    tpu.vector_store %arg9[%c0_102, %c2240], %168 {strides = array<i32>} : memref<2x3136xbf16, #tpu.memory_space<vmem>>, vector<2x64xbf16>,
    %170 = vector.extract_strided_slice %61 {offsets = [0, 36, 0], sizes = [2, 1, 64], strides = [1, 1, 1]} : vector<2x49x64xbf16> to vector<2x1x64xbf16>
    %171 = vector.shape_cast %170 : vector<2x1x64xbf16> to vector<2x64xbf16>
    %c0_103 = arith.constant 0 : index
    %c2304 = arith.constant 2304 : index
    %172 = vector.load %arg9[%c0_103, %c2304] : memref<2x3136xbf16, #tpu.memory_space<vmem>>, vector<2x64xbf16>
    tpu.vector_store %arg9[%c0_103, %c2304], %171 {strides = array<i32>} : memref<2x3136xbf16, #tpu.memory_space<vmem>>, vector<2x64xbf16>,
    %173 = vector.extract_strided_slice %61 {offsets = [0, 37, 0], sizes = [2, 1, 64], strides = [1, 1, 1]} : vector<2x49x64xbf16> to vector<2x1x64xbf16>
    %174 = vector.shape_cast %173 : vector<2x1x64xbf16> to vector<2x64xbf16>
    %c0_104 = arith.constant 0 : index
    %c2368 = arith.constant 2368 : index
    %175 = vector.load %arg9[%c0_104, %c2368] : memref<2x3136xbf16, #tpu.memory_space<vmem>>, vector<2x64xbf16>
    tpu.vector_store %arg9[%c0_104, %c2368], %174 {strides = array<i32>} : memref<2x3136xbf16, #tpu.memory_space<vmem>>, vector<2x64xbf16>,
    %176 = vector.extract_strided_slice %61 {offsets = [0, 38, 0], sizes = [2, 1, 64], strides = [1, 1, 1]} : vector<2x49x64xbf16> to vector<2x1x64xbf16>
    %177 = vector.shape_cast %176 : vector<2x1x64xbf16> to vector<2x64xbf16>
    %c0_105 = arith.constant 0 : index
    %c2432 = arith.constant 2432 : index
    %178 = vector.load %arg9[%c0_105, %c2432] : memref<2x3136xbf16, #tpu.memory_space<vmem>>, vector<2x64xbf16>
    tpu.vector_store %arg9[%c0_105, %c2432], %177 {strides = array<i32>} : memref<2x3136xbf16, #tpu.memory_space<vmem>>, vector<2x64xbf16>,
    %179 = vector.extract_strided_slice %61 {offsets = [0, 39, 0], sizes = [2, 1, 64], strides = [1, 1, 1]} : vector<2x49x64xbf16> to vector<2x1x64xbf16>
    %180 = vector.shape_cast %179 : vector<2x1x64xbf16> to vector<2x64xbf16>
    %c0_106 = arith.constant 0 : index
    %c2496 = arith.constant 2496 : index
    %181 = vector.load %arg9[%c0_106, %c2496] : memref<2x3136xbf16, #tpu.memory_space<vmem>>, vector<2x64xbf16>
    tpu.vector_store %arg9[%c0_106, %c2496], %180 {strides = array<i32>} : memref<2x3136xbf16, #tpu.memory_space<vmem>>, vector<2x64xbf16>,
    %182 = vector.extract_strided_slice %61 {offsets = [0, 40, 0], sizes = [2, 1, 64], strides = [1, 1, 1]} : vector<2x49x64xbf16> to vector<2x1x64xbf16>
    %183 = vector.shape_cast %182 : vector<2x1x64xbf16> to vector<2x64xbf16>
    %c0_107 = arith.constant 0 : index
    %c2560 = arith.constant 2560 : index
    %184 = vector.load %arg9[%c0_107, %c2560] : memref<2x3136xbf16, #tpu.memory_space<vmem>>, vector<2x64xbf16>
    tpu.vector_store %arg9[%c0_107, %c2560], %183 {strides = array<i32>} : memref<2x3136xbf16, #tpu.memory_space<vmem>>, vector<2x64xbf16>,
    %185 = vector.extract_strided_slice %61 {offsets = [0, 41, 0], sizes = [2, 1, 64], strides = [1, 1, 1]} : vector<2x49x64xbf16> to vector<2x1x64xbf16>
    %186 = vector.shape_cast %185 : vector<2x1x64xbf16> to vector<2x64xbf16>
    %c0_108 = arith.constant 0 : index
    %c2624 = arith.constant 2624 : index
    %187 = vector.load %arg9[%c0_108, %c2624] : memref<2x3136xbf16, #tpu.memory_space<vmem>>, vector<2x64xbf16>
    tpu.vector_store %arg9[%c0_108, %c2624], %186 {strides = array<i32>} : memref<2x3136xbf16, #tpu.memory_space<vmem>>, vector<2x64xbf16>,
    %188 = vector.extract_strided_slice %61 {offsets = [0, 42, 0], sizes = [2, 1, 64], strides = [1, 1, 1]} : vector<2x49x64xbf16> to vector<2x1x64xbf16>
    %189 = vector.shape_cast %188 : vector<2x1x64xbf16> to vector<2x64xbf16>
    %c0_109 = arith.constant 0 : index
    %c2688 = arith.constant 2688 : index
    %190 = vector.load %arg9[%c0_109, %c2688] : memref<2x3136xbf16, #tpu.memory_space<vmem>>, vector<2x64xbf16>
    tpu.vector_store %arg9[%c0_109, %c2688], %189 {strides = array<i32>} : memref<2x3136xbf16, #tpu.memory_space<vmem>>, vector<2x64xbf16>,
    %191 = vector.extract_strided_slice %61 {offsets = [0, 43, 0], sizes = [2, 1, 64], strides = [1, 1, 1]} : vector<2x49x64xbf16> to vector<2x1x64xbf16>
    %192 = vector.shape_cast %191 : vector<2x1x64xbf16> to vector<2x64xbf16>
    %c0_110 = arith.constant 0 : index
    %c2752 = arith.constant 2752 : index
    %193 = vector.load %arg9[%c0_110, %c2752] : memref<2x3136xbf16, #tpu.memory_space<vmem>>, vector<2x64xbf16>
    tpu.vector_store %arg9[%c0_110, %c2752], %192 {strides = array<i32>} : memref<2x3136xbf16, #tpu.memory_space<vmem>>, vector<2x64xbf16>,
    %194 = vector.extract_strided_slice %61 {offsets = [0, 44, 0], sizes = [2, 1, 64], strides = [1, 1, 1]} : vector<2x49x64xbf16> to vector<2x1x64xbf16>
    %195 = vector.shape_cast %194 : vector<2x1x64xbf16> to vector<2x64xbf16>
    %c0_111 = arith.constant 0 : index
    %c2816 = arith.constant 2816 : index
    %196 = vector.load %arg9[%c0_111, %c2816] : memref<2x3136xbf16, #tpu.memory_space<vmem>>, vector<2x64xbf16>
    tpu.vector_store %arg9[%c0_111, %c2816], %195 {strides = array<i32>} : memref<2x3136xbf16, #tpu.memory_space<vmem>>, vector<2x64xbf16>,
    %197 = vector.extract_strided_slice %61 {offsets = [0, 45, 0], sizes = [2, 1, 64], strides = [1, 1, 1]} : vector<2x49x64xbf16> to vector<2x1x64xbf16>
    %198 = vector.shape_cast %197 : vector<2x1x64xbf16> to vector<2x64xbf16>
    %c0_112 = arith.constant 0 : index
    %c2880 = arith.constant 2880 : index
    %199 = vector.load %arg9[%c0_112, %c2880] : memref<2x3136xbf16, #tpu.memory_space<vmem>>, vector<2x64xbf16>
    tpu.vector_store %arg9[%c0_112, %c2880], %198 {strides = array<i32>} : memref<2x3136xbf16, #tpu.memory_space<vmem>>, vector<2x64xbf16>,
    %200 = vector.extract_strided_slice %61 {offsets = [0, 46, 0], sizes = [2, 1, 64], strides = [1, 1, 1]} : vector<2x49x64xbf16> to vector<2x1x64xbf16>
    %201 = vector.shape_cast %200 : vector<2x1x64xbf16> to vector<2x64xbf16>
    %c0_113 = arith.constant 0 : index
    %c2944 = arith.constant 2944 : index
    %202 = vector.load %arg9[%c0_113, %c2944] : memref<2x3136xbf16, #tpu.memory_space<vmem>>, vector<2x64xbf16>
    tpu.vector_store %arg9[%c0_113, %c2944], %201 {strides = array<i32>} : memref<2x3136xbf16, #tpu.memory_space<vmem>>, vector<2x64xbf16>,
    %203 = vector.extract_strided_slice %61 {offsets = [0, 47, 0], sizes = [2, 1, 64], strides = [1, 1, 1]} : vector<2x49x64xbf16> to vector<2x1x64xbf16>
    %204 = vector.shape_cast %203 : vector<2x1x64xbf16> to vector<2x64xbf16>
    %c0_114 = arith.constant 0 : index
    %c3008 = arith.constant 3008 : index
    %205 = vector.load %arg9[%c0_114, %c3008] : memref<2x3136xbf16, #tpu.memory_space<vmem>>, vector<2x64xbf16>
    tpu.vector_store %arg9[%c0_114, %c3008], %204 {strides = array<i32>} : memref<2x3136xbf16, #tpu.memory_space<vmem>>, vector<2x64xbf16>,
    %206 = vector.extract_strided_slice %61 {offsets = [0, 48, 0], sizes = [2, 1, 64], strides = [1, 1, 1]} : vector<2x49x64xbf16> to vector<2x1x64xbf16>
    %207 = vector.shape_cast %206 : vector<2x1x64xbf16> to vector<2x64xbf16>
    %c0_115 = arith.constant 0 : index
    %c3072 = arith.constant 3072 : index
    %208 = vector.load %arg9[%c0_115, %c3072] : memref<2x3136xbf16, #tpu.memory_space<vmem>>, vector<2x64xbf16>
    tpu.vector_store %arg9[%c0_115, %c3072], %207 {strides = array<i32>} : memref<2x3136xbf16, #tpu.memory_space<vmem>>, vector<2x64xbf16>,
    %c0_116 = arith.constant 0 : index
    %c0_117 = arith.constant 0 : index
    %209 = vector.load %arg9[%c0_116, %c0_117] : memref<2x3136xbf16, #tpu.memory_space<vmem>>, vector<2x3136xbf16>
    %c0_118 = arith.constant 0 : index
    %c0_119 = arith.constant 0 : index
    %210 = vector.load %arg4[%c0_118, %c0_119] : memref<3136x512xbf16, #tpu.memory_space<vmem>>, vector<3136x512xbf16>
    %cst_120 = arith.constant dense<0.000000e+00> : vector<2x512xf32>
    %211 = tpu.matmul %209, %210, %cst_120 {dimension_numbers = #tpu.dot_dimension_numbers<[1], [0], [0], [1], [0, 0, 1, 1], [], []>} : vector<2x3136xbf16>, vector<3136x512xbf16>, vector<2x512xf32> -> vector<2x512xf32>
    %c0_121 = arith.constant 0 : index
    %c0_122 = arith.constant 0 : index
    %212 = vector.load %arg5[%c0_121, %c0_122] : memref<1x512xf32, #tpu.memory_space<vmem>>, vector<1x512xf32>
    %213 = vector.broadcast %212 : vector<1x512xf32> to vector<2x512xf32>
    %214 = arith.addf %211, %213 : vector<2x512xf32>
    %cst_123 = arith.constant 0.000000e+00 : f32
    %215 = vector.broadcast %cst_123 : f32 to vector<2x512xf32>
    %216 = arith.maximumf %214, %215 : vector<2x512xf32>
    %217 = arith.truncf %216 : vector<2x512xf32> to vector<2x512xbf16>
    %c0_124 = arith.constant 0 : index
    %c0_125 = arith.constant 0 : index
    %218 = vector.load %arg6[%c0_124, %c0_125] : memref<512x6xbf16, #tpu.memory_space<vmem>>, vector<512x6xbf16>
    %cst_126 = arith.constant dense<0.000000e+00> : vector<2x6xf32>
    %219 = tpu.matmul %217, %218, %cst_126 {dimension_numbers = #tpu.dot_dimension_numbers<[1], [0], [0], [1], [0, 0, 1, 1], [], []>} : vector<2x512xbf16>, vector<512x6xbf16>, vector<2x6xf32> -> vector<2x6xf32>
    %c0_127 = arith.constant 0 : index
    %c0_128 = arith.constant 0 : index
    %220 = vector.load %arg7[%c0_127, %c0_128] : memref<1x6xf32, #tpu.memory_space<vmem>>, vector<1x6xf32>
    %221 = vector.broadcast %220 : vector<1x6xf32> to vector<2x6xf32>
    %222 = arith.addf %219, %221 : vector<2x6xf32>
    %c0_129 = arith.constant 0 : index
    %c0_130 = arith.constant 0 : index
    %223 = vector.load %arg8[%c0_129, %c0_130] : memref<2x6xf32, #tpu.memory_space<vmem>>, vector<2x6xf32>
    tpu.vector_store %arg8[%c0_129, %c0_130], %222 {strides = array<i32>} : memref<2x6xf32, #tpu.memory_space<vmem>>, vector<2x6xf32>,
    return
  }
  func.func @transform_0(%arg0: i32) -> (i32, i32, i32, i32) {
    %c0_i32 = arith.constant 0 : i32
    %c0_i32_0 = arith.constant 0 : i32
    %c0_i32_1 = arith.constant 0 : i32
    %c0_i32_2 = arith.constant 0 : i32
    return %arg0, %c0_i32, %c0_i32_0, %c0_i32_1 : i32, i32, i32, i32
  }
  func.func @transform_1(%arg0: i32) -> (i32, i32, i32) {
    %c0_i32 = arith.constant 0 : i32
    %c0_i32_0 = arith.constant 0 : i32
    %c0_i32_1 = arith.constant 0 : i32
    %c0_i32_2 = arith.constant 0 : i32
    return %c0_i32, %c0_i32_0, %c0_i32_1 : i32, i32, i32
  }
  func.func @transform_2(%arg0: i32) -> (i32, i32) {
    %c0_i32 = arith.constant 0 : i32
    %c0_i32_0 = arith.constant 0 : i32
    %c0_i32_1 = arith.constant 0 : i32
    return %c0_i32, %c0_i32_0 : i32, i32
  }
  func.func @transform_3(%arg0: i32) -> (i32, i32) {
    %c0_i32 = arith.constant 0 : i32
    %c0_i32_0 = arith.constant 0 : i32
    %c0_i32_1 = arith.constant 0 : i32
    return %c0_i32, %c0_i32_0 : i32, i32
  }
  func.func @transform_4(%arg0: i32) -> (i32, i32) {
    %c0_i32 = arith.constant 0 : i32
    %c0_i32_0 = arith.constant 0 : i32
    %c0_i32_1 = arith.constant 0 : i32
    return %c0_i32, %c0_i32_0 : i32, i32
  }
  func.func @transform_5(%arg0: i32) -> (i32, i32) {
    %c0_i32 = arith.constant 0 : i32
    %c0_i32_0 = arith.constant 0 : i32
    %c0_i32_1 = arith.constant 0 : i32
    return %c0_i32, %c0_i32_0 : i32, i32
  }
  func.func @transform_6(%arg0: i32) -> (i32, i32) {
    %c0_i32 = arith.constant 0 : i32
    %c0_i32_0 = arith.constant 0 : i32
    %c0_i32_1 = arith.constant 0 : i32
    return %c0_i32, %c0_i32_0 : i32, i32
  }
  func.func @transform_7(%arg0: i32) -> (i32, i32) {
    %c0_i32 = arith.constant 0 : i32
    %c0_i32_0 = arith.constant 0 : i32
    return %arg0, %c0_i32 : i32, i32
  }
}

</mosaic_0001>

<bundles_post_ra>
// kernel: actor_cnn_forward.3
= control target key start
LH: loop header
LB: loop body
LE: loop exit
PB: predicated region body
PF: predicated region fallthrough
CT: control target
= control target key end

     0   :  { %s1542_s12 = smov 0   ;;  %s1852_s0 = inlined_call_operand.vmem [shape: bf16[800,256], index: 0, kind: input, shape index: {}]   ;;  %s1853_s1 = inlined_call_operand.vmem [shape: bf16[256,32], index: 1, kind: input, shape index: {}]   ;;  %s1854_s2 = inlined_call_operand.vmem [shape: f32[1,32], index: 2, kind: input, shape index: {}]   ;;  %s1855_s3 = inlined_call_operand.vmem [shape: bf16[800,32], index: 3, kind: output, shape index: {}]  }
   0x1 LB: > { %s1203_s13 = sadd.s32 4294967295, %s1519_s12   ;;  %p1207_p0 = scmp.ge.s32.totalorder %s1519_s12, 1  ;;  %s1519_s12 = sphi %s1542_s12, %s13_s12  }
   0x2   : > { %p139_p1 = scmp.lt.s32.totalorder %s1519_s12, 3 }
   0x4   : > { %p140_p2 = pnand %p1207_p0, %p139_p1 }
   0x5   : > { %v1422_v0 = vld [vmem:[%s1853_s1] sm:$0xff] (!%p140_p2)   ;;  %v1521_v1 = vmov (!%p140_p2), 0   ;;  %s164_s16 = smul.u32 (!%p140_p2), 50, %s1203_s13  ;;  %v1423_v2 = vld [vmem:[%s1853_s1 + $0x8] sm:$0xff] (!%p140_p2)   ;;  %v1424_v3 = vld [vmem:[%s1853_s1 + $0x10] sm:$0xff] (!%p140_p2)   ;;  %vm1096_vm0 = vcmask (!%p140_p2), 257024  }
   0x6   : > { %143 = sbr.rel (%p140_p2) target bundleno = 387 (0x183), region = 32  ;;  %613 = vmatprep.subr.bf16.mxu0 (!%p140_p2), %v1521_v1  ;;  %1381 = vmatprep.subr.bf16.mxu1 (!%p140_p2), %v1521_v1  ;;  %v1425_v4 = vld [vmem:[%s1853_s1 + $0x18] sm:$0xff] (!%p140_p2)   ;;  %v1426_v5 = vld [vmem:[%s1853_s1 + $0x20] sm:$0xff] (!%p140_p2)   ;;  %v1427_v7 = vld [vmem:[%s1853_s1 + $0x28] sm:$0xff] (!%p140_p2)  }
   0x7   : > { %614 = vmatpush1.bf16.msra.mxu0 (!%p140_p2), %v1422_v0  ;;  %1397 = vmatpush1.bf16.msra.mxu1 (!%p140_p2), %v1422_v0  ;;  %p165_p3 = scmp.lt.s32.totalorder (!%p140_p2), %s164_s16, 99  ;;  %v1428_v9 = vld [vmem:[%s1853_s1 + $0x30] sm:$0xff] (!%p140_p2)   ;;  %v1429_v10 = vld [vmem:[%s1853_s1 + $0x38] sm:$0xff] (!%p140_p2)   ;;  %v1430_v11 = vld [vmem:[%s1853_s1 + $0x40] sm:$0xff] (!%p140_p2)  }
   0x8   : > { %615 = vmatprep.subr.bf16.mxu0 (!%p140_p2), %v1521_v1  ;;  %1382 = vmatprep.subr.bf16.mxu1 (!%p140_p2), %v1521_v1  ;;  %v1431_v12 = vld [vmem:[%s1853_s1 + $0x48] sm:$0xff] (!%p140_p2)   ;;  %v1432_v13 = vld [vmem:[%s1853_s1 + $0x50] sm:$0xff] (!%p140_p2)   ;;  %v1433_v14 = vld [vmem:[%s1853_s1 + $0x58] sm:$0xff] (!%p140_p2)  }
   0x9   : > { %v1434_v15 = vld [vmem:[%s1853_s1 + $0x60] sm:$0xff] (!%p140_p2)   ;;  %v1435_v16 = vld [vmem:[%s1853_s1 + $0x68] sm:$0xff] (!%p140_p2)   ;;  %v1436_v17 = vld [vmem:[%s1853_s1 + $0x70] sm:$0xff] (!%p140_p2)  }
   0xa   : > { %v1437_v18 = vld [vmem:[%s1853_s1 + $0x78] sm:$0xff] (!%p140_p2)  }
   0xb   : > { %616 = vmatpush1.bf16.msra.mxu0 (!%p140_p2), %v1423_v2  ;;  %1398 = vmatpush1.bf16.msra.mxu1 (!%p140_p2), %v1423_v2 }
   0xc   : > { %617 = vmatprep.subr.bf16.mxu0 (!%p140_p2), %v1521_v1  ;;  %1383 = vmatprep.subr.bf16.mxu1 (!%p140_p2), %v1521_v1 }
   0xd   : > { %s1857_s16 = smov (!%p165_p3, %s164_s16), 99 }
   0xe   : > { %s1330_s23 = sshll.u32 %s1857_s16, 3  ;;  %s1210_s29 = sshll.u32 %s1857_s16, 2 }
   0xf   : > { %618 = vmatpush1.bf16.msra.mxu0 %v1424_v3  ;;  %1399 = vmatpush1.bf16.msra.mxu1 %v1424_v3  ;;  %s1579_s28 = scalar_lea.vmem %s1852_s0, %s1330_s23  ;;  %v1691_v3 = vld [vmem:[%s1854_s2] ss:$0 sm:$0xff]  ;;  %s1701_s16 = scalar_lea.vmem %s1855_s3, %s1210_s29 }
  0x10   : > { %619 = vmatprep.subr.bf16.mxu0 %v1521_v1  ;;  %1384 = vmatprep.subr.bf16.mxu1 %v1521_v1  ;;  %v1440_v6 = vld [vmem:[%s1579_s28 + $0x4] ss:$8 sps:$4 sm:$0xff]   ;;  %v1443_v8 = vld [vmem:[%s1579_s28 + $0xd4] ss:$8 sps:$4 sm:$0xff]   ;;  %v1438_v19 = vld [vmem:[%s1579_s28] ss:$8 sps:$4 sm:$0xff]  }
  0x11   : > { %645 = vmatprep.mubr.bf16.mxu0 %v1440_v6  ;;  %749 = vmatprep.mubr.bf16.mxu1 %v1443_v8  ;;  %v1441_v20 = vld [vmem:[%s1579_s28 + $0xd0] ss:$8 sps:$4 sm:$0xff]   ;;  %v1444_v21 = vld [vmem:[%s1579_s28 + $0x14] ss:$8 sps:$4 sm:$0xff]   ;;  %v1447_v22 = vld [vmem:[%s1579_s28 + $0xe4] ss:$8 sps:$4 sm:$0xff]  }
  0x12   : > { %v1446_v23 = vld [vmem:[%s1579_s28 + $0x10] ss:$8 sps:$4 sm:$0xff]   ;;  %v1449_v24 = vld [vmem:[%s1579_s28 + $0xe0] ss:$8 sps:$4 sm:$0xff]   ;;  %v1450_v25 = vld [vmem:[%s1579_s28 + $0x24] ss:$8 sps:$4 sm:$0xff]  }
  0x13   : > { %620 = vmatpush1.bf16.msra.mxu0 %v1425_v4  ;;  %1400 = vmatpush1.bf16.msra.mxu1 %v1425_v4  ;;  %v1453_v26 = vld [vmem:[%s1579_s28 + $0xf4] ss:$8 sps:$4 sm:$0xff]   ;;  %v1452_v27 = vld [vmem:[%s1579_s28 + $0x20] ss:$8 sps:$4 sm:$0xff]   ;;  %v1455_v28 = vld [vmem:[%s1579_s28 + $0xf0] ss:$8 sps:$4 sm:$0xff]  }
  0x14   : > { %621 = vmatprep.subr.bf16.mxu0 %v1521_v1  ;;  %1385 = vmatprep.subr.bf16.mxu1 %v1521_v1  ;;  %v1456_v29 = vld [vmem:[%s1579_s28 + $0x34] ss:$8 sps:$4 sm:$0xff]   ;;  %v1459_v30 = vld [vmem:[%s1579_s28 + $0x104] ss:$8 sps:$4 sm:$0xff]   ;;  %v1458_v31 = vld [vmem:[%s1579_s28 + $0x30] ss:$8 sps:$4 sm:$0xff]  }
  0x15   : > { %v1461_v32 = vld [vmem:[%s1579_s28 + $0x100] ss:$8 sps:$4 sm:$0xff]   ;;  %v1462_v33 = vld [vmem:[%s1579_s28 + $0x44] ss:$8 sps:$4 sm:$0xff]   ;;  %v1465_v34 = vld [vmem:[%s1579_s28 + $0x114] ss:$8 sps:$4 sm:$0xff]  }
  0x16   : > { %v1464_v35 = vld [vmem:[%s1579_s28 + $0x40] ss:$8 sps:$4 sm:$0xff]   ;;  %v1467_v36 = vld [vmem:[%s1579_s28 + $0x110] ss:$8 sps:$4 sm:$0xff]   ;;  %v1468_v37 = vld [vmem:[%s1579_s28 + $0x54] ss:$8 sps:$4 sm:$0xff]  }
  0x17   : > { %622 = vmatpush1.bf16.msra.mxu0 %v1426_v5  ;;  %1401 = vmatpush1.bf16.msra.mxu1 %v1426_v5  ;;  %v1471_v38 = vld [vmem:[%s1579_s28 + $0x124] ss:$8 sps:$4 sm:$0xff]   ;;  %v1470_v39 = vld [vmem:[%s1579_s28 + $0x50] ss:$8 sps:$4 sm:$0xff]   ;;  %v1473_v40 = vld [vmem:[%s1579_s28 + $0x120] ss:$8 sps:$4 sm:$0xff]  }
  0x18   : > { %623 = vmatprep.subr.bf16.mxu0 %v1521_v1  ;;  %1386 = vmatprep.subr.bf16.mxu1 %v1521_v1  ;;  %v1474_v41 = vld [vmem:[%s1579_s28 + $0x64] ss:$8 sps:$4 sm:$0xff]   ;;  %v1477_v42 = vld [vmem:[%s1579_s28 + $0x134] ss:$8 sps:$4 sm:$0xff]   ;;  %v1476_v43 = vld [vmem:[%s1579_s28 + $0x60] ss:$8 sps:$4 sm:$0xff]  }
  0x19   : > { %v1479_v44 = vld [vmem:[%s1579_s28 + $0x130] ss:$8 sps:$4 sm:$0xff]   ;;  %v1480_v45 = vld [vmem:[%s1579_s28 + $0x74] ss:$8 sps:$4 sm:$0xff]   ;;  %v1483_v46 = vld [vmem:[%s1579_s28 + $0x144] ss:$8 sps:$4 sm:$0xff]  }
  0x1a   : > { %v1482_v47 = vld [vmem:[%s1579_s28 + $0x70] ss:$8 sps:$4 sm:$0xff]   ;;  %v1485_v48 = vld [vmem:[%s1579_s28 + $0x140] ss:$8 sps:$4 sm:$0xff]   ;;  %v1486_v49 = vld [vmem:[%s1579_s28 + $0x84] ss:$8 sps:$4 sm:$0xff]  }
  0x1b   : > { %624 = vmatpush1.bf16.msra.mxu0 %v1427_v7  ;;  %1402 = vmatpush1.bf16.msra.mxu1 %v1427_v7  ;;  %v1489_v50 = vld [vmem:[%s1579_s28 + $0x154] ss:$8 sps:$4 sm:$0xff]   ;;  %v1488_v51 = vld [vmem:[%s1579_s28 + $0x80] ss:$8 sps:$4 sm:$0xff]   ;;  %v1491_v52 = vld [vmem:[%s1579_s28 + $0x150] ss:$8 sps:$4 sm:$0xff]  }
  0x1c   : > { %625 = vmatprep.subr.bf16.mxu0 %v1521_v1  ;;  %1387 = vmatprep.subr.bf16.mxu1 %v1521_v1  ;;  %v1492_v53 = vld [vmem:[%s1579_s28 + $0x94] ss:$8 sps:$4 sm:$0xff]   ;;  %v1495_v54 = vld [vmem:[%s1579_s28 + $0x164] ss:$8 sps:$4 sm:$0xff]   ;;  %v1494_v55 = vld [vmem:[%s1579_s28 + $0x90] ss:$8 sps:$4 sm:$0xff]  }
  0x1d   : > { %v1497_v56 = vld [vmem:[%s1579_s28 + $0x160] ss:$8 sps:$4 sm:$0xff]   ;;  %v1498_v57 = vld [vmem:[%s1579_s28 + $0xa4] ss:$8 sps:$4 sm:$0xff]   ;;  %v1501_v58 = vld [vmem:[%s1579_s28 + $0x174] ss:$8 sps:$4 sm:$0xff]  }
  0x1e   : > { %v1500_v59 = vld [vmem:[%s1579_s28 + $0xa0] ss:$8 sps:$4 sm:$0xff]   ;;  %v1503_v60 = vld [vmem:[%s1579_s28 + $0x170] ss:$8 sps:$4 sm:$0xff]   ;;  %v1504_v61 = vld [vmem:[%s1579_s28 + $0xb4] ss:$8 sps:$4 sm:$0xff]  }
  0x1f   : > { %626 = vmatpush1.bf16.msra.mxu0 %v1428_v9  ;;  %1403 = vmatpush1.bf16.msra.mxu1 %v1428_v9  ;;  %v1507_v62 = vld [vmem:[%s1579_s28 + $0x184] ss:$8 sps:$4 sm:$0xff]   ;;  %v1506_v63 = vld [vmem:[%s1579_s28 + $0xb0] ss:$8 sps:$4 sm:$0xff]   ;;  %v1509_v0 = vld [vmem:[%s1579_s28 + $0x180] ss:$8 sps:$4 sm:$0xff]  }
  0x20   : > { %627 = vmatprep.subr.bf16.mxu0 %v1521_v1  ;;  %1388 = vmatprep.subr.bf16.mxu1 %v1521_v1  ;;  %v1512_v2 = vld [vmem:[%s1579_s28 + $0xc0] ss:$8 sps:$4 sm:$0xff]  }
  0x23   : > { %628 = vmatpush1.bf16.msra.mxu0 %v1429_v10  ;;  %1404 = vmatpush1.bf16.msra.mxu1 %v1429_v10 }
  0x24   : > { %629 = vmatprep.subr.bf16.mxu0 %v1521_v1  ;;  %1389 = vmatprep.subr.bf16.mxu1 %v1521_v1 }
  0x27   : > { %630 = vmatpush1.bf16.msra.mxu0 %v1430_v11  ;;  %1405 = vmatpush1.bf16.msra.mxu1 %v1430_v11 }
  0x28   : > { %631 = vmatprep.subr.bf16.mxu0 %v1521_v1  ;;  %1390 = vmatprep.subr.bf16.mxu1 %v1521_v1 }
  0x2b   : > { %632 = vmatpush1.bf16.msra.mxu0 %v1431_v12  ;;  %1406 = vmatpush1.bf16.msra.mxu1 %v1431_v12 }
  0x2c   : > { %633 = vmatprep.subr.bf16.mxu0 %v1521_v1  ;;  %1391 = vmatprep.subr.bf16.mxu1 %v1521_v1 }
  0x2f   : > { %634 = vmatpush1.bf16.msra.mxu0 %v1432_v13  ;;  %1407 = vmatpush1.bf16.msra.mxu1 %v1432_v13 }
  0x30   : > { %635 = vmatprep.subr.bf16.mxu0 %v1521_v1  ;;  %1392 = vmatprep.subr.bf16.mxu1 %v1521_v1 }
  0x33   : > { %636 = vmatpush1.bf16.msra.mxu0 %v1433_v14  ;;  %1408 = vmatpush1.bf16.msra.mxu1 %v1433_v14 }
  0x34   : > { %637 = vmatprep.subr.bf16.mxu0 %v1521_v1  ;;  %1393 = vmatprep.subr.bf16.mxu1 %v1521_v1 }
  0x37   : > { %638 = vmatpush1.bf16.msra.mxu0 %v1434_v15  ;;  %1409 = vmatpush1.bf16.msra.mxu1 %v1434_v15 }
  0x38   : > { %639 = vmatprep.subr.bf16.mxu0 %v1521_v1  ;;  %1394 = vmatprep.subr.bf16.mxu1 %v1521_v1 }
  0x3b   : > { %640 = vmatpush1.bf16.msra.mxu0 %v1435_v16  ;;  %1410 = vmatpush1.bf16.msra.mxu1 %v1435_v16 }
  0x3c   : > { %641 = vmatprep.subr.bf16.mxu0 %v1521_v1  ;;  %1395 = vmatprep.subr.bf16.mxu1 %v1521_v1 }
  0x3f   : > { %642 = vmatpush1.bf16.msra.mxu0 %v1436_v17  ;;  %1411 = vmatpush1.bf16.msra.mxu1 %v1436_v17 }
  0x40   : > { %643 = vmatprep.subr.bf16.mxu0 %v1521_v1  ;;  %1396 = vmatprep.subr.bf16.mxu1 %v1521_v1  ;;  %v1510_v1 = vld [vmem:[%s1579_s28 + $0xc4] ss:$8 sps:$4 sm:$0xff]  }
  0x43   : > { %644 = vmatpush1.bf16.msra.mxu0 %v1437_v18  ;;  %1412 = vmatpush1.bf16.msra.mxu1 %v1437_v18 }
  0x46   : > { %646 = vmatmul.mubr.bf16.vlgmr.msra.gmra.mrb[0].mxu0 %v1438_v19  ;;  %750 = vmatmul.mubr.bf16.vlgmr.msra.gmra.mrb[0].mxu1 %v1441_v20 }
  0x47   : > { %653 = vmatprep.mubr.bf16.mxu0 %v1444_v21  ;;  %757 = vmatprep.mubr.bf16.mxu1 %v1447_v22 }
  0x4e   : > { %654 = vmatmul.mubr.bf16.gmra.mrb[4].mxu0 %v1446_v23  ;;  %758 = vmatmul.mubr.bf16.gmra.mrb[4].mxu1 %v1449_v24 }
  0x4f   : > { %661 = vmatprep.mubr.bf16.mxu0 %v1450_v25  ;;  %765 = vmatprep.mubr.bf16.mxu1 %v1453_v26 }
  0x56   : > { %662 = vmatmul.mubr.bf16.gmra.mrb[8].mxu0 %v1452_v27  ;;  %766 = vmatmul.mubr.bf16.gmra.mrb[8].mxu1 %v1455_v28 }
  0x57   : > { %669 = vmatprep.mubr.bf16.mxu0 %v1456_v29  ;;  %773 = vmatprep.mubr.bf16.mxu1 %v1459_v30 }
  0x5e   : > { %670 = vmatmul.mubr.bf16.gmra.mrb[12].mxu0 %v1458_v31  ;;  %774 = vmatmul.mubr.bf16.gmra.mrb[12].mxu1 %v1461_v32 }
  0x5f   : > { %677 = vmatprep.mubr.bf16.mxu0 %v1462_v33  ;;  %781 = vmatprep.mubr.bf16.mxu1 %v1465_v34 }
  0x66   : > { %678 = vmatmul.mubr.bf16.gmra.mrb[16].mxu0 %v1464_v35  ;;  %782 = vmatmul.mubr.bf16.gmra.mrb[16].mxu1 %v1467_v36 }
  0x67   : > { %685 = vmatprep.mubr.bf16.mxu0 %v1468_v37  ;;  %789 = vmatprep.mubr.bf16.mxu1 %v1471_v38 }
  0x6e   : > { %686 = vmatmul.mubr.bf16.gmra.mrb[20].mxu0 %v1470_v39  ;;  %790 = vmatmul.mubr.bf16.gmra.mrb[20].mxu1 %v1473_v40 }
  0x6f   : > { %693 = vmatprep.mubr.bf16.mxu0 %v1474_v41  ;;  %797 = vmatprep.mubr.bf16.mxu1 %v1477_v42 }
  0x76   : > { %694 = vmatmul.mubr.bf16.gmra.mrb[24].mxu0 %v1476_v43  ;;  %798 = vmatmul.mubr.bf16.gmra.mrb[24].mxu1 %v1479_v44 }
  0x77   : > { %701 = vmatprep.mubr.bf16.mxu0 %v1480_v45  ;;  %805 = vmatprep.mubr.bf16.mxu1 %v1483_v46 }
  0x7e   : > { %702 = vmatmul.mubr.bf16.gmra.mrb[28].mxu0 %v1482_v47  ;;  %806 = vmatmul.mubr.bf16.gmra.mrb[28].mxu1 %v1485_v48 }
  0x7f   : > { %709 = vmatprep.mubr.bf16.mxu0 %v1486_v49  ;;  %813 = vmatprep.mubr.bf16.mxu1 %v1489_v50 }
  0x86   : > { %710 = vmatmul.mubr.bf16.gmra.mrb[32].mxu0 %v1488_v51  ;;  %814 = vmatmul.mubr.bf16.gmra.mrb[32].mxu1 %v1491_v52 }
  0x87   : > { %717 = vmatprep.mubr.bf16.mxu0 %v1492_v53  ;;  %821 = vmatprep.mubr.bf16.mxu1 %v1495_v54 }
  0x8e   : > { %718 = vmatmul.mubr.bf16.gmra.mrb[36].mxu0 %v1494_v55  ;;  %822 = vmatmul.mubr.bf16.gmra.mrb[36].mxu1 %v1497_v56 }
  0x8f   : > { %725 = vmatprep.mubr.bf16.mxu0 %v1498_v57  ;;  %829 = vmatprep.mubr.bf16.mxu1 %v1501_v58 }
  0x96   : > { %726 = vmatmul.mubr.bf16.gmra.mrb[40].mxu0 %v1500_v59  ;;  %830 = vmatmul.mubr.bf16.gmra.mrb[40].mxu1 %v1503_v60 }
  0x97   : > { %733 = vmatprep.mubr.bf16.mxu0 %v1504_v61  ;;  %837 = vmatprep.mubr.bf16.mxu1 %v1507_v62 }
  0x9e   : > { %734 = vmatmul.mubr.bf16.gmra.mrb[44].mxu0 %v1506_v63  ;;  %838 = vmatmul.mubr.bf16.gmra.mrb[44].mxu1 %v1509_v0 }
  0x9f   : > { %741 = vmatprep.mubr.bf16.mxu0 %v1510_v1 }
  0xa6   : > { %742 = vmatmul.mubr.bf16.gmra.mrb[48].mxu0 %v1512_v2 }
 0x119   : > { %v647_v4 = vpop.f32.mrb[0].mxu0  ;;  %v751_v5 = vpop.f32.mrb[0].mxu1 }
 0x11a   : > { %v648_v6 = vadd.f32 %v1691_v3, %v647_v4  ;;  %v649_v7 = vpop.f32.mrb[1].mxu0  ;;  %v752_v8 = vadd.f32 %v1691_v3, %v751_v5  ;;  %v753_v9 = vpop.f32.mrb[1].mxu1 }
 0x11b   : > { %v650_v10 = vpop.f32.mrb[2].mxu0  ;;  %v754_v11 = vpop.f32.mrb[2].mxu1 }
 0x11c   : > { %v846_v12 = vmax.f32 %v648_v6, 0.0  ;;  %v651_v13 = vadd.f32 %v1691_v3, %v650_v10  ;;  %v652_v14 = vpop.f32.mrb[3].mxu0  ;;  %v872_v15 = vmax.f32 %v752_v8, 0.0  ;;  %v755_v16 = vadd.f32 %v1691_v3, %v754_v11  ;;  %v756_v17 = vpop.f32.mrb[3].mxu1 }
 0x11e   : > { %v1331_v18 = vpack.c.bf16 %v846_v12, %v846_v12  ;;  %v847_v19 = vmax.f32 %v651_v13, 0.0  ;;  %v1357_v20 = vpack.c.bf16 %v872_v15, %v872_v15  ;;  %v873_v21 = vmax.f32 %v755_v16, 0.0 }
 0x120   : > { %1097 = vst.msk [vmem:[%s1701_s16] sm:$0xf] %vm1096_vm0, %v1331_v18  ;;  %v1332_v22 = vpack.c.bf16 %v847_v19, %v847_v19  ;;  %1123 = vst.msk [vmem:[%s1701_s16 + $0x68] sm:$0xf] %vm1096_vm0, %v1357_v20  ;;  %v1358_v23 = vpack.c.bf16 %v873_v21, %v873_v21 }
 0x121   : > { %v655_v24 = vpop.f32.mrb[4].mxu0  ;;  %v759_v25 = vpop.f32.mrb[4].mxu1 }
 0x122   : > { %1098 = vst.msk [vmem:[%s1701_s16 + $0x4] sm:$0xf] %vm1096_vm0, %v1332_v22  ;;  %1124 = vst.msk [vmem:[%s1701_s16 + $0x6c] sm:$0xf] %vm1096_vm0, %v1358_v23  ;;  %v656_v26 = vadd.f32 %v1691_v3, %v655_v24  ;;  %v657_v27 = vpop.f32.mrb[5].mxu0  ;;  %v760_v28 = vadd.f32 %v1691_v3, %v759_v25  ;;  %v761_v29 = vpop.f32.mrb[5].mxu1 }
 0x123   : > { %v658_v30 = vpop.f32.mrb[6].mxu0  ;;  %v762_v31 = vpop.f32.mrb[6].mxu1 }
 0x124   : > { %v848_v32 = vmax.f32 %v656_v26, 0.0  ;;  %v659_v33 = vadd.f32 %v1691_v3, %v658_v30  ;;  %v660_v34 = vpop.f32.mrb[7].mxu0  ;;  %v874_v35 = vmax.f32 %v760_v28, 0.0  ;;  %v763_v36 = vadd.f32 %v1691_v3, %v762_v31  ;;  %v764_v37 = vpop.f32.mrb[7].mxu1 }
 0x126   : > { %v1333_v38 = vpack.c.bf16 %v848_v32, %v848_v32  ;;  %v849_v39 = vmax.f32 %v659_v33, 0.0  ;;  %v1359_v40 = vpack.c.bf16 %v874_v35, %v874_v35  ;;  %v875_v41 = vmax.f32 %v763_v36, 0.0 }
 0x128   : > { %1099 = vst.msk [vmem:[%s1701_s16 + $0x8] sm:$0xf] %vm1096_vm0, %v1333_v38  ;;  %v1334_v42 = vpack.c.bf16 %v849_v39, %v849_v39  ;;  %1125 = vst.msk [vmem:[%s1701_s16 + $0x70] sm:$0xf] %vm1096_vm0, %v1359_v40  ;;  %v1360_v43 = vpack.c.bf16 %v875_v41, %v875_v41 }
 0x129   : > { %v663_v44 = vpop.f32.mrb[8].mxu0  ;;  %v767_v45 = vpop.f32.mrb[8].mxu1 }
 0x12a   : > { %1100 = vst.msk [vmem:[%s1701_s16 + $0xc] sm:$0xf] %vm1096_vm0, %v1334_v42  ;;  %1126 = vst.msk [vmem:[%s1701_s16 + $0x74] sm:$0xf] %vm1096_vm0, %v1360_v43  ;;  %v664_v46 = vadd.f32 %v1691_v3, %v663_v44  ;;  %v665_v47 = vpop.f32.mrb[9].mxu0  ;;  %v768_v48 = vadd.f32 %v1691_v3, %v767_v45  ;;  %v769_v49 = vpop.f32.mrb[9].mxu1 }
 0x12b   : > { %v666_v50 = vpop.f32.mrb[10].mxu0  ;;  %v770_v51 = vpop.f32.mrb[10].mxu1 }
 0x12c   : > { %v850_v52 = vmax.f32 %v664_v46, 0.0  ;;  %v667_v53 = vadd.f32 %v1691_v3, %v666_v50  ;;  %v668_v54 = vpop.f32.mrb[11].mxu0  ;;  %v876_v55 = vmax.f32 %v768_v48, 0.0  ;;  %v771_v56 = vadd.f32 %v1691_v3, %v770_v51  ;;  %v772_v57 = vpop.f32.mrb[11].mxu1 }
 0x12e   : > { %v1335_v58 = vpack.c.bf16 %v850_v52, %v850_v52  ;;  %v851_v59 = vmax.f32 %v667_v53, 0.0  ;;  %v1361_v60 = vpack.c.bf16 %v876_v55, %v876_v55  ;;  %v877_v61 = vmax.f32 %v771_v56, 0.0 }
 0x130   : > { %1101 = vst.msk [vmem:[%s1701_s16 + $0x10] sm:$0xf] %vm1096_vm0, %v1335_v58  ;;  %v1336_v62 = vpack.c.bf16 %v851_v59, %v851_v59  ;;  %1127 = vst.msk [vmem:[%s1701_s16 + $0x78] sm:$0xf] %vm1096_vm0, %v1361_v60  ;;  %v1362_v63 = vpack.c.bf16 %v877_v61, %v877_v61 }
 0x131   : > { %v671_v0 = vpop.f32.mrb[12].mxu0  ;;  %v775_v1 = vpop.f32.mrb[12].mxu1 }
 0x132   : > { %1102 = vst.msk [vmem:[%s1701_s16 + $0x14] sm:$0xf] %vm1096_vm0, %v1336_v62  ;;  %1128 = vst.msk [vmem:[%s1701_s16 + $0x7c] sm:$0xf] %vm1096_vm0, %v1362_v63  ;;  %v672_v2 = vadd.f32 %v1691_v3, %v671_v0  ;;  %v673_v4 = vpop.f32.mrb[13].mxu0  ;;  %v776_v5 = vadd.f32 %v1691_v3, %v775_v1  ;;  %v777_v6 = vpop.f32.mrb[13].mxu1 }
 0x133   : > { %v674_v7 = vpop.f32.mrb[14].mxu0  ;;  %v778_v8 = vpop.f32.mrb[14].mxu1 }
 0x134   : > { %v852_v9 = vmax.f32 %v672_v2, 0.0  ;;  %v675_v10 = vadd.f32 %v1691_v3, %v674_v7  ;;  %v676_v11 = vpop.f32.mrb[15].mxu0  ;;  %v878_v12 = vmax.f32 %v776_v5, 0.0  ;;  %v779_v13 = vadd.f32 %v1691_v3, %v778_v8  ;;  %v780_v14 = vpop.f32.mrb[15].mxu1 }
 0x136   : > { %v1337_v15 = vpack.c.bf16 %v852_v9, %v852_v9  ;;  %v853_v16 = vmax.f32 %v675_v10, 0.0  ;;  %v1363_v17 = vpack.c.bf16 %v878_v12, %v878_v12  ;;  %v879_v18 = vmax.f32 %v779_v13, 0.0 }
 0x138   : > { %1103 = vst.msk [vmem:[%s1701_s16 + $0x18] sm:$0xf] %vm1096_vm0, %v1337_v15  ;;  %v1338_v19 = vpack.c.bf16 %v853_v16, %v853_v16  ;;  %1129 = vst.msk [vmem:[%s1701_s16 + $0x80] sm:$0xf] %vm1096_vm0, %v1363_v17  ;;  %v1364_v20 = vpack.c.bf16 %v879_v18, %v879_v18 }
 0x139   : > { %v679_v21 = vpop.f32.mrb[16].mxu0  ;;  %v783_v22 = vpop.f32.mrb[16].mxu1 }
 0x13a   : > { %1104 = vst.msk [vmem:[%s1701_s16 + $0x1c] sm:$0xf] %vm1096_vm0, %v1338_v19  ;;  %1130 = vst.msk [vmem:[%s1701_s16 + $0x84] sm:$0xf] %vm1096_vm0, %v1364_v20  ;;  %v680_v23 = vadd.f32 %v1691_v3, %v679_v21  ;;  %v681_v24 = vpop.f32.mrb[17].mxu0  ;;  %v784_v25 = vadd.f32 %v1691_v3, %v783_v22  ;;  %v785_v26 = vpop.f32.mrb[17].mxu1 }
 0x13b   : > { %v682_v27 = vpop.f32.mrb[18].mxu0  ;;  %v786_v28 = vpop.f32.mrb[18].mxu1 }
 0x13c   : > { %v854_v29 = vmax.f32 %v680_v23, 0.0  ;;  %v683_v30 = vadd.f32 %v1691_v3, %v682_v27  ;;  %v684_v31 = vpop.f32.mrb[19].mxu0  ;;  %v880_v32 = vmax.f32 %v784_v25, 0.0  ;;  %v787_v33 = vadd.f32 %v1691_v3, %v786_v28  ;;  %v788_v34 = vpop.f32.mrb[19].mxu1 }
 0x13e   : > { %v1339_v35 = vpack.c.bf16 %v854_v29, %v854_v29  ;;  %v855_v36 = vmax.f32 %v683_v30, 0.0  ;;  %v1365_v37 = vpack.c.bf16 %v880_v32, %v880_v32  ;;  %v881_v38 = vmax.f32 %v787_v33, 0.0 }
 0x140   : > { %1105 = vst.msk [vmem:[%s1701_s16 + $0x20] sm:$0xf] %vm1096_vm0, %v1339_v35  ;;  %v1340_v39 = vpack.c.bf16 %v855_v36, %v855_v36  ;;  %1131 = vst.msk [vmem:[%s1701_s16 + $0x88] sm:$0xf] %vm1096_vm0, %v1365_v37  ;;  %v1366_v40 = vpack.c.bf16 %v881_v38, %v881_v38 }
 0x141   : > { %v687_v41 = vpop.f32.mrb[20].mxu0  ;;  %v791_v42 = vpop.f32.mrb[20].mxu1 }
 0x142   : > { %1106 = vst.msk [vmem:[%s1701_s16 + $0x24] sm:$0xf] %vm1096_vm0, %v1340_v39  ;;  %1132 = vst.msk [vmem:[%s1701_s16 + $0x8c] sm:$0xf] %vm1096_vm0, %v1366_v40  ;;  %v688_v43 = vadd.f32 %v1691_v3, %v687_v41  ;;  %v689_v44 = vpop.f32.mrb[21].mxu0  ;;  %v792_v45 = vadd.f32 %v1691_v3, %v791_v42  ;;  %v793_v46 = vpop.f32.mrb[21].mxu1 }
 0x143   : > { %v690_v47 = vpop.f32.mrb[22].mxu0  ;;  %v794_v48 = vpop.f32.mrb[22].mxu1 }
 0x144   : > { %v856_v49 = vmax.f32 %v688_v43, 0.0  ;;  %v691_v50 = vadd.f32 %v1691_v3, %v690_v47  ;;  %v692_v51 = vpop.f32.mrb[23].mxu0  ;;  %v882_v52 = vmax.f32 %v792_v45, 0.0  ;;  %v795_v53 = vadd.f32 %v1691_v3, %v794_v48  ;;  %v796_v54 = vpop.f32.mrb[23].mxu1 }
 0x146   : > { %v1341_v55 = vpack.c.bf16 %v856_v49, %v856_v49  ;;  %v857_v56 = vmax.f32 %v691_v50, 0.0  ;;  %v1367_v57 = vpack.c.bf16 %v882_v52, %v882_v52  ;;  %v883_v58 = vmax.f32 %v795_v53, 0.0 }
 0x148   : > { %1107 = vst.msk [vmem:[%s1701_s16 + $0x28] sm:$0xf] %vm1096_vm0, %v1341_v55  ;;  %v1342_v59 = vpack.c.bf16 %v857_v56, %v857_v56  ;;  %1133 = vst.msk [vmem:[%s1701_s16 + $0x90] sm:$0xf] %vm1096_vm0, %v1367_v57  ;;  %v1368_v60 = vpack.c.bf16 %v883_v58, %v883_v58 }
 0x149   : > { %v695_v61 = vpop.f32.mrb[24].mxu0  ;;  %v799_v62 = vpop.f32.mrb[24].mxu1 }
 0x14a   : > { %1108 = vst.msk [vmem:[%s1701_s16 + $0x2c] sm:$0xf] %vm1096_vm0, %v1342_v59  ;;  %1134 = vst.msk [vmem:[%s1701_s16 + $0x94] sm:$0xf] %vm1096_vm0, %v1368_v60  ;;  %v696_v63 = vadd.f32 %v1691_v3, %v695_v61  ;;  %v697_v0 = vpop.f32.mrb[25].mxu0  ;;  %v800_v1 = vadd.f32 %v1691_v3, %v799_v62  ;;  %v801_v2 = vpop.f32.mrb[25].mxu1 }
 0x14b   : > { %v698_v4 = vpop.f32.mrb[26].mxu0  ;;  %v802_v5 = vpop.f32.mrb[26].mxu1 }
 0x14c   : > { %v858_v6 = vmax.f32 %v696_v63, 0.0  ;;  %v699_v7 = vadd.f32 %v1691_v3, %v698_v4  ;;  %v700_v8 = vpop.f32.mrb[27].mxu0  ;;  %v884_v9 = vmax.f32 %v800_v1, 0.0  ;;  %v803_v10 = vadd.f32 %v1691_v3, %v802_v5  ;;  %v804_v11 = vpop.f32.mrb[27].mxu1 }
 0x14e   : > { %v1343_v12 = vpack.c.bf16 %v858_v6, %v858_v6  ;;  %v859_v13 = vmax.f32 %v699_v7, 0.0  ;;  %v1369_v14 = vpack.c.bf16 %v884_v9, %v884_v9  ;;  %v885_v15 = vmax.f32 %v803_v10, 0.0 }
 0x150   : > { %1109 = vst.msk [vmem:[%s1701_s16 + $0x30] sm:$0xf] %vm1096_vm0, %v1343_v12  ;;  %v1344_v16 = vpack.c.bf16 %v859_v13, %v859_v13  ;;  %1135 = vst.msk [vmem:[%s1701_s16 + $0x98] sm:$0xf] %vm1096_vm0, %v1369_v14  ;;  %v1370_v17 = vpack.c.bf16 %v885_v15, %v885_v15 }
 0x151   : > { %v703_v18 = vpop.f32.mrb[28].mxu0  ;;  %v807_v19 = vpop.f32.mrb[28].mxu1 }
 0x152   : > { %1110 = vst.msk [vmem:[%s1701_s16 + $0x34] sm:$0xf] %vm1096_vm0, %v1344_v16  ;;  %1136 = vst.msk [vmem:[%s1701_s16 + $0x9c] sm:$0xf] %vm1096_vm0, %v1370_v17  ;;  %v704_v20 = vadd.f32 %v1691_v3, %v703_v18  ;;  %v705_v21 = vpop.f32.mrb[29].mxu0  ;;  %v808_v22 = vadd.f32 %v1691_v3, %v807_v19  ;;  %v809_v23 = vpop.f32.mrb[29].mxu1 }
 0x153   : > { %v706_v24 = vpop.f32.mrb[30].mxu0  ;;  %v810_v25 = vpop.f32.mrb[30].mxu1 }
 0x154   : > { %v860_v26 = vmax.f32 %v704_v20, 0.0  ;;  %v707_v27 = vadd.f32 %v1691_v3, %v706_v24  ;;  %v708_v28 = vpop.f32.mrb[31].mxu0  ;;  %v886_v29 = vmax.f32 %v808_v22, 0.0  ;;  %v811_v30 = vadd.f32 %v1691_v3, %v810_v25  ;;  %v812_v31 = vpop.f32.mrb[31].mxu1 }
 0x156   : > { %v1345_v32 = vpack.c.bf16 %v860_v26, %v860_v26  ;;  %v861_v33 = vmax.f32 %v707_v27, 0.0  ;;  %v1371_v34 = vpack.c.bf16 %v886_v29, %v886_v29  ;;  %v887_v35 = vmax.f32 %v811_v30, 0.0 }
 0x158   : > { %1111 = vst.msk [vmem:[%s1701_s16 + $0x38] sm:$0xf] %vm1096_vm0, %v1345_v32  ;;  %v1346_v36 = vpack.c.bf16 %v861_v33, %v861_v33  ;;  %1137 = vst.msk [vmem:[%s1701_s16 + $0xa0] sm:$0xf] %vm1096_vm0, %v1371_v34  ;;  %v1372_v37 = vpack.c.bf16 %v887_v35, %v887_v35 }
 0x159   : > { %v711_v38 = vpop.f32.mrb[32].mxu0  ;;  %v815_v39 = vpop.f32.mrb[32].mxu1 }
 0x15a   : > { %1112 = vst.msk [vmem:[%s1701_s16 + $0x3c] sm:$0xf] %vm1096_vm0, %v1346_v36  ;;  %1138 = vst.msk [vmem:[%s1701_s16 + $0xa4] sm:$0xf] %vm1096_vm0, %v1372_v37  ;;  %v712_v40 = vadd.f32 %v1691_v3, %v711_v38  ;;  %v713_v41 = vpop.f32.mrb[33].mxu0  ;;  %v816_v42 = vadd.f32 %v1691_v3, %v815_v39  ;;  %v817_v43 = vpop.f32.mrb[33].mxu1 }
 0x15b   : > { %v714_v44 = vpop.f32.mrb[34].mxu0  ;;  %v818_v45 = vpop.f32.mrb[34].mxu1 }
 0x15c   : > { %v862_v46 = vmax.f32 %v712_v40, 0.0  ;;  %v715_v47 = vadd.f32 %v1691_v3, %v714_v44  ;;  %v716_v48 = vpop.f32.mrb[35].mxu0  ;;  %v888_v49 = vmax.f32 %v816_v42, 0.0  ;;  %v819_v50 = vadd.f32 %v1691_v3, %v818_v45  ;;  %v820_v51 = vpop.f32.mrb[35].mxu1 }
 0x15e   : > { %v1347_v52 = vpack.c.bf16 %v862_v46, %v862_v46  ;;  %v863_v53 = vmax.f32 %v715_v47, 0.0  ;;  %v1373_v54 = vpack.c.bf16 %v888_v49, %v888_v49  ;;  %v889_v55 = vmax.f32 %v819_v50, 0.0 }
 0x160   : > { %1113 = vst.msk [vmem:[%s1701_s16 + $0x40] sm:$0xf] %vm1096_vm0, %v1347_v52  ;;  %v1348_v56 = vpack.c.bf16 %v863_v53, %v863_v53  ;;  %1139 = vst.msk [vmem:[%s1701_s16 + $0xa8] sm:$0xf] %vm1096_vm0, %v1373_v54  ;;  %v1374_v57 = vpack.c.bf16 %v889_v55, %v889_v55 }
 0x161   : > { %v719_v58 = vpop.f32.mrb[36].mxu0  ;;  %v823_v59 = vpop.f32.mrb[36].mxu1 }
 0x162   : > { %1114 = vst.msk [vmem:[%s1701_s16 + $0x44] sm:$0xf] %vm1096_vm0, %v1348_v56  ;;  %1140 = vst.msk [vmem:[%s1701_s16 + $0xac] sm:$0xf] %vm1096_vm0, %v1374_v57  ;;  %v720_v60 = vadd.f32 %v1691_v3, %v719_v58  ;;  %v721_v61 = vpop.f32.mrb[37].mxu0  ;;  %v824_v62 = vadd.f32 %v1691_v3, %v823_v59  ;;  %v825_v63 = vpop.f32.mrb[37].mxu1 }
 0x163   : > { %v722_v0 = vpop.f32.mrb[38].mxu0  ;;  %v826_v1 = vpop.f32.mrb[38].mxu1 }
 0x164   : > { %v864_v2 = vmax.f32 %v720_v60, 0.0  ;;  %v723_v4 = vadd.f32 %v1691_v3, %v722_v0  ;;  %v724_v5 = vpop.f32.mrb[39].mxu0  ;;  %v890_v6 = vmax.f32 %v824_v62, 0.0  ;;  %v827_v7 = vadd.f32 %v1691_v3, %v826_v1  ;;  %v828_v8 = vpop.f32.mrb[39].mxu1 }
 0x166   : > { %v1349_v9 = vpack.c.bf16 %v864_v2, %v864_v2  ;;  %v865_v10 = vmax.f32 %v723_v4, 0.0  ;;  %v1375_v11 = vpack.c.bf16 %v890_v6, %v890_v6  ;;  %v891_v12 = vmax.f32 %v827_v7, 0.0 }
 0x168   : > { %1115 = vst.msk [vmem:[%s1701_s16 + $0x48] sm:$0xf] %vm1096_vm0, %v1349_v9  ;;  %v1350_v13 = vpack.c.bf16 %v865_v10, %v865_v10  ;;  %1141 = vst.msk [vmem:[%s1701_s16 + $0xb0] sm:$0xf] %vm1096_vm0, %v1375_v11  ;;  %v1376_v14 = vpack.c.bf16 %v891_v12, %v891_v12 }
 0x169   : > { %v727_v15 = vpop.f32.mrb[40].mxu0  ;;  %v831_v16 = vpop.f32.mrb[40].mxu1 }
 0x16a   : > { %1116 = vst.msk [vmem:[%s1701_s16 + $0x4c] sm:$0xf] %vm1096_vm0, %v1350_v13  ;;  %1142 = vst.msk [vmem:[%s1701_s16 + $0xb4] sm:$0xf] %vm1096_vm0, %v1376_v14  ;;  %v728_v17 = vadd.f32 %v1691_v3, %v727_v15  ;;  %v729_v18 = vpop.f32.mrb[41].mxu0  ;;  %v832_v19 = vadd.f32 %v1691_v3, %v831_v16  ;;  %v833_v20 = vpop.f32.mrb[41].mxu1 }
 0x16b   : > { %v730_v21 = vpop.f32.mrb[42].mxu0  ;;  %v834_v22 = vpop.f32.mrb[42].mxu1 }
 0x16c   : > { %v866_v23 = vmax.f32 %v728_v17, 0.0  ;;  %v731_v24 = vadd.f32 %v1691_v3, %v730_v21  ;;  %v732_v25 = vpop.f32.mrb[43].mxu0  ;;  %v892_v26 = vmax.f32 %v832_v19, 0.0  ;;  %v835_v27 = vadd.f32 %v1691_v3, %v834_v22  ;;  %v836_v28 = vpop.f32.mrb[43].mxu1 }
 0x16e   : > { %v1351_v29 = vpack.c.bf16 %v866_v23, %v866_v23  ;;  %v867_v30 = vmax.f32 %v731_v24, 0.0  ;;  %v1377_v31 = vpack.c.bf16 %v892_v26, %v892_v26  ;;  %v893_v32 = vmax.f32 %v835_v27, 0.0 }
 0x170   : > { %1117 = vst.msk [vmem:[%s1701_s16 + $0x50] sm:$0xf] %vm1096_vm0, %v1351_v29  ;;  %v1352_v33 = vpack.c.bf16 %v867_v30, %v867_v30  ;;  %1143 = vst.msk [vmem:[%s1701_s16 + $0xb8] sm:$0xf] %vm1096_vm0, %v1377_v31  ;;  %v1378_v34 = vpack.c.bf16 %v893_v32, %v893_v32 }
 0x171   : > { %v735_v35 = vpop.f32.mrb[44].mxu0  ;;  %v839_v36 = vpop.f32.mrb[44].mxu1 }
 0x172   : > { %1118 = vst.msk [vmem:[%s1701_s16 + $0x54] sm:$0xf] %vm1096_vm0, %v1352_v33  ;;  %1144 = vst.msk [vmem:[%s1701_s16 + $0xbc] sm:$0xf] %vm1096_vm0, %v1378_v34  ;;  %v736_v37 = vadd.f32 %v1691_v3, %v735_v35  ;;  %v737_v38 = vpop.f32.mrb[45].mxu0  ;;  %v840_v39 = vadd.f32 %v1691_v3, %v839_v36  ;;  %v841_v40 = vpop.f32.mrb[45].mxu1 }
 0x173   : > { %v738_v41 = vpop.f32.mrb[46].mxu0  ;;  %v842_v42 = vpop.f32.mrb[46].mxu1 }
 0x174   : > { %v868_v43 = vmax.f32 %v736_v37, 0.0  ;;  %v739_v44 = vadd.f32 %v1691_v3, %v738_v41  ;;  %v740_v45 = vpop.f32.mrb[47].mxu0  ;;  %v894_v46 = vmax.f32 %v840_v39, 0.0  ;;  %v843_v47 = vadd.f32 %v1691_v3, %v842_v42  ;;  %v844_v48 = vpop.f32.mrb[47].mxu1 }
 0x176   : > { %v1353_v49 = vpack.c.bf16 %v868_v43, %v868_v43  ;;  %v869_v50 = vmax.f32 %v739_v44, 0.0  ;;  %v1379_v51 = vpack.c.bf16 %v894_v46, %v894_v46  ;;  %v895_v52 = vmax.f32 %v843_v47, 0.0 }
 0x178   : > { %1119 = vst.msk [vmem:[%s1701_s16 + $0x58] sm:$0xf] %vm1096_vm0, %v1353_v49  ;;  %v1354_v53 = vpack.c.bf16 %v869_v50, %v869_v50  ;;  %1145 = vst.msk [vmem:[%s1701_s16 + $0xc0] sm:$0xf] %vm1096_vm0, %v1379_v51  ;;  %v1380_v54 = vpack.c.bf16 %v895_v52, %v895_v52 }
 0x179   : > { %v743_v55 = vpop.f32.mrb[48].mxu0 }
 0x17a   : > { %1120 = vst.msk [vmem:[%s1701_s16 + $0x5c] sm:$0xf] %vm1096_vm0, %v1354_v53  ;;  %1146 = vst.msk [vmem:[%s1701_s16 + $0xc4] sm:$0xf] %vm1096_vm0, %v1380_v54  ;;  %v744_v56 = vadd.f32 %v1691_v3, %v743_v55  ;;  %v745_v57 = vpop.f32.mrb[49].mxu0 }
 0x17b   : > { %v746_v58 = vpop.f32.mrb[50].mxu0 }
 0x17c   : > { %v870_v59 = vmax.f32 %v744_v56, 0.0  ;;  %v747_v60 = vadd.f32 %v1691_v3, %v746_v58  ;;  %v748_v61 = vpop.f32.mrb[51].mxu0 }
 0x17e   : > { %v1355_v62 = vpack.c.bf16 %v870_v59, %v870_v59  ;;  %v871_v63 = vmax.f32 %v747_v60, 0.0 }
 0x180   : > { %1121 = vst.msk [vmem:[%s1701_s16 + $0x60] sm:$0xf] %vm1096_vm0, %v1355_v62  ;;  %v1356_v0 = vpack.c.bf16 %v871_v63, %v871_v63 }
 0x182   : > { %1122 = vst.msk [vmem:[%s1701_s16 + $0x64] sm:$0xf] %vm1096_vm0, %v1356_v0 }
 0x183 PF: > { %s13_s12 = sadd.s32 1, %s1519_s12  }
 0x184   : > { %p10_p4 = scmp.ge.s32.totalorder %s13_s12, 4  }
 0x186   :  { %12 = sbr.rel (!%p10_p4) target bundleno = 1 (0x1), region = 62 }

// kernel: actor_cnn_forward.4
= control target key start
LH: loop header
LB: loop body
LE: loop exit
PB: predicated region body
PF: predicated region fallthrough
CT: control target
= control target key end

     0   :  { %s1555_s12 = smov 0   ;;  %s1557_s13 = smov 0   ;;  %s1812_s0 = inlined_call_operand.vmem [shape: bf16[162,512], index: 0, kind: input, shape index: {}]   ;;  %s1813_s1 = inlined_call_operand.vmem [shape: bf16[512,64], index: 1, kind: input, shape index: {}]   ;;  %s1814_s2 = inlined_call_operand.vmem [shape: f32[1,64], index: 2, kind: input, shape index: {}]   ;;  %s1815_s3 = inlined_call_operand.vmem [shape: bf16[162,64], index: 3, kind: output, shape index: {}]  }
   0x1   :  { %s1559_s14 = smov 0  }
   0x2 LB: > { %s1568_s15 = sadd.s32 4294967295, %s1501_s14   ;;  %s1570_s16 = sadd.s32 1, %s1501_s14   ;;  %s1501_s14 = sphi %s1559_s14, %s1822_s14   ;;  %s1497_s13 = sphi %s1557_s13, %s1821_s13   ;;  %s1493_s12 = sphi %s1555_s12, %s1820_s12  }
   0x3   : > { %s85_s17 = ssub.s32 %s1501_s14, %s1570_s16  ;;  %s88_s18 = sadd.s32 1, %s1497_s13 }
   0x4   : > { %p86_p0 = scmp.eq.s32.totalorder %s85_s17, 0  ;;  %p98_p1 = scmp.ne.s32.totalorder %s1497_s13, %s1493_s12 }
   0x5   : > { %p99_p2 = scmp.eq.s32.totalorder %s1568_s15, 1  ;;  %p1087_p3 = scmp.ge.s32.totalorder %s1501_s14, 1 }
   0x6   : > { %s1578_s19 = scalar_select %p86_p0, %s1497_s13, %s88_s18  }
   0x7   : > { %p1580_p4 = por %p99_p2, %p98_p1  ;;  %p149_p5 = scmp.lt.s32.totalorder %s1501_s14, 3 }
   0x9   : > { %p150_p6 = pnand %p1087_p3, %p149_p5 }
   0xa   : > { %v1377_v0 = vld [vmem:[%s1813_s1 + $0x40] sm:$0xff] (!%p150_p6)   ;;  %v1381_v4 = vld [vmem:[%s1813_s1 + $0x48] sm:$0xff] (!%p150_p6)   ;;  %v1385_v8 = vld [vmem:[%s1813_s1 + $0x50] sm:$0xff] (!%p150_p6)   ;;  %s1630_s30 = smul.u32 (!%p150_p6), 11, %s1568_s15  ;;  %s175_s5 = sand.u32 (!%p150_p6), 1, %s1493_s12   ;;  %vm816_vm0 = vcmask (!%p150_p6), 519168  }
   0xb   : > { %153 = sbr.rel (%p150_p6) target bundleno = 377 (0x179), region = 32  ;;  %v1378_v1 = vld [vmem:[%s1813_s1 + $0xc0] sm:$0xff] (!%p150_p6)   ;;  %1183 = vmatprep.subr.bf16.mxu0 (!%p150_p6), %v1377_v0  ;;  %v1382_v5 = vld [vmem:[%s1813_s1 + $0xc8] sm:$0xff] (!%p150_p6)   ;;  %v1386_v9 = vld [vmem:[%s1813_s1 + $0xd0] sm:$0xff] (!%p150_p6)  }
   0xc   : > { %v1379_v2 = vld [vmem:[%s1813_s1] sm:$0xff] (!%p150_p6)   ;;  %1235 = vmatprep.subr.bf16.mxu1 (!%p150_p6), %v1378_v1  ;;  %v1383_v6 = vld [vmem:[%s1813_s1 + $0x8] sm:$0xff] (!%p150_p6)   ;;  %v1387_v10 = vld [vmem:[%s1813_s1 + $0x10] sm:$0xff] (!%p150_p6)   ;;  %p184_p7 = scmp.lt.s32.totalorder (!%p150_p6), %s1630_s30, 20  ;;  %s1287_s6 = smul.u32 (!%p150_p6), 44, %s175_s5 }
   0xd   : > { %v1380_v3 = vld [vmem:[%s1813_s1 + $0x80] sm:$0xff] (!%p150_p6)   ;;  %1184 = vmatpush3.bf16.msra.mxu0 (!%p150_p6), %v1379_v2  ;;  %v1384_v7 = vld [vmem:[%s1813_s1 + $0x88] sm:$0xff] (!%p150_p6)   ;;  %v1388_v11 = vld [vmem:[%s1813_s1 + $0x90] sm:$0xff] (!%p150_p6)  }
   0xe   : > { %1236 = vmatpush3.bf16.msra.mxu1 (!%p150_p6), %v1380_v3  ;;  %1185 = vmatprep.subr.bf16.mxu0 (!%p150_p6), %v1381_v4  ;;  %v1389_v12 = vld [vmem:[%s1813_s1 + $0x58] sm:$0xff] (!%p150_p6)   ;;  %v1393_v16 = vld [vmem:[%s1813_s1 + $0x60] sm:$0xff] (!%p150_p6)   ;;  %v1397_v20 = vld [vmem:[%s1813_s1 + $0x68] sm:$0xff] (!%p150_p6)   ;;  %s1720_s12 = scalar_lea.vmem (!%p150_p6), [#allocation2], %s1287_s6  }
   0xf   : > { %1237 = vmatprep.subr.bf16.mxu1 (!%p150_p6), %v1382_v5  ;;  %v1390_v13 = vld [vmem:[%s1813_s1 + $0xd8] sm:$0xff] (!%p150_p6)   ;;  %v1394_v17 = vld [vmem:[%s1813_s1 + $0xe0] sm:$0xff] (!%p150_p6)   ;;  %v1398_v21 = vld [vmem:[%s1813_s1 + $0xe8] sm:$0xff] (!%p150_p6)  }
  0x10   : > { %v1391_v14 = vld [vmem:[%s1813_s1 + $0x18] sm:$0xff] (!%p150_p6)   ;;  %v1395_v18 = vld [vmem:[%s1813_s1 + $0x20] sm:$0xff] (!%p150_p6)   ;;  %v1399_v22 = vld [vmem:[%s1813_s1 + $0x28] sm:$0xff] (!%p150_p6)  }
  0x11   : > { %1186 = vmatpush3.bf16.msra.mxu0 (!%p150_p6), %v1383_v6  ;;  %v1392_v15 = vld [vmem:[%s1813_s1 + $0x98] sm:$0xff] (!%p150_p6)   ;;  %v1396_v19 = vld [vmem:[%s1813_s1 + $0xa0] sm:$0xff] (!%p150_p6)   ;;  %v1400_v23 = vld [vmem:[%s1813_s1 + $0xa8] sm:$0xff] (!%p150_p6)  }
  0x12   : > { %1238 = vmatpush3.bf16.msra.mxu1 %v1384_v7  ;;  %1187 = vmatprep.subr.bf16.mxu0 %v1385_v8  ;;  %s185_s26 = scalar_select %p184_p7, %s1630_s30, 20  ;;  %v1401_v24 = vld [vmem:[%s1813_s1 + $0x70] sm:$0xff]   ;;  %v1405_v28 = vld [vmem:[%s1813_s1 + $0x78] sm:$0xff]   ;;  %v1715_v60 = vld [vmem:[%s1814_s2] ss:$0 sm:$0xff] }
  0x13   : > { %1239 = vmatprep.subr.bf16.mxu1 %v1386_v9  ;;  %v1402_v25 = vld [vmem:[%s1813_s1 + $0xf0] sm:$0xff]   ;;  %v1406_v29 = vld [vmem:[%s1813_s1 + $0xf8] sm:$0xff]   ;;  %s836_s7 = ssub.s32 (%p1580_p4), 21, %s1630_s30  ;;  %s1182_s8 = smul.u32 (%p1580_p4), 44, %s1568_s15 }
  0x14   : > { %v1403_v26 = vld [vmem:[%s1813_s1 + $0x30] sm:$0xff]   ;;  %s1170_s9 = sshll.u32 %s185_s26, 4  ;;  %v1407_v30 = vld [vmem:[%s1813_s1 + $0x38] sm:$0xff]   ;;  %p837_p8 = scmp.lt.s32.totalorder (%p1580_p4), %s836_s7, 11 }
  0x15   : > { %1188 = vmatpush3.bf16.msra.mxu0 %v1387_v10  ;;  %v1404_v27 = vld [vmem:[%s1813_s1 + $0xb0] sm:$0xff]   ;;  %s1682_s24 = scalar_lea.vmem %s1812_s0, %s1170_s9  ;;  %v1408_v31 = vld [vmem:[%s1813_s1 + $0xb8] sm:$0xff]   ;;  %s1760_s11 = scalar_lea.vmem (%p1580_p4), %s1815_s3, %s1182_s8  }
  0x16   : > { %1240 = vmatpush3.bf16.msra.mxu1 %v1388_v11  ;;  %1189 = vmatprep.subr.bf16.mxu0 %v1389_v12  ;;  %v1409_v32 = vld [vmem:[%s1682_s24] ss:$16 sps:$4 sm:$0xff]   ;;  %v1411_v33 = vld [vmem:[%s1682_s24 + $0x4] ss:$16 sps:$4 sm:$0xff]   ;;  %v1412_v34 = vld [vmem:[%s1682_s24 + $0x8] ss:$16 sps:$4 sm:$0xff]  }
  0x17   : > { %1241 = vmatprep.subr.bf16.mxu1 %v1390_v13  ;;  %v1414_v35 = vld [vmem:[%s1682_s24 + $0xc] ss:$16 sps:$4 sm:$0xff]   ;;  %632 = vmatprep.mubr.bf16.mxu0 %v1411_v33  ;;  %v1415_v36 = vld [vmem:[%s1682_s24 + $0x24] ss:$16 sps:$4 sm:$0xff]   ;;  %v1419_v38 = vld [vmem:[%s1682_s24 + $0x20] ss:$16 sps:$4 sm:$0xff]  }
  0x18   : > { %712 = vmatprep.mubr.bf16.mxu1 %v1414_v35  ;;  %v1417_v37 = vld [vmem:[%s1682_s24 + $0x2c] ss:$16 sps:$4 sm:$0xff]   ;;  %v1420_v39 = vld [vmem:[%s1682_s24 + $0x28] ss:$16 sps:$4 sm:$0xff]   ;;  %v1421_v40 = vld [vmem:[%s1682_s24 + $0x44] ss:$16 sps:$4 sm:$0xff]  }
  0x19   : > { %1190 = vmatpush3.bf16.msra.mxu0 %v1391_v14  ;;  %v1423_v41 = vld [vmem:[%s1682_s24 + $0x4c] ss:$16 sps:$4 sm:$0xff]   ;;  %v1425_v42 = vld [vmem:[%s1682_s24 + $0x40] ss:$16 sps:$4 sm:$0xff]   ;;  %v1426_v43 = vld [vmem:[%s1682_s24 + $0x48] ss:$16 sps:$4 sm:$0xff]  }
  0x1a   : > { %1242 = vmatpush3.bf16.msra.mxu1 %v1392_v15  ;;  %1191 = vmatprep.subr.bf16.mxu0 %v1393_v16  ;;  %v1427_v44 = vld [vmem:[%s1682_s24 + $0x64] ss:$16 sps:$4 sm:$0xff]   ;;  %v1429_v45 = vld [vmem:[%s1682_s24 + $0x6c] ss:$16 sps:$4 sm:$0xff]   ;;  %v1431_v46 = vld [vmem:[%s1682_s24 + $0x60] ss:$16 sps:$4 sm:$0xff]  }
  0x1b   : > { %1243 = vmatprep.subr.bf16.mxu1 %v1394_v17  ;;  %v1432_v47 = vld [vmem:[%s1682_s24 + $0x68] ss:$16 sps:$4 sm:$0xff]   ;;  %v1433_v48 = vld [vmem:[%s1682_s24 + $0x84] ss:$16 sps:$4 sm:$0xff]   ;;  %v1435_v49 = vld [vmem:[%s1682_s24 + $0x8c] ss:$16 sps:$4 sm:$0xff]  }
  0x1c   : > { %v221_v50 = vld [vmem:[%s1682_s24 + $0xa0] sm:$0xff]  ;;  %v222_v51 = vld [vmem:[%s1682_s24 + $0xa8] sm:$0xff] }
  0x1d   : > { %1192 = vmatpush3.bf16.msra.mxu0 %v1395_v18  ;;  %v1437_v52 = vld [vmem:[%s1682_s24 + $0x80] ss:$16 sps:$4 sm:$0xff]   ;;  %v1438_v53 = vld [vmem:[%s1682_s24 + $0x88] ss:$16 sps:$4 sm:$0xff]   ;;  %v1112_v54 = vcombine.high %v221_v50, %v221_v50  ;;  %v1114_v55 = vcombine.high %v222_v51, %v222_v51  ;;  %v1111_v56 = vcombine.low %v221_v50, %v221_v50  ;;  %v1113_v57 = vcombine.low %v222_v51, %v222_v51 }
  0x1e   : > { %1244 = vmatpush3.bf16.msra.mxu1 %v1396_v19  ;;  %1193 = vmatprep.subr.bf16.mxu0 %v1397_v20 }
  0x1f   : > { %1245 = vmatprep.subr.bf16.mxu1 %v1398_v21 }
  0x21   : > { %1194 = vmatpush3.bf16.msra.mxu0 %v1399_v22 }
  0x22   : > { %1246 = vmatpush3.bf16.msra.mxu1 %v1400_v23  ;;  %1195 = vmatprep.subr.bf16.mxu0 %v1401_v24 }
  0x23   : > { %1247 = vmatprep.subr.bf16.mxu1 %v1402_v25 }
  0x25   : > { %1196 = vmatpush3.bf16.msra.mxu0 %v1403_v26 }
  0x26   : > { %1248 = vmatpush3.bf16.msra.mxu1 %v1404_v27  ;;  %1197 = vmatprep.subr.bf16.mxu0 %v1405_v28 }
  0x27   : > { %1249 = vmatprep.subr.bf16.mxu1 %v1406_v29 }
  0x29   : > { %1198 = vmatpush3.bf16.msra.mxu0 %v1407_v30 }
  0x2a   : > { %1250 = vmatpush3.bf16.msra.mxu1 %v1408_v31 }
  0x2c   : > { %633 = vmatmul.mubr.bf16.vlgmr.msra.gmra.mrb[0].mxu0 %v1409_v32 }
  0x2d   : > { %713 = vmatmul.mubr.bf16.vlgmr.msra.gmra.mrb[0].mxu1 %v1412_v34  ;;  %640 = vmatprep.mubr.bf16.mxu0 %v1415_v36 }
  0x2e   : > { %720 = vmatprep.mubr.bf16.mxu1 %v1417_v37 }
  0x34   : > { %641 = vmatmul.mubr.bf16.gmra.mrb[4].mxu0 %v1419_v38 }
  0x35   : > { %721 = vmatmul.mubr.bf16.gmra.mrb[4].mxu1 %v1420_v39  ;;  %648 = vmatprep.mubr.bf16.mxu0 %v1421_v40 }
  0x36   : > { %728 = vmatprep.mubr.bf16.mxu1 %v1423_v41 }
  0x3c   : > { %649 = vmatmul.mubr.bf16.gmra.mrb[8].mxu0 %v1425_v42 }
  0x3d   : > { %729 = vmatmul.mubr.bf16.gmra.mrb[8].mxu1 %v1426_v43  ;;  %656 = vmatprep.mubr.bf16.mxu0 %v1427_v44 }
  0x3e   : > { %736 = vmatprep.mubr.bf16.mxu1 %v1429_v45 }
  0x44   : > { %657 = vmatmul.mubr.bf16.gmra.mrb[12].mxu0 %v1431_v46 }
  0x45   : > { %737 = vmatmul.mubr.bf16.gmra.mrb[12].mxu1 %v1432_v47  ;;  %664 = vmatprep.mubr.bf16.mxu0 %v1433_v48 }
  0x46   : > { %744 = vmatprep.mubr.bf16.mxu1 %v1435_v49 }
  0x4c   : > { %665 = vmatmul.mubr.bf16.gmra.mrb[16].mxu0 %v1437_v52 }
  0x4d   : > { %745 = vmatmul.mubr.bf16.gmra.mrb[16].mxu1 %v1438_v53  ;;  %672 = vmatprep.mubr.bf16.mxu0 %v1112_v54 }
  0x4e   : > { %752 = vmatprep.mubr.bf16.mxu1 %v1114_v55 }
  0x54   : > { %673 = vmatmul.mubr.bf16.gmra.mrb[20].mxu0 %v1111_v56 }
  0x55   : > { %753 = vmatmul.mubr.bf16.gmra.mrb[20].mxu1 %v1113_v57 }
  0xff   : > { %v1199_v58 = vpop.f32.mrb[0].mxu0 }
 0x100   : > { %v1251_v59 = vpop.f32.mrb[0].mxu1  ;;  %v1200_v61 = vpop.f32.mrb[1].mxu0 }
 0x101   : > { %v1201_v62 = vadd.f32 %v1200_v61, %v1199_v58  ;;  %v1252_v63 = vpop.f32.mrb[1].mxu1  ;;  %v1202_v0 = vpop.f32.mrb[2].mxu0 }
 0x102   : > { %v1253_v1 = vadd.f32 %v1252_v63, %v1251_v59  ;;  %v1254_v2 = vpop.f32.mrb[2].mxu1  ;;  %v1203_v3 = vpop.f32.mrb[3].mxu0 }
 0x103   : > { %v635_v4 = vadd.f32 %v1201_v62, %v1715_v60  ;;  %v1204_v5 = vadd.f32 %v1203_v3, %v1202_v0  ;;  %v1255_v6 = vpop.f32.mrb[3].mxu1 }
 0x104   : > { %v1256_v7 = vadd.f32 %v1255_v6, %v1254_v2 }
 0x105   : > { %v715_v8 = vadd.f32 %v1253_v1, %v635_v4  ;;  %v638_v9 = vadd.f32 %v1204_v5, %v1715_v60 }
 0x107   : > { %v760_v10 = vmax.f32 %v715_v8, 0.0  ;;  %v718_v11 = vadd.f32 %v1256_v7, %v638_v9  ;;  %v1205_v12 = vpop.f32.mrb[4].mxu0 }
 0x108   : > { %v1257_v13 = vpop.f32.mrb[4].mxu1  ;;  %v1206_v14 = vpop.f32.mrb[5].mxu0 }
 0x109   : > { %v1171_v15 = vpack.c.bf16 %v760_v10, %v760_v10  ;;  %v761_v16 = vmax.f32 %v718_v11, 0.0  ;;  %v1207_v17 = vadd.f32 %v1206_v14, %v1205_v12  ;;  %v1258_v18 = vpop.f32.mrb[5].mxu1  ;;  %v1208_v19 = vpop.f32.mrb[6].mxu0 }
 0x10a   : > { %v1259_v20 = vadd.f32 %v1258_v18, %v1257_v13  ;;  %v1260_v21 = vpop.f32.mrb[6].mxu1  ;;  %v1209_v22 = vpop.f32.mrb[7].mxu0 }
 0x10b   : > { %817 = vst.msk [vmem:[%s1720_s12] sm:$0xf] %vm816_vm0, %v1171_v15  ;;  %v1172_v23 = vpack.c.bf16 %v761_v16, %v761_v16  ;;  %v643_v24 = vadd.f32 %v1207_v17, %v1715_v60  ;;  %v1210_v25 = vadd.f32 %v1209_v22, %v1208_v19  ;;  %v1261_v26 = vpop.f32.mrb[7].mxu1 }
 0x10c   : > { %v1262_v27 = vadd.f32 %v1261_v26, %v1260_v21 }
 0x10d   : > { %818 = vst.msk [vmem:[%s1720_s12 + $0x4] sm:$0xf] %vm816_vm0, %v1172_v23  ;;  %v723_v28 = vadd.f32 %v1259_v20, %v643_v24  ;;  %v646_v29 = vadd.f32 %v1210_v25, %v1715_v60 }
 0x10f   : > { %v762_v30 = vmax.f32 %v723_v28, 0.0  ;;  %v726_v31 = vadd.f32 %v1262_v27, %v646_v29  ;;  %v1211_v32 = vpop.f32.mrb[8].mxu0 }
 0x110   : > { %v1263_v33 = vpop.f32.mrb[8].mxu1  ;;  %v1212_v34 = vpop.f32.mrb[9].mxu0 }
 0x111   : > { %v1173_v35 = vpack.c.bf16 %v762_v30, %v762_v30  ;;  %v763_v36 = vmax.f32 %v726_v31, 0.0  ;;  %v1213_v37 = vadd.f32 %v1212_v34, %v1211_v32  ;;  %v1264_v38 = vpop.f32.mrb[9].mxu1  ;;  %v1214_v39 = vpop.f32.mrb[10].mxu0 }
 0x112   : > { %v1265_v40 = vadd.f32 %v1264_v38, %v1263_v33  ;;  %v1266_v41 = vpop.f32.mrb[10].mxu1  ;;  %v1215_v42 = vpop.f32.mrb[11].mxu0 }
 0x113   : > { %819 = vst.msk [vmem:[%s1720_s12 + $0x8] sm:$0xf] %vm816_vm0, %v1173_v35  ;;  %v1174_v43 = vpack.c.bf16 %v763_v36, %v763_v36  ;;  %v651_v44 = vadd.f32 %v1213_v37, %v1715_v60  ;;  %v1216_v45 = vadd.f32 %v1215_v42, %v1214_v39  ;;  %v1267_v46 = vpop.f32.mrb[11].mxu1 }
 0x114   : > { %v1268_v47 = vadd.f32 %v1267_v46, %v1266_v41 }
 0x115   : > { %820 = vst.msk [vmem:[%s1720_s12 + $0xc] sm:$0xf] %vm816_vm0, %v1174_v43  ;;  %v731_v48 = vadd.f32 %v1265_v40, %v651_v44  ;;  %v654_v49 = vadd.f32 %v1216_v45, %v1715_v60 }
 0x117   : > { %v764_v50 = vmax.f32 %v731_v48, 0.0  ;;  %v734_v51 = vadd.f32 %v1268_v47, %v654_v49  ;;  %v1217_v52 = vpop.f32.mrb[12].mxu0 }
 0x118   : > { %v1269_v53 = vpop.f32.mrb[12].mxu1  ;;  %v1218_v54 = vpop.f32.mrb[13].mxu0 }
 0x119   : > { %v1175_v55 = vpack.c.bf16 %v764_v50, %v764_v50  ;;  %v765_v56 = vmax.f32 %v734_v51, 0.0  ;;  %v1219_v57 = vadd.f32 %v1218_v54, %v1217_v52  ;;  %v1270_v58 = vpop.f32.mrb[13].mxu1  ;;  %v1220_v59 = vpop.f32.mrb[14].mxu0 }
 0x11a   : > { %v1271_v61 = vadd.f32 %v1270_v58, %v1269_v53  ;;  %v1272_v62 = vpop.f32.mrb[14].mxu1  ;;  %v1221_v63 = vpop.f32.mrb[15].mxu0 }
 0x11b   : > { %821 = vst.msk [vmem:[%s1720_s12 + $0x10] sm:$0xf] %vm816_vm0, %v1175_v55  ;;  %v1176_v0 = vpack.c.bf16 %v765_v56, %v765_v56  ;;  %v659_v1 = vadd.f32 %v1219_v57, %v1715_v60  ;;  %v1222_v2 = vadd.f32 %v1221_v63, %v1220_v59  ;;  %v1273_v3 = vpop.f32.mrb[15].mxu1 }
 0x11c   : > { %v1274_v4 = vadd.f32 %v1273_v3, %v1272_v62 }
 0x11d   : > { %822 = vst.msk [vmem:[%s1720_s12 + $0x14] sm:$0xf] %vm816_vm0, %v1176_v0  ;;  %v739_v5 = vadd.f32 %v1271_v61, %v659_v1  ;;  %v662_v6 = vadd.f32 %v1222_v2, %v1715_v60 }
 0x11f   : > { %v766_v7 = vmax.f32 %v739_v5, 0.0  ;;  %v742_v8 = vadd.f32 %v1274_v4, %v662_v6  ;;  %v1223_v9 = vpop.f32.mrb[16].mxu0 }
 0x120   : > { %v1275_v10 = vpop.f32.mrb[16].mxu1  ;;  %v1224_v11 = vpop.f32.mrb[17].mxu0 }
 0x121   : > { %v1177_v12 = vpack.c.bf16 %v766_v7, %v766_v7  ;;  %v767_v13 = vmax.f32 %v742_v8, 0.0  ;;  %v1225_v14 = vadd.f32 %v1224_v11, %v1223_v9  ;;  %v1276_v15 = vpop.f32.mrb[17].mxu1  ;;  %v1226_v16 = vpop.f32.mrb[18].mxu0 }
 0x122   : > { %v1277_v17 = vadd.f32 %v1276_v15, %v1275_v10  ;;  %v1278_v18 = vpop.f32.mrb[18].mxu1  ;;  %v1227_v19 = vpop.f32.mrb[19].mxu0 }
 0x123   : > { %823 = vst.msk [vmem:[%s1720_s12 + $0x18] sm:$0xf] %vm816_vm0, %v1177_v12  ;;  %v1178_v20 = vpack.c.bf16 %v767_v13, %v767_v13  ;;  %v667_v21 = vadd.f32 %v1225_v14, %v1715_v60  ;;  %v1228_v22 = vadd.f32 %v1227_v19, %v1226_v16  ;;  %v1279_v23 = vpop.f32.mrb[19].mxu1 }
 0x124   : > { %v1280_v24 = vadd.f32 %v1279_v23, %v1278_v18 }
 0x125   : > { %824 = vst.msk [vmem:[%s1720_s12 + $0x1c] sm:$0xf] %vm816_vm0, %v1178_v20  ;;  %v747_v25 = vadd.f32 %v1277_v17, %v667_v21  ;;  %v670_v26 = vadd.f32 %v1228_v22, %v1715_v60 }
 0x127   : > { %v768_v27 = vmax.f32 %v747_v25, 0.0  ;;  %v750_v28 = vadd.f32 %v1280_v24, %v670_v26  ;;  %v1229_v29 = vpop.f32.mrb[20].mxu0 }
 0x128   : > { %v1281_v30 = vpop.f32.mrb[20].mxu1  ;;  %v1230_v31 = vpop.f32.mrb[21].mxu0 }
 0x129   : > { %v1179_v32 = vpack.c.bf16 %v768_v27, %v768_v27  ;;  %v769_v33 = vmax.f32 %v750_v28, 0.0  ;;  %v1231_v34 = vadd.f32 %v1230_v31, %v1229_v29  ;;  %v1282_v35 = vpop.f32.mrb[21].mxu1  ;;  %v1232_v36 = vpop.f32.mrb[22].mxu0 }
 0x12a   : > { %v1283_v37 = vadd.f32 %v1282_v35, %v1281_v30  ;;  %v1284_v38 = vpop.f32.mrb[22].mxu1  ;;  %v1233_v39 = vpop.f32.mrb[23].mxu0 }
 0x12b   : > { %825 = vst.msk [vmem:[%s1720_s12 + $0x20] sm:$0xf] %vm816_vm0, %v1179_v32  ;;  %v1180_v40 = vpack.c.bf16 %v769_v33, %v769_v33  ;;  %v675_v41 = vadd.f32 %v1231_v34, %v1715_v60  ;;  %v1285_v42 = vpop.f32.mrb[23].mxu1 }
 0x12d   : > { %826 = vst.msk [vmem:[%s1720_s12 + $0x24] sm:$0xf] %vm816_vm0, %v1180_v40  ;;  %v755_v43 = vadd.f32 %v1283_v37, %v675_v41  ;;  %834 = sbr.rel (!%p1580_p4) target bundleno = 377 (0x179), region = 36 }
 0x12f   : > { %v770_v44 = vmax.f32 %v755_v43, 0.0 }
 0x131   : > { %v1181_v45 = vpack.c.bf16 %v770_v44, %v770_v44 }
 0x133   : > { %827 = vst.msk [vmem:[%s1720_s12 + $0x28] sm:$0xf] %vm816_vm0, %v1181_v45 }
 0x134   : > { %s1824_s7 = smov (!%p837_p8, %s836_s7), 11 }
 0x135   : > { %s1158_s14 = sshll.u32 %s1824_s7, 6 }
 0x136   : > { %p1161_p9 = scmp.eq.s32.totalorder %s1158_s14, 0 }
 0x137   : > { %1443 = sdivrem.u32 (!%p1161_p9), %s1824_s7, 11 }
 0x138   : > { %845 = sbr.rel (%p1161_p9) target bundleno = 377 (0x179), region = 40 }
 0x140   : > { %s1766_s20 = spop.drf %1443 }
 0x141   : > { %p1162_p10 = scmp.le.s32.totalorder %s1766_s20, 0 }
 0x142   : > { %s1817_s15 = smov (!%p1162_p10), %s1760_s11  ;;  %s1818_s30 = smov (!%p1162_p10), %s1720_s12 }
 0x143   : > { %1040 = sbr.rel (%p1162_p10) target bundleno = 348 (0x15c), region = 112  ;;  %s1775_s17 = smov (!%p1162_p10), 0  }
 0x144   : > { %s1777_s18 = smov (!%p1162_p10), 0  }
 0x14a LB: >> { %v862_v60 = vld [vmem:[%s1509_s30] sm:$0xf]  ;;  %v864_v46 = vld [vmem:[%s1509_s30 + $0x4] sm:$0xf]  ;;  %v866_v47 = vld [vmem:[%s1509_s30 + $0x8] sm:$0xf]  ;;  %s1517_s18 = sphi %s1777_s18, %s856_s18   ;;  %s1513_s17 = sphi %s1775_s17, %s1819_s17   ;;  %s1509_s30 = sphi %s1818_s30, %s889_s30   ;;  %s1505_s15 = sphi %s1817_s15, %s890_s15  }
 0x14b   : >> { %863 = vst [vmem:[%s1505_s15] sm:$0xf] %v862_v60  ;;  %865 = vst [vmem:[%s1505_s15 + $0x4] sm:$0xf] %v864_v46  ;;  %v868_v48 = vld [vmem:[%s1509_s30 + $0xc] sm:$0xf]  ;;  %s884_s21 = sadd.s32 1, %s1513_s17 }
 0x14c   : >> { %867 = vst [vmem:[%s1505_s15 + $0x8] sm:$0xf] %v866_v47  ;;  %v870_v49 = vld [vmem:[%s1509_s30 + $0x10] sm:$0xf]  ;;  %v872_v50 = vld [vmem:[%s1509_s30 + $0x14] sm:$0xf]  ;;  %p885_p11 = scmp.ge.s32.totalorder %s884_s21, %s1766_s20 }
 0x14d   : >> { %869 = vst [vmem:[%s1505_s15 + $0xc] sm:$0xf] %v868_v48  ;;  %871 = vst [vmem:[%s1505_s15 + $0x10] sm:$0xf] %v870_v49  ;;  %v874_v51 = vld [vmem:[%s1509_s30 + $0x18] sm:$0xf] }
 0x14e   : >> { %873 = vst [vmem:[%s1505_s15 + $0x14] sm:$0xf] %v872_v50  ;;  %v876_v52 = vld [vmem:[%s1509_s30 + $0x1c] sm:$0xf]  ;;  %v878_v53 = vld [vmem:[%s1509_s30 + $0x20] sm:$0xf] }
 0x14f   : >> { %875 = vst [vmem:[%s1505_s15 + $0x18] sm:$0xf] %v874_v51  ;;  %877 = vst [vmem:[%s1505_s15 + $0x1c] sm:$0xf] %v876_v52  ;;  %v880_v54 = vld [vmem:[%s1509_s30 + $0x24] sm:$0xf] }
 0x150   : >> { %879 = vst [vmem:[%s1505_s15 + $0x20] sm:$0xf] %v878_v53  ;;  %v882_v55 = vld [vmem:[%s1509_s30 + $0x28] sm:$0xf]  ;;  %881 = vst [vmem:[%s1505_s15 + $0x24] sm:$0xf] %v880_v54 }
 0x151   : >> { %883 = vst [vmem:[%s1505_s15 + $0x28] sm:$0xf] %v882_v55  ;;  %s1826_s21 = smov (%p885_p11, %s884_s21), 0  ;;  %s856_s18 = sadd.s32 1, %s1517_s18  }
 0x152   : >> { %s887_s22 = smul.u32 44, %s1826_s21  ;;  %p855_p12 = scmp.ge.s32.totalorder %s856_s18, %s1766_s20 }
 0x153   : >> { %s1819_s17 = smov %s1826_s21 }
 0x154   : >> { %s889_s30 = scalar_lea.vmem %s1720_s12, %s887_s22 [#allocation2]   ;;  %s890_s15 = scalar_lea.vmem %s1760_s11, %s887_s22  }
 0x155   : > { %858 = sbr.rel (!%p855_p12) target bundleno = 330 (0x14a), region = 118 }
 0x15c PF: > { %1445 = sdivrem.u32 %s1824_s7, 11 }
 0x15d   : > { %s1163_s23 = smul.u32 44, %s1766_s20 }
 0x15f   : > { %s895_s24 = scalar_lea.vmem %s1720_s12, %s1163_s23 [#allocation2]   ;;  %s897_s25 = scalar_lea.vmem %s1760_s11, %s1163_s23  }
 0x165   : > { %s1446_s26 = spop.drf %1445 }
 0x166   : > { %p1165_p13 = scmp.le.s32.totalorder %s1446_s26, 0 }
 0x167   : > { %s1519_s27 = smov (!%p1165_p13), %s897_s25   ;;  %s1523_s28 = smov (!%p1165_p13), %s895_s24  }
 0x168   : > { %1054 = sbr.rel (%p1165_p13) target bundleno = 377 (0x179), region = 123  ;;  %s1527_s29 = smov (!%p1165_p13), 0  }
 0x169   : > { %s1531_s4 = smov (!%p1165_p13), 0  }
 0x16f LB: >> { %v907_v56 = vld [vmem:[%s1525_s28] sm:$0xf]  ;;  %s909_s5 = sadd.s32 1, %s1529_s29  ;;  %s901_s4 = sadd.s32 1, %s1533_s4   ;;  %s1533_s4 = sphi %s1531_s4, %s901_s4   ;;  %s1529_s29 = sphi %s1527_s29, %s1528_s29   ;;  %s1525_s28 = sphi %s1523_s28, %s914_s28   ;;  %s1521_s27 = sphi %s1519_s27, %s915_s27  }
 0x170   : >> { %908 = vst [vmem:[%s1521_s27] sm:$0xf] %v907_v56  ;;  %p910_p0 = scmp.ge.s32.totalorder %s909_s5, %s1446_s26  ;;  %p900_p1 = scmp.ge.s32.totalorder %s901_s4, %s1446_s26 }
 0x172   : >> { %s1828_s5 = smov (%p910_p0, %s909_s5), 0  ;;  %903 = sbr.rel (!%p900_p1) target bundleno = 367 (0x16f), region = 129 }
 0x173   : >> { %s1166_s6 = sshll.u32 %s1828_s5, 2  ;;  %s1528_s29 = smov %s1828_s5  }
 0x174   : >> { %s914_s28 = scalar_lea.vmem %s895_s24, %s1166_s6 [#allocation2]   ;;  %s915_s27 = scalar_lea.vmem %s897_s25, %s1166_s6  }
 0x179 PF: > { %p10_p2 = scmp.ge.s32.totalorder %s1570_s16, 4   ;;  %s1820_s12 = smov %s1497_s13 }
 0x17a   : > { %s1821_s13 = smov %s1578_s19  ;;  %s1822_s14 = smov %s1570_s16 }
 0x17b   :  { %12 = sbr.rel (!%p10_p2) target bundleno = 2 (0x2), region = 140 }

// kernel: actor_cnn_forward.5
= control target key start
LH: loop header
LB: loop body
LE: loop exit
PB: predicated region body
PF: predicated region fallthrough
CT: control target
= control target key end

     0   :  { %v24643_v1 = vmov 0.0   ;;  %vm19400_vm0 = vmmov 0   ;;  %v67_v5 = vlaneseq  ;;  %v19401_v12 = vmov 1966171168   ;;  %s24635_s0 = inlined_call_operand.vmem [shape: bf16[2,9,9,64], index: 0, kind: input, shape index: {}]   ;;  %s24636_s1 = inlined_call_operand.vmem [shape: bf16[9,64,64], index: 1, kind: input, shape index: {}]   ;;  %s24637_s2 = inlined_call_operand.vmem [shape: f32[1,64], index: 2, kind: input, shape index: {}]   ;;  %s24638_s3 = inlined_call_operand.vmem [shape: bf16[3136,512], index: 3, kind: input, shape index: {}]   ;;  %s24639_s4 = inlined_call_operand.vmem [shape: f32[1,512], index: 4, kind: input, shape index: {}]   ;;  %s24640_s5 = inlined_call_operand.vmem [shape: bf16[512,6], index: 5, kind: input, shape index: {}]   ;;  %s24641_s6 = inlined_call_operand.vmem [shape: f32[1,6], index: 6, kind: input, shape index: {}]   ;;  %s24642_s7 = inlined_call_operand.hbm [shape: f32[2,6], index: 7, kind: output, shape index: {}]  }
   0x1   :  { %v18126_v0 = vld [vmem:[%s24636_s1 + $0x20] sm:$0xff]   ;;  %17696 = vmatprep.subr.bf16.mxu0 %v24643_v1  ;;  %17732 = vmatprep.subr.bf16.mxu1 %v24643_v1  ;;  %v18128_v3 = vld [vmem:[%s24636_s1 + $0x28] sm:$0xff]   ;;  %v18130_v6 = vld [vmem:[%s24636_s1 + $0x30] sm:$0xff]   ;;  %v65_v13 = vunpack.c.l.s4 %v19401_v12  ;;  %vm902_vm1 = vcmask 523264  }
   0x2   :  { %v18127_v2 = vld [vmem:[%s24636_s1] sm:$0xff]   ;;  %17697 = vmatpush3.bf16.msra.mxu0 %v18126_v0  ;;  %17704 = vmatprep.mubr.msk.bf16.mxu0 %vm19400_vm0, %v24643_v1  ;;  %v18129_v4 = vld [vmem:[%s24636_s1 + $0x8] sm:$0xff]   ;;  %v18131_v7 = vld [vmem:[%s24636_s1 + $0x10] sm:$0xff]   ;;  %v19472_v8 = vshrl.u32 %v67_v5, 7 }
   0x3   :  { %17733 = vmatpush3.bf16.msra.mxu1 %v18127_v2  ;;  %17698 = vmatprep.subr.bf16.mxu0 %v24643_v1  ;;  %v18132_v9 = vld [vmem:[%s24636_s1 + $0x38] sm:$0xff]   ;;  %v15999_v10 = vld.sshfl [vmem:[%s24635_s0] sm:$0x33 pattern:$0x75316420]  ;;  %v66_v17 = vunpack.c.0.s8 %v65_v13 }
   0x4   :  { %17734 = vmatprep.subr.bf16.mxu1 %v24643_v1  ;;  %17740 = vmatprep.mubr.msk.bf16.mxu1 %vm19400_vm0, %v24643_v1  ;;  %24655 = vst [vmem:[#allocation6_spill] sm:$0xff] %v19472_v8  ;;  %v16000_v11 = vld.sshfl [vmem:[%s24635_s0 + $0x8] sm:$0x33 pattern:$0x75316420]  ;;  %v18133_v15 = vld [vmem:[%s24636_s1 + $0x18] sm:$0xff]   ;;  %v63_v16 = vcombine.high %v15999_v10, %v15999_v10 }
   0x5   :  { %v16001_v14 = vld.sshfl [vmem:[%s24635_s0 + $0x10] sm:$0x33 pattern:$0x75316420]  ;;  %v87_v19 = vcombine.high %v16000_v11, %v16000_v11  ;;  %v19501_v22 = vsub.s32 %v66_v17, %v19472_v8 }
   0x6   :  { %17699 = vmatpush3.bf16.msra.mxu0 %v18128_v3  ;;  %v16002_v18 = vld.sshfl [vmem:[%s24635_s0 + $0x18] sm:$0x33 pattern:$0x75316420]  ;;  %v111_v20 = vcombine.high %v16001_v14, %v16001_v14 }
   0x7   :  { %17735 = vmatpush3.bf16.msra.mxu1 %v18129_v4  ;;  %17700 = vmatprep.subr.bf16.mxu0 %v24643_v1  ;;  %v19498_v21 = vld.sshfl [vmem:[%s24635_s0 + $0x20] sm:$0x33 pattern:$0x75316420]  ;;  %v135_v24 = vcombine.high %v16002_v18, %v16002_v18  ;;  %v70_v27 = vrot.slane %v15999_v10, %v19501_v22  ;;  %v77_v28 = vrot.slane %v63_v16, %v19501_v22 }
   0x8   :  { %17736 = vmatprep.subr.bf16.mxu1 %v24643_v1  ;;  %v19506_v23 = vld.sshfl [vmem:[%s24635_s0 + $0x28] sm:$0x33 pattern:$0x75316420]  ;;  %v159_v25 = vcombine.high %v19498_v21, %v19498_v21  ;;  %v19516_v29 = vrot.slane %v16000_v11, %v19501_v22  ;;  %v19519_v30 = vrot.slane %v87_v19, %v19501_v22  ;;  %v19522_v31 = vrot.slane %v16001_v14, %v19501_v22 }
   0x9   :  { %v183_v26 = vcombine.high %v19506_v23, %v19506_v23  ;;  %v19525_v32 = vrot.slane %v111_v20, %v19501_v22  ;;  %v19528_v33 = vrot.slane %v16002_v18, %v19501_v22  ;;  %v78_v34 = vcombine.high %v70_v27, %v70_v27 }
   0xa   :  { %17701 = vmatpush3.bf16.msra.mxu0 %v18130_v6  ;;  %v79_v35 = vcombine.high %v77_v28, %v77_v28  ;;  %v19533_v36 = vcombine.high %v19516_v29, %v19516_v29  ;;  %v393_v37 = vunpack.i.h.s16 %v70_v27  ;;  %v19537_v38 = vcombine.high %v19519_v30, %v19519_v30 }
   0xb   :  { %17737 = vmatpush3.bf16.msra.mxu1 %v18131_v7  ;;  %17702 = vmatprep.subr.bf16.mxu0 %v24643_v1  ;;  %v395_v39 = vunpack.i.h.s16 %v77_v28  ;;  %v400_v40 = vunpack.i.h.s16 %v19516_v29  ;;  %v407_v41 = vunpack.i.h.s16 %v19522_v31  ;;  %v397_v42 = vunpack.i.h.s16 %v78_v34 }
   0xc   :  { %17738 = vmatprep.subr.bf16.mxu1 %v24643_v1  ;;  %v498_v43 = vunpack.i.h.s16 %v79_v35  ;;  %v16021_v44 = vpack.i.b16 %v77_v28, %v393_v37  ;;  %v572_v45 = vcombine.low %v19519_v30, %v19533_v36  ;;  %v402_v48 = vunpack.i.h.s16 %v19519_v30 }
   0xd   :  { %v16022_v46 = vpack.i.b16 %v78_v34, %v395_v39  ;;  %v19544_v47 = vpack.i.b16 %v19525_v32, %v407_v41  ;;  %v404_v49 = vunpack.i.h.s16 %v19533_v36  ;;  %v16023_v50 = vpack.i.b16 %v79_v35, %v397_v42 }
   0xe   :  { %17703 = vmatpush3.bf16.msra.mxu0 %v18132_v9  ;;  %v524_v51 = vpack.i.b16 %v400_v40, %v498_v43  ;;  %v594_v52 = vrot.slane %v572_v45, %v19501_v22  ;;  %v16056_v53 = vpack.i.b16 %v19516_v29, %v79_v35  ;;  %v16057_v56 = vpack.i.b16 %v19519_v30, %v400_v40 }
   0xf   :  { %17739 = vmatpush3.bf16.msra.mxu1 %v18133_v15  ;;  %17768 = vmatprep.subr.bf16.mxu0 %v24643_v1  ;;  %v570_v54 = vcombine.low %v16021_v44, %v16022_v46  ;;  %v573_v55 = vcombine.low %v19537_v38, %v19544_v47  ;;  %v16058_v57 = vpack.i.b16 %v19533_v36, %v402_v48  ;;  %v409_v18 = vunpack.i.h.s16 %v19525_v32 }
  0x10   :  { %17804 = vmatprep.subr.bf16.mxu1 %v24643_v1  ;;  %v571_v58 = vcombine.low %v16023_v50, %v524_v51  ;;  %v16059_v59 = vpack.i.b16 %v19537_v38, %v404_v49  ;;  %v1061_v60 = vcombine.low %v70_v27, %v77_v28  ;;  %v1062_v61 = vcombine.low %v78_v34, %v16056_v53 }
  0x11   :  { %v580_v62 = vrot.slane %v570_v54, %v19501_v22  ;;  %v601_v63 = vrot.slane %v573_v55, %v19501_v22  ;;  %v1063_v0 = vcombine.low %v16057_v56, %v16058_v57  ;;  %v19559_v2 = vcombine.high %v19522_v31, %v19522_v31  ;;  %v18135_v57 = vld [vmem:[%s24636_s1 + $0x48] sm:$0xff]  }
  0x12   :  { %v587_v3 = vrot.slane %v571_v58, %v19501_v22  ;;  %v1064_v4 = vcombine.low %v16059_v59, %v19522_v31  ;;  %v1071_v5 = vrot.slane %v1061_v60, %v19501_v22  ;;  %v1078_v6 = vrot.slane %v1062_v61, %v19501_v22 }
  0x13   :  { %v603_v7 = vcombine.low %v594_v52, %v601_v63  ;;  %v1085_v9 = vrot.slane %v1063_v0, %v19501_v22  ;;  %v127_v10 = vcombine.high %v19525_v32, %v19525_v32  ;;  %v19569_v11 = vrot.slane %v135_v24, %v19501_v22  ;;  %v18138_v52 = vld [vmem:[%s24636_s1 + $0x60] sm:$0xff]  }
  0x14   :  { %v602_v12 = vcombine.low %v580_v62, %v587_v3  ;;  %v1092_v13 = vrot.slane %v1064_v4, %v19501_v22  ;;  %v1093_v14 = vcombine.low %v1071_v5, %v1078_v6  ;;  %v19574_v15 = vrot.slane %v19498_v21, %v19501_v22  ;;  %v18134_v21 = vld [vmem:[%s24636_s1 + $0x40] sm:$0xff]   ;;  %v16005_v4 = vld.sshfl [vmem:[%s24635_s0 + $0x30] sm:$0x33 pattern:$0x75316420] }
  0x15   :  { %v617_v16 = vrot.slane %v603_v7, %v19501_v22  ;;  %v173_v17 = vrot.slane %v159_v25, %v19501_v22  ;;  %v411_v19 = vunpack.i.h.s16 %v19559_v2  ;;  %v414_v34 = vunpack.i.h.s16 %v19528_v33 }
  0x16   :  { %v610_v20 = vrot.slane %v602_v12, %v19501_v22  ;;  %v1094_v24 = vcombine.low %v1085_v9, %v1092_v13  ;;  %v1101_v27 = vrot.slane %v1093_v14, %v19501_v22  ;;  %v19584_v28 = vcombine.high %v19574_v15, %v19574_v15  ;;  %v18136_v14 = vld [vmem:[%s24636_s1 + $0x50] sm:$0xff]  }
  0x17   :  { %v421_v25 = vunpack.i.h.s16 %v19574_v15  ;;  %v423_v35 = vunpack.i.h.s16 %v173_v17  ;;  %v500_v37 = vunpack.i.h.s16 %v127_v10  ;;  %v19593_v41 = vpack.i.b16 %v19559_v2, %v409_v18 }
  0x18   :  { %v618_v39 = vcombine.low %v610_v20, %v617_v16  ;;  %v1108_v40 = vrot.slane %v1094_v24, %v19501_v22  ;;  %v19595_v42 = vpack.i.b16 %v127_v10, %v411_v19  ;;  %v16042_v46 = vcombine.high %v19528_v33, %v19569_v11 }
  0x19   :  { %v531_v43 = vpack.i.b16 %v414_v34, %v500_v37  ;;  %v19597_v44 = vpack.i.b16 %v173_v17, %v421_v25  ;;  %v19600_v45 = vpack.i.b16 %v19584_v28, %v423_v35  ;;  %v19609_v50 = vcombine.high %v19528_v33, %v19528_v33  ;;  %v18140_v35 = vld [vmem:[%s24636_s1 + $0x70] sm:$0xff]  }
  0x1a   :  { %17705 = vmatmul.mubr.msk.bf16.vlgmr.msra.gmra.mrb[0].mxu0 %vm902_vm1, %v618_v39  ;;  %v1109_v48 = vcombine.low %v1101_v27, %v1108_v40  ;;  %v619_v49 = vcombine.low %v19593_v41, %v19595_v42  ;;  %v19613_v51 = vcombine.high %v19569_v11, %v19569_v11  ;;  %v643_v55 = vrot.slane %v16042_v46, %v19501_v22  ;;  %v18137_v46 = vld [vmem:[%s24636_s1 + $0x58] sm:$0xff]  }
  0x1b   :  { %17769 = vmatpush3.bf16.msra.mxu0 %v18134_v21  ;;  %17708 = vmatprep.mubr.msk.bf16.mxu0 %vm19400_vm0, %v24643_v1  ;;  %v620_v53 = vcombine.low %v531_v43, %v19569_v11  ;;  %v622_v54 = vcombine.low %v19597_v44, %v19600_v45  ;;  %v416_v56 = vunpack.i.h.s16 %v19569_v11  ;;  %v418_v59 = vunpack.i.h.s16 %v19609_v50 }
  0x1c   :  { %17741 = vmatmul.mubr.msk.bf16.vlgmr.msra.gmra.mrb[0].mxu1 %vm902_vm1, %v1109_v48  ;;  %v629_v58 = vrot.slane %v619_v49, %v19501_v22  ;;  %v16060_v60 = vpack.i.b16 %v19528_v33, %v127_v10  ;;  %v16061_v61 = vpack.i.b16 %v19569_v11, %v414_v34  ;;  %17770 = vmatprep.subr.bf16.mxu0 %v24643_v1  ;;  %v18139_v10 = vld [vmem:[%s24636_s1 + $0x68] sm:$0xff]   ;;  %v425_v40 = vunpack.i.h.s16 %v19584_v28 }
  0x1d   :  { %17744 = vmatprep.mubr.msk.bf16.mxu1 %vm19400_vm0, %v24643_v1  ;;  %v636_v62 = vrot.slane %v620_v53, %v19501_v22  ;;  %v650_v63 = vrot.slane %v622_v54, %v19501_v22  ;;  %v16062_v0 = vpack.i.b16 %v19609_v50, %v416_v56  ;;  %v1110_v3 = vcombine.low %v19525_v32, %v19559_v2 }
  0x1e   :  { %v16063_v5 = vpack.i.b16 %v19613_v51, %v418_v59  ;;  %v1111_v6 = vcombine.low %v16060_v60, %v16061_v61  ;;  %v1113_v7 = vcombine.low %v19574_v15, %v173_v17  ;;  %v19646_v9 = vcombine.high %v173_v17, %v173_v17  ;;  %17805 = vmatpush3.bf16.msra.mxu1 %v18138_v52 }
  0x1f   :  { %v651_v12 = vcombine.low %v629_v58, %v636_v62  ;;  %v652_v13 = vcombine.low %v643_v55, %v650_v63  ;;  %v1120_v32 = vrot.slane %v1110_v3, %v19501_v22  ;;  %17771 = vmatpush3.bf16.msra.mxu0 %v18135_v57  ;;  %v19654_v2 = vrot.slane %v19506_v23, %v19501_v22 }
  0x20   :  { %v1112_v16 = vcombine.low %v16062_v0, %v16063_v5  ;;  %v1127_v17 = vrot.slane %v1111_v6, %v19501_v22  ;;  %v1141_v18 = vrot.slane %v1113_v7, %v19501_v22  ;;  %v19665_v19 = vrot.slane %v183_v26, %v19501_v22  ;;  %17772 = vmatprep.subr.bf16.mxu0 %v24643_v1 }
  0x21   :  { %v659_v20 = vrot.slane %v651_v12, %v19501_v22  ;;  %v666_v24 = vrot.slane %v652_v13, %v19501_v22  ;;  %v19672_v27 = vcombine.high %v19654_v2, %v19654_v2  ;;  %v207_v21 = vcombine.high %v16005_v4, %v16005_v4  ;;  %17806 = vmatprep.subr.bf16.mxu1 %v24643_v1  ;;  %v18141_v12 = vld [vmem:[%s24636_s1 + $0x78] sm:$0xff]  }
  0x22   :  { %v1134_v34 = vrot.slane %v1112_v16, %v19501_v22  ;;  %v1142_v25 = vcombine.low %v1120_v32, %v1127_v17  ;;  %v19678_v23 = vcombine.high %v19665_v19, %v19665_v19  ;;  %v19681_v26 = vrot.slane %v16005_v4, %v19501_v22  ;;  %17807 = vmatpush3.bf16.msra.mxu1 %v18139_v10  ;;  %v16006_v4 = vld.sshfl [vmem:[%s24635_s0 + $0x48] sm:$0x33 pattern:$0x75316420] }
  0x23   :  { %v667_v37 = vcombine.low %v659_v20, %v666_v24  ;;  %v221_v39 = vrot.slane %v207_v21, %v19501_v22  ;;  %v428_v43 = vunpack.i.h.s16 %v19654_v2  ;;  %17773 = vmatpush3.bf16.msra.mxu0 %v18136_v14  ;;  %17808 = vmatprep.subr.bf16.mxu1 %v24643_v1  ;;  %v502_v56 = vunpack.i.h.s16 %v19646_v9 }
  0x24   :  { %v1143_v48 = vcombine.low %v1134_v34, %v1141_v18  ;;  %v1150_v49 = vrot.slane %v1142_v25, %v19501_v22  ;;  %v222_v52 = vcombine.high %v19681_v26, %v19681_v26  ;;  %v435_v53 = vunpack.i.h.s16 %v19681_v26  ;;  %17774 = vmatprep.subr.bf16.mxu0 %v24643_v1  ;;  %v16007_v25 = vld.sshfl [vmem:[%s24635_s0 + $0x50] sm:$0x33 pattern:$0x75316420] }
  0x25   :  { %17709 = vmatmul.mubr.msk.bf16.gmra.mrb[4].mxu0 %vm902_vm1, %v667_v37  ;;  %v19699_v54 = vcombine.high %v221_v39, %v221_v39  ;;  %v437_v55 = vunpack.i.h.s16 %v221_v39  ;;  %v19703_v57 = vpack.i.b16 %v19646_v9, %v425_v40  ;;  %v669_v61 = vcombine.low %v19665_v19, %v19672_v27 }
  0x26   :  { %v1157_v58 = vrot.slane %v1143_v48, %v19501_v22  ;;  %17712 = vmatprep.mubr.msk.bf16.mxu0 %vm19400_vm0, %v24643_v1  ;;  %v439_v59 = vunpack.i.h.s16 %v222_v52  ;;  %v19708_v60 = vpack.i.b16 %v221_v39, %v435_v53  ;;  %17809 = vmatpush3.bf16.msra.mxu1 %v18140_v35  ;;  %v538_v62 = vpack.i.b16 %v428_v43, %v502_v56 }
  0x27   :  { %v19712_v63 = vpack.i.b16 %v222_v52, %v437_v55  ;;  %v430_v0 = vunpack.i.h.s16 %v19665_v19  ;;  %v432_v3 = vunpack.i.h.s16 %v19672_v27  ;;  %17775 = vmatpush3.bf16.msra.mxu0 %v18137_v46  ;;  %17810 = vmatprep.subr.bf16.mxu1 %v24643_v1  ;;  %v685_v10 = vrot.slane %v669_v61, %v19501_v22 }
  0x28   :  { %v1158_v5 = vcombine.low %v1150_v49, %v1157_v58  ;;  %v19721_v6 = vpack.i.b16 %v19699_v54, %v439_v59  ;;  %v670_v7 = vcombine.low %v19678_v23, %v19708_v60  ;;  %17840 = vmatprep.subr.bf16.mxu0 %v24643_v1  ;;  %v668_v13 = vcombine.low %v19703_v57, %v538_v62 }
  0x29   :  { %v16064_v32 = vpack.i.b16 %v19654_v2, %v19646_v9  ;;  %v16065_v14 = vpack.i.b16 %v19665_v19, %v428_v43  ;;  %v16066_v16 = vpack.i.b16 %v19672_v27, %v430_v0  ;;  %v16067_v20 = vpack.i.b16 %v19678_v23, %v432_v3 }
  0x2a   :  { %17745 = vmatmul.mubr.msk.bf16.gmra.mrb[4].mxu1 %vm902_vm1, %v1158_v5  ;;  %v671_v17 = vcombine.low %v19712_v63, %v19721_v6  ;;  %v692_v18 = vrot.slane %v670_v7, %v19501_v22  ;;  %v1162_v24 = vcombine.low %v221_v39, %v222_v52  ;;  %v678_v21 = vrot.slane %v668_v13, %v19501_v22  ;;  %v19753_v39 = vld.sshfl [vmem:[%s24635_s0 + $0x58] sm:$0x33 pattern:$0x75316420] }
  0x2b   :  { %17748 = vmatprep.mubr.msk.bf16.mxu1 %vm19400_vm0, %v24643_v1  ;;  %v1159_v9 = vcombine.low %v19584_v28, %v16064_v32  ;;  %v1160_v34 = vcombine.low %v16065_v14, %v16066_v16  ;;  %v231_v35 = vcombine.high %v16006_v4, %v16006_v4  ;;  %v1161_v40 = vcombine.low %v16067_v20, %v19681_v26 }
  0x2c   :  { %v699_v37 = vrot.slane %v671_v17, %v19501_v22  ;;  %v1190_v43 = vrot.slane %v1162_v24, %v19501_v22  ;;  %v238_v46 = vrot.slane %v16006_v4, %v19501_v22  ;;  %17811 = vmatpush3.bf16.msra.mxu1 %v18141_v12  ;;  %v700_v28 = vcombine.low %v678_v21, %v685_v10 }
  0x2d   :  { %v1169_v48 = vrot.slane %v1159_v9, %v19501_v22  ;;  %v1176_v49 = vrot.slane %v1160_v34, %v19501_v22  ;;  %v245_v52 = vrot.slane %v231_v35, %v19501_v22  ;;  %17876 = vmatprep.subr.bf16.mxu1 %v24643_v1  ;;  %v1183_v55 = vrot.slane %v1161_v40, %v19501_v22 }
  0x2e   :  { %v701_v53 = vcombine.low %v692_v18, %v699_v37  ;;  %v255_v56 = vcombine.high %v16007_v25, %v16007_v25  ;;  %v19762_v58 = vrot.slane %v16007_v25, %v19501_v22  ;;  %v708_v59 = vrot.slane %v700_v28, %v19501_v22 }
  0x2f   :  { %v1191_v61 = vcombine.low %v1169_v48, %v1176_v49  ;;  %v19767_v62 = vrot.slane %v19753_v39, %v19501_v22  ;;  %v442_v0 = vunpack.i.h.s16 %v238_v46  ;;  %v1192_v4 = vcombine.low %v1183_v55, %v1190_v43 }
  0x30   :  { %v715_v3 = vrot.slane %v701_v53, %v19501_v22  ;;  %v269_v5 = vrot.slane %v255_v56, %v19501_v22  ;;  %v270_v7 = vcombine.high %v19762_v58, %v19762_v58  ;;  %v449_v12 = vunpack.i.h.s16 %v19762_v58 }
  0x31   :  { %v1199_v10 = vrot.slane %v1191_v61, %v19501_v22  ;;  %v456_v13 = vunpack.i.h.s16 %v19767_v62  ;;  %v504_v32 = vunpack.i.h.s16 %v19699_v54  ;;  %v1206_v16 = vrot.slane %v1192_v4, %v19501_v22 }
  0x32   :  { %v716_v14 = vcombine.low %v708_v59, %v715_v3  ;;  %v271_v17 = vcombine.high %v269_v5, %v269_v5  ;;  %v451_v18 = vunpack.i.h.s16 %v269_v5  ;;  %v453_v20 = vunpack.i.h.s16 %v270_v7 }
  0x33   :  { %v545_v24 = vpack.i.b16 %v442_v0, %v504_v32  ;;  %v19778_v21 = vpack.i.b16 %v269_v5, %v449_v12  ;;  %v16043_v9 = vcombine.high %v238_v46, %v245_v52  ;;  %v1207_v34 = vcombine.low %v1199_v10, %v1206_v16  ;;  %v16009_v10 = vld.sshfl [vmem:[%s24635_s0 + $0x60] sm:$0x33 pattern:$0x75316420] }
  0x34   :  { %17713 = vmatmul.mubr.msk.bf16.gmra.mrb[8].mxu0 %vm902_vm1, %v716_v14  ;;  %v506_v25 = vunpack.i.h.s16 %v271_v17  ;;  %v19781_v35 = vpack.i.b16 %v270_v7, %v451_v18  ;;  %v246_v37 = vcombine.high %v238_v46, %v238_v46  ;;  %v19785_v40 = vpack.i.b16 %v271_v17, %v453_v20  ;;  %v16010_v18 = vld.sshfl [vmem:[%s24635_s0 + $0x68] sm:$0x33 pattern:$0x75316420] }
  0x35   :  { %24656 = vst [vmem:[#allocation7_spill] sm:$0xff] %v19778_v21  ;;  %17716 = vmatprep.mubr.msk.bf16.mxu0 %vm19400_vm0, %v24643_v1  ;;  %v717_v43 = vcombine.low %v545_v24, %v245_v52  ;;  %v734_v28 = vrot.slane %v16043_v9, %v19501_v22  ;;  %v247_v48 = vcombine.high %v245_v52, %v245_v52  ;;  %v444_v55 = vunpack.i.h.s16 %v245_v52 }
  0x36   :  { %17749 = vmatmul.mubr.msk.bf16.gmra.mrb[8].mxu1 %vm902_vm1, %v1207_v34  ;;  %v552_v49 = vpack.i.b16 %v456_v13, %v506_v25  ;;  %v719_v53 = vcombine.low %v19778_v21, %v19781_v35  ;;  %v446_v56 = vunpack.i.h.s16 %v246_v37  ;;  %v16068_v61 = vpack.i.b16 %v238_v46, %v19699_v54 }
  0x37   :  { %17752 = vmatprep.mubr.msk.bf16.mxu1 %vm19400_vm0, %v24643_v1  ;;  %v727_v59 = vrot.slane %v717_v43, %v19501_v22  ;;  %v16069_v3 = vpack.i.b16 %v245_v52, %v442_v0  ;;  %v16072_v4 = vpack.i.b16 %v19767_v62, %v271_v17  ;;  %v16070_v14 = vpack.i.b16 %v246_v37, %v444_v55 }
  0x38   :  { %v720_v12 = vcombine.low %v19785_v40, %v552_v49  ;;  %v741_v32 = vrot.slane %v719_v53, %v19501_v22  ;;  %v16071_v16 = vpack.i.b16 %v247_v48, %v446_v56  ;;  %v1210_v54 = vcombine.low %v19762_v58, %v269_v5 }
  0x39   :  { %v749_v20 = vcombine.low %v727_v59, %v734_v28  ;;  %v1208_v24 = vcombine.low %v16068_v61, %v16069_v3  ;;  %v1211_v46 = vcombine.low %v270_v7, %v16072_v4  ;;  %v279_v17 = vcombine.high %v19753_v39, %v19753_v39 }
  0x3a   :  { %v748_v52 = vrot.slane %v720_v12, %v19501_v22  ;;  %v1209_v0 = vcombine.low %v16070_v14, %v16071_v16  ;;  %v19812_v9 = vcombine.high %v19767_v62, %v19767_v62  ;;  %v1232_v37 = vrot.slane %v1210_v54, %v19501_v22 }
  0x3b   :  { %v757_v34 = vrot.slane %v749_v20, %v19501_v22  ;;  %v1218_v25 = vrot.slane %v1208_v24, %v19501_v22  ;;  %v1239_v43 = vrot.slane %v1211_v46, %v19501_v22  ;;  %v19820_v28 = vrot.slane %v279_v17, %v19501_v22 }
  0x3c   :  { %v750_v5 = vcombine.low %v741_v32, %v748_v52  ;;  %v1225_v7 = vrot.slane %v1209_v0, %v19501_v22  ;;  %v303_v48 = vcombine.high %v16009_v10, %v16009_v10  ;;  %v19823_v49 = vrot.slane %v16009_v10, %v19501_v22 }
  0x3d   :  { %v1241_v39 = vcombine.low %v1232_v37, %v1239_v43  ;;  %v327_v53 = vcombine.high %v16010_v18, %v16010_v18  ;;  %v19826_v55 = vrot.slane %v16010_v18, %v19501_v22  ;;  %v19831_v61 = vcombine.high %v19820_v28, %v19820_v28 }
  0x3e   :  { %v764_v56 = vrot.slane %v750_v5, %v19501_v22  ;;  %v1240_v59 = vcombine.low %v1218_v25, %v1225_v7  ;;  %v317_v3 = vrot.slane %v303_v48, %v19501_v22  ;;  %v318_v12 = vcombine.high %v19823_v49, %v19823_v49  ;;  %v16011_v48 = vld.sshfl [vmem:[%s24635_s0 + $0x70] sm:$0x33 pattern:$0x75316420] }
  0x3f   :  { %v1255_v4 = vrot.slane %v1241_v39, %v19501_v22  ;;  %v19838_v10 = vrot.slane %v327_v53, %v19501_v22  ;;  %v463_v32 = vunpack.i.h.s16 %v19823_v49  ;;  %v470_v54 = vunpack.i.h.s16 %v19826_v55 }
  0x40   :  { %v765_v14 = vcombine.low %v757_v34, %v764_v56  ;;  %v1248_v16 = vrot.slane %v1240_v59, %v19501_v22  ;;  %v319_v18 = vcombine.high %v317_v3, %v317_v3  ;;  %v465_v20 = vunpack.i.h.s16 %v317_v3 }
  0x41   :  { %v467_v24 = vunpack.i.h.s16 %v318_v12  ;;  %v19843_v46 = vpack.i.b16 %v317_v3, %v463_v32  ;;  %v766_v52 = vcombine.low %v19820_v28, %v19812_v9  ;;  %v458_v34 = vunpack.i.h.s16 %v19820_v28 }
  0x42   :  { %17717 = vmatmul.mubr.msk.bf16.gmra.mrb[12].mxu0 %vm902_vm1, %v765_v14  ;;  %v1256_v0 = vcombine.low %v1248_v16, %v1255_v4  ;;  %v508_v17 = vunpack.i.h.s16 %v319_v18  ;;  %v19848_v25 = vpack.i.b16 %v318_v12, %v465_v20  ;;  %v460_v7 = vunpack.i.h.s16 %v19812_v9 }
  0x43   :  { %24657 = vst [vmem:[#allocation8_spill] sm:$0xff] %v19843_v46  ;;  %17720 = vmatprep.mubr.msk.bf16.mxu0 %vm19400_vm0, %v24643_v1  ;;  %v19853_v37 = vpack.i.b16 %v319_v18, %v467_v24  ;;  %v767_v43 = vcombine.low %v19831_v61, %v19843_v46  ;;  %v776_v5 = vrot.slane %v766_v52, %v19501_v22 }
  0x44   :  { %24658 = vst [vmem:[#allocation9_spill] sm:$0xff] %v19848_v25  ;;  %17753 = vmatmul.mubr.msk.bf16.gmra.mrb[12].mxu1 %vm902_vm1, %v1256_v0  ;;  %v559_v39 = vpack.i.b16 %v470_v54, %v508_v17  ;;  %v16073_v53 = vpack.i.b16 %v19820_v28, %v456_v13  ;;  %v16074_v56 = vpack.i.b16 %v19812_v9, %v458_v34  ;;  %v16012_v13 = vld.sshfl [vmem:[%s24635_s0 + $0x78] sm:$0x33 pattern:$0x75316420] }
  0x45   :  { %24659 = vst [vmem:[#allocation10_spill] sm:$0xff] %v19853_v37  ;;  %v16076_v59 = vpack.i.b16 %v19826_v55, %v319_v18  ;;  %17756 = vmatprep.mubr.msk.bf16.mxu1 %vm19400_vm0, %v24643_v1  ;;  %v768_v4 = vcombine.low %v19848_v25, %v19853_v37  ;;  %v783_v32 = vrot.slane %v767_v43, %v19501_v22 }
  0x46   :  { %v16075_v14 = vpack.i.b16 %v19831_v61, %v460_v7  ;;  %v16077_v16 = vpack.i.b16 %v19838_v10, %v470_v54  ;;  %v769_v20 = vcombine.low %v559_v39, %v19838_v10  ;;  %v1257_v24 = vcombine.low %v16073_v53, %v16074_v56 }
  0x47   :  { %v1259_v18 = vcombine.low %v317_v3, %v318_v12  ;;  %v351_v52 = vcombine.high %v16011_v48, %v16011_v48  ;;  %v790_v0 = vrot.slane %v768_v4, %v19501_v22  ;;  %v798_v17 = vcombine.low %v776_v5, %v783_v32 }
  0x48   :  { %v1258_v34 = vcombine.low %v16075_v14, %v19823_v49  ;;  %v1260_v1 = vcombine.low %v16076_v59, %v16077_v16  ;;  %v797_v43 = vrot.slane %v769_v20, %v19501_v22  ;;  %v1267_v7 = vrot.slane %v1257_v24, %v19501_v22 }
  0x49   :  { %v1281_v54 = vrot.slane %v1259_v18, %v19501_v22  ;;  %v19885_v8 = vrot.slane %v16011_v48, %v19501_v22  ;;  %v806_v39 = vrot.slane %v798_v17, %v19501_v22  ;;  %v365_v5 = vrot.slane %v351_v52, %v19501_v22 }
  0x4a   :  { %v1274_v3 = vrot.slane %v1258_v34, %v19501_v22  ;;  %v1288_v12 = vrot.slane %v1260_v1, %v19501_v22  ;;  %v799_v53 = vcombine.low %v790_v0, %v797_v43  ;;  %v375_v59 = vcombine.high %v16012_v13, %v16012_v13 }
  0x4b   :  { %v366_v56 = vcombine.high %v19885_v8, %v19885_v8  ;;  %v382_v4 = vrot.slane %v16012_v13, %v19501_v22  ;;  %v367_v16 = vcombine.high %v365_v5, %v365_v5  ;;  %v477_v48 = vunpack.i.h.s16 %v19885_v8 }
  0x4c   :  { %v1289_v32 = vcombine.low %v1267_v7, %v1274_v3  ;;  %v1290_v14 = vcombine.low %v1281_v54, %v1288_v12  ;;  %v813_v20 = vrot.slane %v799_v53, %v19501_v22  ;;  %v389_v24 = vrot.slane %v375_v59, %v19501_v22 }
  0x4d   :  { %v390_v18 = vcombine.high %v382_v4, %v382_v4  ;;  %v479_v1 = vunpack.i.h.s16 %v365_v5  ;;  %v481_v17 = vunpack.i.h.s16 %v366_v56  ;;  %v484_v34 = vunpack.i.h.s16 %v382_v4 }
  0x4e   :  { %v1297_v52 = vrot.slane %v1289_v32, %v19501_v22  ;;  %v1304_v0 = vrot.slane %v1290_v14, %v19501_v22  ;;  %v814_v43 = vcombine.low %v806_v39, %v813_v20  ;;  %v510_v37 = vunpack.i.h.s16 %v367_v16 }
  0x4f   :  { %v19899_v13 = vpack.i.b16 %v365_v5, %v477_v48  ;;  %v19901_v7 = vpack.i.b16 %v366_v56, %v479_v1  ;;  %v19903_v3 = vpack.i.b16 %v367_v16, %v481_v17  ;;  %v16044_v12 = vcombine.high %v19826_v55, %v19838_v10 }
  0x50   :  { %v1305_v54 = vcombine.low %v1297_v52, %v1304_v0  ;;  %v818_v53 = vcombine.low %v389_v24, %v390_v18  ;;  %17721 = vmatmul.mubr.msk.bf16.gmra.mrb[16].mxu0 %vm902_vm1, %v814_v43  ;;  %v566_v59 = vpack.i.b16 %v484_v34, %v510_v37  ;;  %v342_v39 = vcombine.high %v19826_v55, %v19826_v55 }
  0x51   :  { %24660 = vst [vmem:[#allocation11_spill] sm:$0xff] %v19899_v13  ;;  %24661 = vst [vmem:[#allocation12_spill] sm:$0xff] %v19901_v7  ;;  %v816_v32 = vcombine.low %v19899_v13, %v19901_v7  ;;  %v343_v14 = vcombine.high %v19838_v10, %v19838_v10  ;;  %v24663_v48 = vmov 0.0   ;;  %v825_v20 = vrot.slane %v16044_v12, %v19501_v22 }
  0x52   :  { %24662 = vst [vmem:[#allocation13_spill] sm:$0xff] %v19903_v3  ;;  %17757 = vmatmul.mubr.msk.bf16.gmra.mrb[16].mxu1 %vm902_vm1, %v1305_v54  ;;  %17724 = vmatprep.mubr.msk.bf16.mxu0 %vm19400_vm0, %v24663_v48  ;;  %v846_v1 = vrot.slane %v818_v53, %v19501_v22  ;;  %v472_v37 = vunpack.i.h.s16 %v19838_v10  ;;  %v486_v52 = vunpack.i.h.s16 %v389_v24  ;;  %v817_v55 = vcombine.low %v19903_v3, %v566_v59  ;;  %v16095_v54 = vld.sshfl [vmem:[%s24635_s0] sm:$0x32 pattern:$0x75316420] }
  0x53   :  { %17760 = vmatprep.mubr.msk.bf16.mxu1 %vm19400_vm0, %v24663_v48  ;;  %v832_v0 = vrot.slane %v816_v32, %v19501_v22  ;;  %v474_v17 = vunpack.i.h.s16 %v342_v39  ;;  %v16080_v43 = vpack.i.b16 %v382_v4, %v367_v16  ;;  %v16081_v12 = vpack.i.b16 %v389_v24, %v484_v34  ;;  %v16096_v10 = vld.sshfl [vmem:[%s24635_s0 + $0x4] sm:$0x1 pattern:$0x75316420] }
  0x54   :  { %v16078_v7 = vpack.i.b16 %v342_v39, %v472_v37  ;;  %v16082_v13 = vpack.i.b16 %v390_v18, %v486_v52  ;;  %v1307_v53 = vcombine.low %v19885_v8, %v365_v5  ;;  %v839_v46 = vrot.slane %v817_v55, %v19501_v22  ;;  %v16097_v34 = vld.sshfl [vmem:[%s24635_s0 + $0x8] sm:$0x32 pattern:$0x75316420] }
  0x55   :  { %v847_v59 = vcombine.low %v825_v20, %v832_v0  ;;  %v16079_v3 = vpack.i.b16 %v343_v14, %v474_v17  ;;  %v1308_v32 = vcombine.low %v366_v56, %v16080_v43  ;;  %v391_v16 = vcombine.high %v389_v24, %v389_v24  ;;  %v16098_v24 = vld.sshfl [vmem:[%s24635_s0 + $0xc] sm:$0x1 pattern:$0x75316420] }
  0x56   :  { %v1309_v25 = vcombine.low %v16081_v12, %v16082_v13  ;;  %v1323_v4 = vrot.slane %v1307_v53, %v19501_v22  ;;  %v488_v21 = vunpack.i.h.s16 %v390_v18  ;;  %v848_v39 = vcombine.low %v839_v46, %v846_v1  ;;  %v19948_v46 = vld.sshfl [vmem:[%s24635_s0 + $0x10] sm:$0x32 pattern:$0x75316420] }
  0x57   :  { %v855_v5 = vrot.slane %v847_v59, %v19501_v22  ;;  %v1306_v37 = vcombine.low %v16078_v7, %v16079_v3  ;;  %v1330_v52 = vrot.slane %v1308_v32, %v19501_v22  ;;  %v870_v14 = vrot.slane %v391_v16, %v19501_v22 }
  0x58   :  { %v1337_v55 = vrot.slane %v1309_v25, %v19501_v22  ;;  %v16083_v56 = vpack.i.b16 %v391_v16, %v488_v21  ;;  %v1565_v18 = vcombine.high %v16095_v54, %v16095_v54  ;;  %v862_v13 = vrot.slane %v848_v39, %v19501_v22 }
  0x59   :  { %v1316_v20 = vrot.slane %v1306_v37, %v19501_v22  ;;  %v1572_v7 = vrot.slane %v16095_v54, %v19501_v22  ;;  %v1595_v25 = vrot.slane %v16096_v10, %v19501_v22  ;;  %v877_v21 = vrot.slane %v870_v14, %v19501_v22 }
  0x5a   :  { %v1339_v3 = vcombine.low %v1330_v52, %v1337_v55  ;;  %v1361_v1 = vrot.slane %v16083_v56, %v19501_v22  ;;  %v1579_v0 = vrot.slane %v1565_v18, %v19501_v22  ;;  %v863_v17 = vcombine.low %v855_v5, %v862_v13 }
  0x5b   :  { %v1338_v43 = vcombine.low %v1316_v20, %v1323_v4  ;;  %v1580_v12 = vcombine.high %v1572_v7, %v1572_v7  ;;  %v1603_v53 = vcombine.high %v16097_v34, %v16097_v34  ;;  %v1610_v54 = vrot.slane %v16097_v34, %v19501_v22 }
  0x5c   :  { %v1353_v59 = vrot.slane %v1339_v3, %v19501_v22  ;;  %v1368_v32 = vrot.slane %v1361_v1, %v19501_v22  ;;  %v1581_v16 = vcombine.high %v1579_v0, %v1579_v0  ;;  %17725 = vmatmul.mubr.msk.bf16.gmra.mrb[20].mxu0 %vm902_vm1, %v863_v17  ;;  %v1633_v37 = vrot.slane %v16098_v24, %v19501_v22  ;;  %v16100_v24 = vld.sshfl [vmem:[%s24635_s0 + $0x14] sm:$0x1 pattern:$0x75316420] }
  0x5d   :  { %v1346_v10 = vrot.slane %v1338_v43, %v19501_v22  ;;  %v1617_v39 = vrot.slane %v1603_v53, %v19501_v22  ;;  %v1641_v4 = vcombine.high %v19948_v46, %v19948_v46  ;;  %17728 = vmatprep.mubr.msk.bf16.mxu0 %vm19400_vm0, %v24663_v48  ;;  %v1618_v5 = vcombine.high %v1610_v54, %v1610_v54 }
  0x5e   :  { %v2246_v52 = vcombine.low %v1579_v0, %v1580_v12  ;;  %v16209_v55 = vpack.i.b16 %v19522_v31, %v19537_v38  ;;  %v3221_v34 = vcombine.low %v19516_v29, %v19519_v30  ;;  %v3223_v29 = vcombine.low %v19544_v47, %v19593_v41  ;;  %v16101_v0 = vld.sshfl [vmem:[%s24635_s0 + $0x18] sm:$0x32 pattern:$0x75316420] }
  0x5f   :  { %v1354_v14 = vcombine.low %v1346_v10, %v1353_v59  ;;  %v1619_v56 = vcombine.high %v1617_v39, %v1617_v39  ;;  %v1655_v18 = vrot.slane %v1641_v4, %v19501_v22  ;;  %v2098_v13 = vunpack.i.h.s16 %v1617_v39  ;;  %v16102_v47 = vld.sshfl [vmem:[%s24635_s0 + $0x1c] sm:$0x1 pattern:$0x75316420] }
  0x60   :  { %v2100_v20 = vunpack.i.h.s16 %v1618_v5  ;;  %v16131_v7 = vpack.i.b16 %v1617_v39, %v1595_v25  ;;  %v2256_v3 = vrot.slane %v2246_v52, %v19501_v22  ;;  %v3222_v1 = vcombine.low %v19533_v36, %v16209_v55  ;;  %v16103_v12 = vld.sshfl [vmem:[%s24635_s0 + $0x20] sm:$0x32 pattern:$0x75316420] }
  0x61   :  { %17761 = vmatmul.mubr.msk.bf16.gmra.mrb[20].mxu1 %vm902_vm1, %v1354_v14  ;;  %v2102_v31 = vunpack.i.h.s16 %v1619_v56  ;;  %v16132_v38 = vpack.i.b16 %v1618_v5, %v2098_v13  ;;  %v3224_v30 = vcombine.low %v19595_v42, %v19528_v33  ;;  %v3231_v36 = vrot.slane %v3221_v34, %v19501_v22 }
  0x62   :  { %17764 = vmatprep.mubr.msk.bf16.mxu1 %vm19400_vm0, %v24663_v48  ;;  %v16133_v25 = vpack.i.b16 %v1619_v56, %v2100_v20  ;;  %v2247_v17 = vcombine.low %v1581_v16, %v16131_v7  ;;  %v3238_v43 = vrot.slane %v3222_v1, %v19501_v22  ;;  %v3245_v33 = vrot.slane %v3223_v29, %v19501_v22 }
  0x63   :  { %v16134_v41 = vpack.i.b16 %v1633_v37, %v2102_v31  ;;  %v3252_v42 = vrot.slane %v3224_v30, %v19501_v22  ;;  %v1648_v53 = vrot.slane %v19948_v46, %v19501_v22  ;;  %v20000_v10 = vrot.slane %v16100_v24, %v19501_v22  ;;  %v18142_v30 = vld [vmem:[%s24636_s1 + $0x80] sm:$0xff]  }
  0x64   :  { %v2248_v59 = vcombine.low %v16132_v38, %v16133_v25  ;;  %v2263_v16 = vrot.slane %v2247_v17, %v19501_v22  ;;  %v3253_v54 = vcombine.low %v3231_v36, %v3238_v43  ;;  %17729 = vmatmul.mubr.msk.bf16.gmra.mrb[24].mxu0 %vm902_vm1, %v877_v21  ;;  %v1679_v4 = vcombine.high %v16101_v0, %v16101_v0 }
  0x65   :  { %v2249_v39 = vcombine.low %v16134_v41, %v1655_v18  ;;  %v3254_v37 = vcombine.low %v3245_v33, %v3252_v42  ;;  %v1686_v5 = vrot.slane %v16101_v0, %v19501_v22  ;;  %17776 = vmatprep.mubr.msk.bf16.mxu0 %vm19400_vm0, %v24663_v48  ;;  %v1709_v34 = vrot.slane %v16102_v47, %v19501_v22  ;;  %v16104_v41 = vld.sshfl [vmem:[%s24635_s0 + $0x24] sm:$0x1 pattern:$0x75316420] }
  0x66   :  { %v2270_v52 = vrot.slane %v2248_v59, %v19501_v22  ;;  %v2278_v46 = vcombine.low %v2256_v3, %v2263_v16  ;;  %v3261_v55 = vrot.slane %v3253_v54, %v19501_v22  ;;  %v20012_v21 = vrot.slane %v1679_v4, %v19501_v22  ;;  %v16105_v59 = vld.sshfl [vmem:[%s24635_s0 + $0x28] sm:$0x32 pattern:$0x75316420] }
  0x67   :  { %v2277_v14 = vrot.slane %v2249_v39, %v19501_v22  ;;  %v3268_v56 = vrot.slane %v3254_v37, %v19501_v22  ;;  %v1694_v13 = vcombine.high %v1686_v5, %v1686_v5  ;;  %v1717_v20 = vcombine.high %v16103_v12, %v16103_v12  ;;  %v20048_v4 = vld.sshfl [vmem:[%s24635_s0 + $0x2c] sm:$0x1 pattern:$0x75316420] }
  0x68   :  { %v2286_v24 = vrot.slane %v2278_v46, %v19501_v22  ;;  %v1724_v7 = vrot.slane %v16103_v12, %v19501_v22  ;;  %v16159_v1 = vcombine.high %v1648_v53, %v1655_v18  ;;  %v1695_v38 = vcombine.high %v20012_v21, %v20012_v21 }
  0x69   :  { %17765 = vmatmul.mubr.msk.bf16.gmra.mrb[24].mxu1 %vm902_vm1, %v1368_v32  ;;  %v2279_v3 = vcombine.low %v2270_v52, %v2277_v14  ;;  %v3269_v31 = vcombine.low %v3261_v55, %v3268_v56  ;;  %v2112_v29 = vunpack.i.h.s16 %v20012_v21  ;;  %v20026_v0 = vrot.slane %v1717_v20, %v19501_v22 }
  0x6a   :  { %17812 = vmatprep.mubr.msk.bf16.mxu1 %vm19400_vm0, %v24663_v48  ;;  %v1732_v18 = vcombine.high %v1724_v7, %v1724_v7  ;;  %v2114_v25 = vunpack.i.h.s16 %v1694_v13  ;;  %v16135_v32 = vpack.i.b16 %v20012_v21, %v20000_v10  ;;  %v2116_v36 = vunpack.i.h.s16 %v1695_v38 }
  0x6b   :  { %v2293_v17 = vrot.slane %v2279_v3, %v19501_v22  ;;  %v16136_v43 = vpack.i.b16 %v1694_v13, %v2112_v29  ;;  %v2305_v47 = vrot.slane %v16159_v1, %v19501_v22  ;;  %v16213_v12 = vpack.i.b16 %v19574_v15, %v19613_v51  ;;  %v18146_v15 = vld [vmem:[%s24636_s1 + $0xa0] sm:$0xff]  }
  0x6c   :  { %v16137_v33 = vpack.i.b16 %v1695_v38, %v2114_v25  ;;  %v2298_v42 = vcombine.low %v20026_v0, %v1732_v18  ;;  %v3270_v53 = vcombine.low %v19569_v11, %v19609_v50  ;;  %v16138_v54 = vpack.i.b16 %v1709_v34, %v2116_v36  ;;  %v18147_v38 = vld [vmem:[%s24636_s1 + $0xa8] sm:$0xff]  }
  0x6d   :  { %v2294_v16 = vcombine.low %v2286_v24, %v2293_v17  ;;  %v2296_v39 = vcombine.low %v16135_v32, %v16136_v43  ;;  %v3272_v37 = vcombine.low %v19600_v45, %v19703_v57  ;;  %v3271_v50 = vcombine.low %v16213_v12, %v19597_v44  ;;  %v18143_v45 = vld [vmem:[%s24636_s1 + $0x88] sm:$0xff]   ;;  %v16107_v57 = vld.sshfl [vmem:[%s24635_s0 + $0x30] sm:$0x32 pattern:$0x75316420] }
  0x6e   :  { %v2326_v11 = vrot.slane %v2298_v42, %v19501_v22  ;;  %v3273_v51 = vcombine.low %v19654_v2, %v19665_v19  ;;  %v3280_v5 = vrot.slane %v3270_v53, %v19501_v22  ;;  %v2297_v52 = vcombine.low %v16137_v33, %v16138_v54  ;;  %v16193_v24 = vld.sshfl [vmem:[%s24635_s0 + $0x38] sm:$0x33 pattern:$0x75316420] }
  0x6f   :  { %17777 = vmatmul.mubr.msk.bf16.vlgmr.msra.gmra.mrb[28].mxu0 %vm902_vm1, %v2294_v16  ;;  %v2312_v46 = vrot.slane %v2296_v39, %v19501_v22  ;;  %v3294_v44 = vrot.slane %v3272_v37, %v19501_v22  ;;  %v1733_v2 = vcombine.high %v20026_v0, %v20026_v0  ;;  %v3287_v19 = vrot.slane %v3271_v50, %v19501_v22 }
  0x70   :  { %17841 = vmatpush3.bf16.msra.mxu0 %v18142_v30  ;;  %17780 = vmatprep.mubr.msk.bf16.mxu0 %vm19400_vm0, %v24663_v48  ;;  %v3301_v55 = vrot.slane %v3273_v51, %v19501_v22  ;;  %v20074_v34 = vrot.slane %v16104_v41, %v19501_v22  ;;  %v2319_v14 = vrot.slane %v2297_v52, %v19501_v22 }
  0x71   :  { %17813 = vmatmul.mubr.msk.bf16.vlgmr.msra.gmra.mrb[28].mxu1 %vm902_vm1, %v3269_v31  ;;  %v2327_v56 = vcombine.low %v2305_v47, %v2312_v46  ;;  %17842 = vmatprep.subr.bf16.mxu0 %v24663_v48  ;;  %v1755_v13 = vcombine.high %v16105_v59, %v16105_v59  ;;  %v3302_v20 = vcombine.low %v3280_v5, %v3287_v19  ;;  %v18144_v31 = vld [vmem:[%s24636_s1 + $0x90] sm:$0xff]  }
  0x72   :  { %17816 = vmatprep.mubr.msk.bf16.mxu1 %vm19400_vm0, %v24663_v48  ;;  %v3303_v7 = vcombine.low %v3294_v44, %v3301_v55  ;;  %v1762_v1 = vrot.slane %v16105_v59, %v19501_v22  ;;  %v1785_v3 = vrot.slane %v20048_v4, %v19501_v22  ;;  %v2328_v29 = vcombine.low %v2319_v14, %v2326_v11  ;;  %v16108_v4 = vld.sshfl [vmem:[%s24635_s0 + $0x34] sm:$0x1 pattern:$0x75316420]  ;;  %v18145_v11 = vld [vmem:[%s24636_s1 + $0x98] sm:$0xff]  }
  0x73   :  { %v2335_v30 = vrot.slane %v2327_v56, %v19501_v22  ;;  %v20095_v0 = vrot.slane %v1755_v13, %v19501_v22  ;;  %v1793_v18 = vcombine.high %v16107_v57, %v16107_v57  ;;  %17877 = vmatpush3.bf16.msra.mxu1 %v18146_v15  ;;  %v3310_v25 = vrot.slane %v3302_v20, %v19501_v22  ;;  %v16109_v15 = vld.sshfl [vmem:[%s24635_s0 + $0x48] sm:$0x32 pattern:$0x75316420] }
  0x74   :  { %v3317_v32 = vrot.slane %v3303_v7, %v19501_v22  ;;  %17843 = vmatpush3.bf16.msra.mxu0 %v18143_v45  ;;  %v20099_v17 = vcombine.high %v1762_v1, %v1762_v1  ;;  %v1800_v36 = vrot.slane %v16107_v57, %v19501_v22  ;;  %v2342_v43 = vrot.slane %v2328_v29, %v19501_v22  ;;  %v16110_v55 = vld.sshfl [vmem:[%s24635_s0 + $0x4c] sm:$0x1 pattern:$0x75316420] }
  0x75   :  { %v20105_v47 = vcombine.high %v20095_v0, %v20095_v0  ;;  %v1807_v41 = vrot.slane %v1793_v18, %v19501_v22  ;;  %v2126_v33 = vunpack.i.h.s16 %v20095_v0  ;;  %17844 = vmatprep.subr.bf16.mxu0 %v24663_v48  ;;  %17878 = vmatprep.subr.bf16.mxu1 %v24663_v48  ;;  %v16139_v53 = vpack.i.b16 %v20095_v0, %v20074_v34  ;;  %v16111_v7 = vld.sshfl [vmem:[%s24635_s0 + $0x50] sm:$0x32 pattern:$0x75316420] }
  0x76   :  { %v3318_v42 = vcombine.low %v3310_v25, %v3317_v32  ;;  %v2128_v12 = vunpack.i.h.s16 %v20099_v17  ;;  %v2880_v59 = vcombine.high %v16193_v24, %v16193_v24  ;;  %v2343_v16 = vcombine.low %v2335_v30, %v2342_v43  ;;  %v18149_v32 = vld [vmem:[%s24636_s1 + $0xb8] sm:$0xff]  }
  0x77   :  { %v2130_v54 = vunpack.i.h.s16 %v20105_v47  ;;  %v16140_v39 = vpack.i.b16 %v20099_v17, %v2126_v33  ;;  %v16160_v37 = vcombine.high %v1800_v36, %v1807_v41  ;;  %17879 = vmatpush3.bf16.msra.mxu1 %v18147_v38  ;;  %v2344_v51 = vcombine.low %v1733_v2, %v16139_v53  ;;  %v20177_v38 = vld.sshfl [vmem:[%s24635_s0 + $0x58] sm:$0x32 pattern:$0x75316420] }
  0x78   :  { %v16141_v50 = vpack.i.b16 %v20105_v47, %v2128_v12  ;;  %v20127_v5 = vrot.slane %v16193_v24, %v19501_v22  ;;  %v20130_v45 = vrot.slane %v2880_v59, %v19501_v22  ;;  %17845 = vmatpush3.bf16.msra.mxu0 %v18144_v31  ;;  %v16217_v46 = vpack.i.b16 %v19681_v26, %v19678_v23  ;;  %v18148_v23 = vld [vmem:[%s24636_s1 + $0xb0] sm:$0xff]  }
  0x79   :  { %17781 = vmatmul.mubr.msk.bf16.gmra.mrb[32].mxu0 %vm902_vm1, %v2343_v16  ;;  %17817 = vmatmul.mubr.msk.bf16.gmra.mrb[32].mxu1 %vm902_vm1, %v3318_v42  ;;  %v16142_v57 = vpack.i.b16 %v1785_v3, %v2130_v54  ;;  %v2375_v52 = vrot.slane %v16160_v37, %v19501_v22  ;;  %v2354_v2 = vrot.slane %v2344_v51, %v19501_v22  ;;  %v16112_v31 = vld.sshfl [vmem:[%s24635_s0 + $0x54] sm:$0x1 pattern:$0x75316420] }
  0x7a   :  { %17784 = vmatprep.mubr.msk.bf16.mxu0 %vm19400_vm0, %v24663_v48  ;;  %v2345_v44 = vcombine.low %v16140_v39, %v16141_v50  ;;  %17820 = vmatprep.mubr.msk.bf16.mxu1 %vm19400_vm0, %v24663_v48  ;;  %v20144_v19 = vcombine.high %v20127_v5, %v20127_v5  ;;  %v3319_v14 = vcombine.low %v19672_v27, %v16217_v46 }
  0x7b   :  { %v2346_v26 = vcombine.low %v16142_v57, %v1807_v41  ;;  %v3320_v56 = vcombine.low %v19708_v60, %v19712_v63  ;;  %v3321_v13 = vcombine.low %v19721_v6, %v20127_v5  ;;  %17846 = vmatprep.subr.bf16.mxu0 %v24663_v48  ;;  %v20165_v1 = vrot.slane %v16108_v4, %v19501_v22 }
  0x7c   :  { %v2361_v24 = vrot.slane %v2345_v44, %v19501_v22  ;;  %v3322_v20 = vcombine.low %v20130_v45, %v20144_v19  ;;  %v1831_v27 = vcombine.high %v16109_v15, %v16109_v15  ;;  %17847 = vmatpush3.bf16.msra.mxu0 %v18145_v11  ;;  %v3329_v63 = vrot.slane %v3319_v14, %v19501_v22 }
  0x7d   :  { %v2368_v60 = vrot.slane %v2346_v26, %v19501_v22  ;;  %v3336_v6 = vrot.slane %v3320_v56, %v19501_v22  ;;  %v3343_v3 = vrot.slane %v3321_v13, %v19501_v22  ;;  %17880 = vmatprep.subr.bf16.mxu1 %v24663_v48  ;;  %v1838_v18 = vrot.slane %v16109_v15, %v19501_v22 }
  0x7e   :  { %v2376_v29 = vcombine.low %v2354_v2, %v2361_v24  ;;  %v3350_v30 = vrot.slane %v3322_v20, %v19501_v22  ;;  %v1845_v25 = vrot.slane %v1831_v27, %v19501_v22  ;;  %17881 = vmatpush3.bf16.msra.mxu1 %v18148_v23  ;;  %v1861_v41 = vrot.slane %v16110_v55, %v19501_v22  ;;  %v16114_v27 = vld.sshfl [vmem:[%s24635_s0 + $0x5c] sm:$0x1 pattern:$0x75316420] }
  0x7f   :  { %v2377_v36 = vcombine.low %v2368_v60, %v2375_v52  ;;  %v3351_v43 = vcombine.low %v3329_v63, %v3336_v6  ;;  %v1869_v33 = vcombine.high %v16111_v7, %v16111_v7  ;;  %17882 = vmatprep.subr.bf16.mxu1 %v24663_v48  ;;  %v1846_v53 = vcombine.high %v1838_v18, %v1838_v18 }
  0x80   :  { %v2384_v42 = vrot.slane %v2376_v29, %v19501_v22  ;;  %v3352_v12 = vcombine.low %v3343_v3, %v3350_v30  ;;  %v1847_v59 = vcombine.high %v1845_v25, %v1845_v25  ;;  %17912 = vmatprep.subr.bf16.mxu0 %v24663_v48  ;;  %v1876_v39 = vrot.slane %v16111_v7, %v19501_v22 }
  0x81   :  { %v2391_v16 = vrot.slane %v2377_v36, %v19501_v22  ;;  %v3359_v54 = vrot.slane %v3351_v43, %v19501_v22  ;;  %v1883_v37 = vrot.slane %v1869_v33, %v19501_v22  ;;  %v1899_v15 = vrot.slane %v16112_v31, %v19501_v22 }
  0x82   :  { %v3366_v4 = vrot.slane %v3352_v12, %v19501_v22  ;;  %v1907_v11 = vcombine.high %v20177_v38, %v20177_v38  ;;  %v2140_v50 = vunpack.i.h.s16 %v1845_v25  ;;  %17883 = vmatpush3.bf16.msra.mxu1 %v18149_v32  ;;  %v1884_v57 = vcombine.high %v1876_v39, %v1876_v39 }
  0x83   :  { %v2392_v51 = vcombine.low %v2384_v42, %v2391_v16  ;;  %v1885_v52 = vcombine.high %v1883_v37, %v1883_v37  ;;  %v2142_v46 = vunpack.i.h.s16 %v1846_v53  ;;  %17948 = vmatprep.subr.bf16.mxu1 %v24663_v48  ;;  %v2144_v55 = vunpack.i.h.s16 %v1847_v59 }
  0x84   :  { %v3367_v44 = vcombine.low %v3359_v54, %v3366_v4  ;;  %v1921_v2 = vrot.slane %v1907_v11, %v19501_v22  ;;  %v16143_v23 = vpack.i.b16 %v1845_v25, %v20165_v1  ;;  %v16144_v26 = vpack.i.b16 %v1846_v53, %v2140_v50  ;;  %v16116_v25 = vld.sshfl [vmem:[%s24635_s0 + $0x64] sm:$0x1 pattern:$0x75316420] }
  0x85   :  { %17785 = vmatmul.mubr.msk.bf16.gmra.mrb[36].mxu0 %vm902_vm1, %v2392_v51  ;;  %v16145_v14 = vpack.i.b16 %v1847_v59, %v2142_v46  ;;  %v2395_v56 = vcombine.low %v1883_v37, %v1884_v57  ;;  %v20204_v13 = vcombine.high %v20130_v45, %v20130_v45  ;;  %v16146_v24 = vpack.i.b16 %v1861_v41, %v2144_v55  ;;  %v16197_v55 = vld.sshfl [vmem:[%s24635_s0 + $0x68] sm:$0x33 pattern:$0x75316420] }
  0x86   :  { %17821 = vmatmul.mubr.msk.bf16.gmra.mrb[36].mxu1 %vm902_vm1, %v3367_v44  ;;  %17788 = vmatprep.mubr.msk.bf16.mxu0 %vm19400_vm0, %v24663_v48  ;;  %v16147_v20 = vpack.i.b16 %v1921_v2, %v1899_v15  ;;  %v16225_v7 = vpack.i.b16 %v19823_v49, %v19831_v61  ;;  %v2154_v60 = vunpack.i.h.s16 %v1921_v2  ;;  %v2393_v63 = vcombine.low %v16143_v23, %v16144_v26  ;;  %v16115_v49 = vld.sshfl [vmem:[%s24635_s0 + $0x60] sm:$0x32 pattern:$0x75316420] }
  0x87   :  { %v2417_v6 = vrot.slane %v2395_v56, %v19501_v22  ;;  %17824 = vmatprep.mubr.msk.bf16.mxu1 %vm19400_vm0, %v24663_v48  ;;  %v16221_v3 = vpack.i.b16 %v19762_v58, %v20204_v13  ;;  %v3369_v31 = vcombine.low %v19781_v35, %v19785_v40  ;;  %v2394_v61 = vcombine.low %v16145_v14, %v16146_v24  ;;  %v16117_v58 = vld.sshfl [vmem:[%s24635_s0 + $0x68] sm:$0x32 pattern:$0x75316420] }
  0x88   :  { %v2396_v29 = vcombine.low %v1885_v52, %v16147_v20  ;;  %v3370_v30 = vcombine.low %v19767_v62, %v19820_v28  ;;  %v3371_v18 = vcombine.low %v19812_v9, %v16225_v7  ;;  %v2403_v35 = vrot.slane %v2393_v63, %v19501_v22  ;;  %v24664_v40 = vld [vmem:[#allocation7_spill] sm:$0xff] }
  0x89   :  { %v3368_v32 = vcombine.low %v16221_v3, %v24664_v40  ;;  %v3385_v36 = vrot.slane %v3369_v31, %v19501_v22  ;;  %v1914_v43 = vrot.slane %v20177_v38, %v19501_v22  ;;  %v2410_v62 = vrot.slane %v2394_v61, %v19501_v22 }
  0x8a   :  { %v2424_v9 = vrot.slane %v2396_v29, %v19501_v22  ;;  %v3392_v28 = vrot.slane %v3370_v30, %v19501_v22  ;;  %v3399_v41 = vrot.slane %v3371_v18, %v19501_v22  ;;  %v1923_v12 = vcombine.high %v1921_v2, %v1921_v2  ;;  %v16119_v30 = vld.sshfl [vmem:[%s24635_s0 + $0x70] sm:$0x32 pattern:$0x75316420] }
  0x8b   :  { %v3378_v33 = vrot.slane %v3368_v32, %v19501_v22  ;;  %v1922_v42 = vcombine.high %v1914_v43, %v1914_v43  ;;  %v20244_v53 = vrot.slane %v16114_v27, %v19501_v22  ;;  %v2425_v59 = vcombine.low %v2403_v35, %v2410_v62 }
  0x8c   :  { %v2426_v16 = vcombine.low %v2417_v6, %v2424_v9  ;;  %v3401_v54 = vcombine.low %v3392_v28, %v3399_v41  ;;  %v1945_v39 = vcombine.high %v16115_v49, %v16115_v49  ;;  %v1952_v37 = vrot.slane %v16115_v49, %v19501_v22  ;;  %v16118_v49 = vld.sshfl [vmem:[%s24635_s0 + $0x6c] sm:$0x1 pattern:$0x75316420]  ;;  %v24665_v9 = vld [vmem:[#allocation9_spill] sm:$0xff] }
  0x8d   :  { %v3400_v38 = vcombine.low %v3378_v33, %v3385_v36  ;;  %v1975_v4 = vrot.slane %v16116_v25, %v19501_v22  ;;  %v1983_v15 = vcombine.high %v16117_v58, %v16117_v58  ;;  %v2433_v11 = vrot.slane %v2425_v59, %v19501_v22  ;;  %v16120_v36 = vld.sshfl [vmem:[%s24635_s0 + $0x74] sm:$0x1 pattern:$0x75316420]  ;;  %v24666_v28 = vld [vmem:[#allocation8_spill] sm:$0xff]  ;;  %v24667_v59 = vld [vmem:[#allocation10_spill] sm:$0xff] }
  0x8e   :  { %v2440_v50 = vrot.slane %v2426_v16, %v19501_v22  ;;  %v3415_v51 = vrot.slane %v3401_v54, %v19501_v22  ;;  %v20252_v57 = vrot.slane %v1945_v39, %v19501_v22  ;;  %v1990_v46 = vrot.slane %v16117_v58, %v19501_v22  ;;  %v16121_v33 = vld.sshfl [vmem:[%s24635_s0 + $0x78] sm:$0x32 pattern:$0x75316420] }
  0x8f   :  { %v3408_v52 = vrot.slane %v3400_v38, %v19501_v22  ;;  %v1997_v44 = vrot.slane %v1983_v15, %v19501_v22  ;;  %v2156_v2 = vunpack.i.h.s16 %v1922_v42  ;;  %v2158_v26 = vunpack.i.h.s16 %v1923_v12 }
  0x90   :  { %v2441_v23 = vcombine.low %v2433_v11, %v2440_v50  ;;  %v16148_v14 = vpack.i.b16 %v1922_v42, %v2154_v60  ;;  %v16161_v56 = vcombine.high %v1952_v37, %v20252_v57  ;;  %v1998_v20 = vcombine.high %v1990_v46, %v1990_v46 }
  0x91   :  { %v3416_v24 = vcombine.low %v3408_v52, %v3415_v51  ;;  %v2168_v7 = vunpack.i.h.s16 %v1997_v44  ;;  %v16149_v27 = vpack.i.b16 %v1923_v12, %v2156_v2  ;;  %v16150_v63 = vpack.i.b16 %v20244_v53, %v2158_v26 }
  0x92   :  { %17789 = vmatmul.mubr.msk.bf16.gmra.mrb[40].mxu0 %vm902_vm1, %v2441_v23  ;;  %v16151_v6 = vpack.i.b16 %v1997_v44, %v1975_v4  ;;  %v2466_v3 = vrot.slane %v16161_v56, %v19501_v22  ;;  %v2976_v31 = vcombine.high %v16197_v55, %v16197_v55  ;;  %v20271_v29 = vrot.slane %v16197_v55, %v19501_v22 }
  0x93   :  { %17825 = vmatmul.mubr.msk.bf16.gmra.mrb[40].mxu1 %vm902_vm1, %v3416_v24  ;;  %17792 = vmatprep.mubr.msk.bf16.mxu0 %vm19400_vm0, %v24663_v48  ;;  %v16152_v60 = vpack.i.b16 %v1998_v20, %v2168_v7  ;;  %v2442_v61 = vcombine.low %v16148_v14, %v16149_v27  ;;  %v2170_v18 = vunpack.i.h.s16 %v1998_v20  ;;  %v2443_v25 = vcombine.low %v16150_v63, %v20252_v57  ;;  %v16199_v63 = vld.sshfl [vmem:[%s24635_s0 + $0x78] sm:$0x33 pattern:$0x75316420] }
  0x94   :  { %17828 = vmatprep.mubr.msk.bf16.mxu1 %vm19400_vm0, %v24663_v48  ;;  %v20280_v58 = vrot.slane %v2976_v31, %v19501_v22  ;;  %v20285_v32 = vcombine.high %v20271_v29, %v20271_v29  ;;  %v3417_v41 = vcombine.low %v24666_v28, %v24665_v9  ;;  %v1999_v42 = vcombine.high %v1997_v44, %v1997_v44  ;;  %v24668_v44 = vld [vmem:[#allocation11_spill] sm:$0xff] }
  0x95   :  { %v2445_v35 = vcombine.low %v16151_v6, %v16152_v60  ;;  %v2452_v40 = vrot.slane %v2442_v61, %v19501_v22  ;;  %v2459_v43 = vrot.slane %v2443_v25, %v19501_v22  ;;  %v3418_v16 = vcombine.low %v24667_v59, %v20271_v29 }
  0x96   :  { %v20293_v62 = vcombine.high %v20280_v58, %v20280_v58  ;;  %v3419_v54 = vcombine.low %v20280_v58, %v20285_v32  ;;  %v20306_v39 = vrot.slane %v16118_v49, %v19501_v22  ;;  %v3427_v4 = vrot.slane %v3417_v41, %v19501_v22 }
  0x97   :  { %v2473_v12 = vrot.slane %v2445_v35, %v19501_v22  ;;  %v2474_v38 = vcombine.low %v2452_v40, %v2459_v43  ;;  %v2021_v15 = vcombine.high %v16119_v30, %v16119_v30  ;;  %v3434_v50 = vrot.slane %v3418_v16, %v19501_v22  ;;  %v16200_v35 = vld.sshfl [vmem:[%s24635_s0 + $0x80] sm:$0x33 pattern:$0x75316420] }
  0x98   :  { %v16229_v37 = vpack.i.b16 %v19885_v8, %v20293_v62  ;;  %v3441_v51 = vrot.slane %v3419_v54, %v19501_v22  ;;  %v2028_v52 = vrot.slane %v16119_v30, %v19501_v22  ;;  %v2051_v23 = vrot.slane %v16120_v36, %v19501_v22 }
  0x99   :  { %v2475_v11 = vcombine.low %v2466_v3, %v2473_v12  ;;  %v2482_v46 = vrot.slane %v2474_v38, %v19501_v22  ;;  %v20317_v55 = vrot.slane %v2021_v15, %v19501_v22  ;;  %v3449_v26 = vcombine.low %v3427_v4, %v3434_v50  ;;  %v16122_v50 = vld.sshfl [vmem:[%s24635_s0 + $0x7c] sm:$0x1 pattern:$0x75316420] }
  0x9a   :  { %v3420_v2 = vcombine.low %v16229_v37, %v24668_v44  ;;  %v20321_v14 = vcombine.high %v2028_v52, %v2028_v52  ;;  %v2059_v56 = vcombine.high %v16121_v33, %v16121_v33  ;;  %v2066_v7 = vrot.slane %v16121_v33, %v19501_v22 }
  0x9b   :  { %v2489_v8 = vrot.slane %v2475_v11, %v19501_v22  ;;  %v20326_v20 = vcombine.high %v20317_v55, %v20317_v55  ;;  %v2172_v27 = vunpack.i.h.s16 %v1999_v42  ;;  %v3457_v3 = vrot.slane %v3449_v26, %v19501_v22 }
  0x9c   :  { %v3448_v24 = vrot.slane %v3420_v2, %v19501_v22  ;;  %v2073_v31 = vrot.slane %v2059_v56, %v19501_v22  ;;  %v16153_v49 = vpack.i.b16 %v1999_v42, %v2170_v18  ;;  %v2074_v61 = vcombine.high %v2066_v7, %v2066_v7 }
  0x9d   :  { %v2490_v6 = vcombine.low %v2482_v46, %v2489_v8  ;;  %v16154_v30 = vpack.i.b16 %v20306_v39, %v2172_v27  ;;  %v2492_v25 = vcombine.low %v20317_v55, %v20321_v14  ;;  %v3024_v12 = vcombine.high %v16199_v63, %v16199_v63 }
  0x9e   :  { %v3450_v60 = vcombine.low %v3441_v51, %v3448_v24  ;;  %v2075_v40 = vcombine.high %v2073_v31, %v2073_v31  ;;  %v2182_v36 = vunpack.i.h.s16 %v2073_v31  ;;  %v16155_v43 = vpack.i.b16 %v2073_v31, %v2051_v23  ;;  %v16262_v24 = vld.sshfl [vmem:[%s24635_s0 + $0x8] sm:$0x33 pattern:$0x75316420]  ;;  %v24669_v31 = vld [vmem:[#allocation13_spill] sm:$0xff] }
  0x9f   :  { %17793 = vmatmul.mubr.msk.bf16.gmra.mrb[44].mxu0 %vm902_vm1, %v2490_v6  ;;  %v2184_v18 = vunpack.i.h.s16 %v2074_v61  ;;  %v2491_v28 = vcombine.low %v16153_v49, %v16154_v30  ;;  %v2508_v41 = vrot.slane %v2492_v25, %v19501_v22  ;;  %v20348_v38 = vrot.slane %v16199_v63, %v19501_v22  ;;  %v24670_v49 = vld [vmem:[#allocation12_spill] sm:$0xff] }
  0xa0   :  { %v3464_v9 = vrot.slane %v3450_v60, %v19501_v22  ;;  %17796 = vmatprep.mubr.msk.bf16.mxu0 %vm19400_vm0, %v24663_v48  ;;  %v16156_v33 = vpack.i.b16 %v2074_v61, %v2182_v36  ;;  %v2493_v42 = vcombine.low %v20326_v20, %v16155_v43  ;;  %v20352_v4 = vrot.slane %v3024_v12, %v19501_v22  ;;  %v16263_v25 = vld.sshfl [vmem:[%s24635_s0 + $0x10] sm:$0x33 pattern:$0x75316420] }
  0xa1   :  { %v16157_v16 = vpack.i.b16 %v2075_v40, %v2184_v18  ;;  %v2501_v54 = vrot.slane %v2491_v28, %v19501_v22  ;;  %v3048_v15 = vcombine.high %v16200_v35, %v16200_v35  ;;  %v20355_v11 = vrot.slane %v16200_v35, %v19501_v22 }
  0xa2   :  { %v3465_v59 = vcombine.low %v3457_v3, %v3464_v9  ;;  %v2515_v37 = vrot.slane %v2493_v42, %v19501_v22  ;;  %v20363_v46 = vcombine.high %v20348_v38, %v20348_v38  ;;  %v20369_v44 = vcombine.high %v20352_v4, %v20352_v4 }
  0xa3   :  { %v2494_v51 = vcombine.low %v16156_v33, %v16157_v16  ;;  %v2523_v52 = vcombine.low %v2501_v54, %v2508_v41  ;;  %v20372_v2 = vrot.slane %v3048_v15, %v19501_v22  ;;  %v20376_v23 = vcombine.high %v20355_v11, %v20355_v11  ;;  %v16264_v33 = vld.sshfl [vmem:[%s24635_s0 + $0x18] sm:$0x33 pattern:$0x75316420] }
  0xa4   :  { %17829 = vmatmul.mubr.msk.bf16.gmra.mrb[44].mxu1 %vm902_vm1, %v3465_v59  ;;  %v24654_v8 = vunpack.i.h.s16 %v20355_v11  ;;  %v16233_v27 = vpack.i.b16 %v20355_v11, %v20369_v44  ;;  %v3467_v6 = vcombine.low %v20348_v38, %v20352_v4  ;;  %v3466_v60 = vcombine.low %v24670_v49, %v24669_v31 }
  0xa5   :  { %17832 = vmatprep.mubr.msk.bf16.mxu1 %vm19400_vm0, %v24663_v48  ;;  %v2522_v26 = vrot.slane %v2494_v51, %v19501_v22  ;;  %v2531_v56 = vrot.slane %v2523_v52, %v19501_v22  ;;  %v3159_v7 = vunpack.i.h.s16 %v20372_v2  ;;  %v20395_v61 = vrot.slane %v16122_v50, %v19501_v22 }
  0xa6   :  { %v16234_v63 = vpack.i.b16 %v20372_v2, %v24654_v8  ;;  %v2186_v30 = vunpack.i.h.s16 %v2075_v40  ;;  %v3468_v36 = vcombine.low %v20363_v46, %v16233_v27  ;;  %v3483_v43 = vrot.slane %v3467_v6, %v19501_v22 }
  0xa7   :  { %v2524_v3 = vcombine.low %v2515_v37, %v2522_v26  ;;  %v16235_v35 = vpack.i.b16 %v20376_v23, %v3159_v7  ;;  %v20405_v9 = vcombine.high %v20372_v2, %v20372_v2  ;;  %v3476_v28 = vrot.slane %v3466_v60, %v19501_v22  ;;  %v16347_v60 = vld.sshfl [vmem:[%s24635_s0 + $0x8] sm:$0x32 pattern:$0x75316420] }
  0xa8   :  { %v16158_v40 = vpack.i.b16 %v20395_v61, %v2186_v30  ;;  %v3161_v41 = vunpack.i.h.s16 %v20376_v23  ;;  %v3490_v12 = vrot.slane %v3468_v36, %v19501_v22  ;;  %v3710_v59 = vcombine.high %v16262_v24, %v16262_v24 }
  0xa9   :  { %v2538_v18 = vrot.slane %v2524_v3, %v19501_v22  ;;  %v3469_v42 = vcombine.low %v16234_v63, %v16235_v35  ;;  %v3717_v16 = vrot.slane %v16262_v24, %v19501_v22  ;;  %v3498_v37 = vcombine.low %v3476_v28, %v3483_v43 }
  0xaa   :  { %v2546_v15 = vrot.slane %v16158_v40, %v19501_v22  ;;  %v16236_v50 = vpack.i.b16 %v20405_v9, %v3161_v41  ;;  %v3724_v52 = vrot.slane %v3710_v59, %v19501_v22  ;;  %v3734_v7 = vcombine.high %v16263_v25, %v16263_v25 }
  0xab   :  { %v2539_v54 = vcombine.low %v2531_v56, %v2538_v18  ;;  %v3497_v51 = vrot.slane %v3469_v42, %v19501_v22  ;;  %v3725_v26 = vcombine.high %v3717_v16, %v3717_v16  ;;  %v3506_v27 = vrot.slane %v3498_v37, %v19501_v22 }
  0xac   :  { %v2553_v63 = vrot.slane %v2546_v15, %v19501_v22  ;;  %v3521_v24 = vrot.slane %v16236_v50, %v19501_v22  ;;  %v3741_v56 = vrot.slane %v16263_v25, %v19501_v22  ;;  %v3726_v3 = vcombine.high %v3724_v52, %v3724_v52  ;;  %v16348_v25 = vld.sshfl [vmem:[%s24635_s0 + $0xc] sm:$0x1 pattern:$0x75316420] }
  0xad   :  { %17797 = vmatmul.mubr.msk.bf16.gmra.mrb[48].mxu0 %vm902_vm1, %v2539_v54  ;;  %v3499_v6 = vcombine.low %v3490_v12, %v3497_v51  ;;  %v3748_v31 = vrot.slane %v3734_v7, %v19501_v22  ;;  %v3758_v49 = vcombine.high %v16264_v33, %v16264_v33  ;;  %v3765_v36 = vrot.slane %v16264_v33, %v19501_v22 }
  0xae   :  { %17800 = vmatprep.mubr.msk.bf16.mxu0 %vm19400_vm0, %v24663_v48  ;;  %v3528_v30 = vrot.slane %v3521_v24, %v19501_v22  ;;  %v3749_v35 = vcombine.high %v3741_v56, %v3741_v56  ;;  %v4039_v43 = vunpack.i.h.s16 %v3717_v16  ;;  %v4041_v41 = vunpack.i.h.s16 %v3724_v52  ;;  %v16349_v16 = vld.sshfl [vmem:[%s24635_s0 + $0x10] sm:$0x32 pattern:$0x75316420] }
  0xaf   :  { %v3513_v18 = vrot.slane %v3499_v6, %v19501_v22  ;;  %v3750_v28 = vcombine.high %v3748_v31, %v3748_v31  ;;  %v20438_v40 = vrot.slane %v3758_v49, %v19501_v22  ;;  %v4043_v42 = vunpack.i.h.s16 %v3725_v26 }
  0xb0   :  { %v4045_v12 = vunpack.i.h.s16 %v3726_v3  ;;  %v4046_v59 = vunpack.i.h.s16 %v3741_v56  ;;  %v4053_v54 = vunpack.i.h.s16 %v3765_v36  ;;  %v16284_v15 = vpack.i.b16 %v3724_v52, %v4039_v43 }
  0xb1   :  { %v3514_v37 = vcombine.low %v3506_v27, %v3513_v18  ;;  %v16285_v50 = vpack.i.b16 %v3725_v26, %v4041_v41  ;;  %v4197_v33 = vcombine.low %v3748_v31, %v3749_v35  ;;  %v16286_v51 = vpack.i.b16 %v3726_v3, %v4043_v42  ;;  %v16265_v26 = vld.sshfl [vmem:[%s24635_s0 + $0x20] sm:$0x33 pattern:$0x75316420] }
  0xb2   :  { %v4149_v7 = vpack.i.b16 %v4046_v59, %v4045_v12  ;;  %v16287_v24 = vpack.i.b16 %v20438_v40, %v4053_v54  ;;  %v4712_v6 = vcombine.high %v16347_v60, %v16347_v60  ;;  %v4719_v56 = vrot.slane %v16347_v60, %v19501_v22 }
  0xb3   :  { %17833 = vmatmul.mubr.msk.bf16.gmra.mrb[48].mxu1 %vm902_vm1, %v3514_v37  ;;  %v4195_v49 = vcombine.low %v16284_v15, %v16285_v50  ;;  %v4219_v8 = vrot.slane %v4197_v33, %v19501_v22  ;;  %v4742_v52 = vrot.slane %v16348_v25, %v19501_v22  ;;  %v4055_v35 = vunpack.i.h.s16 %v20438_v40  ;;  %v16266_v37 = vld.sshfl [vmem:[%s24635_s0 + $0x28] sm:$0x33 pattern:$0x75316420] }
  0xb4   :  { %17836 = vmatprep.mubr.msk.bf16.mxu1 %vm19400_vm0, %v24663_v48  ;;  %v4196_v27 = vcombine.low %v16286_v51, %v4149_v7  ;;  %v4198_v3 = vcombine.low %v3750_v28, %v16287_v24  ;;  %v4726_v31 = vrot.slane %v4712_v6, %v19501_v22  ;;  %v4727_v43 = vcombine.high %v4719_v56, %v4719_v56 }
  0xb5   :  { %17801 = vmatmul.mubr.msk.bf16.gmra.mrb[52].mxu0 %vm902_vm1, %v2553_v63  ;;  %v4205_v60 = vrot.slane %v4195_v49, %v19501_v22  ;;  %v4750_v25 = vcombine.high %v16349_v16, %v16349_v16  ;;  %v4757_v18 = vrot.slane %v16349_v16, %v19501_v22  ;;  %v3773_v12 = vcombine.high %v3765_v36, %v3765_v36  ;;  %v18150_v36 = vld [vmem:[%s24636_s1 + $0xc0] sm:$0xff]  }
  0xb6   :  { %17848 = vmatprep.mubr.msk.bf16.mxu0 %vm19400_vm0, %v24663_v48  ;;  %v4212_v63 = vrot.slane %v4196_v27, %v19501_v22  ;;  %v4226_v41 = vrot.slane %v4198_v3, %v19501_v22  ;;  %v4728_v42 = vcombine.high %v4726_v31, %v4726_v31  ;;  %v5393_v54 = vcombine.low %v4726_v31, %v4727_v43 }
  0xb7   :  { %v4764_v28 = vrot.slane %v4750_v25, %v19501_v22  ;;  %v4765_v59 = vcombine.high %v4757_v18, %v4757_v18  ;;  %v3774_v15 = vcombine.high %v20438_v40, %v20438_v40  ;;  %v3782_v16 = vcombine.high %v16265_v26, %v16265_v26 }
  0xb8   :  { %v4227_v50 = vcombine.low %v4205_v60, %v4212_v63  ;;  %v4228_v33 = vcombine.low %v4219_v8, %v4226_v41  ;;  %v20469_v51 = vrot.slane %v16265_v26, %v19501_v22  ;;  %v5403_v40 = vrot.slane %v5393_v54, %v19501_v22 }
  0xb9   :  { %v4766_v7 = vcombine.high %v4764_v28, %v4764_v28  ;;  %v5245_v24 = vunpack.i.h.s16 %v4764_v28  ;;  %v5247_v6 = vunpack.i.h.s16 %v4765_v59  ;;  %v16383_v49 = vpack.i.b16 %v4764_v28, %v4742_v52 }
  0xba   :  { %v4235_v56 = vrot.slane %v4227_v50, %v19501_v22  ;;  %v4242_v27 = vrot.slane %v4228_v33, %v19501_v22  ;;  %v20478_v8 = vrot.slane %v3782_v16, %v19501_v22  ;;  %v3806_v52 = vcombine.high %v16266_v37, %v16266_v37  ;;  %v18151_v33 = vld [vmem:[%s24636_s1 + $0xc8] sm:$0xff]  }
  0xbb   :  { %17837 = vmatmul.mubr.msk.bf16.gmra.mrb[52].mxu1 %vm902_vm1, %v3528_v30  ;;  %v5249_v26 = vunpack.i.h.s16 %v4766_v7  ;;  %v16384_v3 = vpack.i.b16 %v4765_v59, %v5245_v24  ;;  %v16385_v31 = vpack.i.b16 %v4766_v7, %v5247_v6  ;;  %v5394_v60 = vcombine.low %v4728_v42, %v16383_v49 }
  0xbc   :  { %v4243_v43 = vcombine.low %v4235_v56, %v4242_v27  ;;  %17884 = vmatprep.mubr.msk.bf16.mxu1 %vm19400_vm0, %v24663_v48  ;;  %v3813_v25 = vrot.slane %v16266_v37, %v19501_v22  ;;  %v4057_v18 = vunpack.i.h.s16 %v3773_v12  ;;  %v4059_v54 = vunpack.i.h.s16 %v3774_v15  ;;  %v16352_v37 = vld.sshfl [vmem:[%s24635_s0 + $0x1c] sm:$0x1 pattern:$0x75316420] }
  0xbd   :  { %v16386_v63 = vpack.i.b16 %v20000_v10, %v5249_v26  ;;  %v5395_v41 = vcombine.low %v16384_v3, %v16385_v31  ;;  %v5410_v28 = vrot.slane %v5394_v60, %v19501_v22  ;;  %v3820_v30 = vrot.slane %v3806_v52, %v19501_v22  ;;  %v16353_v10 = vld.sshfl [vmem:[%s24635_s0 + $0x20] sm:$0x32 pattern:$0x75316420]  ;;  %v18152_v60 = vld [vmem:[%s24636_s1 + $0xd0] sm:$0xff]  }
  0xbe   :  { %17849 = vmatmul.mubr.msk.bf16.vlgmr.msra.gmra.mrb[56].mxu0 %vm902_vm1, %v4243_v43  ;;  %v20488_v59 = vcombine.high %v3813_v25, %v3813_v25  ;;  %v4060_v42 = vunpack.i.h.s16 %v20469_v51  ;;  %v4067_v50 = vunpack.i.h.s16 %v3813_v25  ;;  %v4081_v6 = vunpack.i.h.s16 %v20127_v5  ;;  %v19372_v43 = vld.sshfl [vmem:[%s24635_s0 + $0x18] sm:$0x32 pattern:$0x75316420] }
  0xbf   :  { %17913 = vmatpush3.bf16.msra.mxu0 %v18150_v36  ;;  %v5396_v16 = vcombine.low %v16386_v63, %v20012_v21  ;;  %v5417_v7 = vrot.slane %v5395_v41, %v19501_v22  ;;  %v5425_v24 = vcombine.low %v5403_v40, %v5410_v28  ;;  %17852 = vmatprep.mubr.msk.bf16.mxu0 %vm19400_vm0, %v24663_v48  ;;  %v4069_v49 = vunpack.i.h.s16 %v3820_v30 }
  0xc0   :  { %v16288_v56 = vpack.i.b16 %v3773_v12, %v4055_v35  ;;  %v16289_v27 = vpack.i.b16 %v3774_v15, %v4057_v18  ;;  %v4156_v26 = vpack.i.b16 %v4060_v42, %v4059_v54  ;;  %17914 = vmatprep.subr.bf16.mxu0 %v24663_v48  ;;  %v16290_v31 = vpack.i.b16 %v3820_v30, %v4067_v50 }
  0xc1   :  { %v5424_v36 = vrot.slane %v5396_v16, %v19501_v22  ;;  %v5433_v3 = vrot.slane %v5425_v24, %v19501_v22  ;;  %v16305_v40 = vcombine.high %v20469_v51, %v20478_v8  ;;  %v16291_v35 = vpack.i.b16 %v20488_v59, %v4069_v49  ;;  %v16267_v24 = vld.sshfl [vmem:[%s24635_s0 + $0x30] sm:$0x33 pattern:$0x75316420] }
  0xc2   :  { %v4244_v12 = vcombine.low %v16288_v56, %v16289_v27  ;;  %v4245_v15 = vcombine.low %v4156_v26, %v20478_v8  ;;  %v4795_v52 = vrot.slane %v19372_v43, %v19501_v22  ;;  %v4818_v63 = vrot.slane %v16352_v37, %v19501_v22 }
  0xc3   :  { %v5426_v25 = vcombine.low %v5417_v7, %v5424_v36  ;;  %v4268_v18 = vrot.slane %v16305_v40, %v19501_v22  ;;  %v4826_v41 = vcombine.high %v16353_v10, %v16353_v10  ;;  %17915 = vmatpush3.bf16.msra.mxu0 %v18151_v33  ;;  %v4247_v28 = vcombine.low %v16290_v31, %v16291_v35  ;;  %v18154_v7 = vld [vmem:[%s24636_s1 + $0xe0] sm:$0xff]  }
  0xc4   :  { %v4254_v54 = vrot.slane %v4244_v12, %v19501_v22  ;;  %v4261_v50 = vrot.slane %v4245_v15, %v19501_v22  ;;  %v4833_v16 = vrot.slane %v16353_v10, %v19501_v22  ;;  %17916 = vmatprep.subr.bf16.mxu0 %v24663_v48  ;;  %v16411_v49 = vcombine.high %v4795_v52, %v20012_v21  ;;  %v18153_v10 = vld [vmem:[%s24636_s1 + $0xd8] sm:$0xff]  }
  0xc5   :  { %v5440_v37 = vrot.slane %v5426_v25, %v19501_v22  ;;  %v4840_v33 = vrot.slane %v4826_v41, %v19501_v22  ;;  %v5445_v56 = vcombine.low %v20095_v0, %v20099_v17  ;;  %v4275_v27 = vrot.slane %v4247_v28, %v19501_v22 }
  0xc6   :  { %v4276_v26 = vcombine.low %v4254_v54, %v4261_v50  ;;  %v4841_v36 = vcombine.high %v4833_v16, %v4833_v16  ;;  %v3822_v31 = vcombine.high %v3820_v30, %v3820_v30  ;;  %v5452_v0 = vrot.slane %v16411_v49, %v19501_v22 }
  0xc7   :  { %v5441_v40 = vcombine.low %v5433_v3, %v5440_v37  ;;  %v4842_v35 = vcombine.high %v4840_v33, %v4840_v33  ;;  %v5259_v12 = vunpack.i.h.s16 %v4840_v33  ;;  %v16387_v15 = vpack.i.b16 %v4840_v33, %v4818_v63  ;;  %17917 = vmatpush3.bf16.msra.mxu0 %v18152_v60 }
  0xc8   :  { %v4277_v43 = vcombine.low %v4268_v18, %v4275_v27  ;;  %v4284_v21 = vrot.slane %v4276_v26, %v19501_v22  ;;  %v5261_v52 = vunpack.i.h.s16 %v4841_v36  ;;  %17918 = vmatprep.subr.bf16.mxu0 %v24663_v48  ;;  %v5473_v41 = vrot.slane %v5445_v56, %v19501_v22  ;;  %v16356_v27 = vld.sshfl [vmem:[%s24635_s0 + $0x2c] sm:$0x1 pattern:$0x75316420] }
  0xc9   :  { %17885 = vmatmul.mubr.msk.bf16.vlgmr.msra.gmra.mrb[56].mxu1 %vm902_vm1, %v5441_v40  ;;  %v5263_v17 = vunpack.i.h.s16 %v4842_v35  ;;  %v16388_v25 = vpack.i.b16 %v4841_v36, %v5259_v12  ;;  %v3830_v30 = vcombine.high %v16267_v24, %v16267_v24  ;;  %v20551_v18 = vrot.slane %v16267_v24, %v19501_v22  ;;  %v16357_v26 = vld.sshfl [vmem:[%s24635_s0 + $0x30] sm:$0x32 pattern:$0x75316420] }
  0xca   :  { %v4291_v3 = vrot.slane %v4277_v43, %v19501_v22  ;;  %17888 = vmatprep.mubr.msk.bf16.mxu1 %vm19400_vm0, %v24663_v48  ;;  %v16389_v60 = vpack.i.b16 %v4842_v35, %v5261_v52  ;;  %v4071_v63 = vunpack.i.h.s16 %v20488_v59  ;;  %17949 = vmatpush3.bf16.msra.mxu1 %v18154_v7  ;;  %v4073_v16 = vunpack.i.h.s16 %v3822_v31  ;;  %v18156_v43 = vld [vmem:[%s24636_s1 + $0xf0] sm:$0xff]  }
  0xcb   :  { %v16390_v28 = vpack.i.b16 %v20074_v34, %v5263_v17  ;;  %v5443_v54 = vcombine.low %v16387_v15, %v16388_v25  ;;  %v20556_v50 = vrot.slane %v3830_v30, %v19501_v22  ;;  %17919 = vmatpush3.bf16.msra.mxu0 %v18153_v10  ;;  %17950 = vmatprep.subr.bf16.mxu1 %v24663_v48  ;;  %v4074_v24 = vunpack.i.h.s16 %v20551_v18  ;;  %v18155_v34 = vld [vmem:[%s24636_s1 + $0xe8] sm:$0xff]   ;;  %v16359_v15 = vld.sshfl [vmem:[%s24635_s0 + $0x38] sm:$0x32 pattern:$0x75316420] }
  0xcc   :  { %v4292_v37 = vcombine.low %v4284_v21, %v4291_v3  ;;  %v20561_v33 = vcombine.high %v20551_v18, %v20551_v18  ;;  %v4083_v59 = vunpack.i.h.s16 %v20130_v45  ;;  %17984 = vmatprep.subr.bf16.mxu0 %v24663_v48  ;;  %v4085_v10 = vunpack.i.h.s16 %v20144_v19  ;;  %v16269_v17 = vld.sshfl [vmem:[%s24635_s0 + $0x50] sm:$0x33 pattern:$0x75316420] }
  0xcd   :  { %v5444_v7 = vcombine.low %v16389_v60, %v16390_v28  ;;  %v5459_v49 = vrot.slane %v5443_v54, %v19501_v22  ;;  %v20572_v56 = vcombine.high %v20556_v50, %v20556_v50  ;;  %v16292_v36 = vpack.i.b16 %v3822_v31, %v4071_v63 }
  0xce   :  { %17853 = vmatmul.mubr.msk.bf16.gmra.mrb[60].mxu0 %vm902_vm1, %v4292_v37  ;;  %v4163_v40 = vpack.i.b16 %v4074_v24, %v4073_v16  ;;  %v16293_v35 = vpack.i.b16 %v20130_v45, %v4081_v6  ;;  %v16294_v12 = vpack.i.b16 %v20144_v19, %v4083_v59  ;;  %v16295_v5 = vpack.i.b16 %v20204_v13, %v4085_v10  ;;  %v18157_v16 = vld [vmem:[%s24636_s1 + $0xf8] sm:$0xff]  }
  0xcf   :  { %v5466_v21 = vrot.slane %v5444_v7, %v19501_v22  ;;  %v5474_v31 = vcombine.low %v5452_v0, %v5459_v49  ;;  %17856 = vmatprep.mubr.msk.bf16.mxu0 %vm19400_vm0, %v24663_v48  ;;  %v4294_v45 = vcombine.low %v20556_v50, %v20561_v33  ;;  %v4894_v52 = vrot.slane %v16356_v27, %v19501_v22  ;;  %v16270_v7 = vld.sshfl [vmem:[%s24635_s0 + $0x58] sm:$0x33 pattern:$0x75316420] }
  0xd0   :  { %v4293_v19 = vcombine.low %v16292_v36, %v4163_v40  ;;  %v4295_v6 = vcombine.low %v20572_v56, %v16293_v35  ;;  %17951 = vmatpush3.bf16.msra.mxu1 %v18155_v34  ;;  %v4296_v30 = vcombine.low %v16294_v12, %v16295_v5  ;;  %v4902_v28 = vcombine.high %v16357_v26, %v16357_v26  ;;  %v20625_v12 = vld.sshfl [vmem:[%s24635_s0 + $0x60] sm:$0x33 pattern:$0x75316420] }
  0xd1   :  { %v5475_v25 = vcombine.low %v5466_v21, %v5473_v41  ;;  %v5482_v0 = vrot.slane %v5474_v31, %v19501_v22  ;;  %v4310_v3 = vrot.slane %v4294_v45, %v19501_v22  ;;  %17952 = vmatprep.subr.bf16.mxu1 %v24663_v48  ;;  %v4909_v54 = vrot.slane %v16357_v26, %v19501_v22 }
  0xd2   :  { %v4303_v60 = vrot.slane %v4293_v19, %v19501_v22  ;;  %v4317_v63 = vrot.slane %v4295_v6, %v19501_v22  ;;  %v4324_v37 = vrot.slane %v4296_v30, %v19501_v22  ;;  %v4940_v59 = vcombine.high %v16359_v15, %v16359_v15 }
  0xd3   :  { %v5489_v41 = vrot.slane %v5475_v25, %v19501_v22  ;;  %v4947_v34 = vrot.slane %v16359_v15, %v19501_v22  ;;  %v4916_v10 = vrot.slane %v4902_v28, %v19501_v22  ;;  %v4917_v27 = vcombine.high %v4909_v54, %v4909_v54 }
  0xd4   :  { %v4325_v49 = vcombine.low %v4303_v60, %v4310_v3  ;;  %v3878_v26 = vcombine.high %v16269_v17, %v16269_v17  ;;  %17953 = vmatpush3.bf16.msra.mxu1 %v18156_v43  ;;  %v4326_v40 = vcombine.low %v4317_v63, %v4324_v37  ;;  %v4954_v35 = vrot.slane %v4940_v59, %v19501_v22 }
  0xd5   :  { %v5490_v36 = vcombine.low %v5482_v0, %v5489_v41  ;;  %v3885_v15 = vrot.slane %v16269_v17, %v19501_v22  ;;  %17954 = vmatprep.subr.bf16.mxu1 %v24663_v48  ;;  %v4918_v31 = vcombine.high %v4916_v10, %v4916_v10  ;;  %v5273_v5 = vunpack.i.h.s16 %v4916_v10 }
  0xd6   :  { %v4333_v21 = vrot.slane %v4325_v49, %v19501_v22  ;;  %v5275_v45 = vunpack.i.h.s16 %v4917_v27  ;;  %v4340_v43 = vrot.slane %v4326_v40, %v19501_v22  ;;  %v16391_v19 = vpack.i.b16 %v4916_v10, %v4894_v52 }
  0xd7   :  { %17889 = vmatmul.mubr.msk.bf16.gmra.mrb[60].mxu1 %vm902_vm1, %v5490_v36  ;;  %v16412_v6 = vcombine.high %v4947_v34, %v4954_v35  ;;  %v3892_v25 = vrot.slane %v3878_v26, %v19501_v22  ;;  %v5277_v0 = vunpack.i.h.s16 %v4918_v31  ;;  %v16392_v17 = vpack.i.b16 %v4917_v27, %v5273_v5  ;;  %v16361_v36 = vld.sshfl [vmem:[%s24635_s0 + $0x50] sm:$0x32 pattern:$0x75316420] }
  0xd8   :  { %17892 = vmatprep.mubr.msk.bf16.mxu1 %vm19400_vm0, %v24663_v48  ;;  %v16393_v30 = vpack.i.b16 %v4918_v31, %v5275_v45  ;;  %v3902_v3 = vcombine.high %v16270_v7, %v16270_v7  ;;  %17955 = vmatpush3.bf16.msra.mxu1 %v18157_v16  ;;  %v4341_v60 = vcombine.low %v4333_v21, %v4340_v43  ;;  %v4088_v49 = vunpack.i.h.s16 %v3885_v15 }
  0xd9   :  { %v5491_v63 = vcombine.low %v20105_v47, %v16391_v19  ;;  %v5522_v28 = vrot.slane %v16412_v6, %v19501_v22  ;;  %v3909_v54 = vrot.slane %v16270_v7, %v19501_v22  ;;  %v16394_v52 = vpack.i.b16 %v20165_v1, %v5277_v0  ;;  %v16360_v7 = vld.sshfl [vmem:[%s24635_s0 + $0x3c] sm:$0x1 pattern:$0x75316420] }
  0xda   :  { %v5492_v41 = vcombine.low %v16392_v17, %v16393_v30  ;;  %v3916_v37 = vrot.slane %v3902_v3, %v19501_v22  ;;  %v20642_v59 = vrot.slane %v20625_v12, %v19501_v22  ;;  %17857 = vmatmul.mubr.msk.bf16.gmra.mrb[64].mxu0 %vm902_vm1, %v4341_v60  ;;  %v4087_v47 = vunpack.i.h.s16 %v20204_v13  ;;  %v16363_v6 = vld.sshfl [vmem:[%s24635_s0 + $0x58] sm:$0x32 pattern:$0x75316420] }
  0xdb   :  { %v5501_v16 = vrot.slane %v5491_v63, %v19501_v22  ;;  %v3917_v34 = vcombine.high %v3909_v54, %v3909_v54  ;;  %v5493_v1 = vcombine.low %v16394_v52, %v4954_v35  ;;  %17860 = vmatprep.mubr.msk.bf16.mxu0 %vm19400_vm0, %v24663_v48  ;;  %v4095_v26 = vunpack.i.h.s16 %v3909_v54  ;;  %v16362_v35 = vld.sshfl [vmem:[%s24635_s0 + $0x54] sm:$0x1 pattern:$0x75316420] }
  0xdc   :  { %v5508_v10 = vrot.slane %v5492_v41, %v19501_v22  ;;  %v3918_v27 = vcombine.high %v3916_v37, %v3916_v37  ;;  %v4097_v40 = vunpack.i.h.s16 %v3916_v37  ;;  %v4102_v13 = vunpack.i.h.s16 %v20642_v59 }
  0xdd   :  { %v4099_v21 = vunpack.i.h.s16 %v3917_v34  ;;  %v4170_v31 = vpack.i.b16 %v4088_v49, %v4087_v47  ;;  %v5515_v5 = vrot.slane %v5493_v1, %v19501_v22  ;;  %v16296_v19 = vpack.i.b16 %v3916_v37, %v4095_v26 }
  0xde   :  { %v5523_v45 = vcombine.low %v5501_v16, %v5508_v10  ;;  %v4101_v43 = vunpack.i.h.s16 %v3918_v27  ;;  %v16297_v0 = vpack.i.b16 %v3917_v34, %v4097_v40  ;;  %v16306_v3 = vcombine.high %v3885_v15, %v3892_v25 }
  0xdf   :  { %v16298_v17 = vpack.i.b16 %v3918_v27, %v4099_v21  ;;  %v4342_v30 = vcombine.low %v4170_v31, %v3892_v25  ;;  %v5524_v60 = vcombine.low %v5515_v5, %v5522_v28  ;;  %v4970_v52 = vrot.slane %v16360_v7, %v19501_v22 }
  0xe0   :  { %v5531_v63 = vrot.slane %v5523_v45, %v19501_v22  ;;  %v4177_v54 = vpack.i.b16 %v4102_v13, %v4101_v43  ;;  %v4344_v41 = vcombine.low %v16296_v19, %v16297_v0  ;;  %v4359_v16 = vrot.slane %v16306_v3, %v19501_v22  ;;  %v16273_v0 = vld.sshfl [vmem:[%s24635_s0 + $0x70] sm:$0x33 pattern:$0x75316420] }
  0xe1   :  { %v4352_v47 = vrot.slane %v4342_v30, %v19501_v22  ;;  %v4978_v37 = vcombine.high %v16361_v36, %v16361_v36  ;;  %v5538_v49 = vrot.slane %v5524_v60, %v19501_v22  ;;  %v4985_v34 = vrot.slane %v16361_v36, %v19501_v22 }
  0xe2   :  { %v4345_v1 = vcombine.low %v16298_v17, %v4177_v54  ;;  %v5008_v10 = vrot.slane %v16362_v35, %v19501_v22  ;;  %v4366_v15 = vrot.slane %v4344_v41, %v19501_v22  ;;  %v5016_v27 = vcombine.high %v16363_v6, %v16363_v6 }
  0xe3   :  { %v4374_v25 = vcombine.low %v4352_v47, %v4359_v16  ;;  %v4992_v28 = vrot.slane %v4978_v37, %v19501_v22  ;;  %v5539_v7 = vcombine.low %v5531_v63, %v5538_v49  ;;  %v4993_v40 = vcombine.high %v4985_v34, %v4985_v34 }
  0xe4   :  { %v4373_v26 = vrot.slane %v4345_v1, %v19501_v22  ;;  %v5023_v21 = vrot.slane %v16363_v6, %v19501_v22  ;;  %v5030_v5 = vrot.slane %v5016_v27, %v19501_v22  ;;  %v16399_v3 = vpack.i.b16 %v20252_v57, %v20244_v53 }
  0xe5   :  { %v4382_v13 = vrot.slane %v4374_v25, %v19501_v22  ;;  %v4994_v31 = vcombine.high %v4992_v28, %v4992_v28  ;;  %v5287_v36 = vunpack.i.h.s16 %v4992_v28  ;;  %17893 = vmatmul.mubr.msk.bf16.gmra.mrb[64].mxu1 %vm902_vm1, %v5539_v7  ;;  %v5289_v43 = vunpack.i.h.s16 %v4993_v40 }
  0xe6   :  { %v4375_v35 = vcombine.low %v4366_v15, %v4373_v26  ;;  %v5031_v45 = vcombine.high %v5023_v21, %v5023_v21  ;;  %v16395_v19 = vpack.i.b16 %v4992_v28, %v4970_v52  ;;  %17896 = vmatprep.mubr.msk.bf16.mxu1 %vm19400_vm0, %v24663_v48  ;;  %v5032_v6 = vcombine.high %v5030_v5, %v5030_v5 }
  0xe7   :  { %v5291_v17 = vunpack.i.h.s16 %v4994_v31  ;;  %v16396_v30 = vpack.i.b16 %v4993_v40, %v5287_v36  ;;  %v16397_v63 = vpack.i.b16 %v4994_v31, %v5289_v43  ;;  %v3926_v52 = vcombine.high %v20625_v12, %v20625_v12  ;;  %v16366_v43 = vld.sshfl [vmem:[%s24635_s0 + $0x64] sm:$0x1 pattern:$0x75316420] }
  0xe8   :  { %v4389_v60 = vrot.slane %v4375_v35, %v19501_v22  ;;  %v5542_v54 = vcombine.low %v5030_v5, %v5031_v45  ;;  %v5543_v16 = vcombine.low %v5032_v6, %v16399_v3  ;;  %v3941_v37 = vcombine.high %v20642_v59, %v20642_v59 }
  0xe9   :  { %v16398_v41 = vpack.i.b16 %v5008_v10, %v5291_v17  ;;  %v5540_v47 = vcombine.low %v16395_v19, %v16396_v30  ;;  %v3940_v34 = vrot.slane %v3926_v52, %v19501_v22  ;;  %v3974_v15 = vcombine.high %v16273_v0, %v16273_v0 }
  0xea   :  { %v4390_v49 = vcombine.low %v4382_v13, %v4389_v60  ;;  %v5564_v1 = vrot.slane %v5542_v54, %v19501_v22  ;;  %v5571_v28 = vrot.slane %v5543_v16, %v19501_v22  ;;  %v20695_v27 = vrot.slane %v16273_v0, %v19501_v22 }
  0xeb   :  { %v5541_v53 = vcombine.low %v16397_v63, %v16398_v41  ;;  %v5550_v25 = vrot.slane %v5540_v47, %v19501_v22  ;;  %v3942_v12 = vcombine.high %v3940_v34, %v3940_v34  ;;  %v20699_v10 = vrot.slane %v3974_v15, %v19501_v22 }
  0xec   :  { %17861 = vmatmul.mubr.msk.bf16.gmra.mrb[68].mxu0 %vm902_vm1, %v4390_v49  ;;  %v4109_v59 = vunpack.i.h.s16 %v20271_v29  ;;  %v4111_v7 = vunpack.i.h.s16 %v20280_v58  ;;  %v5573_v21 = vcombine.low %v5564_v1, %v5571_v28  ;;  %v4113_v13 = vunpack.i.h.s16 %v20285_v32 }
  0xed   :  { %v20703_v26 = vpop.f32.mrb[0].mxu0  ;;  %v5557_v40 = vrot.slane %v5541_v53, %v19501_v22  ;;  %17864 = vmatprep.mubr.msk.bf16.mxu0 %vm19400_vm0, %v24663_v48  ;;  %v4115_v31 = vunpack.i.h.s16 %v20293_v62  ;;  %v4116_v36 = vunpack.i.h.s16 %v20695_v27  ;;  %v4391_v45 = vcombine.low %v3940_v34, %v3941_v37 }
  0xee   :  { %v17706_v5 = vpop.f32.mrb[1].mxu0  ;;  %v16299_v35 = vpack.i.b16 %v20280_v58, %v4109_v59  ;;  %v16300_v29 = vpack.i.b16 %v20285_v32, %v4111_v7  ;;  %v5587_v17 = vrot.slane %v5573_v21, %v19501_v22  ;;  %v16301_v30 = vpack.i.b16 %v20293_v62, %v4113_v13  ;;  %v16367_v58 = vld.sshfl [vmem:[%s24635_s0 + $0x68] sm:$0x32 pattern:$0x75316420] }
  0xef   :  { %v20716_v19 = vpop.f32.mrb[0].mxu1  ;;  %v20718_v0 = vpop.f32.mrb[2].mxu0  ;;  %v5572_v6 = vcombine.low %v5550_v25, %v5557_v40  ;;  %v19373_v32 = vld.sshfl [vmem:[%s24635_s0 + $0x60] sm:$0x32 pattern:$0x75316420]  ;;  %v4184_v54 = vpack.i.b16 %v4116_v36, %v4115_v31  ;;  %v4401_v41 = vrot.slane %v4391_v45, %v19501_v22  ;;  %v5070_v47 = vcombine.high %v20252_v57, %v20252_v57 }
  0xf0   :  { %v5061_v3 = vrot.slane %v19373_v32, %v19501_v22  ;;  %v17742_v60 = vpop.f32.mrb[1].mxu1  ;;  %v17707_v63 = vpop.f32.mrb[3].mxu0  ;;  %v4392_v52 = vcombine.low %v3942_v12, %v16299_v35  ;;  %v4393_v37 = vcombine.low %v16300_v29, %v16301_v30  ;;  %v5084_v1 = vrot.slane %v16366_v43, %v19501_v22 }
  0xf1   :  { %v20732_v62 = vpop.f32.mrb[2].mxu1  ;;  %v5580_v16 = vrot.slane %v5572_v6, %v19501_v22  ;;  %v4394_v15 = vcombine.low %v4184_v54, %v20699_v10  ;;  %v5092_v25 = vcombine.high %v16367_v58, %v16367_v58  ;;  %v5099_v28 = vrot.slane %v16367_v58, %v19501_v22  ;;  %v20756_v60 = vld.sshfl [vmem:[%s24635_s0 + $0x74] sm:$0x1 pattern:$0x75316420] }
  0xf2   :  { %v5069_v49 = vcombine.high %v5061_v3, %v5061_v3  ;;  %v17743_v34 = vpop.f32.mrb[3].mxu1  ;;  %v4408_v53 = vrot.slane %v4392_v52, %v19501_v22  ;;  %v4415_v59 = vrot.slane %v4393_v37, %v19501_v22  ;;  %v5301_v7 = vunpack.i.h.s16 %v20252_v57 }
  0xf3   :  { %v5588_v12 = vcombine.low %v5580_v16, %v5587_v17  ;;  %v4422_v21 = vrot.slane %v4394_v15, %v19501_v22  ;;  %v5106_v31 = vrot.slane %v5092_v25, %v19501_v22  ;;  %v5305_v5 = vunpack.i.h.s16 %v5070_v47 }
  0xf4   :  { %v5303_v40 = vunpack.i.h.s16 %v5069_v49  ;;  %v4423_v13 = vcombine.low %v4401_v41, %v4408_v53  ;;  %v5315_v36 = vunpack.i.h.s16 %v20317_v55  ;;  %v16400_v35 = vpack.i.b16 %v5069_v49, %v5301_v7 }
  0xf5   :  { %17897 = vmatmul.mubr.msk.bf16.gmra.mrb[68].mxu1 %vm902_vm1, %v5588_v12  ;;  %v16403_v45 = vpack.i.b16 %v20317_v55, %v20306_v39  ;;  %v4424_v43 = vcombine.low %v4415_v59, %v4422_v21  ;;  %v16402_v57 = vpack.i.b16 %v5084_v1, %v5305_v5  ;;  %v16413_v17 = vcombine.high %v5099_v28, %v5106_v31  ;;  %v16373_v21 = vld.sshfl [vmem:[%s24635_s0 + $0x80] sm:$0x32 pattern:$0x75316420] }
  0xf6   :  { %v16401_v29 = vpack.i.b16 %v5070_v47, %v5303_v40  ;;  %v4431_v6 = vrot.slane %v4423_v13, %v19501_v22  ;;  %17900 = vmatprep.mubr.msk.bf16.mxu1 %vm19400_vm0, %v24663_v48  ;;  %v16404_v30 = vpack.i.b16 %v20321_v14, %v5315_v36  ;;  %v4123_v32 = vunpack.i.h.s16 %v20348_v38  ;;  %v16371_v40 = vld.sshfl [vmem:[%s24635_s0 + $0x78] sm:$0x32 pattern:$0x75316420] }
  0xf7   :  { %v4125_v3 = vunpack.i.h.s16 %v20352_v4  ;;  %v4438_v55 = vrot.slane %v4424_v43, %v19501_v22  ;;  %v5590_v63 = vcombine.low %v16402_v57, %v5106_v31  ;;  %v5613_v54 = vrot.slane %v16413_v17, %v19501_v22 }
  0xf8   :  { %v5589_v58 = vcombine.low %v16400_v35, %v16401_v29  ;;  %v20758_v39 = vpop.f32.mrb[4].mxu0  ;;  %v4127_v52 = vunpack.i.h.s16 %v20363_v46  ;;  %v5592_v47 = vcombine.low %v16403_v45, %v16404_v30  ;;  %v4129_v16 = vunpack.i.h.s16 %v20369_v44 }
  0xf9   :  { %v17710_v41 = vpop.f32.mrb[5].mxu0  ;;  %v16302_v37 = vpack.i.b16 %v20352_v4, %v4123_v32  ;;  %v4439_v1 = vcombine.low %v4431_v6, %v4438_v55  ;;  %v5606_v34 = vrot.slane %v5590_v63, %v19501_v22  ;;  %v16303_v15 = vpack.i.b16 %v20363_v46, %v4125_v3 }
  0xfa   :  { %v5599_v38 = vrot.slane %v5589_v58, %v19501_v22  ;;  %v20766_v49 = vpop.f32.mrb[6].mxu0  ;;  %v16304_v53 = vpack.i.b16 %v20369_v44, %v4127_v52  ;;  %v5620_v28 = vrot.slane %v5592_v47, %v19501_v22  ;;  %v24671_v12 = vunpack.i.h.s16 %v20355_v11 }
  0xfb   :  { %v17711_v25 = vpop.f32.mrb[7].mxu0  ;;  %v16307_v7 = vcombine.high %v20695_v27, %v20699_v10  ;;  %v4443_v4 = vcombine.low %v20372_v2, %v20376_v23  ;;  %17865 = vmatmul.mubr.msk.bf16.gmra.mrb[72].mxu0 %vm902_vm1, %v4439_v1  ;;  %v4441_v44 = vcombine.low %v16302_v37, %v16303_v15  ;;  %v5160_v11 = vrot.slane %v20756_v60, %v19501_v22 }
  0xfc   :  { %v4191_v59 = vpack.i.b16 %v24671_v12, %v4129_v16  ;;  %v5621_v46 = vcombine.low %v5599_v38, %v5606_v34  ;;  %v5622_v31 = vcombine.low %v5613_v54, %v5620_v28  ;;  %17868 = vmatprep.mubr.msk.bf16.mxu0 %vm19400_vm0, %v24663_v48  ;;  %v5168_v45 = vcombine.high %v16371_v40, %v16371_v40  ;;  %v16374_v54 = vld.sshfl [vmem:[%s24635_s0 + $0x84] sm:$0x1 pattern:$0x75316420] }
  0xfd   :  { %v20787_v13 = vpop.f32.mrb[4].mxu1  ;;  %v4450_v23 = vrot.slane %v16307_v7, %v19501_v22  ;;  %v4471_v5 = vrot.slane %v4443_v4, %v19501_v22  ;;  %v4457_v29 = vrot.slane %v4441_v44, %v19501_v22  ;;  %v5175_v43 = vrot.slane %v16371_v40, %v19501_v22  ;;  %v16439_v7 = vld.sshfl [vmem:[%s24635_s0 + $0x10] sm:$0x33 pattern:$0x75316420] }
  0xfe   :  { %v4442_v2 = vcombine.low %v16304_v53, %v4191_v59  ;;  %v17746_v36 = vpop.f32.mrb[5].mxu1  ;;  %v5629_v35 = vrot.slane %v5621_v46, %v19501_v22  ;;  %v5636_v57 = vrot.slane %v5622_v31, %v19501_v22  ;;  %v5206_v30 = vcombine.high %v16373_v21, %v16373_v21  ;;  %v16440_v44 = vld.sshfl [vmem:[%s24635_s0 + $0x18] sm:$0x33 pattern:$0x75316420] }
  0xff   :  { %v20796_v6 = vpop.f32.mrb[6].mxu1  ;;  %v5213_v58 = vrot.slane %v16373_v21, %v19501_v22  ;;  %v4472_v3 = vcombine.low %v4450_v23, %v4457_v29  ;;  %v5182_v60 = vrot.slane %v5168_v45, %v19501_v22  ;;  %v5183_v55 = vcombine.high %v5175_v43, %v5175_v43 }
 0x100   :  { %v4464_v17 = vrot.slane %v4442_v2, %v19501_v22  ;;  %v17747_v32 = vpop.f32.mrb[7].mxu1  ;;  %v5317_v63 = vunpack.i.h.s16 %v20321_v14  ;;  %v5637_v52 = vcombine.low %v5629_v35, %v5636_v57  ;;  %v5220_v47 = vrot.slane %v5206_v30, %v19501_v22 }
 0x101   :  { %v5221_v38 = vcombine.high %v5213_v58, %v5213_v58  ;;  %v4480_v16 = vrot.slane %v4472_v3, %v19501_v22  ;;  %v5184_v37 = vcombine.high %v5182_v60, %v5182_v60  ;;  %v5319_v1 = vunpack.i.h.s16 %v20326_v20 }
 0x102   :  { %v4473_v41 = vcombine.low %v4464_v17, %v4471_v5  ;;  %v16405_v34 = vpack.i.b16 %v20326_v20, %v5317_v63  ;;  %17901 = vmatmul.mubr.msk.bf16.gmra.mrb[72].mxu1 %vm902_vm1, %v5637_v52  ;;  %v5222_v15 = vcombine.high %v5220_v47, %v5220_v47  ;;  %v5329_v53 = vunpack.i.h.s16 %v5220_v47 }
 0x103   :  { %v5331_v25 = vunpack.i.h.s16 %v5221_v38  ;;  %17904 = vmatprep.mubr.msk.bf16.mxu1 %vm19400_vm0, %v24663_v48  ;;  %v16406_v28 = vpack.i.b16 %v5160_v11, %v5319_v1  ;;  %v16407_v12 = vpack.i.b16 %v5220_v47, %v20395_v61  ;;  %v5639_v59 = vcombine.low %v5182_v60, %v5183_v55 }
 0x104   :  { %v4487_v14 = vrot.slane %v4473_v41, %v19501_v22  ;;  %v16408_v20 = vpack.i.b16 %v5221_v38, %v5329_v53  ;;  %v5236_v46 = vrot.slane %v16374_v54, %v19501_v22  ;;  %v4495_v61 = vrot.slane %v20405_v9, %v19501_v22 }
 0x105   :  { %v16409_v40 = vpack.i.b16 %v5222_v15, %v5331_v25  ;;  %v5638_v21 = vcombine.low %v16405_v34, %v16406_v28  ;;  %v5640_v31 = vcombine.low %v5184_v37, %v16407_v12  ;;  %v5655_v11 = vrot.slane %v5639_v59, %v19501_v22 }
 0x106   :  { %v4488_v4 = vcombine.low %v4480_v16, %v4487_v14  ;;  %v5333_v5 = vunpack.i.h.s16 %v5222_v15  ;;  %v5883_v36 = vcombine.high %v16439_v7, %v16439_v7  ;;  %v5890_v35 = vrot.slane %v16439_v7, %v19501_v22 }
 0x107   :  { %v20825_v2 = vpop.f32.mrb[8].mxu0  ;;  %v5641_v23 = vcombine.low %v16408_v20, %v16409_v40  ;;  %v5648_v45 = vrot.slane %v5638_v21, %v19501_v22  ;;  %v5662_v43 = vrot.slane %v5640_v31, %v19501_v22  ;;  %v4502_v57 = vrot.slane %v4495_v61, %v19501_v22 }
 0x108   :  { %17869 = vmatmul.mubr.msk.bf16.gmra.mrb[76].mxu0 %vm902_vm1, %v4488_v4  ;;  %v17714_v29 = vpop.f32.mrb[9].mxu0  ;;  %v5907_v9 = vcombine.high %v16440_v44, %v16440_v44  ;;  %v16410_v32 = vpack.i.b16 %v5236_v46, %v5333_v5  ;;  %v5897_v3 = vrot.slane %v5883_v36, %v19501_v22  ;;  %v5898_v60 = vcombine.high %v5890_v35, %v5890_v35 }
 0x109   :  { %17872 = vmatprep.mubr.msk.bf16.mxu0 %vm19400_vm0, %v24663_v48  ;;  %v20834_v17 = vpop.f32.mrb[8].mxu1  ;;  %v20836_v30 = vpop.f32.mrb[10].mxu0  ;;  %v5669_v58 = vrot.slane %v5641_v23, %v19501_v22  ;;  %v5670_v54 = vcombine.low %v5648_v45, %v5655_v11  ;;  %v5914_v52 = vrot.slane %v16440_v44, %v19501_v22  ;;  %v7186_v47 = vunpack.i.h.s16 %v5890_v35 }
 0x10a   :  { %v17750_v55 = vpop.f32.mrb[9].mxu1  ;;  %v17715_v63 = vpop.f32.mrb[11].mxu0  ;;  %v5921_v41 = vrot.slane %v5907_v9, %v19501_v22  ;;  %v5693_v37 = vrot.slane %v16410_v32, %v19501_v22  ;;  %v5899_v1 = vcombine.high %v5897_v3, %v5897_v3  ;;  %v6368_v34 = vcombine.low %v5890_v35, %v5897_v3  ;;  %v16442_v9 = vld.sshfl [vmem:[%s24635_s0 + $0x28] sm:$0x33 pattern:$0x75316420] }
 0x10b   :  { %v20842_v38 = vpop.f32.mrb[10].mxu1  ;;  %v5671_v16 = vcombine.low %v5662_v43, %v5669_v58  ;;  %v5678_v15 = vrot.slane %v5670_v54, %v19501_v22  ;;  %v5922_v53 = vcombine.high %v5914_v52, %v5914_v52  ;;  %v6220_v28 = vunpack.i.h.s16 %v5914_v52 }
 0x10c   :  { %v17751_v14 = vpop.f32.mrb[11].mxu1  ;;  %v5923_v25 = vcombine.high %v5921_v41, %v5921_v41  ;;  %v5700_v59 = vrot.slane %v5693_v37, %v19501_v22  ;;  %v6222_v7 = vunpack.i.h.s16 %v5921_v41  ;;  %v16461_v4 = vpack.i.b16 %v5914_v52, %v5899_v1 }
 0x10d   :  { %v5685_v12 = vrot.slane %v5671_v16, %v19501_v22  ;;  %v6224_v20 = vunpack.i.h.s16 %v5922_v53  ;;  %v16462_v40 = vpack.i.b16 %v5921_v41, %v6220_v28  ;;  %v6378_v46 = vrot.slane %v6368_v34, %v19501_v22 }
 0x10e   :  { %v7188_v44 = vunpack.i.h.s16 %v5897_v3  ;;  %v16463_v31 = vpack.i.b16 %v5922_v53, %v6222_v7  ;;  %v6369_v11 = vcombine.low %v5898_v60, %v16461_v4  ;;  %v7190_v61 = vunpack.i.h.s16 %v5898_v60 }
 0x10f   :  { %v5686_v21 = vcombine.low %v5678_v15, %v5685_v12  ;;  %v16464_v23 = vpack.i.b16 %v5923_v25, %v6224_v20  ;;  %v7192_v5 = vunpack.i.h.s16 %v5899_v1  ;;  %v16536_v36 = vpack.i.b16 %v5897_v3, %v7186_v47 }
 0x110   :  { %17873 = vmatmul.mubr.msk.bf16.gmra.mrb[80].mxu0 %vm902_vm1, %v4502_v57  ;;  %v16537_v35 = vpack.i.b16 %v5898_v60, %v7188_v44  ;;  %v6370_v29 = vcombine.low %v16462_v40, %v16463_v31  ;;  %v6385_v45 = vrot.slane %v6369_v11, %v19501_v22  ;;  %v16538_v43 = vpack.i.b16 %v5899_v1, %v7190_v61 }
 0x111   :  { %17920 = vmatprep.mubr.msk.bf16.mxu0 %vm19400_vm0, %v24663_v48  ;;  %17905 = vmatmul.mubr.msk.bf16.gmra.mrb[76].mxu1 %vm902_vm1, %v5686_v21  ;;  %v16539_v57 = vpack.i.b16 %v20478_v8, %v4060_v42  ;;  %v6371_v58 = vcombine.low %v16464_v23, %v20469_v51  ;;  %v7296_v32 = vpack.i.b16 %v6220_v28, %v7192_v5  ;;  %v19374_v42 = vld.sshfl [vmem:[%s24635_s0 + $0x20] sm:$0x33 pattern:$0x75316420] }
 0x112   :  { %17908 = vmatprep.mubr.msk.bf16.mxu1 %vm19400_vm0, %v24663_v48  ;;  %v7342_v3 = vcombine.low %v16536_v36, %v16537_v35  ;;  %v7344_v60 = vcombine.low %v5921_v41, %v5922_v53  ;;  %v6392_v55 = vrot.slane %v6370_v29, %v19501_v22  ;;  %v6400_v63 = vcombine.low %v6378_v46, %v6385_v45  ;;  %v18158_v46 = vld [vmem:[%s24636_s1 + $0x100] sm:$0xff]  }
 0x113   :  { %v7345_v54 = vcombine.low %v5923_v25, %v16539_v57  ;;  %v5931_v52 = vcombine.high %v19374_v42, %v19374_v42  ;;  %v6399_v47 = vrot.slane %v6371_v58, %v19501_v22  ;;  %v7343_v16 = vcombine.low %v16538_v43, %v7296_v32 }
 0x114   :  { %v7352_v37 = vrot.slane %v7342_v3, %v19501_v22  ;;  %v7366_v1 = vrot.slane %v7344_v60, %v19501_v22  ;;  %v6408_v41 = vrot.slane %v6400_v63, %v19501_v22  ;;  %v5946_v53 = vcombine.high %v20469_v51, %v20469_v51 }
 0x115   :  { %v20870_v34 = vpop.f32.mrb[12].mxu0  ;;  %v7373_v14 = vrot.slane %v7345_v54, %v19501_v22  ;;  %v5945_v15 = vrot.slane %v5931_v52, %v19501_v22  ;;  %v6401_v28 = vcombine.low %v6392_v55, %v6399_v47  ;;  %v7359_v12 = vrot.slane %v7343_v16, %v19501_v22 }
 0x116   :  { %v17718_v25 = vpop.f32.mrb[13].mxu0  ;;  %v5955_v7 = vcombine.high %v16442_v9, %v16442_v9  ;;  %v5962_v4 = vrot.slane %v16442_v9, %v19501_v22  ;;  %v6420_v51 = vcombine.low %v20551_v18, %v20556_v50  ;;  %v6921_v47 = vcombine.high %v20478_v8, %v20478_v8  ;;  %v18160_v18 = vld [vmem:[%s24636_s1 + $0x110] sm:$0xff]  }
 0x117   :  { %v20879_v20 = vpop.f32.mrb[12].mxu1  ;;  %v20881_v40 = vpop.f32.mrb[14].mxu0  ;;  %v7375_v44 = vcombine.low %v7366_v1, %v7373_v14  ;;  %v5947_v21 = vcombine.high %v5945_v15, %v5945_v15  ;;  %v6417_v31 = vcombine.low %v5945_v15, %v5946_v53  ;;  %v6415_v23 = vrot.slane %v6401_v28, %v19501_v22  ;;  %v16444_v25 = vld.sshfl [vmem:[%s24635_s0 + $0x38] sm:$0x33 pattern:$0x75316420] }
 0x118   :  { %v17754_v11 = vpop.f32.mrb[13].mxu1  ;;  %v17719_v61 = vpop.f32.mrb[15].mxu0  ;;  %v7374_v5 = vcombine.low %v7352_v37, %v7359_v12  ;;  %v20890_v36 = vrot.slane %v5955_v7, %v19501_v22  ;;  %v5970_v35 = vcombine.high %v5962_v4, %v5962_v4  ;;  %v6234_v43 = vunpack.i.h.s16 %v5962_v4  ;;  %v18159_v37 = vld [vmem:[%s24636_s1 + $0x108] sm:$0xff]  }
 0x119   :  { %v20892_v29 = vpop.f32.mrb[14].mxu1  ;;  %17909 = vmatmul.mubr.msk.bf16.gmra.mrb[80].mxu1 %vm902_vm1, %v5700_v59  ;;  %v7389_v45 = vrot.slane %v7375_v44, %v19501_v22  ;;  %v16465_v57 = vpack.i.b16 %v5962_v4, %v5947_v21  ;;  %v6427_v9 = vrot.slane %v6417_v31, %v19501_v22  ;;  %v6416_v32 = vcombine.low %v6408_v41, %v6415_v23 }
 0x11a   :  { %v17755_v58 = vpop.f32.mrb[15].mxu1  ;;  %17956 = vmatprep.mubr.msk.bf16.mxu1 %vm19400_vm0, %v24663_v48  ;;  %v7382_v3 = vrot.slane %v7374_v5, %v19501_v22  ;;  %v5971_v60 = vcombine.high %v20890_v36, %v20890_v36  ;;  %v6236_v55 = vunpack.i.h.s16 %v20890_v36  ;;  %v6238_v63 = vunpack.i.h.s16 %v5970_v35 }
 0x11b   :  { %v16466_v59 = vpack.i.b16 %v20890_v36, %v6234_v43  ;;  %v6448_v54 = vrot.slane %v6420_v51, %v19501_v22  ;;  %17921 = vmatmul.mubr.msk.bf16.vlgmr.msra.gmra.mrb[84].mxu0 %vm902_vm1, %v6416_v32  ;;  %v7202_v16 = vunpack.i.h.s16 %v20478_v8  ;;  %v7204_v14 = vunpack.i.h.s16 %v5946_v53  ;;  %v16445_v51 = vld.sshfl [vmem:[%s24635_s0 + $0x40] sm:$0x33 pattern:$0x75316420] }
 0x11c   :  { %v7390_v42 = vcombine.low %v7382_v3, %v7389_v45  ;;  %v16467_v52 = vpack.i.b16 %v5970_v35, %v6236_v55  ;;  %17985 = vmatpush3.bf16.msra.mxu0 %v18158_v46  ;;  %17924 = vmatprep.mubr.msk.bf16.mxu0 %vm19400_vm0, %v24663_v48  ;;  %v16468_v1 = vpack.i.b16 %v5971_v60, %v6238_v63  ;;  %v7216_v15 = vunpack.i.h.s16 %v20556_v50 }
 0x11d   :  { %v6418_v41 = vcombine.low %v16465_v57, %v16466_v59  ;;  %v7206_v28 = vunpack.i.h.s16 %v6921_v47  ;;  %v16540_v12 = vpack.i.b16 %v5946_v53, %v7202_v16  ;;  %v16542_v8 = vpack.i.b16 %v20556_v50, %v4074_v24  ;;  %17986 = vmatprep.subr.bf16.mxu0 %v24663_v48 }
 0x11e   :  { %v16557_v7 = vcombine.high %v5962_v4, %v20890_v36  ;;  %v6419_v46 = vcombine.low %v16467_v52, %v16468_v1  ;;  %v16541_v21 = vpack.i.b16 %v6921_v47, %v7204_v14  ;;  %v16543_v31 = vpack.i.b16 %v20561_v33, %v7216_v15 }
 0x11f   :  { %v6434_v44 = vrot.slane %v6418_v41, %v19501_v22  ;;  %v7303_v11 = vpack.i.b16 %v6234_v43, %v7206_v28  ;;  %v6003_v5 = vcombine.high %v16444_v25, %v16444_v25  ;;  %v6010_v35 = vrot.slane %v16444_v25, %v19501_v22 }
 0x120   :  { %v7415_v53 = vrot.slane %v16557_v7, %v19501_v22  ;;  %v6441_v50 = vrot.slane %v6419_v46, %v19501_v22  ;;  %v7391_v4 = vcombine.low %v16540_v12, %v16541_v21  ;;  %v7394_v61 = vcombine.low %v16542_v8, %v16543_v31  ;;  %17987 = vmatpush3.bf16.msra.mxu0 %v18159_v37 }
 0x121   :  { %17957 = vmatmul.mubr.msk.bf16.vlgmr.msra.gmra.mrb[84].mxu1 %vm902_vm1, %v7390_v42  ;;  %v6449_v24 = vcombine.low %v6427_v9, %v6434_v44  ;;  %v7392_v23 = vcombine.low %v7303_v11, %v20890_v36  ;;  %v7218_v45 = vunpack.i.h.s16 %v20561_v33  ;;  %17988 = vmatprep.subr.bf16.mxu0 %v24663_v48  ;;  %v20949_v55 = vrot.slane %v6003_v5, %v19501_v22 }
 0x122   :  { %17960 = vmatprep.mubr.msk.bf16.mxu1 %vm19400_vm0, %v24663_v48  ;;  %v6450_v57 = vcombine.low %v6441_v50, %v6448_v54  ;;  %v7401_v9 = vrot.slane %v7391_v4, %v19501_v22  ;;  %v7422_v32 = vrot.slane %v7394_v61, %v19501_v22  ;;  %v20951_v63 = vcombine.high %v6010_v35, %v6010_v35  ;;  %v18161_v54 = vld [vmem:[%s24636_s1 + $0x118] sm:$0xff]  }
 0x123   :  { %v20939_v43 = vpop.f32.mrb[16].mxu0  ;;  %v6457_v58 = vrot.slane %v6449_v24, %v19501_v22  ;;  %v7408_v60 = vrot.slane %v7392_v23, %v19501_v22  ;;  %v6027_v59 = vcombine.high %v16445_v51, %v16445_v51  ;;  %v6034_v37 = vrot.slane %v16445_v51, %v19501_v22 }
 0x124   :  { %v17722_v36 = vpop.f32.mrb[17].mxu0  ;;  %v6464_v47 = vrot.slane %v6450_v57, %v19501_v22  ;;  %v7424_v16 = vcombine.low %v7415_v53, %v7422_v32  ;;  %v6248_v1 = vunpack.i.h.s16 %v6010_v35  ;;  %v6019_v25 = vcombine.high %v20949_v55, %v20949_v55  ;;  %17989 = vmatpush3.bf16.msra.mxu0 %v18160_v18 }
 0x125   :  { %v20945_v3 = vpop.f32.mrb[16].mxu1  ;;  %v20956_v52 = vpop.f32.mrb[18].mxu0  ;;  %v7423_v15 = vcombine.low %v7401_v9, %v7408_v60  ;;  %v6041_v28 = vrot.slane %v6027_v59, %v19501_v22  ;;  %v6250_v12 = vunpack.i.h.s16 %v20949_v55  ;;  %v6042_v44 = vcombine.high %v6034_v37, %v6034_v37  ;;  %17990 = vmatprep.subr.bf16.mxu0 %v24663_v48 }
 0x126   :  { %v17758_v42 = vpop.f32.mrb[17].mxu1  ;;  %v17723_v14 = vpop.f32.mrb[19].mxu0  ;;  %v6465_v7 = vcombine.low %v6457_v58, %v6464_v47  ;;  %v7438_v46 = vrot.slane %v7424_v16, %v19501_v22  ;;  %v6252_v21 = vunpack.i.h.s16 %v20951_v63  ;;  %v16469_v51 = vpack.i.b16 %v6010_v35, %v20572_v56  ;;  %v16446_v35 = vld.sshfl [vmem:[%s24635_s0 + $0x58] sm:$0x33 pattern:$0x75316420] }
 0x127   :  { %v20960_v41 = vpop.f32.mrb[18].mxu1  ;;  %v7431_v31 = vrot.slane %v7423_v15, %v19501_v22  ;;  %v16470_v11 = vpack.i.b16 %v20949_v55, %v6248_v1  ;;  %v16471_v53 = vpack.i.b16 %v20951_v63, %v6250_v12  ;;  %v6469_v50 = vcombine.low %v6041_v28, %v6042_v44 }
 0x128   :  { %v17759_v8 = vpop.f32.mrb[19].mxu1  ;;  %17925 = vmatmul.mubr.msk.bf16.gmra.mrb[88].mxu0 %vm902_vm1, %v6465_v7  ;;  %v16472_v18 = vpack.i.b16 %v6019_v25, %v6252_v21  ;;  %v20974_v24 = vcombine.high %v6041_v28, %v6041_v28  ;;  %v6466_v61 = vcombine.low %v20561_v33, %v16469_v51  ;;  %v7228_v5 = vunpack.i.h.s16 %v6034_v37 }
 0x129   :  { %v7439_v4 = vcombine.low %v7431_v31, %v7438_v46  ;;  %17928 = vmatprep.mubr.msk.bf16.mxu0 %vm19400_vm0, %v24663_v48  ;;  %v6467_v23 = vcombine.low %v16470_v11, %v16471_v53  ;;  %17991 = vmatpush3.bf16.msra.mxu0 %v18161_v54  ;;  %v6497_v58 = vrot.slane %v6469_v50, %v19501_v22  ;;  %v7220_v9 = vunpack.i.h.s16 %v20572_v56 }
 0x12a   :  { %v6468_v57 = vcombine.low %v16472_v18, %v6034_v37  ;;  %v7230_v32 = vunpack.i.h.s16 %v6041_v28  ;;  %v6476_v36 = vrot.slane %v6466_v61, %v19501_v22  ;;  %v7232_v33 = vunpack.i.h.s16 %v6042_v44  ;;  %v16447_v37 = vld.sshfl [vmem:[%s24635_s0 + $0x60] sm:$0x33 pattern:$0x75316420] }
 0x12b   :  { %17961 = vmatmul.mubr.msk.bf16.gmra.mrb[88].mxu1 %vm902_vm1, %v7439_v4  ;;  %v6483_v60 = vrot.slane %v6467_v23, %v19501_v22  ;;  %v16544_v59 = vpack.i.b16 %v20572_v56, %v7218_v45  ;;  %v7310_v54 = vpack.i.b16 %v6248_v1, %v7220_v9  ;;  %v16545_v47 = vpack.i.b16 %v6041_v28, %v7228_v5  ;;  %v21000_v56 = vld.sshfl [vmem:[%s24635_s0 + $0x68] sm:$0x33 pattern:$0x75316420] }
 0x12c   :  { %v6490_v42 = vrot.slane %v6468_v57, %v19501_v22  ;;  %17964 = vmatprep.mubr.msk.bf16.mxu1 %vm19400_vm0, %v24663_v48  ;;  %v16546_v16 = vpack.i.b16 %v6042_v44, %v7230_v32  ;;  %v16547_v15 = vpack.i.b16 %v20974_v24, %v7232_v33  ;;  %v7441_v12 = vcombine.low %v20949_v55, %v20951_v63 }
 0x12d   :  { %v6498_v14 = vcombine.low %v6476_v36, %v6483_v60  ;;  %v7440_v28 = vcombine.low %v16544_v59, %v7310_v54  ;;  %v7442_v8 = vcombine.low %v6019_v25, %v16545_v47  ;;  %v6051_v7 = vcombine.high %v16446_v35, %v16446_v35 }
 0x12e   :  { %v6499_v1 = vcombine.low %v6490_v42, %v6497_v58  ;;  %v7443_v21 = vcombine.low %v16546_v16, %v16547_v15  ;;  %v7457_v31 = vrot.slane %v7441_v12, %v19501_v22  ;;  %v21007_v51 = vrot.slane %v16446_v35, %v19501_v22 }
 0x12f   :  { %v21002_v45 = vpop.f32.mrb[20].mxu0  ;;  %v6506_v44 = vrot.slane %v6498_v14, %v19501_v22  ;;  %v7450_v11 = vrot.slane %v7440_v28, %v19501_v22  ;;  %v7464_v53 = vrot.slane %v7442_v8, %v19501_v22  ;;  %v21015_v25 = vrot.slane %v6051_v7, %v19501_v22 }
 0x130   :  { %v17726_v46 = vpop.f32.mrb[21].mxu0  ;;  %v6513_v63 = vrot.slane %v6499_v1, %v19501_v22  ;;  %v7471_v50 = vrot.slane %v7443_v21, %v19501_v22  ;;  %v6066_v4 = vcombine.high %v21007_v51, %v21007_v51  ;;  %v6075_v61 = vcombine.high %v16447_v37, %v16447_v37 }
 0x131   :  { %v21009_v55 = vpop.f32.mrb[22].mxu0  ;;  %v6082_v23 = vrot.slane %v16447_v37, %v19501_v22  ;;  %v7472_v57 = vcombine.low %v7450_v11, %v7457_v31  ;;  %v6067_v58 = vcombine.high %v21015_v25, %v21015_v25  ;;  %v21027_v9 = vrot.slane %v21000_v56, %v19501_v22 }
 0x132   :  { %v17727_v18 = vpop.f32.mrb[23].mxu0  ;;  %v6514_v35 = vcombine.low %v6506_v44, %v6513_v63  ;;  %v7473_v36 = vcombine.low %v7464_v53, %v7471_v50  ;;  %v6089_v60 = vrot.slane %v6075_v61, %v19501_v22  ;;  %v6262_v59 = vunpack.i.h.s16 %v21007_v51 }
 0x133   :  { %v6090_v33 = vcombine.high %v6082_v23, %v6082_v23  ;;  %v7480_v54 = vrot.slane %v7472_v57, %v19501_v22  ;;  %v6264_v47 = vunpack.i.h.s16 %v21015_v25  ;;  %v6266_v16 = vunpack.i.h.s16 %v6066_v4 }
 0x134   :  { %v21021_v5 = vpop.f32.mrb[20].mxu1  ;;  %17929 = vmatmul.mubr.msk.bf16.gmra.mrb[92].mxu0 %vm902_vm1, %v6514_v35  ;;  %v16473_v37 = vpack.i.b16 %v21007_v51, %v20974_v24  ;;  %v7487_v15 = vrot.slane %v7473_v36, %v19501_v22  ;;  %v6091_v12 = vcombine.high %v6089_v60, %v6089_v60  ;;  %v16474_v1 = vpack.i.b16 %v21015_v25, %v6262_v59 }
 0x135   :  { %v17762_v32 = vpop.f32.mrb[21].mxu1  ;;  %17932 = vmatprep.mubr.msk.bf16.mxu0 %vm19400_vm0, %v24663_v48  ;;  %v6517_v28 = vcombine.low %v6082_v23, %v6089_v60  ;;  %v16475_v7 = vpack.i.b16 %v6066_v4, %v6264_v47  ;;  %v16476_v46 = vpack.i.b16 %v6067_v58, %v6266_v16  ;;  %v7234_v44 = vunpack.i.h.s16 %v20974_v24 }
 0x136   :  { %v21031_v42 = vpop.f32.mrb[22].mxu1  ;;  %v7242_v21 = vunpack.i.h.s16 %v6082_v23  ;;  %v7488_v63 = vcombine.low %v7480_v54, %v7487_v15  ;;  %v16477_v11 = vpack.i.b16 %v21027_v9, %v6091_v12  ;;  %v6515_v53 = vcombine.low %v16473_v37, %v16474_v1 }
 0x137   :  { %v17763_v14 = vpop.f32.mrb[23].mxu1  ;;  %v21042_v8 = vpop.f32.mrb[24].mxu0  ;;  %v6539_v18 = vrot.slane %v6517_v28, %v19501_v22  ;;  %v6516_v61 = vcombine.low %v16475_v7, %v16476_v46  ;;  %v7244_v35 = vunpack.i.h.s16 %v6089_v60  ;;  %v7246_v57 = vunpack.i.h.s16 %v6090_v33 }
 0x138   :  { %v17730_v31 = vpop.f32.mrb[25].mxu0  ;;  %v7248_v32 = vunpack.i.h.s16 %v6091_v12  ;;  %17965 = vmatmul.mubr.msk.bf16.gmra.mrb[92].mxu1 %vm902_vm1, %v7488_v63  ;;  %v6518_v4 = vcombine.low %v6090_v33, %v16477_v11  ;;  %v6525_v58 = vrot.slane %v6515_v53, %v19501_v22  ;;  %v7249_v24 = vunpack.i.h.s16 %v21027_v9 }
 0x139   :  { %v1009_v50 = vpop.f32.mrb[26].mxu0  ;;  %v7317_v23 = vpack.i.b16 %v6262_v59, %v7234_v44  ;;  %v6532_v47 = vrot.slane %v6516_v61, %v19501_v22  ;;  %17968 = vmatprep.mubr.msk.bf16.mxu1 %vm19400_vm0, %v24663_v48  ;;  %v16548_v16 = vpack.i.b16 %v6089_v60, %v7242_v21  ;;  %v16549_v37 = vpack.i.b16 %v6090_v33, %v7244_v35  ;;  %v16450_v59 = vld.sshfl [vmem:[%s24635_s0 + $0x78] sm:$0x33 pattern:$0x75316420] }
 0x13a   :  { %v17731_v36 = vpop.f32.mrb[27].mxu0  ;;  %v16550_v14 = vpack.i.b16 %v6091_v12, %v7246_v57  ;;  %v6546_v1 = vrot.slane %v6518_v4, %v19501_v22  ;;  %v7324_v28 = vpack.i.b16 %v7249_v24, %v7248_v32  ;;  %v16558_v46 = vcombine.high %v21007_v51, %v21015_v25  ;;  %v16524_v32 = vld.sshfl [vmem:[%s24635_s0 + $0x70] sm:$0x33 pattern:$0x75316420] }
 0x13b   :  { %v7489_v7 = vcombine.low %v7317_v23, %v21015_v25  ;;  %v6547_v31 = vcombine.low %v6525_v58, %v6532_v47  ;;  %v7491_v63 = vcombine.low %v16548_v16, %v16549_v37  ;;  %v6099_v60 = vcombine.high %v21000_v56, %v21000_v56 }
 0x13c   :  { %v21050_v54 = vpop.f32.mrb[24].mxu1  ;;  %v6114_v33 = vcombine.high %v21027_v9, %v21027_v9  ;;  %v6548_v21 = vcombine.low %v6539_v18, %v6546_v1  ;;  %v7492_v11 = vcombine.low %v16550_v14, %v7324_v28  ;;  %v7506_v51 = vrot.slane %v16558_v46, %v19501_v22 }
 0x13d   :  { %v17766_v15 = vpop.f32.mrb[25].mxu1  ;;  %v7499_v53 = vrot.slane %v7489_v7, %v19501_v22  ;;  %v6555_v25 = vrot.slane %v6547_v31, %v19501_v22  ;;  %v7513_v50 = vrot.slane %v7491_v63, %v19501_v22  ;;  %v6113_v61 = vrot.slane %v6099_v60, %v19501_v22 }
 0x13e   :  { %v1499_v44 = vpop.f32.mrb[26].mxu1  ;;  %v6138_v35 = vcombine.high %v20695_v27, %v20695_v27  ;;  %v6562_v56 = vrot.slane %v6548_v21, %v19501_v22  ;;  %v7520_v9 = vrot.slane %v7492_v11, %v19501_v22  ;;  %v6139_v18 = vcombine.high %v20699_v10, %v20699_v10 }
 0x13f   :  { %v17767_v12 = vpop.f32.mrb[27].mxu1  ;;  %v7521_v57 = vcombine.low %v7499_v53, %v7506_v51  ;;  %v21082_v4 = vcombine.high %v6113_v61, %v6113_v61  ;;  %v6147_v58 = vcombine.high %v16450_v59, %v16450_v59  ;;  %v21085_v23 = vrot.slane %v16450_v59, %v19501_v22 }
 0x140   :  { %v6563_v16 = vcombine.low %v6555_v25, %v6562_v56  ;;  %v7522_v37 = vcombine.low %v7513_v50, %v7520_v9  ;;  %v6278_v15 = vunpack.i.h.s16 %v6113_v61  ;;  %v6280_v46 = vunpack.i.h.s16 %v6114_v33  ;;  %v16451_v56 = vld.sshfl [vmem:[%s24635_s0 + $0x80] sm:$0x33 pattern:$0x75316420] }
 0x141   :  { %v7529_v14 = vrot.slane %v7521_v57, %v19501_v22  ;;  %v21093_v7 = vrot.slane %v6147_v58, %v19501_v22  ;;  %v6290_v44 = vunpack.i.h.s16 %v21085_v23  ;;  %v16478_v31 = vpack.i.b16 %v6113_v61, %v7249_v24 }
 0x142   :  { %v21080_v36 = vpop.f32.mrb[28].mxu0  ;;  %17933 = vmatmul.mubr.msk.bf16.gmra.mrb[96].mxu0 %vm902_vm1, %v6563_v16  ;;  %v7536_v60 = vrot.slane %v7522_v37, %v19501_v22  ;;  %v16479_v12 = vpack.i.b16 %v6114_v33, %v6278_v15  ;;  %v16481_v21 = vpack.i.b16 %v21085_v23, %v6139_v18  ;;  %v6566_v11 = vcombine.low %v20699_v10, %v6138_v35 }
 0x143   :  { %v17778_v47 = vpop.f32.mrb[29].mxu0  ;;  %17936 = vmatprep.mubr.msk.bf16.mxu0 %vm19400_vm0, %v24663_v48  ;;  %v16480_v51 = vpack.i.b16 %v21082_v4, %v6280_v46  ;;  %v16482_v24 = vpack.i.b16 %v21093_v7, %v6290_v44  ;;  %v7097_v25 = vcombine.high %v16524_v32, %v16524_v32  ;;  %v7104_v50 = vrot.slane %v16524_v32, %v19501_v22 }
 0x144   :  { %v21088_v1 = vpop.f32.mrb[30].mxu0  ;;  %v21090_v28 = vpop.f32.mrb[28].mxu1  ;;  %v7537_v57 = vcombine.low %v7529_v14, %v7536_v60  ;;  %v6564_v18 = vcombine.low %v16478_v31, %v16479_v12  ;;  %v6588_v10 = vrot.slane %v6566_v11, %v19501_v22  ;;  %v7538_v35 = vcombine.low %v6113_v61, %v6114_v33  ;;  %v16452_v14 = vld.sshfl [vmem:[%s24635_s0 + $0x88] sm:$0x33 pattern:$0x75316420] }
 0x145   :  { %24672 = vst [vmem:[#allocation7_spill] sm:$0xff] %v21090_v28  ;;  %v17779_v63 = vpop.f32.mrb[31].mxu0  ;;  %v17814_v59 = vpop.f32.mrb[29].mxu1  ;;  %v6565_v58 = vcombine.low %v16480_v51, %v20695_v27  ;;  %v6567_v47 = vcombine.low %v16481_v21, %v16482_v24  ;;  %v7111_v16 = vrot.slane %v7097_v25, %v19501_v22  ;;  %v7112_v37 = vcombine.high %v7104_v50, %v7104_v50 }
 0x146   :  { %v21100_v53 = vpop.f32.mrb[30].mxu1  ;;  %17969 = vmatmul.mubr.msk.bf16.gmra.mrb[96].mxu1 %vm902_vm1, %v7537_v57  ;;  %v6574_v32 = vrot.slane %v6564_v18, %v19501_v22  ;;  %v7256_v15 = vunpack.i.h.s16 %v7104_v50  ;;  %v7548_v46 = vrot.slane %v7538_v35, %v19501_v22  ;;  %v6162_v33 = vcombine.high %v21085_v23, %v21085_v23 }
 0x147   :  { %24673 = vst [vmem:[#allocation9_spill] sm:$0xff] %v21100_v53  ;;  %v17815_v9 = vpop.f32.mrb[31].mxu1  ;;  %v6581_v27 = vrot.slane %v6565_v58, %v19501_v22  ;;  %v6595_v61 = vrot.slane %v6567_v47, %v19501_v22  ;;  %17972 = vmatprep.mubr.msk.bf16.mxu1 %vm19400_vm0, %v24663_v48  ;;  %v7113_v31 = vcombine.high %v7111_v16, %v7111_v16  ;;  %v7258_v63 = vunpack.i.h.s16 %v7111_v16 }
 0x148   :  { %v7260_v59 = vunpack.i.h.s16 %v7112_v37  ;;  %v16551_v60 = vpack.i.b16 %v7111_v16, %v7256_v15  ;;  %v6163_v12 = vcombine.high %v21093_v7, %v21093_v7  ;;  %v6171_v21 = vcombine.high %v16451_v56, %v16451_v56 }
 0x149   :  { %v6596_v24 = vcombine.low %v6574_v32, %v6581_v27  ;;  %v6597_v25 = vcombine.low %v6588_v10, %v6595_v61  ;;  %v7262_v50 = vunpack.i.h.s16 %v7113_v31  ;;  %v16552_v9 = vpack.i.b16 %v7112_v37, %v7258_v63 }
 0x14a   :  { %v16553_v35 = vpack.i.b16 %v7113_v31, %v7260_v59  ;;  %v7539_v58 = vcombine.low %v21082_v4, %v16551_v60  ;;  %v6178_v47 = vrot.slane %v16451_v56, %v19501_v22  ;;  %v6185_v16 = vrot.slane %v6171_v21, %v19501_v22 }
 0x14b   :  { %v6611_v32 = vrot.slane %v6597_v25, %v19501_v22  ;;  %v7331_v10 = vpack.i.b16 %v6290_v44, %v7262_v50  ;;  %v6195_v27 = vcombine.high %v16452_v14, %v16452_v14  ;;  %v6202_v21 = vrot.slane %v16452_v14, %v19501_v22 }
 0x14c   :  { %v21127_v11 = vpop.f32.mrb[32].mxu0  ;;  %v21129_v51 = vpop.f32.mrb[32].mxu1  ;;  %v7540_v63 = vcombine.low %v16552_v9, %v16553_v35  ;;  %v7555_v31 = vrot.slane %v7539_v58, %v19501_v22  ;;  %v6186_v4 = vcombine.high %v6178_v47, %v6178_v47  ;;  %v6187_v59 = vcombine.high %v6185_v16, %v6185_v16 }
 0x14d   :  { %24674 = vst [vmem:[#allocation8_spill] sm:$0xff] %v21127_v11  ;;  %24675 = vst [vmem:[#allocation10_spill] sm:$0xff] %v21129_v51  ;;  %v17782_v57 = vpop.f32.mrb[33].mxu0  ;;  %v17818_v18 = vpop.f32.mrb[33].mxu1  ;;  %v6604_v11 = vrot.slane %v6596_v24, %v19501_v22  ;;  %v7541_v60 = vcombine.low %v7331_v10, %v21093_v7  ;;  %v6292_v44 = vunpack.i.h.s16 %v21093_v7  ;;  %v6294_v25 = vunpack.i.h.s16 %v6162_v33 }
 0x14e   :  { %v21134_v15 = vpop.f32.mrb[34].mxu0  ;;  %v21136_v53 = vpop.f32.mrb[34].mxu1  ;;  %v6209_v57 = vrot.slane %v6195_v27, %v19501_v22  ;;  %v7562_v24 = vrot.slane %v7540_v63, %v19501_v22  ;;  %v7570_v18 = vcombine.low %v7548_v46, %v7555_v31  ;;  %v21148_v9 = vcombine.high %v6202_v21, %v6202_v21 }
 0x14f   :  { %24676 = vst [vmem:[#allocation11_spill] sm:$0xff] %v21134_v15  ;;  %24677 = vst [vmem:[#allocation13_spill] sm:$0xff] %v21136_v53  ;;  %v17783_v37 = vpop.f32.mrb[35].mxu0  ;;  %v17819_v61 = vpop.f32.mrb[35].mxu1  ;;  %v6612_v56 = vcombine.low %v6604_v11, %v6611_v32  ;;  %v7569_v50 = vrot.slane %v7541_v60, %v19501_v22  ;;  %v6304_v35 = vunpack.i.h.s16 %v6202_v21  ;;  %v16483_v14 = vpack.i.b16 %v6162_v33, %v6292_v44 }
 0x150   :  { %v6306_v11 = vunpack.i.h.s16 %v6209_v57  ;;  %v7578_v58 = vrot.slane %v7570_v18, %v19501_v22  ;;  %v16484_v32 = vpack.i.b16 %v6163_v12, %v6294_v25  ;;  %v16485_v10 = vpack.i.b16 %v6202_v21, %v6187_v59 }
 0x151   :  { %17937 = vmatmul.mubr.msk.bf16.gmra.mrb[100].mxu0 %vm902_vm1, %v6612_v56  ;;  %v7571_v46 = vcombine.low %v7562_v24, %v7569_v50  ;;  %v16486_v27 = vpack.i.b16 %v6209_v57, %v6304_v35  ;;  %v6614_v61 = vcombine.low %v6178_v47, %v6185_v16  ;;  %v7270_v56 = vunpack.i.h.s16 %v6178_v47 }
 0x152   :  { %17940 = vmatprep.mubr.msk.bf16.mxu0 %vm19400_vm0, %v24663_v48  ;;  %v16487_v37 = vpack.i.b16 %v21148_v9, %v6306_v11  ;;  %v6613_v63 = vcombine.low %v16483_v14, %v16484_v32  ;;  %v6615_v31 = vcombine.low %v6186_v4, %v16485_v10  ;;  %v7272_v60 = vunpack.i.h.s16 %v6185_v16  ;;  %v16599_v11 = vld.sshfl [vmem:[%s24635_s0 + $0x10] sm:$0x32 pattern:$0x75316420] }
 0x153   :  { %v7585_v53 = vrot.slane %v7571_v46, %v19501_v22  ;;  %v6630_v18 = vrot.slane %v6614_v61, %v19501_v22  ;;  %v7274_v15 = vunpack.i.h.s16 %v6186_v4  ;;  %v7276_v12 = vunpack.i.h.s16 %v6187_v59 }
 0x154   :  { %v6616_v51 = vcombine.low %v16486_v27, %v16487_v37  ;;  %v6623_v28 = vrot.slane %v6613_v63, %v19501_v22  ;;  %v6637_v33 = vrot.slane %v6615_v31, %v19501_v22  ;;  %v16554_v21 = vpack.i.b16 %v6185_v16, %v7270_v56 }
 0x155   :  { %v7586_v44 = vcombine.low %v7578_v58, %v7585_v53  ;;  %v16555_v50 = vpack.i.b16 %v6186_v4, %v7272_v60  ;;  %v16556_v47 = vpack.i.b16 %v6187_v59, %v7274_v15  ;;  %v7338_v46 = vpack.i.b16 %v6304_v35, %v7276_v12  ;;  %v16602_v12 = vld.sshfl [vmem:[%s24635_s0 + $0x1c] sm:$0x1 pattern:$0x75316420] }
 0x156   :  { %v6644_v25 = vrot.slane %v6616_v51, %v19501_v22  ;;  %v6645_v10 = vcombine.low %v6623_v28, %v6630_v18  ;;  %v16559_v27 = vcombine.high %v21085_v23, %v21093_v7  ;;  %v7590_v16 = vcombine.low %v6209_v57, %v21148_v9  ;;  %v16600_v23 = vld.sshfl [vmem:[%s24635_s0 + $0x14] sm:$0x1 pattern:$0x75316420] }
 0x157   :  { %17973 = vmatmul.mubr.msk.bf16.gmra.mrb[100].mxu1 %vm902_vm1, %v7586_v44  ;;  %v7588_v15 = vcombine.low %v16554_v21, %v16555_v50  ;;  %v21174_v4 = vadd.f32 %v20716_v19, %v20703_v26  ;;  %v21178_v28 = vadd.f32 %v20732_v62, %v20718_v0  ;;  %v7589_v58 = vcombine.low %v16556_v47, %v7338_v46  ;;  %v16601_v0 = vld.sshfl [vmem:[%s24635_s0 + $0x18] sm:$0x32 pattern:$0x75316420] }
 0x158   :  { %v21158_v24 = vpop.f32.mrb[36].mxu0  ;;  %v6646_v51 = vcombine.low %v6637_v33, %v6644_v25  ;;  %v6653_v35 = vrot.slane %v6645_v10, %v19501_v22  ;;  %17976 = vmatprep.mubr.msk.bf16.mxu1 %vm19400_vm0, %v24663_v48  ;;  %v7597_v26 = vrot.slane %v16559_v27, %v19501_v22  ;;  %v7618_v19 = vrot.slane %v7590_v16, %v19501_v22 }
 0x159   :  { %v17786_v14 = vpop.f32.mrb[37].mxu0  ;;  %v21164_v32 = vpop.f32.mrb[36].mxu1  ;;  %v7604_v63 = vrot.slane %v7588_v15, %v19501_v22  ;;  %v6211_v31 = vcombine.high %v6209_v57, %v6209_v57  ;;  %v6308_v56 = vunpack.i.h.s16 %v21148_v9  ;;  %v7611_v60 = vrot.slane %v7589_v58, %v19501_v22  ;;  %v21211_v57 = vld.sshfl [vmem:[%s24635_s0 + $0x20] sm:$0x32 pattern:$0x75316420] }
 0x15a   :  { %v21169_v37 = vpop.f32.mrb[38].mxu0  ;;  %v17822_v53 = vpop.f32.mrb[37].mxu1  ;;  %v6660_v61 = vrot.slane %v6646_v51, %v19501_v22  ;;  %v21199_v18 = vadd.f32 %v20787_v13, %v20758_v39  ;;  %v21203_v33 = vadd.f32 %v20796_v6, %v20766_v49  ;;  %v7859_v9 = vcombine.high %v16599_v11, %v16599_v11  ;;  %v16604_v51 = vld.sshfl [vmem:[%s24635_s0 + $0x24] sm:$0x1 pattern:$0x75316420] }
 0x15b   :  { %v17787_v7 = vpop.f32.mrb[39].mxu0  ;;  %v21183_v59 = vpop.f32.mrb[38].mxu1  ;;  %v7619_v44 = vcombine.low %v7597_v26, %v7604_v63  ;;  %v16488_v25 = vpack.i.b16 %v6211_v31, %v6308_v56  ;;  %v7642_v39 = vrot.slane %v6211_v31, %v19501_v22  ;;  %v7620_v13 = vcombine.low %v7611_v60, %v7618_v19  ;;  %v16605_v58 = vld.sshfl [vmem:[%s24635_s0 + $0x28] sm:$0x32 pattern:$0x75316420] }
 0x15c   :  { %v17823_v62 = vpop.f32.mrb[39].mxu1  ;;  %v6661_v21 = vcombine.low %v6653_v35, %v6660_v61  ;;  %v7866_v50 = vrot.slane %v16599_v11, %v19501_v22  ;;  %v7873_v49 = vrot.slane %v7859_v9, %v19501_v22  ;;  %v7889_v6 = vrot.slane %v16600_v23, %v19501_v22  ;;  %v21241_v26 = vld.sshfl [vmem:[%s24635_s0 + $0x2c] sm:$0x1 pattern:$0x75316420] }
 0x15d   :  { %v7627_v47 = vrot.slane %v7619_v44, %v19501_v22  ;;  %v6668_v14 = vrot.slane %v16488_v25, %v19501_v22  ;;  %v21221_v10 = vrot.slane %v7642_v39, %v19501_v22  ;;  %v7897_v46 = vcombine.high %v16601_v0, %v16601_v0  ;;  %v16607_v63 = vld.sshfl [vmem:[%s24635_s0 + $0x30] sm:$0x32 pattern:$0x75316420] }
 0x15e   :  { %17941 = vmatmul.mubr.msk.bf16.gmra.mrb[104].mxu0 %vm902_vm1, %v6661_v21  ;;  %v7634_v27 = vrot.slane %v7620_v13, %v19501_v22  ;;  %v7874_v11 = vcombine.high %v7866_v50, %v7866_v50  ;;  %v7875_v16 = vcombine.high %v7873_v49, %v7873_v49  ;;  %v7904_v53 = vrot.slane %v16601_v0, %v19501_v22 }
 0x15f   :  { %17944 = vmatprep.mubr.msk.bf16.mxu0 %vm19400_vm0, %v24663_v48  ;;  %v6675_v15 = vrot.slane %v6668_v14, %v19501_v22  ;;  %v7911_v23 = vrot.slane %v7897_v46, %v19501_v22  ;;  %v7927_v7 = vrot.slane %v16602_v12, %v19501_v22  ;;  %v7935_v35 = vcombine.high %v21211_v57, %v21211_v57 }
 0x160   :  { %v7635_v19 = vcombine.low %v7627_v47, %v7634_v27  ;;  %v7912_v0 = vcombine.high %v7904_v53, %v7904_v53  ;;  %v8540_v62 = vcombine.low %v7873_v49, %v7874_v11  ;;  %v21245_v61 = vadd.f32 %v20834_v17, %v20825_v2 }
 0x161   :  { %v7913_v31 = vcombine.high %v7911_v23, %v7911_v23  ;;  %v7949_v56 = vrot.slane %v7935_v35, %v19501_v22  ;;  %v8392_v60 = vunpack.i.h.s16 %v7911_v23  ;;  %v16635_v12 = vpack.i.b16 %v7911_v23, %v7889_v6 }
 0x162   :  { %17977 = vmatmul.mubr.msk.bf16.gmra.mrb[104].mxu1 %vm902_vm1, %v7635_v19  ;;  %v8394_v21 = vunpack.i.h.s16 %v7912_v0  ;;  %v8550_v44 = vrot.slane %v8540_v62, %v19501_v22  ;;  %v21257_v2 = vadd.f32 %v20842_v38, %v20836_v30  ;;  %v7942_v17 = vrot.slane %v21211_v57, %v19501_v22 }
 0x163   :  { %17980 = vmatprep.mubr.msk.bf16.mxu1 %vm19400_vm0, %v24663_v48  ;;  %v8396_v13 = vunpack.i.h.s16 %v7913_v31  ;;  %v16636_v50 = vpack.i.b16 %v7912_v0, %v8392_v60  ;;  %v8541_v49 = vcombine.low %v7875_v16, %v16635_v12  ;;  %v7965_v6 = vrot.slane %v16604_v51, %v19501_v22 }
 0x164   :  { %v16637_v46 = vpack.i.b16 %v7913_v31, %v8394_v21  ;;  %v7973_v30 = vcombine.high %v16605_v58, %v16605_v58  ;;  %v7980_v38 = vrot.slane %v16605_v58, %v19501_v22  ;;  %v8003_v57 = vrot.slane %v21241_v26, %v19501_v22 }
 0x165   :  { %v21251_v9 = vpop.f32.mrb[40].mxu0  ;;  %v16638_v53 = vpack.i.b16 %v7927_v7, %v8396_v13  ;;  %v8557_v16 = vrot.slane %v8541_v49, %v19501_v22  ;;  %v8011_v23 = vcombine.high %v16607_v63, %v16607_v63  ;;  %v8018_v51 = vrot.slane %v16607_v63, %v19501_v22  ;;  %v16608_v7 = vld.sshfl [vmem:[%s24635_s0 + $0x34] sm:$0x1 pattern:$0x75316420] }
 0x166   :  { %v17790_v25 = vpop.f32.mrb[41].mxu0  ;;  %v21261_v39 = vpop.f32.mrb[40].mxu1  ;;  %17945 = vmatmul.mubr.msk.bf16.gmra.mrb[108].mxu0 %vm902_vm1, %v6675_v15  ;;  %v8542_v19 = vcombine.low %v16636_v50, %v16637_v46  ;;  %v7987_v58 = vrot.slane %v7973_v30, %v19501_v22  ;;  %v7988_v0 = vcombine.high %v7980_v38, %v7980_v38  ;;  %v16663_v26 = vcombine.high %v7942_v17, %v7949_v56  ;;  %v16609_v13 = vld.sshfl [vmem:[%s24635_s0 + $0x38] sm:$0x32 pattern:$0x75316420] }
 0x167   :  { %v21266_v47 = vpop.f32.mrb[42].mxu0  ;;  %v17826_v14 = vpop.f32.mrb[41].mxu1  ;;  %17992 = vmatprep.mubr.msk.bf16.mxu0 %vm19400_vm0, %v24663_v48  ;;  %v8543_v62 = vcombine.low %v16638_v53, %v7949_v56  ;;  %v8572_v31 = vcombine.low %v8550_v44, %v8557_v16  ;;  %v21280_v60 = vrot.slane %v8011_v23, %v19501_v22  ;;  %v8026_v15 = vcombine.high %v8018_v51, %v8018_v51  ;;  %v21292_v56 = vld.sshfl [vmem:[%s24635_s0 + $0x3c] sm:$0x1 pattern:$0x75316420] }
 0x168   :  { %v17791_v27 = vpop.f32.mrb[43].mxu0  ;;  %v21271_v11 = vpop.f32.mrb[42].mxu1  ;;  %v8564_v63 = vrot.slane %v8542_v19, %v19501_v22  ;;  %v7989_v12 = vcombine.high %v7987_v58, %v7987_v58  ;;  %v8406_v21 = vunpack.i.h.s16 %v7987_v58  ;;  %v8408_v25 = vunpack.i.h.s16 %v7988_v0  ;;  %v16611_v14 = vld.sshfl [vmem:[%s24635_s0 + $0x40] sm:$0x32 pattern:$0x75316420] }
 0x169   :  { %v17827_v35 = vpop.f32.mrb[43].mxu1  ;;  %v8571_v44 = vrot.slane %v8543_v62, %v19501_v22  ;;  %v8580_v17 = vrot.slane %v8572_v31, %v19501_v22  ;;  %v16639_v50 = vpack.i.b16 %v7987_v58, %v7965_v6  ;;  %v8592_v49 = vcombine.low %v21280_v60, %v8026_v15 }
 0x16a   :  { %17981 = vmatmul.mubr.msk.bf16.gmra.mrb[108].mxu1 %vm902_vm1, %v21221_v10  ;;  %v8410_v46 = vunpack.i.h.s16 %v7989_v12  ;;  %v16640_v30 = vpack.i.b16 %v7988_v0, %v8406_v21  ;;  %v16641_v38 = vpack.i.b16 %v7989_v12, %v8408_v25  ;;  %v8599_v27 = vrot.slane %v16663_v26, %v19501_v22  ;;  %v16613_v12 = vld.sshfl [vmem:[%s24635_s0 + $0x58] sm:$0x32 pattern:$0x75316420] }
 0x16b   :  { %v8573_v53 = vcombine.low %v8564_v63, %v8571_v44  ;;  %v8620_v16 = vrot.slane %v8592_v49, %v19501_v22  ;;  %v21306_v6 = vadd.f32 %v20879_v20, %v20870_v34  ;;  %v21310_v23 = vadd.f32 %v20892_v29, %v20881_v40  ;;  %v21322_v20 = vld.sshfl [vmem:[%s24635_s0 + $0x44] sm:$0x1 pattern:$0x75316420] }
 0x16c   :  { %v16642_v51 = vpack.i.b16 %v8003_v57, %v8410_v46  ;;  %v8590_v35 = vcombine.low %v16639_v50, %v16640_v30  ;;  %v8027_v10 = vcombine.high %v21280_v60, %v21280_v60  ;;  %v8041_v19 = vrot.slane %v16608_v7, %v19501_v22 }
 0x16d   :  { %v8587_v58 = vrot.slane %v8573_v53, %v19501_v22  ;;  %v8049_v0 = vcombine.high %v16609_v13, %v16609_v13  ;;  %v8056_v26 = vrot.slane %v16609_v13, %v19501_v22  ;;  %v8079_v34 = vrot.slane %v21292_v56, %v19501_v22 }
 0x16e   :  { %v8591_v40 = vcombine.low %v16641_v38, %v16642_v51  ;;  %v8606_v29 = vrot.slane %v8590_v35, %v19501_v22  ;;  %v8087_v57 = vcombine.high %v16611_v14, %v16611_v14  ;;  %v8094_v62 = vrot.slane %v16611_v14, %v19501_v22 }
 0x16f   :  { %v8588_v60 = vcombine.low %v8580_v17, %v8587_v58  ;;  %v8063_v15 = vrot.slane %v8049_v0, %v19501_v22  ;;  %v8064_v7 = vcombine.high %v8056_v26, %v8056_v26  ;;  %v21331_v63 = vadd.f32 %v20945_v3, %v20939_v43 }
 0x170   :  { %v8613_v25 = vrot.slane %v8591_v40, %v19501_v22  ;;  %v8621_v13 = vcombine.low %v8599_v27, %v8606_v29  ;;  %v8101_v56 = vrot.slane %v8087_v57, %v19501_v22  ;;  %v21340_v44 = vadd.f32 %v20960_v41, %v20956_v52 }
 0x171   :  { %17993 = vmatmul.mubr.msk.bf16.vlgmr.msra.gmra.mrb[112].mxu0 %vm902_vm1, %v8588_v60  ;;  %v8065_v43 = vcombine.high %v8063_v15, %v8063_v15  ;;  %v8420_v3 = vunpack.i.h.s16 %v8063_v15  ;;  %v8422_v50 = vunpack.i.h.s16 %v8064_v7  ;;  %v16643_v49 = vpack.i.b16 %v8063_v15, %v8041_v19 }
 0x172   :  { %v21326_v31 = vpop.f32.mrb[44].mxu0 }
 0x173   :  { %v17794_v21 = vpop.f32.mrb[45].mxu0 }
 0x174   :  { %v21342_v17 = vpop.f32.mrb[46].mxu0 }
 0x175   :  { %v17795_v14 = vpop.f32.mrb[47].mxu0 }
 0x176   :  { %12 = vsyncpa [#allocation4], 0  ;;  %17996 = vmatprep.mubr.msk.bf16.mxu0 %vm19400_vm0, %v24663_v48  ;;  %v8622_v46 = vcombine.low %v8613_v25, %v8620_v16  ;;  %v8629_v30 = vrot.slane %v8621_v13, %v19501_v22  ;;  %v16664_v38 = vcombine.high %v8094_v62, %v8101_v56  ;;  %v16614_v52 = vld.sshfl [vmem:[%s24635_s0 + $0x5c] sm:$0x1 pattern:$0x75316420]  ;;  %v8117_v41 = vrot.slane %v21322_v20, %v19501_v22 }
 0x177   :  { %v8424_v27 = vunpack.i.h.s16 %v8065_v43  ;;  %v16644_v53 = vpack.i.b16 %v8064_v7, %v8420_v3  ;;  %v16645_v51 = vpack.i.b16 %v8065_v43, %v8422_v50  ;;  %v8638_v35 = vcombine.low %v8027_v10, %v16643_v49  ;;  %v16615_v19 = vld.sshfl [vmem:[%s24635_s0 + $0x60] sm:$0x32 pattern:$0x75316420]  ;;  %v21356_v58 = vpop.f32.mrb[44].mxu1 }
 0x178   :  { %v8636_v16 = vrot.slane %v8622_v46, %v19501_v22  ;;  %v8669_v0 = vrot.slane %v16664_v38, %v19501_v22  ;;  %v16616_v26 = vld.sshfl [vmem:[%s24635_s0 + $0x64] sm:$0x1 pattern:$0x75316420]  ;;  %v8125_v40 = vcombine.high %v16613_v12, %v16613_v12  ;;  %v8132_v20 = vrot.slane %v16613_v12, %v19501_v22  ;;  %v17830_v29 = vpop.f32.mrb[45].mxu1 }
 0x179   :  { %v16646_v57 = vpack.i.b16 %v8079_v34, %v8424_v27  ;;  %v8639_v10 = vcombine.low %v16644_v53, %v16645_v51  ;;  %v8648_v62 = vrot.slane %v8638_v35, %v19501_v22  ;;  %v16617_v60 = vld.sshfl [vmem:[%s24635_s0 + $0x68] sm:$0x32 pattern:$0x75316420]  ;;  %v8155_v15 = vrot.slane %v16614_v52, %v19501_v22  ;;  %v21369_v7 = vpop.f32.mrb[46].mxu1 }
 0x17a   :  { %v8637_v21 = vcombine.low %v8629_v30, %v8636_v16  ;;  %v8139_v25 = vrot.slane %v8125_v40, %v19501_v22  ;;  %v8140_v13 = vcombine.high %v8132_v20, %v8132_v20  ;;  %v8163_v43 = vcombine.high %v16615_v19, %v16615_v19  ;;  %v17831_v3 = vpop.f32.mrb[47].mxu1 }
 0x17b   :  { %v8640_v12 = vcombine.low %v16646_v57, %v8101_v56  ;;  %v8655_v34 = vrot.slane %v8639_v10, %v19501_v22  ;;  %v8170_v50 = vrot.slane %v16615_v19, %v19501_v22  ;;  %v8193_v49 = vrot.slane %v16616_v26, %v19501_v22 }
 0x17c   :  { %v8141_v14 = vcombine.high %v8139_v25, %v8139_v25  ;;  %v8177_v46 = vrot.slane %v8163_v43, %v19501_v22  ;;  %v8201_v38 = vcombine.high %v16617_v60, %v16617_v60  ;;  %v8434_v52 = vunpack.i.h.s16 %v8139_v25  ;;  %17997 = vmatmul.mubr.msk.bf16.gmra.mrb[116].mxu0 %vm902_vm1, %v8637_v21  ;;  %v16618_v43 = vld.sshfl [vmem:[%s24635_s0 + $0x6c] sm:$0x1 pattern:$0x75316420] }
 0x17d   :  { %v8662_v30 = vrot.slane %v8640_v12, %v19501_v22  ;;  %v8670_v27 = vcombine.low %v8648_v62, %v8655_v34  ;;  %v8178_v53 = vcombine.high %v8170_v50, %v8170_v50  ;;  %v8436_v51 = vunpack.i.h.s16 %v8140_v13  ;;  %18000 = vmatprep.mubr.msk.bf16.mxu0 %vm19400_vm0, %v24663_v48  ;;  %v16620_v50 = vld.sshfl [vmem:[%s24635_s0 + $0x74] sm:$0x1 pattern:$0x75316420] }
 0x17e   :  { %v8179_v56 = vcombine.high %v8177_v46, %v8177_v46  ;;  %v8215_v35 = vrot.slane %v8201_v38, %v19501_v22  ;;  %v8438_v19 = vunpack.i.h.s16 %v8141_v14  ;;  %v16647_v16 = vpack.i.b16 %v8139_v25, %v8117_v41  ;;  %v16621_v41 = vld.sshfl [vmem:[%s24635_s0 + $0x78] sm:$0x32 pattern:$0x75316420] }
 0x17f   :  { %v8671_v26 = vcombine.low %v8662_v30, %v8669_v0  ;;  %v8678_v40 = vrot.slane %v8670_v27, %v19501_v22  ;;  %v16648_v20 = vpack.i.b16 %v8140_v13, %v8434_v52  ;;  %v16649_v29 = vpack.i.b16 %v8141_v14, %v8436_v51 }
 0x180   :  { %v16650_v57 = vpack.i.b16 %v8155_v15, %v8438_v19  ;;  %v16651_v10 = vpack.i.b16 %v8215_v35, %v8193_v49  ;;  %v8689_v21 = vcombine.low %v8177_v46, %v8178_v53  ;;  %v21384_v62 = vadd.f32 %v21021_v5, %v21002_v45  ;;  %v16619_v45 = vld.sshfl [vmem:[%s24635_s0 + $0x70] sm:$0x32 pattern:$0x75316420]  ;;  %v21401_v13 = vpop.f32.mrb[48].mxu0 }
 0x181   :  { %v8685_v0 = vrot.slane %v8671_v26, %v19501_v22  ;;  %v8687_v25 = vcombine.low %v16647_v16, %v16648_v20  ;;  %v21395_v15 = vadd.f32 %v21031_v42, %v21009_v55  ;;  %v8208_v5 = vrot.slane %v16617_v60, %v19501_v22  ;;  %v17798_v14 = vpop.f32.mrb[49].mxu0 }
 0x182   :  { %v8688_v3 = vcombine.low %v16649_v29, %v16650_v57  ;;  %v8690_v12 = vcombine.low %v8179_v56, %v16651_v10  ;;  %v8711_v34 = vrot.slane %v8689_v21, %v19501_v22  ;;  %v8217_v49 = vcombine.high %v8215_v35, %v8215_v35  ;;  %v21409_v52 = vpop.f32.mrb[50].mxu0 }
 0x183   :  { %v8686_v55 = vcombine.low %v8678_v40, %v8685_v0  ;;  %v8697_v42 = vrot.slane %v8687_v25, %v19501_v22  ;;  %v8216_v46 = vcombine.high %v8208_v5, %v8208_v5  ;;  %v8231_v38 = vrot.slane %v16618_v43, %v19501_v22  ;;  %v17799_v51 = vpop.f32.mrb[51].mxu0  ;;  %v16623_v25 = vld.sshfl [vmem:[%s24635_s0 + $0x80] sm:$0x32 pattern:$0x75316420] }
 0x184   :  { %v8704_v60 = vrot.slane %v8688_v3, %v19501_v22  ;;  %v8718_v30 = vrot.slane %v8690_v12, %v19501_v22  ;;  %v8239_v27 = vcombine.high %v16619_v45, %v16619_v45  ;;  %v8246_v53 = vrot.slane %v16619_v45, %v19501_v22  ;;  %v16622_v12 = vld.sshfl [vmem:[%s24635_s0 + $0x7c] sm:$0x1 pattern:$0x75316420] }
 0x185   :  { %18001 = vmatmul.mubr.msk.bf16.gmra.mrb[120].mxu0 %vm902_vm1, %v8686_v55  ;;  %v8269_v56 = vrot.slane %v16620_v50, %v19501_v22  ;;  %v8277_v19 = vcombine.high %v16621_v41, %v16621_v41  ;;  %v8284_v16 = vrot.slane %v16621_v41, %v19501_v22  ;;  %v8448_v26 = vunpack.i.h.s16 %v8215_v35  ;;  %v16625_v35 = vld.sshfl [vmem:[%s24635_s0 + $0x88] sm:$0x32 pattern:$0x75316420] }
 0x186   :  { %18004 = vmatprep.mubr.msk.bf16.mxu0 %vm19400_vm0, %v24663_v48  ;;  %v8719_v40 = vcombine.low %v8697_v42, %v8704_v60  ;;  %v8720_v20 = vcombine.low %v8711_v34, %v8718_v30  ;;  %v8253_v29 = vrot.slane %v8239_v27, %v19501_v22  ;;  %v8450_v57 = vunpack.i.h.s16 %v8216_v46  ;;  %v21432_v34 = vpop.f32.mrb[48].mxu1 }
 0x187   :  { %v8291_v10 = vrot.slane %v8277_v19, %v19501_v22  ;;  %v8292_v21 = vcombine.high %v8284_v16, %v8284_v16  ;;  %v8452_v43 = vunpack.i.h.s16 %v8217_v49  ;;  %v16652_v0 = vpack.i.b16 %v8216_v46, %v8448_v26  ;;  %v16624_v46 = vld.sshfl [vmem:[%s24635_s0 + $0x84] sm:$0x1 pattern:$0x75316420]  ;;  %v17834_v60 = vpop.f32.mrb[49].mxu1 }
 0x188   :  { %v8727_v41 = vrot.slane %v8719_v40, %v19501_v22  ;;  %v8734_v45 = vrot.slane %v8720_v20, %v19501_v22  ;;  %v16653_v5 = vpack.i.b16 %v8217_v49, %v8450_v57  ;;  %v16665_v3 = vcombine.high %v8246_v53, %v8253_v29  ;;  %v21441_v49 = vpop.f32.mrb[52].mxu0  ;;  %v21444_v19 = vpop.f32.mrb[50].mxu1 }
 0x189   :  { %v8462_v50 = vunpack.i.h.s16 %v8291_v10  ;;  %v16654_v14 = vpack.i.b16 %v8231_v38, %v8452_v43  ;;  %v16655_v55 = vpack.i.b16 %v8291_v10, %v8269_v56  ;;  %v21436_v42 = vadd.f32 %v21050_v54, %v21042_v8  ;;  %v17802_v38 = vpop.f32.mrb[53].mxu0  ;;  %v17835_v26 = vpop.f32.mrb[51].mxu1 }
 0x18a   :  { %v8735_v30 = vcombine.low %v8727_v41, %v8734_v45  ;;  %v8736_v27 = vcombine.low %v16652_v0, %v16653_v5  ;;  %v8760_v53 = vrot.slane %v16665_v3, %v19501_v22  ;;  %v8293_v51 = vcombine.high %v8291_v10, %v8291_v10  ;;  %v2684_v40 = vpop.f32.mrb[54].mxu0 }
 0x18b   :  { %v16656_v56 = vpack.i.b16 %v8292_v21, %v8462_v50  ;;  %v8737_v16 = vcombine.low %v16654_v14, %v8253_v29  ;;  %v8307_v8 = vrot.slane %v16622_v12, %v19501_v22  ;;  %v8315_v54 = vcombine.high %v16623_v25, %v16623_v25  ;;  %v17803_v41 = vpop.f32.mrb[55].mxu0 }
 0x18c   :  { %v8746_v20 = vrot.slane %v8736_v27, %v19501_v22  ;;  %v8322_v57 = vrot.slane %v16623_v25, %v19501_v22  ;;  %v8345_v43 = vrot.slane %v16624_v46, %v19501_v22  ;;  %v8353_v0 = vcombine.high %v16625_v35, %v16625_v35 }
 0x18d   :  { %18005 = vmatmul.mubr.msk.bf16.gmra.mrb[124].mxu0 %vm902_vm1, %v8735_v30  ;;  %v8739_v10 = vcombine.low %v16655_v55, %v16656_v56  ;;  %v8753_v45 = vrot.slane %v8737_v16, %v19501_v22  ;;  %v8329_v29 = vrot.slane %v8315_v54, %v19501_v22  ;;  %v8360_v5 = vrot.slane %v16625_v35, %v19501_v22 }
 0x18e   :  { %18008 = vmatprep.mubr.msk.bf16.mxu0 %vm19400_vm0, %v24663_v48  ;;  %v8330_v3 = vcombine.high %v8322_v57, %v8322_v57  ;;  %v8367_v12 = vrot.slane %v8353_v0, %v19501_v22  ;;  %v8464_v25 = vunpack.i.h.s16 %v8292_v21  ;;  %v8466_v50 = vunpack.i.h.s16 %v8293_v51  ;;  %v3656_v16 = vpop.f32.mrb[52].mxu1  ;;  %v16626_v21 = vld.sshfl [vmem:[%s24635_s0 + $0x8c] sm:$0x1 pattern:$0x75316420]  ;;  %s19402_s0 = smov 64  }
 0x18f   :  { %v8767_v14 = vrot.slane %v8739_v10, %v19501_v22  ;;  %v8768_v46 = vcombine.low %v8746_v20, %v8753_v45  ;;  %v8331_v60 = vcombine.high %v8329_v29, %v8329_v29  ;;  %v8368_v30 = vcombine.high %v8360_v5, %v8360_v5  ;;  %v17838_v57 = vpop.f32.mrb[53].mxu1 }
 0x190   :  { %v8369_v55 = vcombine.high %v8367_v12, %v8367_v12  ;;  %v8476_v27 = vunpack.i.h.s16 %v8367_v12  ;;  %v16657_v38 = vpack.i.b16 %v8293_v51, %v8464_v25  ;;  %v16658_v56 = vpack.i.b16 %v8307_v8, %v8466_v50  ;;  %v3659_v45 = vpop.f32.mrb[54].mxu1 }
 0x191   :  { %v8769_v54 = vcombine.low %v8760_v53, %v8767_v14  ;;  %v8776_v35 = vrot.slane %v8768_v46, %v19501_v22  ;;  %v8478_v26 = vunpack.i.h.s16 %v8368_v30  ;;  %v16659_v40 = vpack.i.b16 %v8367_v12, %v8345_v43  ;;  %v4582_v43 = vpop.f32.mrb[56].mxu0  ;;  %v17839_v12 = vpop.f32.mrb[55].mxu1  ;;  %v24678_v14 = vld [vmem:[#allocation7_spill] sm:$0xff] }
 0x192   :  { %v16660_v0 = vpack.i.b16 %v8368_v30, %v8476_v27  ;;  %v8785_v41 = vcombine.low %v16657_v38, %v16658_v56  ;;  %v8786_v20 = vcombine.low %v8329_v29, %v8330_v3  ;;  %v2687_v10 = vadd.f32 %v21080_v36, %v21174_v4  ;;  %v17850_v3 = vpop.f32.mrb[57].mxu0  ;;  %v24679_v27 = vld [vmem:[#allocation9_spill] sm:$0xff] }
 0x193   :  { %v8783_v51 = vrot.slane %v8769_v54, %v19501_v22  ;;  %v16661_v8 = vpack.i.b16 %v8369_v55, %v8478_v26  ;;  %v8787_v53 = vcombine.low %v8331_v60, %v16659_v40  ;;  %v2688_v5 = vadd.f32 %v21088_v1, %v21178_v28  ;;  %v4585_v38 = vpop.f32.mrb[58].mxu0  ;;  %v24680_v28 = vld [vmem:[#allocation8_spill] sm:$0xff]  ;;  %v24681_v26 = vld [vmem:[#allocation11_spill] sm:$0xff] }
 0x194   :  { %v8795_v25 = vrot.slane %v8785_v41, %v19501_v22  ;;  %v8802_v50 = vrot.slane %v8786_v20, %v19501_v22  ;;  %v3662_v46 = vadd.f32 %v24678_v14, %v2687_v10  ;;  %v8383_v29 = vrot.slane %v16626_v21, %v19501_v22  ;;  %v17851_v57 = vpop.f32.mrb[59].mxu0  ;;  %v24683_v20 = vld [vmem:[#allocation13_spill] sm:$0xff] }
 0x195   :  { %v8784_v36 = vcombine.low %v8776_v35, %v8783_v51  ;;  %v8788_v4 = vcombine.low %v16660_v0, %v16661_v8  ;;  %v8809_v30 = vrot.slane %v8787_v53, %v19501_v22  ;;  %v3663_v60 = vadd.f32 %v24679_v27, %v2688_v5 }
 0x196   :  { %v8817_v56 = vcombine.low %v8795_v25, %v8802_v50  ;;  %v8480_v1 = vunpack.i.h.s16 %v8369_v55  ;;  %v2689_v54 = vadd.f32 %v24680_v28, %v21199_v18  ;;  %v2690_v40 = vadd.f32 %v24681_v26, %v21203_v33  ;;  %v24682_v33 = vld [vmem:[#allocation10_spill] sm:$0xff] }
 0x197   :  { %18009 = vmatmul.mubr.msk.bf16.gmra.mrb[128].mxu0 %vm902_vm1, %v8784_v36  ;;  %v8816_v21 = vrot.slane %v8788_v4, %v19501_v22  ;;  %v2691_v35 = vadd.f32 %v21158_v24, %v21245_v61  ;;  %v2692_v0 = vadd.f32 %v21169_v37, %v21257_v2  ;;  %v2693_v55 = vadd.f32 %v21251_v9, %v21306_v6 }
 0x198   :  { %18012 = vmatprep.mubr.msk.bf16.mxu0 %vm19400_vm0, %v24663_v48  ;;  %v8825_v18 = vrot.slane %v8817_v56, %v19501_v22  ;;  %v3664_v41 = vadd.f32 %v24682_v33, %v2689_v54  ;;  %v3665_v10 = vadd.f32 %v24683_v20, %v2690_v40  ;;  %v2694_v37 = vadd.f32 %v21266_v47, %v21310_v23 }
 0x199   :  { %v8818_v45 = vcombine.low %v8809_v30, %v8816_v21  ;;  %v3666_v51 = vadd.f32 %v21164_v32, %v2691_v35  ;;  %v3667_v24 = vadd.f32 %v21183_v59, %v2692_v0  ;;  %v16662_v61 = vpack.i.b16 %v8383_v29, %v8480_v1 }
 0x19a   :  { %v3668_v9 = vadd.f32 %v21261_v39, %v2693_v55  ;;  %v2695_v2 = vadd.f32 %v21326_v31, %v21331_v63  ;;  %v2696_v6 = vadd.f32 %v21342_v17, %v21340_v44  ;;  %v3669_v53 = vadd.f32 %v21271_v11, %v2694_v37 }
 0x19b   :  { %v8832_v8 = vrot.slane %v8818_v45, %v19501_v22  ;;  %v2697_v32 = vadd.f32 %v21401_v13, %v21384_v62  ;;  %v2698_v59 = vadd.f32 %v21409_v52, %v21395_v15  ;;  %v2699_v23 = vadd.f32 %v21441_v49, %v21436_v42 }
 0x19c   :  { %v3670_v47 = vadd.f32 %v21356_v58, %v2695_v2  ;;  %v3671_v39 = vadd.f32 %v21369_v7, %v2696_v6  ;;  %v4636_v11 = vadd.f32 %v4582_v43, %v3662_v46  ;;  %v4637_v62 = vadd.f32 %v4585_v38, %v3663_v60  ;;  %v5780_v13 = vpop.f32.mrb[56].mxu1 }
 0x19d   :  { %v8833_v31 = vcombine.low %v8825_v18, %v8832_v8  ;;  %v21510_v63 = vadd.f32 %v21432_v34, %v2697_v32  ;;  %v21513_v44 = vadd.f32 %v21444_v19, %v2698_v59  ;;  %v21515_v17 = vadd.f32 %v3656_v16, %v2699_v23  ;;  %v17886_v15 = vpop.f32.mrb[57].mxu1 }
 0x19e   :  { %v8840_v58 = vrot.slane %v16662_v61, %v19501_v22  ;;  %v21519_v7 = vadd.f32 %v5780_v13, %v4636_v11  ;;  %v5783_v52 = vpop.f32.mrb[58].mxu1  ;;  %vm9449_vm2 = vcmask 516096   ;;  %vm9455_vm3 = vcmask 1040896  }
 0x19f   :  { %18013 = vmatmul.mubr.msk.bf16.gmra.mrb[132].mxu0 %vm902_vm1, %v8833_v31  ;;  %v21523_v34 = vadd.f32 %v5783_v52, %v4637_v62  ;;  %v17887_v42 = vpop.f32.mrb[59].mxu1  ;;  %vm15983_vm4 = vcmask 41984  }
 0x1a0   :  { %18016 = vmatprep.mubr.msk.bf16.mxu0 %vm19400_vm0, %v24663_v48  ;;  %v8847_v49 = vrot.slane %v8840_v58, %v19501_v22 }
 0x1a1   :  { %v4590_v19 = vpop.f32.mrb[60].mxu0 }
 0x1a2   :  { %v4638_v16 = vadd.f32 %v4590_v19, %v3664_v41  ;;  %v17854_v5 = vpop.f32.mrb[61].mxu0 }
 0x1a3   :  { %v4593_v43 = vpop.f32.mrb[62].mxu0 }
 0x1a4   :  { %v4639_v12 = vadd.f32 %v4593_v43, %v3665_v10  ;;  %v17855_v25 = vpop.f32.mrb[63].mxu0 }
 0x1a7   :  { %18017 = vmatmul.mubr.msk.bf16.gmra.mrb[136].mxu0 %vm902_vm1, %v8847_v49 }
 0x1aa   :  { %v5788_v50 = vpop.f32.mrb[60].mxu1 }
 0x1ab   :  { %v21527_v14 = vadd.f32 %v5788_v50, %v4638_v16  ;;  %v17890_v46 = vpop.f32.mrb[61].mxu1 }
 0x1ac   :  { %v5791_v29 = vpop.f32.mrb[62].mxu1 }
 0x1ad   :  { %v21529_v48 = vadd.f32 %v5791_v29, %v4639_v12  ;;  %v17891_v3 = vpop.f32.mrb[63].mxu1  ;;  %v4598_v36 = vpop.f32.mrb[64].mxu0 }
 0x1ae   :  { %v4640_v4 = vadd.f32 %v4598_v36, %v3666_v51  ;;  %v17858_v30 = vpop.f32.mrb[65].mxu0 }
 0x1af   :  { %v4601_v27 = vpop.f32.mrb[66].mxu0 }
 0x1b0   :  { %v4641_v60 = vadd.f32 %v4601_v27, %v3667_v24  ;;  %v17859_v38 = vpop.f32.mrb[67].mxu0 }
 0x1b8   :  { %v5796_v56 = vpop.f32.mrb[64].mxu1 }
 0x1b9   :  { %v21531_v1 = vadd.f32 %v5796_v56, %v4640_v4  ;;  %v17894_v28 = vpop.f32.mrb[65].mxu1 }
 0x1ba   :  { %v5799_v54 = vpop.f32.mrb[66].mxu1 }
 0x1bb   :  { %v21533_v26 = vadd.f32 %v5799_v54, %v4641_v60  ;;  %v17895_v40 = vpop.f32.mrb[67].mxu1 }
 0x1bf   :  { %v4606_v57 = vpop.f32.mrb[68].mxu0 }
 0x1c0   :  { %v4642_v21 = vadd.f32 %v4606_v57, %v3668_v9  ;;  %v17862_v35 = vpop.f32.mrb[69].mxu0 }
 0x1c1   :  { %v4609_v0 = vpop.f32.mrb[70].mxu0 }
 0x1c2   :  { %v4643_v55 = vadd.f32 %v4609_v0, %v3669_v53  ;;  %v17863_v18 = vpop.f32.mrb[71].mxu0 }
 0x1c8   :  { %v5804_v33 = vpop.f32.mrb[68].mxu1 }
 0x1c9   :  { %v21535_v41 = vadd.f32 %v5804_v33, %v4642_v21  ;;  %v17898_v20 = vpop.f32.mrb[69].mxu1 }
 0x1ca   :  { %v5807_v10 = vpop.f32.mrb[70].mxu1 }
 0x1cb   :  { %v21537_v45 = vadd.f32 %v5807_v10, %v4643_v55  ;;  %v17899_v51 = vpop.f32.mrb[71].mxu1 }
 0x1ce   :  { %v4614_v24 = vpop.f32.mrb[72].mxu0 }
 0x1cf   :  { %v4644_v37 = vadd.f32 %v4614_v24, %v3670_v47  ;;  %v17866_v61 = vpop.f32.mrb[73].mxu0 }
 0x1d0   :  { %v4617_v2 = vpop.f32.mrb[74].mxu0 }
 0x1d1   :  { %v4645_v6 = vadd.f32 %v4617_v2, %v3671_v39  ;;  %v17867_v8 = vpop.f32.mrb[75].mxu0 }
 0x1d5   :  { %v5812_v32 = vpop.f32.mrb[72].mxu1 }
 0x1d6   :  { %v21539_v9 = vadd.f32 %v5812_v32, %v4644_v37  ;;  %v17902_v59 = vpop.f32.mrb[73].mxu1 }
 0x1d7   :  { %v5815_v53 = vpop.f32.mrb[74].mxu1 }
 0x1d8   :  { %v21541_v23 = vadd.f32 %v5815_v53, %v4645_v6  ;;  %v17903_v31 = vpop.f32.mrb[75].mxu1 }
 0x1db   :  { %v4622_v11 = vpop.f32.mrb[76].mxu0 }
 0x1dc   :  { %v4646_v62 = vadd.f32 %v4622_v11, %v21510_v63  ;;  %v17870_v13 = vpop.f32.mrb[77].mxu0 }
 0x1dd   :  { %v4625_v58 = vpop.f32.mrb[78].mxu0 }
 0x1de   :  { %v4647_v15 = vadd.f32 %v4625_v58, %v21513_v44  ;;  %v17871_v47 = vpop.f32.mrb[79].mxu0 }
 0x1e3   :  { %v4630_v52 = vpop.f32.mrb[80].mxu0 }
 0x1e4   :  { %v4648_v39 = vadd.f32 %v4630_v52, %v21515_v17  ;;  %v17874_v42 = vpop.f32.mrb[81].mxu0  ;;  %v5820_v49 = vpop.f32.mrb[76].mxu1 }
 0x1e5   :  { %v4633_v19 = vpop.f32.mrb[82].mxu0  ;;  %v21546_v16 = vadd.f32 %v5820_v49, %v4646_v62  ;;  %v17906_v5 = vpop.f32.mrb[77].mxu1 }
 0x1e6   :  { %v17875_v43 = vpop.f32.mrb[83].mxu0  ;;  %v5823_v12 = vpop.f32.mrb[78].mxu1  ;;  %v18162_v5 = vld [vmem:[%s24638_s3] ss:$16 sps:$4 sm:$0xff]  }
 0x1e7   :  { %v21548_v25 = vadd.f32 %v5823_v12, %v4647_v15  ;;  %v17907_v50 = vpop.f32.mrb[79].mxu1  ;;  %v18167_v43 = vld [vmem:[%s24638_s3 + $0xc] ss:$16 sps:$4 sm:$0xff]   ;;  %v18170_v12 = vld [vmem:[%s24638_s3 + $0x24] ss:$16 sps:$4 sm:$0xff]  }
 0x1e8   :  { %v18173_v50 = vld [vmem:[%s24638_s3 + $0x2c] ss:$16 sps:$4 sm:$0xff]   ;;  %15099 = vmatprep.subr.bf16.mxu0 %v18167_v43  ;;  %v18212_v43 = vld [vmem:[%s24638_s3 + $0x104] ss:$16 sps:$4 sm:$0xff]  }
 0x1ec   :  { %v5828_v63 = vpop.f32.mrb[80].mxu1 }
 0x1ed   :  { %v21550_v46 = vadd.f32 %v5828_v63, %v4648_v39  ;;  %v17910_v29 = vpop.f32.mrb[81].mxu1  ;;  %v18168_v63 = vld [vmem:[%s24638_s3 + $0x20] ss:$16 sps:$4 sm:$0xff]  }
 0x1ee   :  { %v5831_v44 = vpop.f32.mrb[82].mxu1  ;;  %v6755_v3 = vpop.f32.mrb[84].mxu0  ;;  %v18171_v29 = vld [vmem:[%s24638_s3 + $0x28] ss:$16 sps:$4 sm:$0xff]  }
 0x1ef   :  { %v17911_v36 = vpop.f32.mrb[83].mxu1  ;;  %v6809_v17 = vadd.f32 %v6755_v3, %v21519_v7  ;;  %v17922_v4 = vpop.f32.mrb[85].mxu0  ;;  %v18176_v44 = vld [vmem:[%s24638_s3 + $0x44] ss:$16 sps:$4 sm:$0xff]   ;;  %v18179_v3 = vld [vmem:[%s24638_s3 + $0x4c] ss:$16 sps:$4 sm:$0xff]  }
 0x1f0   :  { %v6758_v30 = vpop.f32.mrb[86].mxu0 }
 0x1f1   :  { %v6810_v27 = vadd.f32 %v6758_v30, %v21523_v34  ;;  %v17923_v60 = vpop.f32.mrb[87].mxu0  ;;  %v18174_v30 = vld [vmem:[%s24638_s3 + $0x40] ss:$16 sps:$4 sm:$0xff]  }
 0x1f2   :  { %v18177_v60 = vld [vmem:[%s24638_s3 + $0x48] ss:$16 sps:$4 sm:$0xff]  }
 0x1f4   :  { %v7729_v38 = vpop.f32.mrb[84].mxu1 }
 0x1f5   :  { %v21554_v56 = vadd.f32 %v7729_v38, %v6809_v17  ;;  %v17958_v28 = vpop.f32.mrb[85].mxu1  ;;  %v18182_v38 = vld [vmem:[%s24638_s3 + $0x64] ss:$16 sps:$4 sm:$0xff]  }
 0x1f6   :  { %v7732_v54 = vpop.f32.mrb[86].mxu1 }
 0x1f7   :  { %v21556_v40 = vadd.f32 %v7732_v54, %v6810_v27  ;;  %v17959_v57 = vpop.f32.mrb[87].mxu1  ;;  %v18185_v54 = vld [vmem:[%s24638_s3 + $0x6c] ss:$16 sps:$4 sm:$0xff]  }
 0x1f8   :  { %v18180_v57 = vld [vmem:[%s24638_s3 + $0x60] ss:$16 sps:$4 sm:$0xff]  }
 0x1fb   :  { %v6763_v21 = vpop.f32.mrb[88].mxu0 }
 0x1fc   :  { %v6811_v35 = vadd.f32 %v6763_v21, %v21527_v14  ;;  %v17926_v0 = vpop.f32.mrb[89].mxu0  ;;  %v18183_v21 = vld [vmem:[%s24638_s3 + $0x68] ss:$16 sps:$4 sm:$0xff]  }
 0x1fd   :  { %v6766_v55 = vpop.f32.mrb[90].mxu0 }
 0x1fe   :  { %v6812_v7 = vadd.f32 %v6766_v55, %v21529_v48  ;;  %v7737_v18 = vpop.f32.mrb[88].mxu1  ;;  %v17927_v33 = vpop.f32.mrb[91].mxu0 }
 0x1ff   :  { %v21560_v20 = vadd.f32 %v7737_v18, %v6811_v35  ;;  %v17962_v34 = vpop.f32.mrb[89].mxu1  ;;  %v18191_v35 = vld [vmem:[%s24638_s3 + $0x8c] ss:$16 sps:$4 sm:$0xff]   ;;  %v18186_v18 = vld [vmem:[%s24638_s3 + $0x80] ss:$16 sps:$4 sm:$0xff]  }
 0x200   :  { %v7740_v10 = vpop.f32.mrb[90].mxu1  ;;  %v18189_v34 = vld [vmem:[%s24638_s3 + $0x88] ss:$16 sps:$4 sm:$0xff]  }
 0x201   :  { %v21562_v51 = vadd.f32 %v7740_v10, %v6812_v7  ;;  %v17963_v24 = vpop.f32.mrb[91].mxu1  ;;  %v18194_v10 = vld [vmem:[%s24638_s3 + $0xa4] ss:$16 sps:$4 sm:$0xff]  }
 0x207   :  { %v6771_v37 = vpop.f32.mrb[92].mxu0 }
 0x208   :  { %v6813_v61 = vadd.f32 %v6771_v37, %v21531_v1  ;;  %v17930_v2 = vpop.f32.mrb[93].mxu0 }
 0x209   :  { %v6774_v6 = vpop.f32.mrb[94].mxu0  ;;  %v18192_v2 = vld [vmem:[%s24638_s3 + $0xa0] ss:$16 sps:$4 sm:$0xff]  }
 0x20a   :  { %v6814_v14 = vadd.f32 %v6774_v6, %v21533_v26  ;;  %v17931_v8 = vpop.f32.mrb[95].mxu0 }
 0x20b   :  { %v7745_v32 = vpop.f32.mrb[92].mxu1  ;;  %v18200_v8 = vld [vmem:[%s24638_s3 + $0xc4] ss:$16 sps:$4 sm:$0xff]  }
 0x20c   :  { %v21566_v59 = vadd.f32 %v7745_v32, %v6813_v61  ;;  %v17966_v48 = vpop.f32.mrb[93].mxu1  ;;  %v18197_v61 = vld [vmem:[%s24638_s3 + $0xac] ss:$16 sps:$4 sm:$0xff]  }
 0x20d   :  { %v7748_v53 = vpop.f32.mrb[94].mxu1 }
 0x20e   :  { %v21568_v31 = vadd.f32 %v7748_v53, %v6814_v14  ;;  %v17967_v11 = vpop.f32.mrb[95].mxu1  ;;  %v18195_v14 = vld [vmem:[%s24638_s3 + $0xa8] ss:$16 sps:$4 sm:$0xff]   ;;  %v18203_v53 = vld [vmem:[%s24638_s3 + $0xcc] ss:$16 sps:$4 sm:$0xff]  }
 0x215   :  { %v6779_v62 = vpop.f32.mrb[96].mxu0 }
 0x216   :  { %v6815_v13 = vadd.f32 %v6779_v62, %v21535_v41  ;;  %v17934_v58 = vpop.f32.mrb[97].mxu0  ;;  %v18164_v41 = vld [vmem:[%s24638_s3 + $0x4] ss:$16 sps:$4 sm:$0xff]  }
 0x217   :  { %v6782_v15 = vpop.f32.mrb[98].mxu0  ;;  %14566 = vmatprep.subr.bf16.mxu1 %v18164_v41  ;;  %v18198_v58 = vld [vmem:[%s24638_s3 + $0xc0] ss:$16 sps:$4 sm:$0xff]  }
 0x218   :  { %v6816_v1 = vadd.f32 %v6782_v15, %v21537_v45  ;;  %v17935_v47 = vpop.f32.mrb[99].mxu0  ;;  %v18165_v45 = vld [vmem:[%s24638_s3 + $0x8] ss:$16 sps:$4 sm:$0xff]   ;;  %14567 = vmatpush1.bf16.msra.mxu1 %v18162_v5  ;;  %v18206_v15 = vld [vmem:[%s24638_s3 + $0xe4] ss:$16 sps:$4 sm:$0xff]  }
 0x219   :  { %v7753_v52 = vpop.f32.mrb[96].mxu1  ;;  %15100 = vmatpush1.bf16.msra.mxu0 %v18165_v45  ;;  %14568 = vmatprep.subr.bf16.mxu1 %v18170_v12  ;;  %v18207_v45 = vld [vmem:[%s24638_s3 + $0xe8] ss:$16 sps:$4 sm:$0xff]  }
 0x21a   :  { %v21572_v39 = vadd.f32 %v7753_v52, %v6815_v13  ;;  %v17970_v26 = vpop.f32.mrb[97].mxu1  ;;  %15101 = vmatprep.subr.bf16.mxu0 %v18173_v50 }
 0x21b   :  { %v7756_v42 = vpop.f32.mrb[98].mxu1 }
 0x21c   :  { %v21574_v49 = vadd.f32 %v7756_v42, %v6816_v1  ;;  %v17971_v19 = vpop.f32.mrb[99].mxu1  ;;  %14569 = vmatpush1.bf16.msra.mxu1 %v18168_v63  ;;  %v18204_v42 = vld [vmem:[%s24638_s3 + $0xe0] ss:$16 sps:$4 sm:$0xff]   ;;  %v18215_v63 = vld [vmem:[%s24638_s3 + $0x10c] ss:$16 sps:$4 sm:$0xff]  }
 0x21d   :  { %15102 = vmatpush1.bf16.msra.mxu0 %v18171_v29  ;;  %14570 = vmatprep.subr.bf16.mxu1 %v18176_v44 }
 0x21e   :  { %15103 = vmatprep.subr.bf16.mxu0 %v18179_v3  ;;  %v18210_v3 = vld [vmem:[%s24638_s3 + $0x100] ss:$16 sps:$4 sm:$0xff]  }
 0x220   :  { %14571 = vmatpush1.bf16.msra.mxu1 %v18174_v30 }
 0x221   :  { %15104 = vmatpush1.bf16.msra.mxu0 %v18177_v60  ;;  %14572 = vmatprep.subr.bf16.mxu1 %v18182_v38  ;;  %v21702_v38 = vld [vmem:[%s24637_s2] ss:$0 sm:$0xff]  ;;  %s19404_s2 = smov [#allocation3]  }
 0x222   :  { %15105 = vmatprep.subr.bf16.mxu0 %v18185_v54  ;;  %s15991_s27 = sshll.u32 %s19404_s2, 4  ;;  %s15992_s27 = int_to_ptr.vmem [resolvable:$true] %s15991_s27 }
 0x223   :  { %p19380_p1 = scmp.lt.s32.totalorder %s15992_s27, %s15992_s27 }
 0x224   :  { %v6787_v36 = vpop.f32.mrb[100].mxu0  ;;  %14573 = vmatpush1.bf16.msra.mxu1 %v18180_v57 }
 0x225   :  { %v6817_v17 = vadd.f32 %v6787_v36, %v21539_v9  ;;  %v17938_v4 = vpop.f32.mrb[101].mxu0  ;;  %15106 = vmatpush1.bf16.msra.mxu0 %v18183_v21  ;;  %v18213_v36 = vld [vmem:[%s24638_s3 + $0x108] ss:$16 sps:$4 sm:$0xff]  }
 0x226   :  { %v6790_v27 = vpop.f32.mrb[102].mxu0  ;;  %15107 = vmatprep.subr.bf16.mxu0 %v18191_v35 }
 0x227   :  { %v6818_v28 = vadd.f32 %v6790_v27, %v21541_v23  ;;  %v17939_v9 = vpop.f32.mrb[103].mxu0  ;;  %v18188_v23 = vld [vmem:[%s24638_s3 + $0x84] ss:$16 sps:$4 sm:$0xff]  }
 0x228   :  { %14574 = vmatprep.subr.bf16.mxu1 %v18188_v23 }
 0x229   :  { %14575 = vmatpush1.bf16.msra.mxu1 %v18186_v18  ;;  %15108 = vmatpush1.bf16.msra.mxu0 %v18189_v34 }
 0x22a   :  { %v7761_v0 = vpop.f32.mrb[100].mxu1  ;;  %14576 = vmatprep.subr.bf16.mxu1 %v18194_v10  ;;  %15109 = vmatprep.subr.bf16.mxu0 %v18197_v61 }
 0x22b   :  { %v21632_v55 = vadd.f32 %v7761_v0, %v6817_v17  ;;  %v17974_v7 = vpop.f32.mrb[101].mxu1 }
 0x22c   :  { %v7764_v33 = vpop.f32.mrb[102].mxu1 }
 0x22d   :  { %v21643_v24 = vadd.f32 %v7764_v33, %v6818_v28  ;;  %v17975_v37 = vpop.f32.mrb[103].mxu1  ;;  %14577 = vmatpush1.bf16.msra.mxu1 %v18192_v2  ;;  %15110 = vmatpush1.bf16.msra.mxu0 %v18195_v14 }
 0x22e   :  { %14578 = vmatprep.subr.bf16.mxu1 %v18200_v8  ;;  %15111 = vmatprep.subr.bf16.mxu0 %v18203_v53 }
 0x231   :  { %v6795_v6 = vpop.f32.mrb[104].mxu0  ;;  %14579 = vmatpush1.bf16.msra.mxu1 %v18198_v58 }
 0x232   :  { %v6819_v32 = vadd.f32 %v6795_v6, %v21546_v16  ;;  %v17942_v48 = vpop.f32.mrb[105].mxu0  ;;  %v18201_v16 = vld [vmem:[%s24638_s3 + $0xc8] ss:$16 sps:$4 sm:$0xff]   ;;  %14580 = vmatprep.subr.bf16.mxu1 %v18206_v15 }
 0x233   :  { %v6798_v11 = vpop.f32.mrb[106].mxu0  ;;  %15112 = vmatpush1.bf16.msra.mxu0 %v18201_v16 }
 0x234   :  { %v6820_v62 = vadd.f32 %v6798_v11, %v21548_v25  ;;  %v17943_v13 = vpop.f32.mrb[107].mxu0  ;;  %v18209_v25 = vld [vmem:[%s24638_s3 + $0xec] ss:$16 sps:$4 sm:$0xff]  }
 0x235   :  { %v7769_v1 = vpop.f32.mrb[104].mxu1  ;;  %15113 = vmatprep.subr.bf16.mxu0 %v18209_v25  ;;  %14581 = vmatpush1.bf16.msra.mxu1 %v18204_v42 }
 0x236   :  { %v21674_v47 = vadd.f32 %v7769_v1, %v6819_v32  ;;  %v17978_v52 = vpop.f32.mrb[105].mxu1  ;;  %14582 = vmatprep.subr.bf16.mxu1 %v18212_v43 }
 0x237   :  { %v7772_v26 = vpop.f32.mrb[106].mxu1  ;;  %15114 = vmatpush1.bf16.msra.mxu0 %v18207_v45 }
 0x238   :  { %v21679_v19 = vadd.f32 %v7772_v26, %v6820_v62  ;;  %v17979_v41 = vpop.f32.mrb[107].mxu1  ;;  %15115 = vmatprep.subr.bf16.mxu0 %v18215_v63 }
 0x239   :  { %v6803_v5 = vpop.f32.mrb[108].mxu0  ;;  %14583 = vmatpush1.bf16.msra.mxu1 %v18210_v3 }
 0x23a   :  { %v6821_v12 = vadd.f32 %v6803_v5, %v21550_v46  ;;  %v17946_v50 = vpop.f32.mrb[109].mxu0 }
 0x23b   :  { %v6806_v29 = vpop.f32.mrb[110].mxu0  ;;  %15116 = vmatpush1.bf16.msra.mxu0 %v18213_v36 }
 0x23c   :  { %v17947_v44 = vpop.f32.mrb[111].mxu0 }
 0x23d   :  { %v7777_v46 = vpop.f32.mrb[108].mxu1 }
 0x23e   :  { %v21697_v17 = vadd.f32 %v7777_v46, %v6821_v12  ;;  %v17982_v4 = vpop.f32.mrb[109].mxu1 }
 0x23f   :  { %v7780_v30 = vpop.f32.mrb[110].mxu1 }
 0x240   :  { %v17983_v27 = vpop.f32.mrb[111].mxu1 }
 0x244   :  { %v8927_v60 = vpop.f32.mrb[112].mxu0 }
 0x245   :  { %v8981_v28 = vadd.f32 %v8927_v60, %v21554_v56  ;;  %v17994_v9 = vpop.f32.mrb[113].mxu0 }
 0x246   :  { %v8930_v54 = vpop.f32.mrb[114].mxu0 }
 0x247   :  { %v9001_v57 = vadd.f32 %v21702_v38, %v8981_v28  ;;  %v8982_v21 = vadd.f32 %v8930_v54, %v21556_v40  ;;  %v17995_v23 = vpop.f32.mrb[115].mxu0 }
 0x249   :  { %v9002_v35 = vadd.f32 %v21702_v38, %v8982_v21  ;;  %v9014_v0 = vmax.f32 %v9001_v57, 0.0 }
 0x24b   :  { %v9015_v7 = vmax.f32 %v9002_v35, 0.0 }
 0x24d   :  { %v9027_v33 = vpack.c.bf16 %v9015_v7, %v9014_v0  ;;  %v16678_v34 = vpack.c.bf16 %v9015_v7, %v9015_v7 }
 0x24f   :  { %v8935_v18 = vpop.f32.mrb[116].mxu0  ;;  %v9048_v56 = vrot.slane %v9027_v33, %v19501_v22  ;;  %v9055_v14 = vrot.slane %v16678_v34, %v19501_v22 }
 0x250   :  { %v8983_v10 = vadd.f32 %v8935_v18, %v21560_v20  ;;  %v17998_v37 = vpop.f32.mrb[117].mxu0 }
 0x251   :  { %v8938_v61 = vpop.f32.mrb[118].mxu0  ;;  %v9056_v8 = vcombine.high %v9048_v56, %v9048_v56  ;;  %v9057_v48 = vcombine.high %v9055_v14, %v9055_v14  ;;  %v21715_v20 = vrot.slane %v9055_v14, %v19501_v22  ;;  %v21722_v25 = vrot.slane %v9048_v56, %v19501_v22 }
 0x252   :  { %v8984_v2 = vadd.f32 %v8938_v61, %v21562_v51  ;;  %v17999_v6 = vpop.f32.mrb[119].mxu0  ;;  %v9003_v40 = vadd.f32 %v21702_v38, %v8983_v10 }
 0x253   :  { %v21719_v1 = vrot.slane %v9056_v8, %v19501_v22  ;;  %v9358_v43 = vunpack.i.h.s16 %v21715_v20  ;;  %v9350_v3 = vunpack.i.h.s16 %v21722_v25  ;;  %v21744_v36 = vcombine.high %v21715_v20, %v21715_v20 }
 0x254   :  { %v9004_v32 = vadd.f32 %v21702_v38, %v8984_v2  ;;  %v9016_v53 = vmax.f32 %v9003_v40, 0.0 }
 0x255   :  { %v21735_v63 = vcombine.high %v21719_v1, %v21719_v1  ;;  %v9352_v21 = vunpack.i.h.s16 %v21719_v1  ;;  %v9362_v37 = vunpack.i.h.s16 %v21744_v36 }
 0x256   :  { %v9017_v11 = vmax.f32 %v9004_v32, 0.0  ;;  %v18216_v32 = vld [vmem:[%s24638_s3 + $0x120] ss:$16 sps:$4 sm:$0xff]  }
 0x257   :  { %v9356_v0 = vunpack.i.h.s16 %v21735_v63 }
 0x258   :  { %v8943_v62 = vpop.f32.mrb[120].mxu0  ;;  %v9028_v16 = vpack.c.bf16 %v9017_v11, %v9016_v53  ;;  %v16679_v51 = vpack.c.bf16 %v9017_v11, %v9017_v11  ;;  %v18219_v53 = vld [vmem:[%s24638_s3 + $0x128] ss:$16 sps:$4 sm:$0xff]  }
 0x259   :  { %v8985_v13 = vadd.f32 %v8943_v62, %v21566_v59  ;;  %v18002_v58 = vpop.f32.mrb[121].mxu0  ;;  %v21729_v59 = vrot.slane %v9057_v48, %v19501_v22  ;;  %v18218_v48 = vld [vmem:[%s24638_s3 + $0x124] ss:$16 sps:$4 sm:$0xff]  }
 0x25a   :  { %v8946_v15 = vpop.f32.mrb[122].mxu0  ;;  %v9097_v5 = vrot.slane %v9028_v16, %v19501_v22  ;;  %v9104_v41 = vrot.slane %v16679_v51, %v19501_v22  ;;  %v18221_v16 = vld [vmem:[%s24638_s3 + $0x12c] ss:$16 sps:$4 sm:$0xff]   ;;  %14584 = vmatprep.subr.bf16.mxu1 %v18218_v48 }
 0x25b   :  { %v9005_v52 = vadd.f32 %v21702_v38, %v8985_v13  ;;  %v8986_v26 = vadd.f32 %v8946_v15, %v21568_v31  ;;  %v18003_v42 = vpop.f32.mrb[123].mxu0  ;;  %v21739_v31 = vcombine.high %v21722_v25, %v21722_v25  ;;  %v9360_v27 = vunpack.i.h.s16 %v21729_v59  ;;  %15117 = vmatprep.subr.bf16.mxu0 %v18221_v16  ;;  %14585 = vmatpush1.bf16.msra.mxu1 %v18216_v32  ;;  %v18236_v16 = vld [vmem:[%s24638_s3 + $0x184] ss:$16 sps:$4 sm:$0xff]  }
 0x25c   :  { %v9105_v12 = vcombine.high %v9097_v5, %v9097_v5  ;;  %v9106_v50 = vcombine.high %v9104_v41, %v9104_v41  ;;  %v21747_v46 = vrot.slane %v9097_v5, %v19501_v22  ;;  %v21759_v23 = vrot.slane %v9104_v41, %v19501_v22  ;;  %15118 = vmatpush1.bf16.msra.mxu0 %v18219_v53 }
 0x25d   :  { %v9006_v45 = vadd.f32 %v21702_v38, %v8986_v26  ;;  %v9018_v29 = vmax.f32 %v9005_v52, 0.0  ;;  %v9354_v7 = vunpack.i.h.s16 %v21739_v31  ;;  %v21765_v18 = vcombine.high %v21729_v59, %v21729_v59 }
 0x25e   :  { %v21750_v4 = vrot.slane %v9105_v12, %v19501_v22  ;;  %v21754_v60 = vrot.slane %v9106_v50, %v19501_v22  ;;  %v21778_v2 = vcombine.high %v21747_v46, %v21747_v46  ;;  %v9366_v13 = vunpack.i.h.s16 %v21747_v46 }
 0x25f   :  { %v9019_v44 = vmax.f32 %v9006_v45, 0.0  ;;  %v9364_v62 = vunpack.i.h.s16 %v21765_v18  ;;  %v21804_v58 = vcombine.high %v21759_v23, %v21759_v23 }
 0x260   :  { %v8951_v30 = vpop.f32.mrb[124].mxu0  ;;  %v21774_v56 = vcombine.high %v21750_v4, %v21750_v4  ;;  %v21782_v6 = vcombine.high %v21754_v60, %v21754_v60  ;;  %v9368_v15 = vunpack.i.h.s16 %v21750_v4 }
 0x261   :  { %v9029_v28 = vpack.c.bf16 %v9019_v44, %v9018_v29  ;;  %v16680_v9 = vpack.c.bf16 %v9019_v44, %v9019_v44  ;;  %v8987_v54 = vadd.f32 %v8951_v30, %v21572_v39  ;;  %v18006_v57 = vpop.f32.mrb[125].mxu0  ;;  %v18222_v30 = vld [vmem:[%s24638_s3 + $0x140] ss:$16 sps:$4 sm:$0xff]  }
 0x262   :  { %v8954_v35 = vpop.f32.mrb[126].mxu0  ;;  %v9372_v41 = vunpack.i.h.s16 %v21774_v56 }
 0x263   :  { %v9146_v33 = vrot.slane %v9029_v28, %v19501_v22  ;;  %v9153_v34 = vrot.slane %v16680_v9, %v19501_v22  ;;  %v8988_v39 = vadd.f32 %v8954_v35, %v21574_v49  ;;  %v18007_v10 = vpop.f32.mrb[127].mxu0  ;;  %v9007_v61 = vadd.f32 %v21702_v38, %v8987_v54  ;;  %v18224_v28 = vld [vmem:[%s24638_s3 + $0x144] ss:$16 sps:$4 sm:$0xff]   ;;  %v18225_v9 = vld [vmem:[%s24638_s3 + $0x148] ss:$16 sps:$4 sm:$0xff]  }
 0x264   :  { %14586 = vmatprep.subr.bf16.mxu1 %v18224_v28 }
 0x265   :  { %v9154_v14 = vcombine.high %v9146_v33, %v9146_v33  ;;  %v9155_v40 = vcombine.high %v9153_v34, %v9153_v34  ;;  %v21785_v49 = vrot.slane %v9146_v33, %v19501_v22  ;;  %v21788_v8 = vrot.slane %v9153_v34, %v19501_v22  ;;  %14587 = vmatpush1.bf16.msra.mxu1 %v18222_v30 }
 0x266   :  { %v9008_v11 = vadd.f32 %v21702_v38, %v8988_v39  ;;  %v9020_v42 = vmax.f32 %v9007_v61, 0.0  ;;  %v18227_v39 = vld [vmem:[%s24638_s3 + $0x14c] ss:$16 sps:$4 sm:$0xff]  }
 0x267   :  { %v21810_v51 = vrot.slane %v9154_v14, %v19501_v22  ;;  %v21815_v26 = vrot.slane %v9155_v40, %v19501_v22  ;;  %v21823_v29 = vcombine.high %v21785_v49, %v21785_v49  ;;  %v21827_v44 = vcombine.high %v21788_v8, %v21788_v8  ;;  %15119 = vmatprep.subr.bf16.mxu0 %v18227_v39 }
 0x268   :  { %v9021_v5 = vmax.f32 %v9008_v11, 0.0  ;;  %15120 = vmatpush1.bf16.msra.mxu0 %v18225_v9  ;;  %v18231_v9 = vld [vmem:[%s24638_s3 + $0x168] ss:$16 sps:$4 sm:$0xff]  }
 0x269   :  { %v21846_v14 = vcombine.high %v21810_v51, %v21810_v51  ;;  %v21851_v32 = vcombine.high %v21815_v26, %v21815_v26 }
 0x26a   :  { %v9030_v54 = vpack.c.bf16 %v9021_v5, %v9020_v42  ;;  %v16681_v57 = vpack.c.bf16 %v9021_v5, %v9021_v5  ;;  %v8959_v35 = vpop.f32.mrb[128].mxu0 }
 0x26b   :  { %v8989_v10 = vadd.f32 %v8959_v35, %v21632_v55  ;;  %v18010_v61 = vpop.f32.mrb[129].mxu0 }
 0x26c   :  { %v9195_v48 = vrot.slane %v9030_v54, %v19501_v22  ;;  %v9202_v53 = vrot.slane %v16681_v57, %v19501_v22  ;;  %v8962_v11 = vpop.f32.mrb[130].mxu0  ;;  %v18228_v54 = vld [vmem:[%s24638_s3 + $0x160] ss:$16 sps:$4 sm:$0xff]   ;;  %v18230_v57 = vld [vmem:[%s24638_s3 + $0x164] ss:$16 sps:$4 sm:$0xff]  }
 0x26d   :  { %v9009_v42 = vadd.f32 %v21702_v38, %v8989_v10  ;;  %v8990_v5 = vadd.f32 %v8962_v11, %v21643_v24  ;;  %v18011_v35 = vpop.f32.mrb[131].mxu0  ;;  %v18233_v11 = vld [vmem:[%s24638_s3 + $0x16c] ss:$16 sps:$4 sm:$0xff]   ;;  %14588 = vmatprep.subr.bf16.mxu1 %v18230_v57 }
 0x26e   :  { %v9204_v39 = vcombine.high %v9202_v53, %v9202_v53  ;;  %v21868_v30 = vrot.slane %v9195_v48, %v19501_v22  ;;  %v21871_v24 = vrot.slane %v9202_v53, %v19501_v22  ;;  %v9203_v10 = vcombine.high %v9195_v48, %v9195_v48  ;;  %15121 = vmatprep.subr.bf16.mxu0 %v18233_v11  ;;  %v18237_v11 = vld [vmem:[%s24638_s3 + $0x188] ss:$16 sps:$4 sm:$0xff]  }
 0x26f   :  { %v9022_v35 = vmax.f32 %v9009_v42, 0.0  ;;  %v9010_v28 = vadd.f32 %v21702_v38, %v8990_v5  ;;  %14589 = vmatpush1.bf16.msra.mxu1 %v18228_v54  ;;  %15122 = vmatpush1.bf16.msra.mxu0 %v18231_v9 }
 0x270   :  { %v16691_v48 = vpack.i.b16 %v21871_v24, %v9356_v0  ;;  %v9225_v53 = vrot.slane %v9203_v10, %v19501_v22  ;;  %v21888_v40 = vcombine.high %v21871_v24, %v21871_v24  ;;  %v21892_v42 = vcombine.high %v21868_v30, %v21868_v30  ;;  %v18234_v10 = vld [vmem:[%s24638_s3 + $0x180] ss:$16 sps:$4 sm:$0xff]   ;;  %14590 = vmatprep.subr.bf16.mxu1 %v18236_v16  ;;  %v18242_v16 = vld [vmem:[%s24638_s3 + $0x1a4] ss:$16 sps:$4 sm:$0xff]  }
 0x271   :  { %v9023_v5 = vmax.f32 %v9010_v28, 0.0  ;;  %v9232_v55 = vrot.slane %v9204_v39, %v19501_v22  ;;  %v9398_v57 = vunpack.i.h.s16 %v21868_v30 }
 0x272   :  { %v8967_v34 = vpop.f32.mrb[132].mxu0  ;;  %9477 = vrot.lane.b32.xlu1 %v16691_v48, %s19402_s0  ;;  %v16685_v28 = vpack.i.b16 %v9225_v53, %v9350_v3  ;;  %v16695_v54 = vpack.i.b16 %v21888_v40, %v9360_v27  ;;  %v16687_v39 = vpack.i.b16 %v21892_v42, %v9352_v21  ;;  %v9235_v9 = vcombine.high %v9225_v53, %v9225_v53  ;;  %v18239_v48 = vld [vmem:[%s24638_s3 + $0x18c] ss:$16 sps:$4 sm:$0xff]  }
 0x273   :  { %v9031_v61 = vpack.c.bf16 %v9023_v5, %v9022_v35  ;;  %v16682_v50 = vpack.c.bf16 %v9023_v5, %v9023_v5  ;;  %v8991_v3 = vadd.f32 %v8967_v34, %v21674_v47  ;;  %v18014_v33 = vpop.f32.mrb[133].mxu0  ;;  %v16693_v27 = vpack.i.b16 %v9232_v55, %v9358_v43  ;;  %15123 = vmatprep.subr.bf16.mxu0 %v18239_v48  ;;  %v18245_v5 = vld [vmem:[%s24638_s3 + $0x1ac] ss:$16 sps:$4 sm:$0xff]  }
 0x274   :  { %v8970_v0 = vpop.f32.mrb[134].mxu0  ;;  %9452 = vrot.lane.b32.xlu0 %v16685_v28, %s19402_s0  ;;  %v16689_v21 = vpack.i.b16 %v9235_v9, %v9354_v7  ;;  %v21924_v12 = vcombine.high %v9232_v55, %v9232_v55  ;;  %v9404_v45 = vunpack.i.h.s16 %v9235_v9  ;;  %v16684_v52 = vpack.i.b16 %v9398_v57, %v21722_v25  ;;  %14591 = vmatpush1.bf16.msra.mxu1 %v18234_v10  ;;  %v18240_v7 = vld [vmem:[%s24638_s3 + $0x1a0] ss:$16 sps:$4 sm:$0xff]  }
 0x275   :  { %v9244_v35 = vrot.slane %v9031_v61, %v19501_v22  ;;  %v9251_v47 = vrot.slane %v16682_v50, %v19501_v22  ;;  %v9011_v33 = vadd.f32 %v21702_v38, %v8991_v3  ;;  %v8992_v43 = vadd.f32 %v8970_v0, %v21679_v19  ;;  %v18015_v34 = vpop.f32.mrb[135].mxu0  ;;  %15124 = vmatpush1.bf16.msra.mxu0 %v18237_v11  ;;  %v18248_v11 = vld [vmem:[%s24638_s3 + $0x1c4] ss:$16 sps:$4 sm:$0xff]  }
 0x276   :  { %9493 = vrot.lane.b32.xlu1 %v16695_v54, %s19402_s0  ;;  %v21941_v25 = vpack.i.b16 %v21924_v12, %v9362_v37  ;;  %v16690_v50 = vpack.i.b16 %v9404_v45, %v21735_v63  ;;  %9450 = vst.msk [vmem:[#allocation2] sm:$0x1] %vm9449_vm2, %v16684_v52  ;;  %v9408_v19 = vunpack.i.h.s16 %v9232_v55  ;;  %v9400_v61 = vunpack.i.h.s16 %v9225_v53  ;;  %14592 = vmatprep.subr.bf16.mxu1 %v18242_v16  ;;  %v18243_v37 = vld [vmem:[%s24638_s3 + $0x1a8] ss:$16 sps:$4 sm:$0xff]  }
 0x277   :  { %v9252_v57 = vcombine.high %v9244_v35, %v9244_v35  ;;  %v9253_v0 = vcombine.high %v9251_v47, %v9251_v47  ;;  %v9024_v10 = vmax.f32 %v9011_v33, 0.0  ;;  %v9012_v28 = vadd.f32 %v21702_v38, %v8992_v43  ;;  %15125 = vmatprep.subr.bf16.mxu0 %v18245_v5  ;;  %v18246_v33 = vld [vmem:[%s24638_s3 + $0x1c0] ss:$16 sps:$4 sm:$0xff]   ;;  %v18249_v43 = vld [vmem:[%s24638_s3 + $0x1c8] ss:$16 sps:$4 sm:$0xff]  }
 0x278   :  { %9461 = vrot.lane.b32.xlu0 %v16687_v39, %s19402_s0  ;;  %v21954_v63 = vrot.slane %v9244_v35, %v19501_v22  ;;  %v21957_v52 = vrot.slane %v9251_v47, %v19501_v22  ;;  %9475 = vst.msk [vmem:[#allocation2 + $0x3] sm:$0x1] %vm9449_vm2, %v16690_v50  ;;  %v16694_v45 = vpack.i.b16 %v9408_v19, %v21729_v59  ;;  %v9402_v39 = vunpack.i.h.s16 %v21892_v42 }
 0x279   :  { %v16686_v55 = vpack.i.b16 %v9400_v61, %v21719_v1  ;;  %v9025_v53 = vmax.f32 %v9012_v28, 0.0  ;;  %v21963_v54 = vrot.slane %v9252_v57, %v19501_v22  ;;  %v21966_v9 = vrot.slane %v9253_v0, %v19501_v22  ;;  %14593 = vmatpush1.bf16.msra.mxu1 %v18240_v7  ;;  %15126 = vmatpush1.bf16.msra.mxu0 %v18243_v37  ;;  %v18254_v0 = vld [vmem:[%s24638_s3 + $0x1e4] ss:$16 sps:$4 sm:$0xff]  }
 0x27a   :  { %v8975_v48 = vpop.f32.mrb[136].mxu0  ;;  %9469 = vrot.lane.b32.xlu1 %v16689_v21, %s19402_s0  ;;  %v16699_v1 = vpack.i.b16 %v21954_v63, %v9364_v62  ;;  %v16707_v59 = vpack.i.b16 %v21957_v52, %v9372_v41  ;;  %v21981_v42 = vcombine.high %v21954_v63, %v21954_v63  ;;  %v21985_v3 = vcombine.high %v21957_v52, %v21957_v52  ;;  %v18251_v62 = vld [vmem:[%s24638_s3 + $0x1cc] ss:$16 sps:$4 sm:$0xff]  }
 0x27b   :  { %9491 = vst.msk [vmem:[#allocation2 + $0x5] sm:$0x1] %vm9449_vm2, %v16694_v45  ;;  %9459 = vst.msk [vmem:[#allocation2 + $0x1] sm:$0x1] %vm9449_vm2, %v16686_v55  ;;  %v9032_v21 = vpack.c.bf16 %v9025_v53, %v9024_v10  ;;  %v16683_v35 = vpack.c.bf16 %v9025_v53, %v9025_v53  ;;  %v8993_v41 = vadd.f32 %v8975_v48, %v21697_v17  ;;  %v18018_v34 = vpop.f32.mrb[137].mxu0  ;;  %v24684_v7 = vunpack.i.h.s16 %v21759_v23 }
 0x27c   :  { %v16701_v47 = vpack.i.b16 %v21963_v54, %v9366_v13  ;;  %9485 = vrot.lane.b32.xlu0 %v16693_v27, %s19402_s0  ;;  %v22006_v17 = vpack.i.b16 %v21981_v42, %v9368_v15  ;;  %v24685_v16 = vunpack.i.h.s16 %v21754_v60  ;;  %v22020_v19 = vcombine.high %v21963_v54, %v21963_v54  ;;  %v8978_v27 = vpop.f32.mrb[138].mxu0  ;;  %14594 = vmatprep.subr.bf16.mxu1 %v18248_v11  ;;  %v18257_v53 = vld [vmem:[%s24638_s3 + $0x1ec] ss:$16 sps:$4 sm:$0xff]  }
 0x27d   :  { %v22011_v13 = vpack.i.b16 %v21966_v9, %v24684_v7  ;;  %v9293_v61 = vrot.slane %v9032_v21, %v19501_v22  ;;  %v9300_v15 = vrot.slane %v16683_v35, %v19501_v22  ;;  %v9013_v5 = vadd.f32 %v21702_v38, %v8993_v41  ;;  %15127 = vmatprep.subr.bf16.mxu0 %v18251_v62  ;;  %v18019_v11 = vpop.f32.mrb[139].mxu0 }
 0x27e   :  { %v22016_v50 = vpack.i.b16 %v21985_v3, %v24685_v16  ;;  %v22027_v57 = vcombine.high %v21966_v9, %v21966_v9  ;;  %9509 = vrot.lane.b32.xlu1 %v16699_v1, %s19402_s0  ;;  %v24686_v10 = vunpack.i.h.s16 %v21778_v2  ;;  %v16688_v37 = vpack.i.b16 %v9402_v39, %v21739_v31  ;;  %14595 = vmatpush1.bf16.msra.mxu1 %v18246_v33 }
 0x27f   :  { %v24687_v38 = vunpack.i.h.s16 %v21871_v24  ;;  %v9412_v55 = vunpack.i.h.s16 %v21924_v12  ;;  %v9301_v48 = vcombine.high %v9293_v61, %v9293_v61  ;;  %v9302_v1 = vcombine.high %v9300_v15, %v9300_v15  ;;  %15128 = vmatpush1.bf16.msra.mxu0 %v18249_v43  ;;  %14596 = vmatprep.subr.bf16.mxu1 %v18254_v0 }
 0x280   :  { %v22036_v28 = vpack.i.b16 %v22020_v19, %v24686_v10  ;;  %v9026_v21 = vmax.f32 %v9013_v5, 0.0  ;;  %v22047_v35 = vrot.slane %v9293_v61, %v19501_v22  ;;  %9501 = vrot.lane.b32.xlu0 %v21941_v25, %s19402_s0  ;;  %v24688_v31 = vunpack.i.h.s16 %v21804_v58  ;;  %9467 = vst.msk [vmem:[#allocation2 + $0x2] sm:$0x1] %vm9449_vm2, %v16688_v37  ;;  %v18255_v25 = vld [vmem:[%s24638_s3 + $0x1e8] ss:$16 sps:$4 sm:$0xff]   ;;  %15129 = vmatprep.subr.bf16.mxu0 %v18257_v53 }
 0x281   :  { %v16692_v45 = vpack.i.b16 %v24687_v38, %v21715_v20  ;;  %v18252_v20 = vld [vmem:[%s24638_s3 + $0x1e0] ss:$16 sps:$4 sm:$0xff]   ;;  %v22060_v24 = vrot.slane %v9300_v15, %v19501_v22  ;;  %v16698_v39 = vpack.i.b16 %v9412_v55, %v21765_v18  ;;  %v9410_v62 = vunpack.i.h.s16 %v21888_v40  ;;  %v18260_v18 = vld [vmem:[%s24638_s3 + $0x204] ss:$16 sps:$4 sm:$0xff]  }
 0x282   :  { %v22057_v12 = vpack.i.b16 %v22027_v57, %v24688_v31  ;;  %v9033_v41 = vpack.c.bf16 %v9026_v21, %v9026_v21  ;;  %v24689_v33 = vunpack.i.h.s16 %v21782_v6  ;;  %v22075_v34 = vrot.slane %v9301_v48, %v19501_v22  ;;  %9541 = vrot.lane.b32.xlu1 %v16707_v59, %s19402_s0  ;;  %v18263_v59 = vld [vmem:[%s24638_s3 + $0x20c] ss:$16 sps:$4 sm:$0xff]   ;;  %14597 = vmatpush1.bf16.msra.mxu1 %v18252_v20 }
 0x283   :  { %9483 = vst.msk [vmem:[#allocation2 + $0x4] sm:$0x1] %vm9449_vm2, %v16692_v45  ;;  %v22079_v7 = vcombine.high %v22047_v35, %v22047_v35  ;;  %v24690_v40 = vunpack.i.h.s16 %v21846_v14  ;;  %v22091_v27 = vrot.slane %v9302_v1, %v19501_v22  ;;  %v22095_v61 = vcombine.high %v22060_v24, %v22060_v24  ;;  %9507 = vst.msk [vmem:[#allocation2 + $0x7] sm:$0x1] %vm9449_vm2, %v16698_v39 }
 0x284   :  { %v22072_v43 = vpack.i.b16 %v22047_v35, %v24689_v33  ;;  %v16696_v15 = vpack.i.b16 %v9410_v62, %v21744_v36  ;;  %v9341_v5 = vrot.slane %v9033_v41, %v19501_v22  ;;  %v24691_v0 = vunpack.i.h.s16 %v21785_v49  ;;  %9517 = vrot.lane.b32.xlu0 %v16701_v47, %s19402_s0  ;;  %15130 = vmatpush1.bf16.msra.mxu0 %v18255_v25 }
 0x285   :  { %v22088_v16 = vpack.i.b16 %v22060_v24, %v24690_v40  ;;  %v24692_v37 = vunpack.i.h.s16 %v21810_v51  ;;  %v9333_v45 = vcombine.high %v22075_v34, %v22075_v34  ;;  %v24693_v36 = vunpack.i.h.s16 %v21788_v8  ;;  %14607 = vmatprep.subr.bf16.mxu1 %v18260_v18  ;;  %15140 = vmatprep.subr.bf16.mxu0 %v18263_v59 }
 0x286   :  { %v22106_v10 = vpack.i.b16 %v22075_v34, %v24691_v0  ;;  %v24694_v53 = vunpack.i.h.s16 %v21815_v26  ;;  %v9334_v48 = vcombine.high %v22091_v27, %v22091_v27  ;;  %9499 = vst.msk [vmem:[#allocation2 + $0x6] sm:$0x1] %vm9449_vm2, %v16696_v15  ;;  %v9420_v1 = vunpack.i.h.s16 %v22020_v19  ;;  %9525 = vrot.lane.b32.xlu1 %v22006_v17, %s19402_s0 }
 0x287   :  { %v22111_v38 = vpack.i.b16 %v22079_v7, %v24692_v37  ;;  %v22119_v55 = vpack.i.b16 %v22091_v27, %v24693_v36  ;;  %v24695_v47 = vunpack.i.h.s16 %v21823_v29  ;;  %v9348_v20 = vrot.slane %v9341_v5, %v19501_v22 }
 0x288   :  { %v22124_v11 = vpack.i.b16 %v22095_v61, %v24694_v53  ;;  %v9414_v31 = vunpack.i.h.s16 %v21954_v63  ;;  %v9416_v39 = vunpack.i.h.s16 %v21963_v54  ;;  %v24696_v62 = vunpack.i.h.s16 %v21827_v44  ;;  %9549 = vrot.lane.b32.xlu0 %v22011_v13, %s19402_s0  ;;  %v18261_v53 = vld [vmem:[%s24638_s3 + $0x208] ss:$16 sps:$4 sm:$0xff]  }
 0x289   :  { %v22132_v21 = vpack.i.b16 %v9333_v45, %v24695_v47  ;;  %v16706_v19 = vpack.i.b16 %v9420_v1, %v21774_v56  ;;  %v9422_v25 = vunpack.i.h.s16 %v21957_v52  ;;  %v9424_v33 = vunpack.i.h.s16 %v21966_v9  ;;  %v18266_v47 = vld [vmem:[%s24638_s3 + $0x224] ss:$16 sps:$4 sm:$0xff]  }
 0x28a   :  { %v16729_v41 = vpack.i.b16 %v9334_v48, %v24696_v62  ;;  %v24697_v40 = vunpack.i.h.s16 %v21851_v32  ;;  %v9446_v63 = vunpack.i.h.s16 %v9348_v20  ;;  %v16700_v54 = vpack.i.b16 %v9414_v31, %v21747_v46  ;;  %9557 = vrot.lane.b32.xlu1 %v22016_v50, %s19402_s0  ;;  %v18264_v31 = vld [vmem:[%s24638_s3 + $0x220] ss:$16 sps:$4 sm:$0xff]  }
 0x28b   :  { %v16702_v18 = vpack.i.b16 %v9416_v39, %v21750_v4  ;;  %9539 = vst.msk [vmem:[#allocation2 + $0xb] sm:$0x1] %vm9449_vm2, %v16706_v19  ;;  %v16708_v17 = vpack.i.b16 %v9422_v25, %v21759_v23  ;;  %v16710_v56 = vpack.i.b16 %v9424_v33, %v21754_v60  ;;  %v9418_v52 = vunpack.i.h.s16 %v21981_v42  ;;  %v18267_v39 = vld [vmem:[%s24638_s3 + $0x228] ss:$16 sps:$4 sm:$0xff]   ;;  %v18275_v19 = vld [vmem:[%s24638_s3 + $0x24c] ss:$16 sps:$4 sm:$0xff]  }
 0x28c   :  { %v16731_v15 = vpack.i.b16 %v9348_v20, %v24697_v40  ;;  %v9428_v9 = vunpack.i.h.s16 %v22027_v57  ;;  %v16732_v59 = vpack.i.b16 %v9446_v63, %v21868_v30  ;;  %9515 = vst.msk [vmem:[#allocation2 + $0x8] sm:$0x1] %vm9449_vm2, %v16700_v54  ;;  %v9426_v46 = vunpack.i.h.s16 %v21985_v3  ;;  %9533 = vrot.lane.b32.xlu0 %v22036_v28, %s19402_s0  ;;  %v18270_v33 = vld [vmem:[%s24638_s3 + $0x240] ss:$16 sps:$4 sm:$0xff]   ;;  %v18273_v40 = vld [vmem:[%s24638_s3 + $0x248] ss:$16 sps:$4 sm:$0xff]  }
 0x28d   :  { %9523 = vst.msk [vmem:[#allocation2 + $0x9] sm:$0x1] %vm9449_vm2, %v16702_v18  ;;  %v9436_v4 = vunpack.i.h.s16 %v9333_v45  ;;  %v9430_v13 = vunpack.i.h.s16 %v22047_v35  ;;  %9547 = vst.msk [vmem:[#allocation2 + $0xc] sm:$0x1] %vm9449_vm2, %v16708_v17  ;;  %v16704_v60 = vpack.i.b16 %v9418_v52, %v21778_v2  ;;  %v9432_v30 = vunpack.i.h.s16 %v22075_v34  ;;  %v18278_v63 = vld [vmem:[%s24638_s3 + $0x264] ss:$16 sps:$4 sm:$0xff]  }
 0x28e   :  { %9555 = vst.msk [vmem:[#allocation2 + $0xd] sm:$0x1] %vm9449_vm2, %v16710_v56  ;;  %v16714_v23 = vpack.i.b16 %v9428_v9, %v21782_v6  ;;  %v9438_v42 = vunpack.i.h.s16 %v22060_v24  ;;  %9643 = vst.msk [vmem:[#allocation2 + $0x18] sm:$0x1] %vm9449_vm2, %v16732_v59  ;;  %v16712_v3 = vpack.i.b16 %v9426_v46, %v21804_v58  ;;  %v9440_v35 = vunpack.i.h.s16 %v22091_v27  ;;  %9573 = vrot.lane.b32.xlu1 %v22072_v43, %s19402_s0  ;;  %v18281_v54 = vld [vmem:[%s24638_s3 + $0x26c] ss:$16 sps:$4 sm:$0xff]  }
 0x28f   :  { %v16722_v57 = vpack.i.b16 %v9436_v4, %v21846_v14  ;;  %v16716_v50 = vpack.i.b16 %v9430_v13, %v21785_v49  ;;  %9531 = vst.msk [vmem:[#allocation2 + $0xa] sm:$0x1] %vm9449_vm2, %v16704_v60  ;;  %v16718_v2 = vpack.i.b16 %v9432_v30, %v21810_v51  ;;  %v9434_v24 = vunpack.i.h.s16 %v22079_v7  ;;  %v18276_v17 = vld [vmem:[%s24638_s3 + $0x260] ss:$16 sps:$4 sm:$0xff]   ;;  %v18279_v56 = vld [vmem:[%s24638_s3 + $0x268] ss:$16 sps:$4 sm:$0xff]  }
 0x290   :  { %9571 = vst.msk [vmem:[#allocation2 + $0xf] sm:$0x1] %vm9449_vm2, %v16714_v23  ;;  %v16724_v6 = vpack.i.b16 %v9438_v42, %v21788_v8  ;;  %v9444_v58 = vunpack.i.h.s16 %v9334_v48  ;;  %9563 = vst.msk [vmem:[#allocation2 + $0xe] sm:$0x1] %vm9449_vm2, %v16712_v3  ;;  %v16726_v49 = vpack.i.b16 %v9440_v35, %v21815_v26  ;;  %v9442_v14 = vunpack.i.h.s16 %v22095_v61  ;;  %9565 = vrot.lane.b32.xlu0 %v22057_v12, %s19402_s0  ;;  %v18284_v9 = vld [vmem:[%s24638_s3 + $0x284] ss:$16 sps:$4 sm:$0xff]  }
 0x291   :  { %9603 = vst.msk [vmem:[#allocation2 + $0x13] sm:$0x1] %vm9449_vm2, %v16722_v57  ;;  %9579 = vst.msk [vmem:[#allocation2 + $0x10] sm:$0x1] %vm9449_vm2, %v16716_v50  ;;  %v16720_v8 = vpack.i.b16 %v9434_v24, %v21823_v29  ;;  %v18287_v59 = vld [vmem:[%s24638_s3 + $0x28c] ss:$16 sps:$4 sm:$0xff]  }
 0x292   :  { %9587 = vst.msk [vmem:[#allocation2 + $0x11] sm:$0x1] %vm9449_vm2, %v16718_v2  ;;  %9611 = vst.msk [vmem:[#allocation2 + $0x14] sm:$0x1] %vm9449_vm2, %v16724_v6  ;;  %v16730_v51 = vpack.i.b16 %v9444_v58, %v21851_v32  ;;  %v16728_v28 = vpack.i.b16 %v9442_v14, %v21827_v44  ;;  %9605 = vrot.lane.b32.xlu1 %v22088_v16, %s19402_s0  ;;  %v18282_v4 = vld [vmem:[%s24638_s3 + $0x280] ss:$16 sps:$4 sm:$0xff]  }
 0x293   :  { %9619 = vst.msk [vmem:[#allocation2 + $0x15] sm:$0x1] %vm9449_vm2, %v16726_v49  ;;  %9595 = vst.msk [vmem:[#allocation2 + $0x12] sm:$0x1] %vm9449_vm2, %v16720_v8  ;;  %v18285_v13 = vld [vmem:[%s24638_s3 + $0x288] ss:$16 sps:$4 sm:$0xff]  }
 0x294   :  { %9635 = vst.msk [vmem:[#allocation2 + $0x17] sm:$0x1] %vm9449_vm2, %v16730_v51  ;;  %9627 = vst.msk [vmem:[#allocation2 + $0x16] sm:$0x1] %vm9449_vm2, %v16728_v28  ;;  %9581 = vrot.lane.b32.xlu0 %v22106_v10, %s19402_s0  ;;  %v18290_v23 = vld [vmem:[%s24638_s3 + $0x2a4] ss:$16 sps:$4 sm:$0xff]  }
 0x295   :  { %v18293_v30 = vld [vmem:[%s24638_s3 + $0x2ac] ss:$16 sps:$4 sm:$0xff]   ;;  %v18288_v3 = vld [vmem:[%s24638_s3 + $0x2a0] ss:$16 sps:$4 sm:$0xff]   ;;  %v18291_v57 = vld [vmem:[%s24638_s3 + $0x2a8] ss:$16 sps:$4 sm:$0xff]  }
 0x296   :  { %9589 = vrot.lane.b32.xlu1 %v22111_v38, %s19402_s0  ;;  %v18296_v50 = vld [vmem:[%s24638_s3 + $0x2c4] ss:$16 sps:$4 sm:$0xff]   ;;  %v18299_v35 = vld [vmem:[%s24638_s3 + $0x2cc] ss:$16 sps:$4 sm:$0xff]   ;;  %v18294_v2 = vld [vmem:[%s24638_s3 + $0x2c0] ss:$16 sps:$4 sm:$0xff]  }
 0x297   :  { %v18297_v6 = vld [vmem:[%s24638_s3 + $0x2c8] ss:$16 sps:$4 sm:$0xff]   ;;  %v18302_v24 = vld [vmem:[%s24638_s3 + $0x2e4] ss:$16 sps:$4 sm:$0xff]   ;;  %v18305_v58 = vld [vmem:[%s24638_s3 + $0x2ec] ss:$16 sps:$4 sm:$0xff]  }
 0x298   :  { %9613 = vrot.lane.b32.xlu0 %v22119_v55, %s19402_s0  ;;  %v18258_v55 = vld [vmem:[%s24638_s3 + $0x200] ss:$16 sps:$4 sm:$0xff]   ;;  %v18303_v14 = vld [vmem:[%s24638_s3 + $0x2e8] ss:$16 sps:$4 sm:$0xff]   ;;  %v18308_v8 = vld [vmem:[%s24638_s3 + $0x304] ss:$16 sps:$4 sm:$0xff]  }
 0x299   :  { %v18300_v49 = vld [vmem:[%s24638_s3 + $0x2e0] ss:$16 sps:$4 sm:$0xff]   ;;  %v18311_v51 = vld [vmem:[%s24638_s3 + $0x30c] ss:$16 sps:$4 sm:$0xff]  }
 0x29a   :  { %9621 = vrot.lane.b32.xlu1 %v22124_v11, %s19402_s0  ;;  %v18306_v28 = vld [vmem:[%s24638_s3 + $0x300] ss:$16 sps:$4 sm:$0xff]  }
 0x29c   :  { %9597 = vrot.lane.b32.xlu0 %v22132_v21, %s19402_s0  ;;  %v18269_v21 = vld [vmem:[%s24638_s3 + $0x22c] ss:$16 sps:$4 sm:$0xff]  }
 0x29e   :  { %9637 = vrot.lane.b32.xlu1 %v16731_v15, %s19402_s0 }
 0x2a0   :  { %9629 = vrot.lane.b32.xlu0 %v16729_v41, %s19402_s0  ;;  %v18272_v41 = vld [vmem:[%s24638_s3 + $0x244] ss:$16 sps:$4 sm:$0xff]  }
 0x2e4   :  { %v9478_v26 = vpop.permute.xlu1 %9477 }
 0x2e5   :  { %9480 = vst.msk [vmem:[#allocation2 + $0x3] sm:$0x1] %vm9455_vm3, %v9478_v26  ;;  %v18309_v26 = vld [vmem:[%s24638_s3 + $0x308] ss:$16 sps:$4 sm:$0xff]  }
 0x2e6   :  { %v9453_v29 = vpop.permute.xlu0 %9452 }
 0x2e7   :  { %9456 = vst.msk [vmem:[#allocation2] sm:$0x1] %vm9455_vm3, %v9453_v29  ;;  %v18314_v29 = vld [vmem:[%s24638_s3 + $0x324] ss:$16 sps:$4 sm:$0xff]  }
 0x2e8   :  { %v9494_v44 = vpop.permute.xlu1 %9493 }
 0x2e9   :  { %9496 = vst.msk [vmem:[#allocation2 + $0x5] sm:$0x1] %vm9455_vm3, %v9494_v44  ;;  %v18317_v44 = vld [vmem:[%s24638_s3 + $0x32c] ss:$16 sps:$4 sm:$0xff]  }
 0x2ea   :  { %v9462_v32 = vpop.permute.xlu0 %9461 }
 0x2eb   :  { %9464 = vst.msk [vmem:[#allocation2 + $0x1] sm:$0x1] %vm9455_vm3, %v9462_v32  ;;  %v18312_v32 = vld [vmem:[%s24638_s3 + $0x320] ss:$16 sps:$4 sm:$0xff]  }
 0x2ec   :  { %v9470_v12 = vpop.permute.xlu1 %9469 }
 0x2ed   :  { %9472 = vst.msk [vmem:[#allocation2 + $0x2] sm:$0x1] %vm9455_vm3, %v9470_v12  ;;  %v18315_v12 = vld [vmem:[%s24638_s3 + $0x328] ss:$16 sps:$4 sm:$0xff]  }
 0x2ee   :  { %v9486_v43 = vpop.permute.xlu0 %9485 }
 0x2ef   :  { %9488 = vst.msk [vmem:[#allocation2 + $0x4] sm:$0x1] %vm9455_vm3, %v9486_v43  ;;  %v18320_v43 = vld [vmem:[%s24638_s3 + $0x344] ss:$16 sps:$4 sm:$0xff]  }
 0x2f0   :  { %v9510_v34 = vpop.permute.xlu1 %9509 }
 0x2f1   :  { %9512 = vst.msk [vmem:[#allocation2 + $0x7] sm:$0x1] %vm9455_vm3, %v9510_v34  ;;  %v18323_v34 = vld [vmem:[%s24638_s3 + $0x34c] ss:$16 sps:$4 sm:$0xff]  }
 0x2f2   :  { %v9502_v7 = vpop.permute.xlu0 %9501 }
 0x2f3   :  { %9504 = vst.msk [vmem:[#allocation2 + $0x6] sm:$0x1] %vm9455_vm3, %v9502_v7  ;;  %v18318_v7 = vld [vmem:[%s24638_s3 + $0x340] ss:$16 sps:$4 sm:$0xff]  }
 0x2f4   :  { %v9542_v16 = vpop.permute.xlu1 %9541 }
 0x2f5   :  { %9544 = vst.msk [vmem:[#allocation2 + $0xb] sm:$0x1] %vm9455_vm3, %v9542_v16  ;;  %v18321_v16 = vld [vmem:[%s24638_s3 + $0x348] ss:$16 sps:$4 sm:$0xff]  }
 0x2f6   :  { %v9518_v27 = vpop.permute.xlu0 %9517 }
 0x2f7   :  { %9520 = vst.msk [vmem:[#allocation2 + $0x8] sm:$0x1] %vm9455_vm3, %v9518_v27  ;;  %v18326_v27 = vld [vmem:[%s24638_s3 + $0x364] ss:$16 sps:$4 sm:$0xff]  }
 0x2f8   :  { %v9526_v61 = vpop.permute.xlu1 %9525 }
 0x2f9   :  { %9528 = vst.msk [vmem:[#allocation2 + $0x9] sm:$0x1] %vm9455_vm3, %v9526_v61  ;;  %v18329_v61 = vld [vmem:[%s24638_s3 + $0x36c] ss:$16 sps:$4 sm:$0xff]  }
 0x2fa   :  { %v9550_v5 = vpop.permute.xlu0 %9549  ;;  %v22223_v0 = vld [vmem:[#allocation2] sm:$0xff] }
 0x2fb   :  { %9552 = vst.msk [vmem:[#allocation2 + $0xc] sm:$0x1] %vm9455_vm3, %v9550_v5  ;;  %v10465_v10 = vrot.slane %v22223_v0, %v19501_v22  ;;  %v18324_v5 = vld [vmem:[%s24638_s3 + $0x360] ss:$16 sps:$4 sm:$0xff]  }
 0x2fc   :  { %v9558_v37 = vpop.permute.xlu1 %9557 }
 0x2fd   :  { %9560 = vst.msk [vmem:[#allocation2 + $0xd] sm:$0x1] %vm9455_vm3, %v9558_v37  ;;  %v10473_v38 = vcombine.high %v10465_v10, %v10465_v10  ;;  %v22238_v48 = vrot.slane %v10465_v10, %v19501_v22  ;;  %v18327_v10 = vld [vmem:[%s24638_s3 + $0x368] ss:$16 sps:$4 sm:$0xff]   ;;  %v18332_v37 = vld [vmem:[%s24638_s3 + $0x384] ss:$16 sps:$4 sm:$0xff]  }
 0x2fe   :  { %v9534_v45 = vpop.permute.xlu0 %9533 }
 0x2ff   :  { %9536 = vst.msk [vmem:[#allocation2 + $0xa] sm:$0x1] %vm9455_vm3, %v9534_v45  ;;  %v10495_v36 = vrot.slane %v10473_v38, %v19501_v22  ;;  %v18335_v38 = vld [vmem:[%s24638_s3 + $0x38c] ss:$16 sps:$4 sm:$0xff]   ;;  %v18330_v45 = vld [vmem:[%s24638_s3 + $0x380] ss:$16 sps:$4 sm:$0xff]  }
 0x300   :  { %v9574_v11 = vpop.permute.xlu1 %9573 }
 0x301   :  { %9576 = vst.msk [vmem:[#allocation2 + $0xf] sm:$0x1] %vm9455_vm3, %v9574_v11  ;;  %14598 = vmatprep.mubr.bf16.mxu1 %v10495_v36  ;;  %15131 = vmatprep.mubr.bf16.mxu0 %v10495_v36  ;;  %v10505_v1 = vcombine.high %v10495_v36, %v10495_v36  ;;  %v18333_v36 = vld [vmem:[%s24638_s3 + $0x388] ss:$16 sps:$4 sm:$0xff]   ;;  %v18336_v11 = vld [vmem:[%s24638_s3 + $0x3a0] ss:$16 sps:$4 sm:$0xff]  }
 0x302   :  { %14599 = vmatmul.mubr.bf16.vlgmr.msra.gmra.mrb[112].mxu1 %v22238_v48  ;;  %15132 = vmatmul.mubr.bf16.vlgmr.msra.gmra.mrb[140].mxu0 %v22238_v48  ;;  %v9566_v20 = vpop.permute.xlu0 %9565 }
 0x303   :  { %14608 = vmatpush1.bf16.msra.mxu1 %v18258_v55  ;;  %15141 = vmatpush1.bf16.msra.mxu0 %v18261_v53  ;;  %9568 = vst.msk [vmem:[#allocation2 + $0xe] sm:$0x1] %vm9455_vm3, %v9566_v20  ;;  %v18338_v55 = vld [vmem:[%s24638_s3 + $0x3a4] ss:$16 sps:$4 sm:$0xff]   ;;  %v18341_v53 = vld [vmem:[%s24638_s3 + $0x3ac] ss:$16 sps:$4 sm:$0xff]   ;;  %v10458_v20 = vcombine.high %v22223_v0, %v22223_v0 }
 0x304   :  { %14639 = vmatprep.mubr.bf16.mxu1 %v10505_v1  ;;  %15172 = vmatprep.mubr.bf16.mxu0 %v10505_v1  ;;  %v9606_v62 = vpop.permute.xlu1 %9605  ;;  %v18339_v1 = vld [vmem:[%s24638_s3 + $0x3a8] ss:$16 sps:$4 sm:$0xff]   ;;  %v18353_v0 = vld [vmem:[%s24638_s3 + $0x3ec] ss:$16 sps:$4 sm:$0xff]  }
 0x305   :  { %9608 = vst.msk [vmem:[#allocation2 + $0x13] sm:$0x1] %vm9455_vm3, %v9606_v62  ;;  %14609 = vmatprep.subr.bf16.mxu1 %v18266_v47  ;;  %15142 = vmatprep.subr.bf16.mxu0 %v18269_v21  ;;  %v18344_v47 = vld [vmem:[%s24638_s3 + $0x3c4] ss:$16 sps:$4 sm:$0xff]   ;;  %v18347_v21 = vld [vmem:[%s24638_s3 + $0x3cc] ss:$16 sps:$4 sm:$0xff]  }
 0x306   :  { %v9582_v25 = vpop.permute.xlu0 %9581  ;;  %v18350_v62 = vld [vmem:[%s24638_s3 + $0x3e4] ss:$16 sps:$4 sm:$0xff]  }
 0x307   :  { %14610 = vmatpush1.bf16.msra.mxu1 %v18264_v31  ;;  %15143 = vmatpush1.bf16.msra.mxu0 %v18267_v39  ;;  %9584 = vst.msk [vmem:[#allocation2 + $0x10] sm:$0x1] %vm9455_vm3, %v9582_v25  ;;  %v18342_v31 = vld [vmem:[%s24638_s3 + $0x3c0] ss:$16 sps:$4 sm:$0xff]   ;;  %v18345_v39 = vld [vmem:[%s24638_s3 + $0x3c8] ss:$16 sps:$4 sm:$0xff]  }
 0x308   :  { %v9590_v15 = vpop.permute.xlu1 %9589  ;;  %14611 = vmatprep.subr.bf16.mxu1 %v18272_v41  ;;  %15144 = vmatprep.subr.bf16.mxu0 %v18275_v19  ;;  %v22429_v41 = vrot.slane %v10458_v20, %v19501_v22  ;;  %v18348_v19 = vld [vmem:[%s24638_s3 + $0x3e0] ss:$16 sps:$4 sm:$0xff]   ;;  %v18351_v25 = vld [vmem:[%s24638_s3 + $0x3e8] ss:$16 sps:$4 sm:$0xff]   ;;  %v18434_v20 = vld [vmem:[%s24638_s3 + $0x5a4] ss:$16 sps:$4 sm:$0xff]  }
 0x309   :  { %9592 = vst.msk [vmem:[#allocation2 + $0x11] sm:$0x1] %vm9455_vm3, %v9590_v15 }
 0x30a   :  { %v9614_v18 = vpop.permute.xlu0 %9613  ;;  %v10474_v15 = vcombine.high %v22429_v41, %v22429_v41 }
 0x30b   :  { %14612 = vmatpush1.bf16.msra.mxu1 %v18270_v33  ;;  %15145 = vmatpush1.bf16.msra.mxu0 %v18273_v40  ;;  %9616 = vst.msk [vmem:[#allocation2 + $0x14] sm:$0x1] %vm9455_vm3, %v9614_v18  ;;  %v18356_v33 = vld [vmem:[%s24638_s3 + $0x404] ss:$16 sps:$4 sm:$0xff]   ;;  %v18359_v40 = vld [vmem:[%s24638_s3 + $0x40c] ss:$16 sps:$4 sm:$0xff]  }
 0x30c   :  { %v9622_v52 = vpop.permute.xlu1 %9621  ;;  %14613 = vmatprep.subr.bf16.mxu1 %v18278_v63  ;;  %15146 = vmatprep.subr.bf16.mxu0 %v18281_v54  ;;  %v18354_v63 = vld [vmem:[%s24638_s3 + $0x400] ss:$16 sps:$4 sm:$0xff]   ;;  %v10503_v54 = vcombine.high %v22238_v48, %v22238_v48  ;;  %v18357_v18 = vld [vmem:[%s24638_s3 + $0x408] ss:$16 sps:$4 sm:$0xff]  }
 0x30d   :  { %9624 = vst.msk [vmem:[#allocation2 + $0x15] sm:$0x1] %vm9455_vm3, %v9622_v52  ;;  %v18365_v52 = vld [vmem:[%s24638_s3 + $0x42c] ss:$16 sps:$4 sm:$0xff]   ;;  %v18360_v48 = vld [vmem:[%s24638_s3 + $0x420] ss:$16 sps:$4 sm:$0xff]  }
 0x30e   :  { %v9598_v46 = vpop.permute.xlu0 %9597 }
 0x30f   :  { %14614 = vmatpush1.bf16.msra.mxu1 %v18276_v17  ;;  %15147 = vmatpush1.bf16.msra.mxu0 %v18279_v56  ;;  %9600 = vst.msk [vmem:[#allocation2 + $0x12] sm:$0x1] %vm9455_vm3, %v9598_v46  ;;  %v22454_v17 = vrot.slane %v10474_v15, %v19501_v22  ;;  %v18362_v56 = vld [vmem:[%s24638_s3 + $0x424] ss:$16 sps:$4 sm:$0xff]   ;;  %v18371_v46 = vld [vmem:[%s24638_s3 + $0x44c] ss:$16 sps:$4 sm:$0xff]  }
 0x310   :  { %v9638_v60 = vpop.permute.xlu1 %9637  ;;  %14615 = vmatprep.subr.bf16.mxu1 %v18284_v9  ;;  %15148 = vmatprep.subr.bf16.mxu0 %v18287_v59  ;;  %v18363_v9 = vld [vmem:[%s24638_s3 + $0x428] ss:$16 sps:$4 sm:$0xff]   ;;  %v18368_v59 = vld [vmem:[%s24638_s3 + $0x444] ss:$16 sps:$4 sm:$0xff]   ;;  %v18449_v15 = vld [vmem:[%s24638_s3 + $0x5ec] ss:$16 sps:$4 sm:$0xff]  }
 0x311   :  { %9640 = vst.msk [vmem:[#allocation2 + $0x17] sm:$0x1] %vm9455_vm3, %v9638_v60  ;;  %v18374_v60 = vld [vmem:[%s24638_s3 + $0x464] ss:$16 sps:$4 sm:$0xff]  }
 0x312   :  { %v9630_v42 = vpop.permute.xlu0 %9629 }
 0x313   :  { %14616 = vmatpush1.bf16.msra.mxu1 %v18282_v4  ;;  %15149 = vmatpush1.bf16.msra.mxu0 %v18285_v13  ;;  %9632 = vst.msk [vmem:[#allocation2 + $0x16] sm:$0x1] %vm9455_vm3, %v9630_v42  ;;  %v18366_v4 = vld [vmem:[%s24638_s3 + $0x440] ss:$16 sps:$4 sm:$0xff]   ;;  %v18369_v13 = vld [vmem:[%s24638_s3 + $0x448] ss:$16 sps:$4 sm:$0xff]  }
 0x314   :  { %14617 = vmatprep.subr.bf16.mxu1 %v18290_v23  ;;  %15150 = vmatprep.subr.bf16.mxu0 %v18293_v30  ;;  %v18377_v23 = vld [vmem:[%s24638_s3 + $0x46c] ss:$16 sps:$4 sm:$0xff]   ;;  %v18372_v30 = vld [vmem:[%s24638_s3 + $0x460] ss:$16 sps:$4 sm:$0xff]   ;;  %v18375_v42 = vld [vmem:[%s24638_s3 + $0x468] ss:$16 sps:$4 sm:$0xff]  }
 0x317   :  { %14618 = vmatpush1.bf16.msra.mxu1 %v18288_v3  ;;  %15151 = vmatpush1.bf16.msra.mxu0 %v18291_v57  ;;  %v18380_v3 = vld [vmem:[%s24638_s3 + $0x484] ss:$16 sps:$4 sm:$0xff]   ;;  %v18383_v57 = vld [vmem:[%s24638_s3 + $0x48c] ss:$16 sps:$4 sm:$0xff]  }
 0x318   :  { %14619 = vmatprep.subr.bf16.mxu1 %v18296_v50  ;;  %15152 = vmatprep.subr.bf16.mxu0 %v18299_v35  ;;  %v18378_v50 = vld [vmem:[%s24638_s3 + $0x480] ss:$16 sps:$4 sm:$0xff]   ;;  %v18381_v35 = vld [vmem:[%s24638_s3 + $0x488] ss:$16 sps:$4 sm:$0xff]  }
 0x31b   :  { %14620 = vmatpush1.bf16.msra.mxu1 %v18294_v2  ;;  %15153 = vmatpush1.bf16.msra.mxu0 %v18297_v6  ;;  %v18386_v2 = vld [vmem:[%s24638_s3 + $0x4a4] ss:$16 sps:$4 sm:$0xff]   ;;  %v18389_v6 = vld [vmem:[%s24638_s3 + $0x4ac] ss:$16 sps:$4 sm:$0xff]  }
 0x31c   :  { %14621 = vmatprep.subr.bf16.mxu1 %v18302_v24  ;;  %15154 = vmatprep.subr.bf16.mxu0 %v18305_v58  ;;  %v18384_v24 = vld [vmem:[%s24638_s3 + $0x4a0] ss:$16 sps:$4 sm:$0xff]   ;;  %v18387_v58 = vld [vmem:[%s24638_s3 + $0x4a8] ss:$16 sps:$4 sm:$0xff]  }
 0x31f   :  { %14622 = vmatpush1.bf16.msra.mxu1 %v18300_v49  ;;  %15155 = vmatpush1.bf16.msra.mxu0 %v18303_v14  ;;  %v18392_v49 = vld [vmem:[%s24638_s3 + $0x4c4] ss:$16 sps:$4 sm:$0xff]   ;;  %v18395_v14 = vld [vmem:[%s24638_s3 + $0x4cc] ss:$16 sps:$4 sm:$0xff]  }
 0x320   :  { %14623 = vmatprep.subr.bf16.mxu1 %v18308_v8  ;;  %15156 = vmatprep.subr.bf16.mxu0 %v18311_v51  ;;  %v18390_v8 = vld [vmem:[%s24638_s3 + $0x4c0] ss:$16 sps:$4 sm:$0xff]   ;;  %v18393_v51 = vld [vmem:[%s24638_s3 + $0x4c8] ss:$16 sps:$4 sm:$0xff]  }
 0x323   :  { %14624 = vmatpush1.bf16.msra.mxu1 %v18306_v28  ;;  %15157 = vmatpush1.bf16.msra.mxu0 %v18309_v26  ;;  %v18398_v28 = vld [vmem:[%s24638_s3 + $0x4e4] ss:$16 sps:$4 sm:$0xff]   ;;  %v18401_v26 = vld [vmem:[%s24638_s3 + $0x4ec] ss:$16 sps:$4 sm:$0xff]  }
 0x324   :  { %14625 = vmatprep.subr.bf16.mxu1 %v18314_v29  ;;  %15158 = vmatprep.subr.bf16.mxu0 %v18317_v44  ;;  %v18396_v29 = vld [vmem:[%s24638_s3 + $0x4e0] ss:$16 sps:$4 sm:$0xff]   ;;  %v18399_v44 = vld [vmem:[%s24638_s3 + $0x4e8] ss:$16 sps:$4 sm:$0xff]  }
 0x327   :  { %14626 = vmatpush1.bf16.msra.mxu1 %v18312_v32  ;;  %15159 = vmatpush1.bf16.msra.mxu0 %v18315_v12  ;;  %v18404_v32 = vld [vmem:[%s24638_s3 + $0x504] ss:$16 sps:$4 sm:$0xff]   ;;  %v18407_v12 = vld [vmem:[%s24638_s3 + $0x50c] ss:$16 sps:$4 sm:$0xff]  }
 0x328   :  { %14627 = vmatprep.subr.bf16.mxu1 %v18320_v43  ;;  %15160 = vmatprep.subr.bf16.mxu0 %v18323_v34  ;;  %v18402_v43 = vld [vmem:[%s24638_s3 + $0x500] ss:$16 sps:$4 sm:$0xff]   ;;  %v18405_v34 = vld [vmem:[%s24638_s3 + $0x508] ss:$16 sps:$4 sm:$0xff]  }
 0x32b   :  { %14628 = vmatpush1.bf16.msra.mxu1 %v18318_v7  ;;  %15161 = vmatpush1.bf16.msra.mxu0 %v18321_v16  ;;  %v18410_v7 = vld [vmem:[%s24638_s3 + $0x524] ss:$16 sps:$4 sm:$0xff]   ;;  %v18413_v16 = vld [vmem:[%s24638_s3 + $0x52c] ss:$16 sps:$4 sm:$0xff]  }
 0x32c   :  { %14629 = vmatprep.subr.bf16.mxu1 %v18326_v27  ;;  %15162 = vmatprep.subr.bf16.mxu0 %v18329_v61  ;;  %v18408_v27 = vld [vmem:[%s24638_s3 + $0x520] ss:$16 sps:$4 sm:$0xff]   ;;  %v18411_v61 = vld [vmem:[%s24638_s3 + $0x528] ss:$16 sps:$4 sm:$0xff]  }
 0x32f   :  { %14630 = vmatpush1.bf16.msra.mxu1 %v18324_v5  ;;  %15163 = vmatpush1.bf16.msra.mxu0 %v18327_v10  ;;  %v18416_v5 = vld [vmem:[%s24638_s3 + $0x544] ss:$16 sps:$4 sm:$0xff]   ;;  %v18419_v10 = vld [vmem:[%s24638_s3 + $0x54c] ss:$16 sps:$4 sm:$0xff]  }
 0x330   :  { %14631 = vmatprep.subr.bf16.mxu1 %v18332_v37  ;;  %15164 = vmatprep.subr.bf16.mxu0 %v18335_v38  ;;  %v18414_v37 = vld [vmem:[%s24638_s3 + $0x540] ss:$16 sps:$4 sm:$0xff]   ;;  %v18417_v38 = vld [vmem:[%s24638_s3 + $0x548] ss:$16 sps:$4 sm:$0xff]  }
 0x333   :  { %14632 = vmatpush1.bf16.msra.mxu1 %v18330_v45  ;;  %15165 = vmatpush1.bf16.msra.mxu0 %v18333_v36  ;;  %v18422_v45 = vld [vmem:[%s24638_s3 + $0x564] ss:$16 sps:$4 sm:$0xff]   ;;  %v18425_v36 = vld [vmem:[%s24638_s3 + $0x56c] ss:$16 sps:$4 sm:$0xff]  }
 0x334   :  { %14633 = vmatprep.subr.bf16.mxu1 %v18338_v55  ;;  %15166 = vmatprep.subr.bf16.mxu0 %v18341_v53  ;;  %v18420_v55 = vld [vmem:[%s24638_s3 + $0x560] ss:$16 sps:$4 sm:$0xff]   ;;  %v18423_v53 = vld [vmem:[%s24638_s3 + $0x568] ss:$16 sps:$4 sm:$0xff]  }
 0x337   :  { %14634 = vmatpush1.bf16.msra.mxu1 %v18336_v11  ;;  %15167 = vmatpush1.bf16.msra.mxu0 %v18339_v1  ;;  %v18428_v11 = vld [vmem:[%s24638_s3 + $0x584] ss:$16 sps:$4 sm:$0xff]   ;;  %v18431_v1 = vld [vmem:[%s24638_s3 + $0x58c] ss:$16 sps:$4 sm:$0xff]  }
 0x338   :  { %14635 = vmatprep.subr.bf16.mxu1 %v18344_v47  ;;  %15168 = vmatprep.subr.bf16.mxu0 %v18347_v21  ;;  %v18426_v47 = vld [vmem:[%s24638_s3 + $0x580] ss:$16 sps:$4 sm:$0xff]   ;;  %v18429_v21 = vld [vmem:[%s24638_s3 + $0x588] ss:$16 sps:$4 sm:$0xff]  }
 0x33b   :  { %14636 = vmatpush1.bf16.msra.mxu1 %v18342_v31  ;;  %15169 = vmatpush1.bf16.msra.mxu0 %v18345_v39  ;;  %v18437_v31 = vld [vmem:[%s24638_s3 + $0x5ac] ss:$16 sps:$4 sm:$0xff]   ;;  %v18432_v39 = vld [vmem:[%s24638_s3 + $0x5a0] ss:$16 sps:$4 sm:$0xff]  }
 0x33c   :  { %14637 = vmatprep.subr.bf16.mxu1 %v18350_v62  ;;  %15170 = vmatprep.subr.bf16.mxu0 %v18353_v0  ;;  %v18435_v62 = vld [vmem:[%s24638_s3 + $0x5a8] ss:$16 sps:$4 sm:$0xff]   ;;  %v18440_v0 = vld [vmem:[%s24638_s3 + $0x5c4] ss:$16 sps:$4 sm:$0xff]  }
 0x33f   :  { %14638 = vmatpush1.bf16.msra.mxu1 %v18348_v19  ;;  %15171 = vmatpush1.bf16.msra.mxu0 %v18351_v25  ;;  %v18443_v19 = vld [vmem:[%s24638_s3 + $0x5cc] ss:$16 sps:$4 sm:$0xff]   ;;  %v18438_v25 = vld [vmem:[%s24638_s3 + $0x5c0] ss:$16 sps:$4 sm:$0xff]  }
 0x340   :  { %14648 = vmatprep.subr.bf16.mxu1 %v18356_v33  ;;  %15181 = vmatprep.subr.bf16.mxu0 %v18359_v40  ;;  %v18441_v33 = vld [vmem:[%s24638_s3 + $0x5c8] ss:$16 sps:$4 sm:$0xff]   ;;  %v18446_v40 = vld [vmem:[%s24638_s3 + $0x5e4] ss:$16 sps:$4 sm:$0xff]  }
 0x342   :  { %14640 = vmatmul.mubr.bf16.vlgmr.msra.gmra.mrb[112].mxu1 %v10503_v54  ;;  %15173 = vmatmul.mubr.bf16.vlgmr.msra.gmra.mrb[140].mxu0 %v10503_v54  ;;  %v18447_v54 = vld [vmem:[%s24638_s3 + $0x5e8] ss:$16 sps:$4 sm:$0xff]  }
 0x343   :  { %14649 = vmatpush1.bf16.msra.mxu1 %v18354_v63  ;;  %14680 = vmatprep.mubr.bf16.mxu1 %v22454_v17  ;;  %v18444_v63 = vld [vmem:[%s24638_s3 + $0x5e0] ss:$16 sps:$4 sm:$0xff]  }
 0x344   :  { %15182 = vmatpush1.bf16.msra.mxu0 %v18357_v18  ;;  %15213 = vmatprep.mubr.bf16.mxu0 %v22454_v17  ;;  %v18452_v18 = vld [vmem:[%s24638_s3 + $0x604] ss:$16 sps:$4 sm:$0xff]  }
 0x345   :  { %14650 = vmatprep.subr.bf16.mxu1 %v18362_v56  ;;  %15183 = vmatprep.subr.bf16.mxu0 %v18365_v52  ;;  %v18455_v56 = vld [vmem:[%s24638_s3 + $0x60c] ss:$16 sps:$4 sm:$0xff]   ;;  %v18450_v52 = vld [vmem:[%s24638_s3 + $0x600] ss:$16 sps:$4 sm:$0xff]  }
 0x347   :  { %14651 = vmatpush1.bf16.msra.mxu1 %v18360_v48  ;;  %v22649_v48 = vrot.slane %v22429_v41, %v19501_v22  ;;  %v18461_v41 = vld [vmem:[%s24638_s3 + $0x62c] ss:$16 sps:$4 sm:$0xff]  }
 0x348   :  { %15184 = vmatpush1.bf16.msra.mxu0 %v18363_v9  ;;  %14652 = vmatprep.subr.bf16.mxu1 %v18368_v59  ;;  %v18453_v9 = vld [vmem:[%s24638_s3 + $0x608] ss:$16 sps:$4 sm:$0xff]   ;;  %v18458_v59 = vld [vmem:[%s24638_s3 + $0x624] ss:$16 sps:$4 sm:$0xff]  }
 0x349   :  { %15185 = vmatprep.subr.bf16.mxu0 %v18371_v46  ;;  %v10506_v46 = vcombine.high %v22454_v17, %v22454_v17  ;;  %v18464_v17 = vld [vmem:[%s24638_s3 + $0x644] ss:$16 sps:$4 sm:$0xff]  }
 0x34b   :  { %14653 = vmatpush1.bf16.msra.mxu1 %v18366_v4  ;;  %v18456_v4 = vld [vmem:[%s24638_s3 + $0x620] ss:$16 sps:$4 sm:$0xff]  }
 0x34c   :  { %15186 = vmatpush1.bf16.msra.mxu0 %v18369_v13  ;;  %14654 = vmatprep.subr.bf16.mxu1 %v18374_v60  ;;  %v18459_v13 = vld [vmem:[%s24638_s3 + $0x628] ss:$16 sps:$4 sm:$0xff]   ;;  %v18467_v60 = vld [vmem:[%s24638_s3 + $0x64c] ss:$16 sps:$4 sm:$0xff]  }
 0x34d   :  { %15187 = vmatprep.subr.bf16.mxu0 %v18377_v23  ;;  %v18462_v23 = vld [vmem:[%s24638_s3 + $0x640] ss:$16 sps:$4 sm:$0xff]  }
 0x34f   :  { %14655 = vmatpush1.bf16.msra.mxu1 %v18372_v30  ;;  %v18465_v30 = vld [vmem:[%s24638_s3 + $0x648] ss:$16 sps:$4 sm:$0xff]  }
 0x350   :  { %15188 = vmatpush1.bf16.msra.mxu0 %v18375_v42  ;;  %14656 = vmatprep.subr.bf16.mxu1 %v18380_v3  ;;  %v18470_v42 = vld [vmem:[%s24638_s3 + $0x664] ss:$16 sps:$4 sm:$0xff]   ;;  %v18473_v3 = vld [vmem:[%s24638_s3 + $0x66c] ss:$16 sps:$4 sm:$0xff]  }
 0x351   :  { %15189 = vmatprep.subr.bf16.mxu0 %v18383_v57  ;;  %v18468_v57 = vld [vmem:[%s24638_s3 + $0x660] ss:$16 sps:$4 sm:$0xff]  }
 0x353   :  { %14657 = vmatpush1.bf16.msra.mxu1 %v18378_v50  ;;  %v18471_v50 = vld [vmem:[%s24638_s3 + $0x668] ss:$16 sps:$4 sm:$0xff]  }
 0x354   :  { %15190 = vmatpush1.bf16.msra.mxu0 %v18381_v35  ;;  %14658 = vmatprep.subr.bf16.mxu1 %v18386_v2  ;;  %v18476_v35 = vld [vmem:[%s24638_s3 + $0x684] ss:$16 sps:$4 sm:$0xff]   ;;  %v18479_v2 = vld [vmem:[%s24638_s3 + $0x68c] ss:$16 sps:$4 sm:$0xff]  }
 0x355   :  { %15191 = vmatprep.subr.bf16.mxu0 %v18389_v6  ;;  %v18474_v6 = vld [vmem:[%s24638_s3 + $0x680] ss:$16 sps:$4 sm:$0xff]  }
 0x357   :  { %14659 = vmatpush1.bf16.msra.mxu1 %v18384_v24  ;;  %v18477_v24 = vld [vmem:[%s24638_s3 + $0x688] ss:$16 sps:$4 sm:$0xff]  }
 0x358   :  { %15192 = vmatpush1.bf16.msra.mxu0 %v18387_v58  ;;  %14660 = vmatprep.subr.bf16.mxu1 %v18392_v49  ;;  %v18482_v58 = vld [vmem:[%s24638_s3 + $0x6a4] ss:$16 sps:$4 sm:$0xff]   ;;  %v18485_v49 = vld [vmem:[%s24638_s3 + $0x6ac] ss:$16 sps:$4 sm:$0xff]  }
 0x359   :  { %15193 = vmatprep.subr.bf16.mxu0 %v18395_v14  ;;  %v18480_v14 = vld [vmem:[%s24638_s3 + $0x6a0] ss:$16 sps:$4 sm:$0xff]  }
 0x35b   :  { %14661 = vmatpush1.bf16.msra.mxu1 %v18390_v8  ;;  %v18483_v8 = vld [vmem:[%s24638_s3 + $0x6a8] ss:$16 sps:$4 sm:$0xff]  }
 0x35c   :  { %15194 = vmatpush1.bf16.msra.mxu0 %v18393_v51  ;;  %14662 = vmatprep.subr.bf16.mxu1 %v18398_v28  ;;  %v18488_v51 = vld [vmem:[%s24638_s3 + $0x6c4] ss:$16 sps:$4 sm:$0xff]   ;;  %v18491_v28 = vld [vmem:[%s24638_s3 + $0x6cc] ss:$16 sps:$4 sm:$0xff]  }
 0x35d   :  { %15195 = vmatprep.subr.bf16.mxu0 %v18401_v26  ;;  %v18486_v26 = vld [vmem:[%s24638_s3 + $0x6c0] ss:$16 sps:$4 sm:$0xff]  }
 0x35f   :  { %14663 = vmatpush1.bf16.msra.mxu1 %v18396_v29  ;;  %v18489_v29 = vld [vmem:[%s24638_s3 + $0x6c8] ss:$16 sps:$4 sm:$0xff]  }
 0x360   :  { %15196 = vmatpush1.bf16.msra.mxu0 %v18399_v44  ;;  %14664 = vmatprep.subr.bf16.mxu1 %v18404_v32  ;;  %v18494_v44 = vld [vmem:[%s24638_s3 + $0x6e4] ss:$16 sps:$4 sm:$0xff]   ;;  %v18497_v32 = vld [vmem:[%s24638_s3 + $0x6ec] ss:$16 sps:$4 sm:$0xff]  }
 0x361   :  { %15197 = vmatprep.subr.bf16.mxu0 %v18407_v12  ;;  %v18492_v12 = vld [vmem:[%s24638_s3 + $0x6e0] ss:$16 sps:$4 sm:$0xff]  }
 0x363   :  { %14665 = vmatpush1.bf16.msra.mxu1 %v18402_v43  ;;  %v18495_v43 = vld [vmem:[%s24638_s3 + $0x6e8] ss:$16 sps:$4 sm:$0xff]  }
 0x364   :  { %15198 = vmatpush1.bf16.msra.mxu0 %v18405_v34  ;;  %14666 = vmatprep.subr.bf16.mxu1 %v18410_v7  ;;  %v18500_v34 = vld [vmem:[%s24638_s3 + $0x704] ss:$16 sps:$4 sm:$0xff]   ;;  %v18503_v7 = vld [vmem:[%s24638_s3 + $0x70c] ss:$16 sps:$4 sm:$0xff]  }
 0x365   :  { %15199 = vmatprep.subr.bf16.mxu0 %v18413_v16  ;;  %v18498_v16 = vld [vmem:[%s24638_s3 + $0x700] ss:$16 sps:$4 sm:$0xff]  }
 0x367   :  { %14667 = vmatpush1.bf16.msra.mxu1 %v18408_v27  ;;  %v18501_v27 = vld [vmem:[%s24638_s3 + $0x708] ss:$16 sps:$4 sm:$0xff]  }
 0x368   :  { %15200 = vmatpush1.bf16.msra.mxu0 %v18411_v61  ;;  %14668 = vmatprep.subr.bf16.mxu1 %v18416_v5  ;;  %v18506_v61 = vld [vmem:[%s24638_s3 + $0x724] ss:$16 sps:$4 sm:$0xff]   ;;  %v18509_v5 = vld [vmem:[%s24638_s3 + $0x72c] ss:$16 sps:$4 sm:$0xff]  }
 0x369   :  { %15201 = vmatprep.subr.bf16.mxu0 %v18419_v10  ;;  %v18504_v10 = vld [vmem:[%s24638_s3 + $0x720] ss:$16 sps:$4 sm:$0xff]  }
 0x36b   :  { %14669 = vmatpush1.bf16.msra.mxu1 %v18414_v37  ;;  %v18507_v37 = vld [vmem:[%s24638_s3 + $0x728] ss:$16 sps:$4 sm:$0xff]  }
 0x36c   :  { %15202 = vmatpush1.bf16.msra.mxu0 %v18417_v38  ;;  %14670 = vmatprep.subr.bf16.mxu1 %v18422_v45  ;;  %v18512_v38 = vld [vmem:[%s24638_s3 + $0x744] ss:$16 sps:$4 sm:$0xff]   ;;  %v18515_v45 = vld [vmem:[%s24638_s3 + $0x74c] ss:$16 sps:$4 sm:$0xff]  }
 0x36d   :  { %15203 = vmatprep.subr.bf16.mxu0 %v18425_v36  ;;  %v18510_v36 = vld [vmem:[%s24638_s3 + $0x740] ss:$16 sps:$4 sm:$0xff]  }
 0x36f   :  { %14671 = vmatpush1.bf16.msra.mxu1 %v18420_v55  ;;  %v18513_v55 = vld [vmem:[%s24638_s3 + $0x748] ss:$16 sps:$4 sm:$0xff]  }
 0x370   :  { %15204 = vmatpush1.bf16.msra.mxu0 %v18423_v53  ;;  %14672 = vmatprep.subr.bf16.mxu1 %v18428_v11  ;;  %v18518_v53 = vld [vmem:[%s24638_s3 + $0x764] ss:$16 sps:$4 sm:$0xff]   ;;  %v18521_v11 = vld [vmem:[%s24638_s3 + $0x76c] ss:$16 sps:$4 sm:$0xff]  }
 0x371   :  { %15205 = vmatprep.subr.bf16.mxu0 %v18431_v1  ;;  %v18516_v1 = vld [vmem:[%s24638_s3 + $0x760] ss:$16 sps:$4 sm:$0xff]  }
 0x373   :  { %14673 = vmatpush1.bf16.msra.mxu1 %v18426_v47  ;;  %v18519_v47 = vld [vmem:[%s24638_s3 + $0x768] ss:$16 sps:$4 sm:$0xff]  }
 0x374   :  { %15206 = vmatpush1.bf16.msra.mxu0 %v18429_v21  ;;  %14674 = vmatprep.subr.bf16.mxu1 %v18434_v20  ;;  %v18524_v21 = vld [vmem:[%s24638_s3 + $0x784] ss:$16 sps:$4 sm:$0xff]   ;;  %v18527_v20 = vld [vmem:[%s24638_s3 + $0x78c] ss:$16 sps:$4 sm:$0xff]  }
 0x375   :  { %15207 = vmatprep.subr.bf16.mxu0 %v18437_v31  ;;  %v18522_v31 = vld [vmem:[%s24638_s3 + $0x780] ss:$16 sps:$4 sm:$0xff]  }
 0x377   :  { %14675 = vmatpush1.bf16.msra.mxu1 %v18432_v39  ;;  %v18525_v39 = vld [vmem:[%s24638_s3 + $0x788] ss:$16 sps:$4 sm:$0xff]  }
 0x378   :  { %15208 = vmatpush1.bf16.msra.mxu0 %v18435_v62  ;;  %14676 = vmatprep.subr.bf16.mxu1 %v18440_v0  ;;  %v18530_v62 = vld [vmem:[%s24638_s3 + $0x7a4] ss:$16 sps:$4 sm:$0xff]   ;;  %v18533_v0 = vld [vmem:[%s24638_s3 + $0x7ac] ss:$16 sps:$4 sm:$0xff]  }
 0x379   :  { %15209 = vmatprep.subr.bf16.mxu0 %v18443_v19  ;;  %v18528_v19 = vld [vmem:[%s24638_s3 + $0x7a0] ss:$16 sps:$4 sm:$0xff]  }
 0x37b   :  { %14677 = vmatpush1.bf16.msra.mxu1 %v18438_v25  ;;  %v18531_v25 = vld [vmem:[%s24638_s3 + $0x7a8] ss:$16 sps:$4 sm:$0xff]  }
 0x37c   :  { %15210 = vmatpush1.bf16.msra.mxu0 %v18441_v33  ;;  %14678 = vmatprep.subr.bf16.mxu1 %v18446_v40  ;;  %v18536_v33 = vld [vmem:[%s24638_s3 + $0x7c4] ss:$16 sps:$4 sm:$0xff]   ;;  %v18539_v40 = vld [vmem:[%s24638_s3 + $0x7cc] ss:$16 sps:$4 sm:$0xff]  }
 0x37d   :  { %15211 = vmatprep.subr.bf16.mxu0 %v18449_v15  ;;  %v18534_v15 = vld [vmem:[%s24638_s3 + $0x7c0] ss:$16 sps:$4 sm:$0xff]  }
 0x37f   :  { %14679 = vmatpush1.bf16.msra.mxu1 %v18444_v63  ;;  %v22823_v63 = vld [vmem:[#allocation2 + $0x8] sm:$0xff] }
 0x380   :  { %15212 = vmatpush1.bf16.msra.mxu0 %v18447_v54  ;;  %14689 = vmatprep.subr.bf16.mxu1 %v18452_v18  ;;  %v18537_v54 = vld [vmem:[%s24638_s3 + $0x7c8] ss:$16 sps:$4 sm:$0xff]   ;;  %v18542_v18 = vld [vmem:[%s24638_s3 + $0x7e4] ss:$16 sps:$4 sm:$0xff]  }
 0x381   :  { %15222 = vmatprep.subr.bf16.mxu0 %v18455_v56  ;;  %v18545_v56 = vld [vmem:[%s24638_s3 + $0x7ec] ss:$16 sps:$4 sm:$0xff]  }
 0x382   :  { %14681 = vmatmul.mubr.bf16.vlgmr.msra.gmra.mrb[112].mxu1 %v22649_v48 }
 0x383   :  { %15214 = vmatmul.mubr.bf16.vlgmr.msra.gmra.mrb[140].mxu0 %v22649_v48  ;;  %14690 = vmatpush1.bf16.msra.mxu1 %v18450_v52  ;;  %v22836_v52 = vrot.slane %v22823_v63, %v19501_v22 }
 0x384   :  { %14721 = vmatprep.mubr.bf16.mxu1 %v10506_v46  ;;  %15223 = vmatpush1.bf16.msra.mxu0 %v18453_v9  ;;  %v18540_v9 = vld [vmem:[%s24638_s3 + $0x7e0] ss:$16 sps:$4 sm:$0xff]  }
 0x385   :  { %15254 = vmatprep.mubr.bf16.mxu0 %v10506_v46  ;;  %14691 = vmatprep.subr.bf16.mxu1 %v18458_v59  ;;  %v18543_v59 = vld [vmem:[%s24638_s3 + $0x7e8] ss:$16 sps:$4 sm:$0xff]   ;;  %v18548_v46 = vld [vmem:[%s24638_s3 + $0x804] ss:$16 sps:$4 sm:$0xff]  }
 0x386   :  { %15224 = vmatprep.subr.bf16.mxu0 %v18461_v41  ;;  %v18551_v41 = vld [vmem:[%s24638_s3 + $0x80c] ss:$16 sps:$4 sm:$0xff]  }
 0x387   :  { %14692 = vmatpush1.bf16.msra.mxu1 %v18456_v4  ;;  %v10522_v4 = vcombine.high %v22836_v52, %v22836_v52 }
 0x388   :  { %15225 = vmatpush1.bf16.msra.mxu0 %v18459_v13  ;;  %14693 = vmatprep.subr.bf16.mxu1 %v18464_v17  ;;  %v18546_v13 = vld [vmem:[%s24638_s3 + $0x800] ss:$16 sps:$4 sm:$0xff]   ;;  %v10504_v17 = vcombine.high %v22649_v48, %v22649_v48 }
 0x389   :  { %15226 = vmatprep.subr.bf16.mxu0 %v18467_v60  ;;  %v18549_v60 = vld [vmem:[%s24638_s3 + $0x808] ss:$16 sps:$4 sm:$0xff]   ;;  %v18552_v48 = vld [vmem:[%s24638_s3 + $0x820] ss:$16 sps:$4 sm:$0xff]  }
 0x38b   :  { %14694 = vmatpush1.bf16.msra.mxu1 %v18462_v23  ;;  %v18554_v23 = vld [vmem:[%s24638_s3 + $0x824] ss:$16 sps:$4 sm:$0xff]  }
 0x38c   :  { %15227 = vmatpush1.bf16.msra.mxu0 %v18465_v30  ;;  %14695 = vmatprep.subr.bf16.mxu1 %v18470_v42  ;;  %v22864_v30 = vrot.slane %v10522_v4, %v19501_v22  ;;  %v18557_v42 = vld [vmem:[%s24638_s3 + $0x82c] ss:$16 sps:$4 sm:$0xff]   ;;  %v18638_v4 = vld [vmem:[%s24638_s3 + $0x9e4] ss:$16 sps:$4 sm:$0xff]  }
 0x38d   :  { %15228 = vmatprep.subr.bf16.mxu0 %v18473_v3  ;;  %v18555_v3 = vld [vmem:[%s24638_s3 + $0x828] ss:$16 sps:$4 sm:$0xff]  }
 0x38f   :  { %14696 = vmatpush1.bf16.msra.mxu1 %v18468_v57  ;;  %v18560_v57 = vld [vmem:[%s24638_s3 + $0x844] ss:$16 sps:$4 sm:$0xff]  }
 0x390   :  { %15229 = vmatpush1.bf16.msra.mxu0 %v18471_v50  ;;  %14697 = vmatprep.subr.bf16.mxu1 %v18476_v35  ;;  %v18563_v50 = vld [vmem:[%s24638_s3 + $0x84c] ss:$16 sps:$4 sm:$0xff]   ;;  %v18558_v35 = vld [vmem:[%s24638_s3 + $0x840] ss:$16 sps:$4 sm:$0xff]  }
 0x391   :  { %15230 = vmatprep.subr.bf16.mxu0 %v18479_v2  ;;  %v18561_v2 = vld [vmem:[%s24638_s3 + $0x848] ss:$16 sps:$4 sm:$0xff]  }
 0x393   :  { %14698 = vmatpush1.bf16.msra.mxu1 %v18474_v6  ;;  %v18566_v6 = vld [vmem:[%s24638_s3 + $0x864] ss:$16 sps:$4 sm:$0xff]  }
 0x394   :  { %15231 = vmatpush1.bf16.msra.mxu0 %v18477_v24  ;;  %14699 = vmatprep.subr.bf16.mxu1 %v18482_v58  ;;  %v18569_v24 = vld [vmem:[%s24638_s3 + $0x86c] ss:$16 sps:$4 sm:$0xff]   ;;  %v18564_v58 = vld [vmem:[%s24638_s3 + $0x860] ss:$16 sps:$4 sm:$0xff]  }
 0x395   :  { %15232 = vmatprep.subr.bf16.mxu0 %v18485_v49  ;;  %v18567_v49 = vld [vmem:[%s24638_s3 + $0x868] ss:$16 sps:$4 sm:$0xff]  }
 0x397   :  { %14700 = vmatpush1.bf16.msra.mxu1 %v18480_v14  ;;  %v18572_v14 = vld [vmem:[%s24638_s3 + $0x884] ss:$16 sps:$4 sm:$0xff]  }
 0x398   :  { %15233 = vmatpush1.bf16.msra.mxu0 %v18483_v8  ;;  %14701 = vmatprep.subr.bf16.mxu1 %v18488_v51  ;;  %v18575_v8 = vld [vmem:[%s24638_s3 + $0x88c] ss:$16 sps:$4 sm:$0xff]   ;;  %v18570_v51 = vld [vmem:[%s24638_s3 + $0x880] ss:$16 sps:$4 sm:$0xff]  }
 0x399   :  { %15234 = vmatprep.subr.bf16.mxu0 %v18491_v28  ;;  %v18573_v28 = vld [vmem:[%s24638_s3 + $0x888] ss:$16 sps:$4 sm:$0xff]  }
 0x39b   :  { %14702 = vmatpush1.bf16.msra.mxu1 %v18486_v26  ;;  %v18578_v26 = vld [vmem:[%s24638_s3 + $0x8a4] ss:$16 sps:$4 sm:$0xff]  }
 0x39c   :  { %15235 = vmatpush1.bf16.msra.mxu0 %v18489_v29  ;;  %14703 = vmatprep.subr.bf16.mxu1 %v18494_v44  ;;  %v18581_v29 = vld [vmem:[%s24638_s3 + $0x8ac] ss:$16 sps:$4 sm:$0xff]   ;;  %v18576_v44 = vld [vmem:[%s24638_s3 + $0x8a0] ss:$16 sps:$4 sm:$0xff]  }
 0x39d   :  { %15236 = vmatprep.subr.bf16.mxu0 %v18497_v32  ;;  %v18579_v32 = vld [vmem:[%s24638_s3 + $0x8a8] ss:$16 sps:$4 sm:$0xff]  }
 0x39f   :  { %14704 = vmatpush1.bf16.msra.mxu1 %v18492_v12  ;;  %v18584_v12 = vld [vmem:[%s24638_s3 + $0x8c4] ss:$16 sps:$4 sm:$0xff]  }
 0x3a0   :  { %15237 = vmatpush1.bf16.msra.mxu0 %v18495_v43  ;;  %14705 = vmatprep.subr.bf16.mxu1 %v18500_v34  ;;  %v18587_v43 = vld [vmem:[%s24638_s3 + $0x8cc] ss:$16 sps:$4 sm:$0xff]   ;;  %v18582_v34 = vld [vmem:[%s24638_s3 + $0x8c0] ss:$16 sps:$4 sm:$0xff]  }
 0x3a1   :  { %15238 = vmatprep.subr.bf16.mxu0 %v18503_v7  ;;  %v18585_v7 = vld [vmem:[%s24638_s3 + $0x8c8] ss:$16 sps:$4 sm:$0xff]  }
 0x3a3   :  { %14706 = vmatpush1.bf16.msra.mxu1 %v18498_v16  ;;  %v18590_v16 = vld [vmem:[%s24638_s3 + $0x8e4] ss:$16 sps:$4 sm:$0xff]  }
 0x3a4   :  { %15239 = vmatpush1.bf16.msra.mxu0 %v18501_v27  ;;  %14707 = vmatprep.subr.bf16.mxu1 %v18506_v61  ;;  %v18593_v27 = vld [vmem:[%s24638_s3 + $0x8ec] ss:$16 sps:$4 sm:$0xff]   ;;  %v18588_v61 = vld [vmem:[%s24638_s3 + $0x8e0] ss:$16 sps:$4 sm:$0xff]  }
 0x3a5   :  { %15240 = vmatprep.subr.bf16.mxu0 %v18509_v5  ;;  %v18591_v5 = vld [vmem:[%s24638_s3 + $0x8e8] ss:$16 sps:$4 sm:$0xff]  }
 0x3a7   :  { %14708 = vmatpush1.bf16.msra.mxu1 %v18504_v10  ;;  %v18596_v10 = vld [vmem:[%s24638_s3 + $0x904] ss:$16 sps:$4 sm:$0xff]  }
 0x3a8   :  { %15241 = vmatpush1.bf16.msra.mxu0 %v18507_v37  ;;  %14709 = vmatprep.subr.bf16.mxu1 %v18512_v38  ;;  %v18599_v37 = vld [vmem:[%s24638_s3 + $0x90c] ss:$16 sps:$4 sm:$0xff]   ;;  %v18594_v38 = vld [vmem:[%s24638_s3 + $0x900] ss:$16 sps:$4 sm:$0xff]  }
 0x3a9   :  { %15242 = vmatprep.subr.bf16.mxu0 %v18515_v45  ;;  %v18597_v45 = vld [vmem:[%s24638_s3 + $0x908] ss:$16 sps:$4 sm:$0xff]  }
 0x3ab   :  { %14710 = vmatpush1.bf16.msra.mxu1 %v18510_v36  ;;  %v18602_v36 = vld [vmem:[%s24638_s3 + $0x924] ss:$16 sps:$4 sm:$0xff]  }
 0x3ac   :  { %15243 = vmatpush1.bf16.msra.mxu0 %v18513_v55  ;;  %14711 = vmatprep.subr.bf16.mxu1 %v18518_v53  ;;  %v18605_v55 = vld [vmem:[%s24638_s3 + $0x92c] ss:$16 sps:$4 sm:$0xff]   ;;  %v18600_v53 = vld [vmem:[%s24638_s3 + $0x920] ss:$16 sps:$4 sm:$0xff]  }
 0x3ad   :  { %15244 = vmatprep.subr.bf16.mxu0 %v18521_v11  ;;  %v18603_v11 = vld [vmem:[%s24638_s3 + $0x928] ss:$16 sps:$4 sm:$0xff]  }
 0x3af   :  { %14712 = vmatpush1.bf16.msra.mxu1 %v18516_v1  ;;  %v18608_v1 = vld [vmem:[%s24638_s3 + $0x944] ss:$16 sps:$4 sm:$0xff]  }
 0x3b0   :  { %15245 = vmatpush1.bf16.msra.mxu0 %v18519_v47  ;;  %14713 = vmatprep.subr.bf16.mxu1 %v18524_v21  ;;  %v18611_v47 = vld [vmem:[%s24638_s3 + $0x94c] ss:$16 sps:$4 sm:$0xff]   ;;  %v18606_v21 = vld [vmem:[%s24638_s3 + $0x940] ss:$16 sps:$4 sm:$0xff]  }
 0x3b1   :  { %15246 = vmatprep.subr.bf16.mxu0 %v18527_v20  ;;  %v18609_v20 = vld [vmem:[%s24638_s3 + $0x948] ss:$16 sps:$4 sm:$0xff]  }
 0x3b3   :  { %14714 = vmatpush1.bf16.msra.mxu1 %v18522_v31  ;;  %v18614_v31 = vld [vmem:[%s24638_s3 + $0x964] ss:$16 sps:$4 sm:$0xff]  }
 0x3b4   :  { %15247 = vmatpush1.bf16.msra.mxu0 %v18525_v39  ;;  %14715 = vmatprep.subr.bf16.mxu1 %v18530_v62  ;;  %v18617_v39 = vld [vmem:[%s24638_s3 + $0x96c] ss:$16 sps:$4 sm:$0xff]   ;;  %v18612_v62 = vld [vmem:[%s24638_s3 + $0x960] ss:$16 sps:$4 sm:$0xff]  }
 0x3b5   :  { %15248 = vmatprep.subr.bf16.mxu0 %v18533_v0  ;;  %v18615_v0 = vld [vmem:[%s24638_s3 + $0x968] ss:$16 sps:$4 sm:$0xff]  }
 0x3b7   :  { %14716 = vmatpush1.bf16.msra.mxu1 %v18528_v19  ;;  %v18620_v19 = vld [vmem:[%s24638_s3 + $0x984] ss:$16 sps:$4 sm:$0xff]  }
 0x3b8   :  { %15249 = vmatpush1.bf16.msra.mxu0 %v18531_v25  ;;  %14717 = vmatprep.subr.bf16.mxu1 %v18536_v33  ;;  %v18623_v25 = vld [vmem:[%s24638_s3 + $0x98c] ss:$16 sps:$4 sm:$0xff]   ;;  %v18618_v33 = vld [vmem:[%s24638_s3 + $0x980] ss:$16 sps:$4 sm:$0xff]  }
 0x3b9   :  { %15250 = vmatprep.subr.bf16.mxu0 %v18539_v40  ;;  %v18621_v40 = vld [vmem:[%s24638_s3 + $0x988] ss:$16 sps:$4 sm:$0xff]  }
 0x3bb   :  { %14718 = vmatpush1.bf16.msra.mxu1 %v18534_v15  ;;  %v18626_v15 = vld [vmem:[%s24638_s3 + $0x9a4] ss:$16 sps:$4 sm:$0xff]  }
 0x3bc   :  { %15251 = vmatpush1.bf16.msra.mxu0 %v18537_v54  ;;  %14719 = vmatprep.subr.bf16.mxu1 %v18542_v18  ;;  %v18629_v54 = vld [vmem:[%s24638_s3 + $0x9ac] ss:$16 sps:$4 sm:$0xff]   ;;  %v18624_v18 = vld [vmem:[%s24638_s3 + $0x9a0] ss:$16 sps:$4 sm:$0xff]  }
 0x3bd   :  { %15252 = vmatprep.subr.bf16.mxu0 %v18545_v56  ;;  %v18627_v56 = vld [vmem:[%s24638_s3 + $0x9a8] ss:$16 sps:$4 sm:$0xff]  }
 0x3bf   :  { %14720 = vmatpush1.bf16.msra.mxu1 %v18540_v9  ;;  %v18632_v9 = vld [vmem:[%s24638_s3 + $0x9c4] ss:$16 sps:$4 sm:$0xff]  }
 0x3c0   :  { %15253 = vmatpush1.bf16.msra.mxu0 %v18543_v59  ;;  %14730 = vmatprep.subr.bf16.mxu1 %v18548_v46  ;;  %v18635_v59 = vld [vmem:[%s24638_s3 + $0x9cc] ss:$16 sps:$4 sm:$0xff]   ;;  %v18630_v46 = vld [vmem:[%s24638_s3 + $0x9c0] ss:$16 sps:$4 sm:$0xff]  }
 0x3c1   :  { %15263 = vmatprep.subr.bf16.mxu0 %v18551_v41  ;;  %v18633_v41 = vld [vmem:[%s24638_s3 + $0x9c8] ss:$16 sps:$4 sm:$0xff]  }
 0x3c2   :  { %14722 = vmatmul.mubr.bf16.vlgmr.msra.gmra.mrb[112].mxu1 %v10504_v17 }
 0x3c3   :  { %15255 = vmatmul.mubr.bf16.vlgmr.msra.gmra.mrb[140].mxu0 %v10504_v17  ;;  %14731 = vmatpush1.bf16.msra.mxu1 %v18546_v13  ;;  %v18641_v13 = vld [vmem:[%s24638_s3 + $0x9ec] ss:$16 sps:$4 sm:$0xff]   ;;  %v18636_v17 = vld [vmem:[%s24638_s3 + $0x9e0] ss:$16 sps:$4 sm:$0xff]  }
 0x3c4   :  { %14762 = vmatprep.mubr.bf16.mxu1 %v22864_v30  ;;  %15264 = vmatpush1.bf16.msra.mxu0 %v18549_v60  ;;  %v18639_v60 = vld [vmem:[%s24638_s3 + $0x9e8] ss:$16 sps:$4 sm:$0xff]  }
 0x3c5   :  { %15295 = vmatprep.mubr.bf16.mxu0 %v22864_v30  ;;  %14732 = vmatprep.subr.bf16.mxu1 %v18554_v23  ;;  %v18644_v23 = vld [vmem:[%s24638_s3 + $0xa04] ss:$16 sps:$4 sm:$0xff]  }
 0x3c6   :  { %15265 = vmatprep.subr.bf16.mxu0 %v18557_v42  ;;  %v18647_v42 = vld [vmem:[%s24638_s3 + $0xa0c] ss:$16 sps:$4 sm:$0xff]  }
 0x3c7   :  { %14733 = vmatpush1.bf16.msra.mxu1 %v18552_v48  ;;  %v18642_v48 = vld [vmem:[%s24638_s3 + $0xa00] ss:$16 sps:$4 sm:$0xff]  }
 0x3c8   :  { %15266 = vmatpush1.bf16.msra.mxu0 %v18555_v3  ;;  %14734 = vmatprep.subr.bf16.mxu1 %v18560_v57  ;;  %v23056_v3 = vrot.slane %v22836_v52, %v19501_v22  ;;  %v18645_v57 = vld [vmem:[%s24638_s3 + $0xa08] ss:$16 sps:$4 sm:$0xff]   ;;  %v18653_v52 = vld [vmem:[%s24638_s3 + $0xa2c] ss:$16 sps:$4 sm:$0xff]  }
 0x3c9   :  { %15267 = vmatprep.subr.bf16.mxu0 %v18563_v50  ;;  %v18650_v50 = vld [vmem:[%s24638_s3 + $0xa24] ss:$16 sps:$4 sm:$0xff]  }
 0x3cb   :  { %14735 = vmatpush1.bf16.msra.mxu1 %v18558_v35  ;;  %v10554_v35 = vcombine.high %v22864_v30, %v22864_v30  ;;  %v18656_v30 = vld [vmem:[%s24638_s3 + $0xa44] ss:$16 sps:$4 sm:$0xff]  }
 0x3cc   :  { %15268 = vmatpush1.bf16.msra.mxu0 %v18561_v2  ;;  %14736 = vmatprep.subr.bf16.mxu1 %v18566_v6  ;;  %v18648_v2 = vld [vmem:[%s24638_s3 + $0xa20] ss:$16 sps:$4 sm:$0xff]   ;;  %v18651_v6 = vld [vmem:[%s24638_s3 + $0xa28] ss:$16 sps:$4 sm:$0xff]  }
 0x3cd   :  { %15269 = vmatprep.subr.bf16.mxu0 %v18569_v24  ;;  %v18659_v24 = vld [vmem:[%s24638_s3 + $0xa4c] ss:$16 sps:$4 sm:$0xff]  }
 0x3cf   :  { %14737 = vmatpush1.bf16.msra.mxu1 %v18564_v58  ;;  %v18654_v58 = vld [vmem:[%s24638_s3 + $0xa40] ss:$16 sps:$4 sm:$0xff]  }
 0x3d0   :  { %15270 = vmatpush1.bf16.msra.mxu0 %v18567_v49  ;;  %14738 = vmatprep.subr.bf16.mxu1 %v18572_v14  ;;  %v18657_v49 = vld [vmem:[%s24638_s3 + $0xa48] ss:$16 sps:$4 sm:$0xff]   ;;  %v18662_v14 = vld [vmem:[%s24638_s3 + $0xa64] ss:$16 sps:$4 sm:$0xff]  }
 0x3d1   :  { %15271 = vmatprep.subr.bf16.mxu0 %v18575_v8  ;;  %v18665_v8 = vld [vmem:[%s24638_s3 + $0xa6c] ss:$16 sps:$4 sm:$0xff]  }
 0x3d3   :  { %14739 = vmatpush1.bf16.msra.mxu1 %v18570_v51  ;;  %v18660_v51 = vld [vmem:[%s24638_s3 + $0xa60] ss:$16 sps:$4 sm:$0xff]  }
 0x3d4   :  { %15272 = vmatpush1.bf16.msra.mxu0 %v18573_v28  ;;  %14740 = vmatprep.subr.bf16.mxu1 %v18578_v26  ;;  %v18663_v28 = vld [vmem:[%s24638_s3 + $0xa68] ss:$16 sps:$4 sm:$0xff]   ;;  %v18668_v26 = vld [vmem:[%s24638_s3 + $0xa84] ss:$16 sps:$4 sm:$0xff]  }
 0x3d5   :  { %15273 = vmatprep.subr.bf16.mxu0 %v18581_v29  ;;  %v18671_v29 = vld [vmem:[%s24638_s3 + $0xa8c] ss:$16 sps:$4 sm:$0xff]  }
 0x3d7   :  { %14741 = vmatpush1.bf16.msra.mxu1 %v18576_v44  ;;  %v18666_v44 = vld [vmem:[%s24638_s3 + $0xa80] ss:$16 sps:$4 sm:$0xff]  }
 0x3d8   :  { %15274 = vmatpush1.bf16.msra.mxu0 %v18579_v32  ;;  %14742 = vmatprep.subr.bf16.mxu1 %v18584_v12  ;;  %v18669_v32 = vld [vmem:[%s24638_s3 + $0xa88] ss:$16 sps:$4 sm:$0xff]   ;;  %v18674_v12 = vld [vmem:[%s24638_s3 + $0xaa4] ss:$16 sps:$4 sm:$0xff]  }
 0x3d9   :  { %15275 = vmatprep.subr.bf16.mxu0 %v18587_v43  ;;  %v18677_v43 = vld [vmem:[%s24638_s3 + $0xaac] ss:$16 sps:$4 sm:$0xff]  }
 0x3db   :  { %14743 = vmatpush1.bf16.msra.mxu1 %v18582_v34  ;;  %v18672_v34 = vld [vmem:[%s24638_s3 + $0xaa0] ss:$16 sps:$4 sm:$0xff]  }
 0x3dc   :  { %15276 = vmatpush1.bf16.msra.mxu0 %v18585_v7  ;;  %14744 = vmatprep.subr.bf16.mxu1 %v18590_v16  ;;  %v18675_v7 = vld [vmem:[%s24638_s3 + $0xaa8] ss:$16 sps:$4 sm:$0xff]   ;;  %v18680_v16 = vld [vmem:[%s24638_s3 + $0xac4] ss:$16 sps:$4 sm:$0xff]  }
 0x3dd   :  { %15277 = vmatprep.subr.bf16.mxu0 %v18593_v27  ;;  %v18683_v27 = vld [vmem:[%s24638_s3 + $0xacc] ss:$16 sps:$4 sm:$0xff]  }
 0x3df   :  { %14745 = vmatpush1.bf16.msra.mxu1 %v18588_v61  ;;  %v18678_v61 = vld [vmem:[%s24638_s3 + $0xac0] ss:$16 sps:$4 sm:$0xff]  }
 0x3e0   :  { %15278 = vmatpush1.bf16.msra.mxu0 %v18591_v5  ;;  %14746 = vmatprep.subr.bf16.mxu1 %v18596_v10  ;;  %v18681_v5 = vld [vmem:[%s24638_s3 + $0xac8] ss:$16 sps:$4 sm:$0xff]   ;;  %v18686_v10 = vld [vmem:[%s24638_s3 + $0xae4] ss:$16 sps:$4 sm:$0xff]  }
 0x3e1   :  { %15279 = vmatprep.subr.bf16.mxu0 %v18599_v37  ;;  %v18689_v37 = vld [vmem:[%s24638_s3 + $0xaec] ss:$16 sps:$4 sm:$0xff]  }
 0x3e3   :  { %14747 = vmatpush1.bf16.msra.mxu1 %v18594_v38  ;;  %v18684_v38 = vld [vmem:[%s24638_s3 + $0xae0] ss:$16 sps:$4 sm:$0xff]  }
 0x3e4   :  { %15280 = vmatpush1.bf16.msra.mxu0 %v18597_v45  ;;  %14748 = vmatprep.subr.bf16.mxu1 %v18602_v36  ;;  %v18687_v45 = vld [vmem:[%s24638_s3 + $0xae8] ss:$16 sps:$4 sm:$0xff]   ;;  %v18692_v36 = vld [vmem:[%s24638_s3 + $0xb04] ss:$16 sps:$4 sm:$0xff]  }
 0x3e5   :  { %15281 = vmatprep.subr.bf16.mxu0 %v18605_v55  ;;  %v18695_v55 = vld [vmem:[%s24638_s3 + $0xb0c] ss:$16 sps:$4 sm:$0xff]  }
 0x3e7   :  { %14749 = vmatpush1.bf16.msra.mxu1 %v18600_v53  ;;  %v18690_v53 = vld [vmem:[%s24638_s3 + $0xb00] ss:$16 sps:$4 sm:$0xff]  }
 0x3e8   :  { %15282 = vmatpush1.bf16.msra.mxu0 %v18603_v11  ;;  %14750 = vmatprep.subr.bf16.mxu1 %v18608_v1  ;;  %v18693_v11 = vld [vmem:[%s24638_s3 + $0xb08] ss:$16 sps:$4 sm:$0xff]   ;;  %v18698_v1 = vld [vmem:[%s24638_s3 + $0xb24] ss:$16 sps:$4 sm:$0xff]  }
 0x3e9   :  { %15283 = vmatprep.subr.bf16.mxu0 %v18611_v47  ;;  %v18701_v47 = vld [vmem:[%s24638_s3 + $0xb2c] ss:$16 sps:$4 sm:$0xff]  }
 0x3eb   :  { %14751 = vmatpush1.bf16.msra.mxu1 %v18606_v21  ;;  %v18696_v21 = vld [vmem:[%s24638_s3 + $0xb20] ss:$16 sps:$4 sm:$0xff]  }
 0x3ec   :  { %15284 = vmatpush1.bf16.msra.mxu0 %v18609_v20  ;;  %14752 = vmatprep.subr.bf16.mxu1 %v18614_v31  ;;  %v18699_v20 = vld [vmem:[%s24638_s3 + $0xb28] ss:$16 sps:$4 sm:$0xff]   ;;  %v18704_v31 = vld [vmem:[%s24638_s3 + $0xb44] ss:$16 sps:$4 sm:$0xff]  }
 0x3ed   :  { %15285 = vmatprep.subr.bf16.mxu0 %v18617_v39  ;;  %v18707_v39 = vld [vmem:[%s24638_s3 + $0xb4c] ss:$16 sps:$4 sm:$0xff]  }
 0x3ef   :  { %14753 = vmatpush1.bf16.msra.mxu1 %v18612_v62  ;;  %v18702_v62 = vld [vmem:[%s24638_s3 + $0xb40] ss:$16 sps:$4 sm:$0xff]  }
 0x3f0   :  { %15286 = vmatpush1.bf16.msra.mxu0 %v18615_v0  ;;  %14754 = vmatprep.subr.bf16.mxu1 %v18620_v19  ;;  %v18705_v0 = vld [vmem:[%s24638_s3 + $0xb48] ss:$16 sps:$4 sm:$0xff]   ;;  %v18710_v19 = vld [vmem:[%s24638_s3 + $0xb64] ss:$16 sps:$4 sm:$0xff]  }
 0x3f1   :  { %15287 = vmatprep.subr.bf16.mxu0 %v18623_v25  ;;  %v18713_v25 = vld [vmem:[%s24638_s3 + $0xb6c] ss:$16 sps:$4 sm:$0xff]  }
 0x3f3   :  { %14755 = vmatpush1.bf16.msra.mxu1 %v18618_v33  ;;  %v18708_v33 = vld [vmem:[%s24638_s3 + $0xb60] ss:$16 sps:$4 sm:$0xff]  }
 0x3f4   :  { %15288 = vmatpush1.bf16.msra.mxu0 %v18621_v40  ;;  %14756 = vmatprep.subr.bf16.mxu1 %v18626_v15  ;;  %v18711_v40 = vld [vmem:[%s24638_s3 + $0xb68] ss:$16 sps:$4 sm:$0xff]   ;;  %v18716_v15 = vld [vmem:[%s24638_s3 + $0xb84] ss:$16 sps:$4 sm:$0xff]  }
 0x3f5   :  { %15289 = vmatprep.subr.bf16.mxu0 %v18629_v54  ;;  %v18719_v54 = vld [vmem:[%s24638_s3 + $0xb8c] ss:$16 sps:$4 sm:$0xff]  }
 0x3f7   :  { %14757 = vmatpush1.bf16.msra.mxu1 %v18624_v18  ;;  %v18714_v18 = vld [vmem:[%s24638_s3 + $0xb80] ss:$16 sps:$4 sm:$0xff]  }
 0x3f8   :  { %15290 = vmatpush1.bf16.msra.mxu0 %v18627_v56  ;;  %14758 = vmatprep.subr.bf16.mxu1 %v18632_v9  ;;  %v18717_v56 = vld [vmem:[%s24638_s3 + $0xb88] ss:$16 sps:$4 sm:$0xff]   ;;  %v18722_v9 = vld [vmem:[%s24638_s3 + $0xba4] ss:$16 sps:$4 sm:$0xff]  }
 0x3f9   :  { %15291 = vmatprep.subr.bf16.mxu0 %v18635_v59  ;;  %v18725_v59 = vld [vmem:[%s24638_s3 + $0xbac] ss:$16 sps:$4 sm:$0xff]  }
 0x3fb   :  { %14759 = vmatpush1.bf16.msra.mxu1 %v18630_v46  ;;  %v18720_v46 = vld [vmem:[%s24638_s3 + $0xba0] ss:$16 sps:$4 sm:$0xff]  }
 0x3fc   :  { %15292 = vmatpush1.bf16.msra.mxu0 %v18633_v41  ;;  %14760 = vmatprep.subr.bf16.mxu1 %v18638_v4  ;;  %v18723_v41 = vld [vmem:[%s24638_s3 + $0xba8] ss:$16 sps:$4 sm:$0xff]   ;;  %v18728_v4 = vld [vmem:[%s24638_s3 + $0xbc4] ss:$16 sps:$4 sm:$0xff]  }
 0x3fd   :  { %15293 = vmatprep.subr.bf16.mxu0 %v18641_v13  ;;  %v18731_v13 = vld [vmem:[%s24638_s3 + $0xbcc] ss:$16 sps:$4 sm:$0xff]  }
 0x3ff   :  { %14761 = vmatpush1.bf16.msra.mxu1 %v18636_v17  ;;  %v10507_v17 = vcombine.high %v22823_v63, %v22823_v63  ;;  %v18737_v63 = vld [vmem:[%s24638_s3 + $0xbec] ss:$16 sps:$4 sm:$0xff]  }
 0x400   :  { %15294 = vmatpush1.bf16.msra.mxu0 %v18639_v60  ;;  %14771 = vmatprep.subr.bf16.mxu1 %v18644_v23  ;;  %v18726_v60 = vld [vmem:[%s24638_s3 + $0xbc0] ss:$16 sps:$4 sm:$0xff]   ;;  %v18729_v23 = vld [vmem:[%s24638_s3 + $0xbc8] ss:$16 sps:$4 sm:$0xff]  }
 0x401   :  { %15304 = vmatprep.subr.bf16.mxu0 %v18647_v42  ;;  %v18734_v42 = vld [vmem:[%s24638_s3 + $0xbe4] ss:$16 sps:$4 sm:$0xff]  }
 0x402   :  { %14763 = vmatmul.mubr.bf16.vlgmr.msra.gmra.mrb[112].mxu1 %v23056_v3 }
 0x403   :  { %15296 = vmatmul.mubr.bf16.vlgmr.msra.gmra.mrb[140].mxu0 %v23056_v3  ;;  %14772 = vmatpush1.bf16.msra.mxu1 %v18642_v48  ;;  %v23242_v48 = vrot.slane %v10507_v17, %v19501_v22  ;;  %v18819_v17 = vld [vmem:[%s24638_s3 + $0xda4] ss:$16 sps:$4 sm:$0xff]  }
 0x404   :  { %14803 = vmatprep.mubr.bf16.mxu1 %v10554_v35  ;;  %15305 = vmatpush1.bf16.msra.mxu0 %v18645_v57  ;;  %v18732_v57 = vld [vmem:[%s24638_s3 + $0xbe0] ss:$16 sps:$4 sm:$0xff]  }
 0x405   :  { %15336 = vmatprep.mubr.bf16.mxu0 %v10554_v35  ;;  %14773 = vmatprep.subr.bf16.mxu1 %v18650_v50  ;;  %v18735_v50 = vld [vmem:[%s24638_s3 + $0xbe8] ss:$16 sps:$4 sm:$0xff]   ;;  %v18740_v35 = vld [vmem:[%s24638_s3 + $0xc04] ss:$16 sps:$4 sm:$0xff]  }
 0x406   :  { %15306 = vmatprep.subr.bf16.mxu0 %v18653_v52  ;;  %v18743_v52 = vld [vmem:[%s24638_s3 + $0xc0c] ss:$16 sps:$4 sm:$0xff]  }
 0x407   :  { %14774 = vmatpush1.bf16.msra.mxu1 %v18648_v2  ;;  %v10523_v2 = vcombine.high %v23242_v48, %v23242_v48 }
 0x408   :  { %15307 = vmatpush1.bf16.msra.mxu0 %v18651_v6  ;;  %14775 = vmatprep.subr.bf16.mxu1 %v18656_v30  ;;  %v18738_v6 = vld [vmem:[%s24638_s3 + $0xc00] ss:$16 sps:$4 sm:$0xff]   ;;  %v10552_v30 = vcombine.high %v23056_v3, %v23056_v3 }
 0x409   :  { %15308 = vmatprep.subr.bf16.mxu0 %v18659_v24  ;;  %v18741_v24 = vld [vmem:[%s24638_s3 + $0xc08] ss:$16 sps:$4 sm:$0xff]   ;;  %v18745_v3 = vld [vmem:[%s24638_s3 + $0xc20] ss:$16 sps:$4 sm:$0xff]  }
 0x40b   :  { %14776 = vmatpush1.bf16.msra.mxu1 %v18654_v58  ;;  %v18747_v58 = vld [vmem:[%s24638_s3 + $0xc24] ss:$16 sps:$4 sm:$0xff]  }
 0x40c   :  { %15309 = vmatpush1.bf16.msra.mxu0 %v18657_v49  ;;  %14777 = vmatprep.subr.bf16.mxu1 %v18662_v14  ;;  %v23270_v49 = vrot.slane %v10523_v2, %v19501_v22  ;;  %v18750_v14 = vld [vmem:[%s24638_s3 + $0xc2c] ss:$16 sps:$4 sm:$0xff]  }
 0x40d   :  { %15310 = vmatprep.subr.bf16.mxu0 %v18665_v8  ;;  %v18748_v8 = vld [vmem:[%s24638_s3 + $0xc28] ss:$16 sps:$4 sm:$0xff]   ;;  %v18834_v2 = vld [vmem:[%s24638_s3 + $0xdec] ss:$16 sps:$4 sm:$0xff]  }
 0x40f   :  { %14778 = vmatpush1.bf16.msra.mxu1 %v18660_v51  ;;  %v18753_v51 = vld [vmem:[%s24638_s3 + $0xc44] ss:$16 sps:$4 sm:$0xff]  }
 0x410   :  { %15311 = vmatpush1.bf16.msra.mxu0 %v18663_v28  ;;  %14779 = vmatprep.subr.bf16.mxu1 %v18668_v26  ;;  %v18756_v28 = vld [vmem:[%s24638_s3 + $0xc4c] ss:$16 sps:$4 sm:$0xff]   ;;  %v18751_v26 = vld [vmem:[%s24638_s3 + $0xc40] ss:$16 sps:$4 sm:$0xff]  }
 0x411   :  { %15312 = vmatprep.subr.bf16.mxu0 %v18671_v29  ;;  %v18754_v29 = vld [vmem:[%s24638_s3 + $0xc48] ss:$16 sps:$4 sm:$0xff]  }
 0x413   :  { %14780 = vmatpush1.bf16.msra.mxu1 %v18666_v44  ;;  %v18759_v44 = vld [vmem:[%s24638_s3 + $0xc64] ss:$16 sps:$4 sm:$0xff]  }
 0x414   :  { %15313 = vmatpush1.bf16.msra.mxu0 %v18669_v32  ;;  %14781 = vmatprep.subr.bf16.mxu1 %v18674_v12  ;;  %v18762_v32 = vld [vmem:[%s24638_s3 + $0xc6c] ss:$16 sps:$4 sm:$0xff]   ;;  %v18757_v12 = vld [vmem:[%s24638_s3 + $0xc60] ss:$16 sps:$4 sm:$0xff]  }
 0x415   :  { %15314 = vmatprep.subr.bf16.mxu0 %v18677_v43  ;;  %v18760_v43 = vld [vmem:[%s24638_s3 + $0xc68] ss:$16 sps:$4 sm:$0xff]  }
 0x417   :  { %14782 = vmatpush1.bf16.msra.mxu1 %v18672_v34  ;;  %v18765_v34 = vld [vmem:[%s24638_s3 + $0xc84] ss:$16 sps:$4 sm:$0xff]  }
 0x418   :  { %15315 = vmatpush1.bf16.msra.mxu0 %v18675_v7  ;;  %14783 = vmatprep.subr.bf16.mxu1 %v18680_v16  ;;  %v18768_v7 = vld [vmem:[%s24638_s3 + $0xc8c] ss:$16 sps:$4 sm:$0xff]   ;;  %v18763_v16 = vld [vmem:[%s24638_s3 + $0xc80] ss:$16 sps:$4 sm:$0xff]  }
 0x419   :  { %15316 = vmatprep.subr.bf16.mxu0 %v18683_v27  ;;  %v18766_v27 = vld [vmem:[%s24638_s3 + $0xc88] ss:$16 sps:$4 sm:$0xff]  }
 0x41b   :  { %14784 = vmatpush1.bf16.msra.mxu1 %v18678_v61  ;;  %v18771_v61 = vld [vmem:[%s24638_s3 + $0xca4] ss:$16 sps:$4 sm:$0xff]  }
 0x41c   :  { %15317 = vmatpush1.bf16.msra.mxu0 %v18681_v5  ;;  %14785 = vmatprep.subr.bf16.mxu1 %v18686_v10  ;;  %v18774_v5 = vld [vmem:[%s24638_s3 + $0xcac] ss:$16 sps:$4 sm:$0xff]   ;;  %v18769_v10 = vld [vmem:[%s24638_s3 + $0xca0] ss:$16 sps:$4 sm:$0xff]  }
 0x41d   :  { %15318 = vmatprep.subr.bf16.mxu0 %v18689_v37  ;;  %v18772_v37 = vld [vmem:[%s24638_s3 + $0xca8] ss:$16 sps:$4 sm:$0xff]  }
 0x41f   :  { %14786 = vmatpush1.bf16.msra.mxu1 %v18684_v38  ;;  %v18777_v38 = vld [vmem:[%s24638_s3 + $0xcc4] ss:$16 sps:$4 sm:$0xff]  }
 0x420   :  { %15319 = vmatpush1.bf16.msra.mxu0 %v18687_v45  ;;  %14787 = vmatprep.subr.bf16.mxu1 %v18692_v36  ;;  %v18780_v45 = vld [vmem:[%s24638_s3 + $0xccc] ss:$16 sps:$4 sm:$0xff]   ;;  %v18775_v36 = vld [vmem:[%s24638_s3 + $0xcc0] ss:$16 sps:$4 sm:$0xff]  }
 0x421   :  { %15320 = vmatprep.subr.bf16.mxu0 %v18695_v55  ;;  %v18778_v55 = vld [vmem:[%s24638_s3 + $0xcc8] ss:$16 sps:$4 sm:$0xff]  }
 0x423   :  { %14788 = vmatpush1.bf16.msra.mxu1 %v18690_v53  ;;  %v18783_v53 = vld [vmem:[%s24638_s3 + $0xce4] ss:$16 sps:$4 sm:$0xff]  }
 0x424   :  { %15321 = vmatpush1.bf16.msra.mxu0 %v18693_v11  ;;  %14789 = vmatprep.subr.bf16.mxu1 %v18698_v1  ;;  %v18786_v11 = vld [vmem:[%s24638_s3 + $0xcec] ss:$16 sps:$4 sm:$0xff]   ;;  %v18781_v1 = vld [vmem:[%s24638_s3 + $0xce0] ss:$16 sps:$4 sm:$0xff]  }
 0x425   :  { %15322 = vmatprep.subr.bf16.mxu0 %v18701_v47  ;;  %v18784_v47 = vld [vmem:[%s24638_s3 + $0xce8] ss:$16 sps:$4 sm:$0xff]  }
 0x427   :  { %14790 = vmatpush1.bf16.msra.mxu1 %v18696_v21  ;;  %v18789_v21 = vld [vmem:[%s24638_s3 + $0xd04] ss:$16 sps:$4 sm:$0xff]  }
 0x428   :  { %15323 = vmatpush1.bf16.msra.mxu0 %v18699_v20  ;;  %14791 = vmatprep.subr.bf16.mxu1 %v18704_v31  ;;  %v18792_v20 = vld [vmem:[%s24638_s3 + $0xd0c] ss:$16 sps:$4 sm:$0xff]   ;;  %v18787_v31 = vld [vmem:[%s24638_s3 + $0xd00] ss:$16 sps:$4 sm:$0xff]  }
 0x429   :  { %15324 = vmatprep.subr.bf16.mxu0 %v18707_v39  ;;  %v18790_v39 = vld [vmem:[%s24638_s3 + $0xd08] ss:$16 sps:$4 sm:$0xff]  }
 0x42b   :  { %14792 = vmatpush1.bf16.msra.mxu1 %v18702_v62  ;;  %v18795_v62 = vld [vmem:[%s24638_s3 + $0xd24] ss:$16 sps:$4 sm:$0xff]  }
 0x42c   :  { %15325 = vmatpush1.bf16.msra.mxu0 %v18705_v0  ;;  %14793 = vmatprep.subr.bf16.mxu1 %v18710_v19  ;;  %v18798_v0 = vld [vmem:[%s24638_s3 + $0xd2c] ss:$16 sps:$4 sm:$0xff]   ;;  %v18793_v19 = vld [vmem:[%s24638_s3 + $0xd20] ss:$16 sps:$4 sm:$0xff]  }
 0x42d   :  { %15326 = vmatprep.subr.bf16.mxu0 %v18713_v25  ;;  %v18796_v25 = vld [vmem:[%s24638_s3 + $0xd28] ss:$16 sps:$4 sm:$0xff]  }
 0x42f   :  { %14794 = vmatpush1.bf16.msra.mxu1 %v18708_v33  ;;  %v18801_v33 = vld [vmem:[%s24638_s3 + $0xd44] ss:$16 sps:$4 sm:$0xff]  }
 0x430   :  { %15327 = vmatpush1.bf16.msra.mxu0 %v18711_v40  ;;  %14795 = vmatprep.subr.bf16.mxu1 %v18716_v15  ;;  %v18804_v40 = vld [vmem:[%s24638_s3 + $0xd4c] ss:$16 sps:$4 sm:$0xff]   ;;  %v18799_v15 = vld [vmem:[%s24638_s3 + $0xd40] ss:$16 sps:$4 sm:$0xff]  }
 0x431   :  { %15328 = vmatprep.subr.bf16.mxu0 %v18719_v54  ;;  %v18802_v54 = vld [vmem:[%s24638_s3 + $0xd48] ss:$16 sps:$4 sm:$0xff]  }
 0x433   :  { %14796 = vmatpush1.bf16.msra.mxu1 %v18714_v18  ;;  %v18807_v18 = vld [vmem:[%s24638_s3 + $0xd64] ss:$16 sps:$4 sm:$0xff]  }
 0x434   :  { %15329 = vmatpush1.bf16.msra.mxu0 %v18717_v56  ;;  %14797 = vmatprep.subr.bf16.mxu1 %v18722_v9  ;;  %v18810_v56 = vld [vmem:[%s24638_s3 + $0xd6c] ss:$16 sps:$4 sm:$0xff]   ;;  %v18805_v9 = vld [vmem:[%s24638_s3 + $0xd60] ss:$16 sps:$4 sm:$0xff]  }
 0x435   :  { %15330 = vmatprep.subr.bf16.mxu0 %v18725_v59  ;;  %v18808_v59 = vld [vmem:[%s24638_s3 + $0xd68] ss:$16 sps:$4 sm:$0xff]  }
 0x437   :  { %14798 = vmatpush1.bf16.msra.mxu1 %v18720_v46  ;;  %v18813_v46 = vld [vmem:[%s24638_s3 + $0xd84] ss:$16 sps:$4 sm:$0xff]  }
 0x438   :  { %15331 = vmatpush1.bf16.msra.mxu0 %v18723_v41  ;;  %14799 = vmatprep.subr.bf16.mxu1 %v18728_v4  ;;  %v18816_v41 = vld [vmem:[%s24638_s3 + $0xd8c] ss:$16 sps:$4 sm:$0xff]   ;;  %v18811_v4 = vld [vmem:[%s24638_s3 + $0xd80] ss:$16 sps:$4 sm:$0xff]  }
 0x439   :  { %15332 = vmatprep.subr.bf16.mxu0 %v18731_v13  ;;  %v18814_v13 = vld [vmem:[%s24638_s3 + $0xd88] ss:$16 sps:$4 sm:$0xff]  }
 0x43b   :  { %14800 = vmatpush1.bf16.msra.mxu1 %v18726_v60  ;;  %v18822_v60 = vld [vmem:[%s24638_s3 + $0xdac] ss:$16 sps:$4 sm:$0xff]  }
 0x43c   :  { %15333 = vmatpush1.bf16.msra.mxu0 %v18729_v23  ;;  %14801 = vmatprep.subr.bf16.mxu1 %v18734_v42  ;;  %v18817_v23 = vld [vmem:[%s24638_s3 + $0xda0] ss:$16 sps:$4 sm:$0xff]   ;;  %v18820_v42 = vld [vmem:[%s24638_s3 + $0xda8] ss:$16 sps:$4 sm:$0xff]  }
 0x43d   :  { %15334 = vmatprep.subr.bf16.mxu0 %v18737_v63  ;;  %v18825_v63 = vld [vmem:[%s24638_s3 + $0xdc4] ss:$16 sps:$4 sm:$0xff]  }
 0x43f   :  { %14802 = vmatpush1.bf16.msra.mxu1 %v18732_v57  ;;  %v18828_v57 = vld [vmem:[%s24638_s3 + $0xdcc] ss:$16 sps:$4 sm:$0xff]  }
 0x440   :  { %15335 = vmatpush1.bf16.msra.mxu0 %v18735_v50  ;;  %14812 = vmatprep.subr.bf16.mxu1 %v18740_v35  ;;  %v18823_v50 = vld [vmem:[%s24638_s3 + $0xdc0] ss:$16 sps:$4 sm:$0xff]   ;;  %v18826_v35 = vld [vmem:[%s24638_s3 + $0xdc8] ss:$16 sps:$4 sm:$0xff]  }
 0x441   :  { %15345 = vmatprep.subr.bf16.mxu0 %v18743_v52  ;;  %v18831_v52 = vld [vmem:[%s24638_s3 + $0xde4] ss:$16 sps:$4 sm:$0xff]  }
 0x442   :  { %14804 = vmatmul.mubr.bf16.vlgmr.msra.gmra.mrb[112].mxu1 %v10552_v30 }
 0x443   :  { %15337 = vmatmul.mubr.bf16.vlgmr.msra.gmra.mrb[140].mxu0 %v10552_v30  ;;  %14813 = vmatpush1.bf16.msra.mxu1 %v18738_v6  ;;  %v18829_v6 = vld [vmem:[%s24638_s3 + $0xde0] ss:$16 sps:$4 sm:$0xff]   ;;  %v18832_v30 = vld [vmem:[%s24638_s3 + $0xde8] ss:$16 sps:$4 sm:$0xff]  }
 0x444   :  { %14844 = vmatprep.mubr.bf16.mxu1 %v23270_v49  ;;  %15346 = vmatpush1.bf16.msra.mxu0 %v18741_v24  ;;  %v18837_v24 = vld [vmem:[%s24638_s3 + $0xe04] ss:$16 sps:$4 sm:$0xff]  }
 0x445   :  { %15377 = vmatprep.mubr.bf16.mxu0 %v23270_v49  ;;  %14814 = vmatprep.subr.bf16.mxu1 %v18747_v58  ;;  %v18840_v58 = vld [vmem:[%s24638_s3 + $0xe0c] ss:$16 sps:$4 sm:$0xff]  }
 0x446   :  { %15347 = vmatprep.subr.bf16.mxu0 %v18750_v14  ;;  %v18835_v14 = vld [vmem:[%s24638_s3 + $0xe00] ss:$16 sps:$4 sm:$0xff]  }
 0x447   :  { %14815 = vmatpush1.bf16.msra.mxu1 %v18745_v3  ;;  %v23462_v3 = vrot.slane %v23242_v48, %v19501_v22  ;;  %v18846_v48 = vld [vmem:[%s24638_s3 + $0xe2c] ss:$16 sps:$4 sm:$0xff]  }
 0x448   :  { %15348 = vmatpush1.bf16.msra.mxu0 %v18748_v8  ;;  %14816 = vmatprep.subr.bf16.mxu1 %v18753_v51  ;;  %v18838_v8 = vld [vmem:[%s24638_s3 + $0xe08] ss:$16 sps:$4 sm:$0xff]   ;;  %v18843_v51 = vld [vmem:[%s24638_s3 + $0xe24] ss:$16 sps:$4 sm:$0xff]  }
 0x449   :  { %15349 = vmatprep.subr.bf16.mxu0 %v18756_v28  ;;  %v10555_v28 = vcombine.high %v23270_v49, %v23270_v49  ;;  %v18849_v49 = vld [vmem:[%s24638_s3 + $0xe44] ss:$16 sps:$4 sm:$0xff]  }
 0x44b   :  { %14817 = vmatpush1.bf16.msra.mxu1 %v18751_v26  ;;  %v18841_v26 = vld [vmem:[%s24638_s3 + $0xe20] ss:$16 sps:$4 sm:$0xff]  }
 0x44c   :  { %15350 = vmatpush1.bf16.msra.mxu0 %v18754_v29  ;;  %14818 = vmatprep.subr.bf16.mxu1 %v18759_v44  ;;  %v18844_v29 = vld [vmem:[%s24638_s3 + $0xe28] ss:$16 sps:$4 sm:$0xff]   ;;  %v18852_v44 = vld [vmem:[%s24638_s3 + $0xe4c] ss:$16 sps:$4 sm:$0xff]  }
 0x44d   :  { %15351 = vmatprep.subr.bf16.mxu0 %v18762_v32  ;;  %v18847_v32 = vld [vmem:[%s24638_s3 + $0xe40] ss:$16 sps:$4 sm:$0xff]  }
 0x44f   :  { %14819 = vmatpush1.bf16.msra.mxu1 %v18757_v12  ;;  %v18850_v12 = vld [vmem:[%s24638_s3 + $0xe48] ss:$16 sps:$4 sm:$0xff]  }
 0x450   :  { %15352 = vmatpush1.bf16.msra.mxu0 %v18760_v43  ;;  %14820 = vmatprep.subr.bf16.mxu1 %v18765_v34  ;;  %v18855_v43 = vld [vmem:[%s24638_s3 + $0xe64] ss:$16 sps:$4 sm:$0xff]   ;;  %v18858_v34 = vld [vmem:[%s24638_s3 + $0xe6c] ss:$16 sps:$4 sm:$0xff]  }
 0x451   :  { %15353 = vmatprep.subr.bf16.mxu0 %v18768_v7  ;;  %v18853_v7 = vld [vmem:[%s24638_s3 + $0xe60] ss:$16 sps:$4 sm:$0xff]  }
 0x453   :  { %14821 = vmatpush1.bf16.msra.mxu1 %v18763_v16  ;;  %v18856_v16 = vld [vmem:[%s24638_s3 + $0xe68] ss:$16 sps:$4 sm:$0xff]  }
 0x454   :  { %15354 = vmatpush1.bf16.msra.mxu0 %v18766_v27  ;;  %14822 = vmatprep.subr.bf16.mxu1 %v18771_v61  ;;  %v18861_v27 = vld [vmem:[%s24638_s3 + $0xe84] ss:$16 sps:$4 sm:$0xff]   ;;  %v18864_v61 = vld [vmem:[%s24638_s3 + $0xe8c] ss:$16 sps:$4 sm:$0xff]  }
 0x455   :  { %15355 = vmatprep.subr.bf16.mxu0 %v18774_v5  ;;  %v18859_v5 = vld [vmem:[%s24638_s3 + $0xe80] ss:$16 sps:$4 sm:$0xff]  }
 0x457   :  { %14823 = vmatpush1.bf16.msra.mxu1 %v18769_v10  ;;  %v18862_v10 = vld [vmem:[%s24638_s3 + $0xe88] ss:$16 sps:$4 sm:$0xff]  }
 0x458   :  { %15356 = vmatpush1.bf16.msra.mxu0 %v18772_v37  ;;  %14824 = vmatprep.subr.bf16.mxu1 %v18777_v38  ;;  %v18867_v37 = vld [vmem:[%s24638_s3 + $0xea4] ss:$16 sps:$4 sm:$0xff]   ;;  %v18870_v38 = vld [vmem:[%s24638_s3 + $0xeac] ss:$16 sps:$4 sm:$0xff]  }
 0x459   :  { %15357 = vmatprep.subr.bf16.mxu0 %v18780_v45  ;;  %v18865_v45 = vld [vmem:[%s24638_s3 + $0xea0] ss:$16 sps:$4 sm:$0xff]  }
 0x45b   :  { %14825 = vmatpush1.bf16.msra.mxu1 %v18775_v36  ;;  %v18868_v36 = vld [vmem:[%s24638_s3 + $0xea8] ss:$16 sps:$4 sm:$0xff]  }
 0x45c   :  { %15358 = vmatpush1.bf16.msra.mxu0 %v18778_v55  ;;  %14826 = vmatprep.subr.bf16.mxu1 %v18783_v53  ;;  %v18873_v55 = vld [vmem:[%s24638_s3 + $0xec4] ss:$16 sps:$4 sm:$0xff]   ;;  %v18876_v53 = vld [vmem:[%s24638_s3 + $0xecc] ss:$16 sps:$4 sm:$0xff]  }
 0x45d   :  { %15359 = vmatprep.subr.bf16.mxu0 %v18786_v11  ;;  %v18871_v11 = vld [vmem:[%s24638_s3 + $0xec0] ss:$16 sps:$4 sm:$0xff]  }
 0x45f   :  { %14827 = vmatpush1.bf16.msra.mxu1 %v18781_v1  ;;  %v18874_v1 = vld [vmem:[%s24638_s3 + $0xec8] ss:$16 sps:$4 sm:$0xff]  }
 0x460   :  { %15360 = vmatpush1.bf16.msra.mxu0 %v18784_v47  ;;  %14828 = vmatprep.subr.bf16.mxu1 %v18789_v21  ;;  %v18879_v47 = vld [vmem:[%s24638_s3 + $0xee4] ss:$16 sps:$4 sm:$0xff]   ;;  %v18882_v21 = vld [vmem:[%s24638_s3 + $0xeec] ss:$16 sps:$4 sm:$0xff]  }
 0x461   :  { %15361 = vmatprep.subr.bf16.mxu0 %v18792_v20  ;;  %v18877_v20 = vld [vmem:[%s24638_s3 + $0xee0] ss:$16 sps:$4 sm:$0xff]  }
 0x463   :  { %14829 = vmatpush1.bf16.msra.mxu1 %v18787_v31  ;;  %v18880_v31 = vld [vmem:[%s24638_s3 + $0xee8] ss:$16 sps:$4 sm:$0xff]  }
 0x464   :  { %15362 = vmatpush1.bf16.msra.mxu0 %v18790_v39  ;;  %14830 = vmatprep.subr.bf16.mxu1 %v18795_v62  ;;  %v18885_v39 = vld [vmem:[%s24638_s3 + $0xf04] ss:$16 sps:$4 sm:$0xff]   ;;  %v18888_v62 = vld [vmem:[%s24638_s3 + $0xf0c] ss:$16 sps:$4 sm:$0xff]  }
 0x465   :  { %15363 = vmatprep.subr.bf16.mxu0 %v18798_v0  ;;  %v18883_v0 = vld [vmem:[%s24638_s3 + $0xf00] ss:$16 sps:$4 sm:$0xff]  }
 0x467   :  { %14831 = vmatpush1.bf16.msra.mxu1 %v18793_v19  ;;  %v18886_v19 = vld [vmem:[%s24638_s3 + $0xf08] ss:$16 sps:$4 sm:$0xff]  }
 0x468   :  { %15364 = vmatpush1.bf16.msra.mxu0 %v18796_v25  ;;  %14832 = vmatprep.subr.bf16.mxu1 %v18801_v33  ;;  %v18891_v25 = vld [vmem:[%s24638_s3 + $0xf24] ss:$16 sps:$4 sm:$0xff]   ;;  %v18894_v33 = vld [vmem:[%s24638_s3 + $0xf2c] ss:$16 sps:$4 sm:$0xff]  }
 0x469   :  { %15365 = vmatprep.subr.bf16.mxu0 %v18804_v40  ;;  %v18889_v40 = vld [vmem:[%s24638_s3 + $0xf20] ss:$16 sps:$4 sm:$0xff]  }
 0x46b   :  { %14833 = vmatpush1.bf16.msra.mxu1 %v18799_v15  ;;  %v18892_v15 = vld [vmem:[%s24638_s3 + $0xf28] ss:$16 sps:$4 sm:$0xff]  }
 0x46c   :  { %15366 = vmatpush1.bf16.msra.mxu0 %v18802_v54  ;;  %14834 = vmatprep.subr.bf16.mxu1 %v18807_v18  ;;  %v18897_v54 = vld [vmem:[%s24638_s3 + $0xf44] ss:$16 sps:$4 sm:$0xff]   ;;  %v18900_v18 = vld [vmem:[%s24638_s3 + $0xf4c] ss:$16 sps:$4 sm:$0xff]  }
 0x46d   :  { %15367 = vmatprep.subr.bf16.mxu0 %v18810_v56  ;;  %v18895_v56 = vld [vmem:[%s24638_s3 + $0xf40] ss:$16 sps:$4 sm:$0xff]  }
 0x46f   :  { %14835 = vmatpush1.bf16.msra.mxu1 %v18805_v9  ;;  %v18898_v9 = vld [vmem:[%s24638_s3 + $0xf48] ss:$16 sps:$4 sm:$0xff]  }
 0x470   :  { %15368 = vmatpush1.bf16.msra.mxu0 %v18808_v59  ;;  %14836 = vmatprep.subr.bf16.mxu1 %v18813_v46  ;;  %v18903_v59 = vld [vmem:[%s24638_s3 + $0xf64] ss:$16 sps:$4 sm:$0xff]   ;;  %v18906_v46 = vld [vmem:[%s24638_s3 + $0xf6c] ss:$16 sps:$4 sm:$0xff]  }
 0x471   :  { %15369 = vmatprep.subr.bf16.mxu0 %v18816_v41  ;;  %v18901_v41 = vld [vmem:[%s24638_s3 + $0xf60] ss:$16 sps:$4 sm:$0xff]  }
 0x473   :  { %14837 = vmatpush1.bf16.msra.mxu1 %v18811_v4  ;;  %v18904_v4 = vld [vmem:[%s24638_s3 + $0xf68] ss:$16 sps:$4 sm:$0xff]  }
 0x474   :  { %15370 = vmatpush1.bf16.msra.mxu0 %v18814_v13  ;;  %14838 = vmatprep.subr.bf16.mxu1 %v18819_v17  ;;  %v18909_v13 = vld [vmem:[%s24638_s3 + $0xf84] ss:$16 sps:$4 sm:$0xff]   ;;  %v18912_v17 = vld [vmem:[%s24638_s3 + $0xf8c] ss:$16 sps:$4 sm:$0xff]  }
 0x475   :  { %15371 = vmatprep.subr.bf16.mxu0 %v18822_v60  ;;  %v18907_v60 = vld [vmem:[%s24638_s3 + $0xf80] ss:$16 sps:$4 sm:$0xff]  }
 0x477   :  { %14839 = vmatpush1.bf16.msra.mxu1 %v18817_v23  ;;  %v18910_v23 = vld [vmem:[%s24638_s3 + $0xf88] ss:$16 sps:$4 sm:$0xff]  }
 0x478   :  { %15372 = vmatpush1.bf16.msra.mxu0 %v18820_v42  ;;  %14840 = vmatprep.subr.bf16.mxu1 %v18825_v63  ;;  %v18915_v42 = vld [vmem:[%s24638_s3 + $0xfa4] ss:$16 sps:$4 sm:$0xff]   ;;  %v18918_v63 = vld [vmem:[%s24638_s3 + $0xfac] ss:$16 sps:$4 sm:$0xff]  }
 0x479   :  { %15373 = vmatprep.subr.bf16.mxu0 %v18828_v57  ;;  %v18913_v57 = vld [vmem:[%s24638_s3 + $0xfa0] ss:$16 sps:$4 sm:$0xff]  }
 0x47b   :  { %14841 = vmatpush1.bf16.msra.mxu1 %v18823_v50  ;;  %v18916_v50 = vld [vmem:[%s24638_s3 + $0xfa8] ss:$16 sps:$4 sm:$0xff]  }
 0x47c   :  { %15374 = vmatpush1.bf16.msra.mxu0 %v18826_v35  ;;  %14842 = vmatprep.subr.bf16.mxu1 %v18831_v52  ;;  %v18921_v35 = vld [vmem:[%s24638_s3 + $0xfc4] ss:$16 sps:$4 sm:$0xff]   ;;  %v18924_v52 = vld [vmem:[%s24638_s3 + $0xfcc] ss:$16 sps:$4 sm:$0xff]  }
 0x47d   :  { %15375 = vmatprep.subr.bf16.mxu0 %v18834_v2  ;;  %v18919_v2 = vld [vmem:[%s24638_s3 + $0xfc0] ss:$16 sps:$4 sm:$0xff]  }
 0x47f   :  { %14843 = vmatpush1.bf16.msra.mxu1 %v18829_v6  ;;  %v23636_v6 = vld [vmem:[#allocation2 + $0x10] sm:$0xff] }
 0x480   :  { %15376 = vmatpush1.bf16.msra.mxu0 %v18832_v30  ;;  %14853 = vmatprep.subr.bf16.mxu1 %v18837_v24  ;;  %v18922_v30 = vld [vmem:[%s24638_s3 + $0xfc8] ss:$16 sps:$4 sm:$0xff]   ;;  %v18927_v24 = vld [vmem:[%s24638_s3 + $0xfe4] ss:$16 sps:$4 sm:$0xff]  }
 0x481   :  { %15386 = vmatprep.subr.bf16.mxu0 %v18840_v58  ;;  %v18930_v58 = vld [vmem:[%s24638_s3 + $0xfec] ss:$16 sps:$4 sm:$0xff]  }
 0x482   :  { %14845 = vmatmul.mubr.bf16.vlgmr.msra.gmra.mrb[112].mxu1 %v23462_v3 }
 0x483   :  { %15378 = vmatmul.mubr.bf16.vlgmr.msra.gmra.mrb[140].mxu0 %v23462_v3  ;;  %14854 = vmatpush1.bf16.msra.mxu1 %v18835_v14  ;;  %v23649_v14 = vrot.slane %v23636_v6, %v19501_v22 }
 0x484   :  { %14885 = vmatprep.mubr.bf16.mxu1 %v10555_v28  ;;  %15387 = vmatpush1.bf16.msra.mxu0 %v18838_v8  ;;  %v18925_v8 = vld [vmem:[%s24638_s3 + $0xfe0] ss:$16 sps:$4 sm:$0xff]  }
 0x485   :  { %15418 = vmatprep.mubr.bf16.mxu0 %v10555_v28  ;;  %14855 = vmatprep.subr.bf16.mxu1 %v18843_v51  ;;  %v18928_v51 = vld [vmem:[%s24638_s3 + $0xfe8] ss:$16 sps:$4 sm:$0xff]   ;;  %v18933_v28 = vld [vmem:[%s24638_s3 + $0x1004] ss:$16 sps:$4 sm:$0xff]  }
 0x486   :  { %15388 = vmatprep.subr.bf16.mxu0 %v18846_v48  ;;  %v18936_v48 = vld [vmem:[%s24638_s3 + $0x100c] ss:$16 sps:$4 sm:$0xff]  }
 0x487   :  { %14856 = vmatpush1.bf16.msra.mxu1 %v18841_v26  ;;  %v10571_v26 = vcombine.high %v23649_v14, %v23649_v14 }
 0x488   :  { %15389 = vmatpush1.bf16.msra.mxu0 %v18844_v29  ;;  %14857 = vmatprep.subr.bf16.mxu1 %v18849_v49  ;;  %v18931_v29 = vld [vmem:[%s24638_s3 + $0x1000] ss:$16 sps:$4 sm:$0xff]   ;;  %v10553_v49 = vcombine.high %v23462_v3, %v23462_v3 }
 0x489   :  { %15390 = vmatprep.subr.bf16.mxu0 %v18852_v44  ;;  %v18934_v44 = vld [vmem:[%s24638_s3 + $0x1008] ss:$16 sps:$4 sm:$0xff]   ;;  %v18937_v3 = vld [vmem:[%s24638_s3 + $0x1020] ss:$16 sps:$4 sm:$0xff]  }
 0x48b   :  { %14858 = vmatpush1.bf16.msra.mxu1 %v18847_v32  ;;  %v18939_v32 = vld [vmem:[%s24638_s3 + $0x1024] ss:$16 sps:$4 sm:$0xff]  }
 0x48c   :  { %15391 = vmatpush1.bf16.msra.mxu0 %v18850_v12  ;;  %14859 = vmatprep.subr.bf16.mxu1 %v18855_v43  ;;  %v23677_v12 = vrot.slane %v10571_v26, %v19501_v22  ;;  %v18942_v43 = vld [vmem:[%s24638_s3 + $0x102c] ss:$16 sps:$4 sm:$0xff]   ;;  %v19023_v26 = vld [vmem:[%s24638_s3 + $0x11e4] ss:$16 sps:$4 sm:$0xff]  }
 0x48d   :  { %15392 = vmatprep.subr.bf16.mxu0 %v18858_v34  ;;  %v18940_v34 = vld [vmem:[%s24638_s3 + $0x1028] ss:$16 sps:$4 sm:$0xff]  }
 0x48f   :  { %14860 = vmatpush1.bf16.msra.mxu1 %v18853_v7  ;;  %v18945_v7 = vld [vmem:[%s24638_s3 + $0x1044] ss:$16 sps:$4 sm:$0xff]  }
 0x490   :  { %15393 = vmatpush1.bf16.msra.mxu0 %v18856_v16  ;;  %14861 = vmatprep.subr.bf16.mxu1 %v18861_v27  ;;  %v18948_v16 = vld [vmem:[%s24638_s3 + $0x104c] ss:$16 sps:$4 sm:$0xff]   ;;  %v18943_v27 = vld [vmem:[%s24638_s3 + $0x1040] ss:$16 sps:$4 sm:$0xff]  }
 0x491   :  { %15394 = vmatprep.subr.bf16.mxu0 %v18864_v61  ;;  %v18946_v61 = vld [vmem:[%s24638_s3 + $0x1048] ss:$16 sps:$4 sm:$0xff]  }
 0x493   :  { %14862 = vmatpush1.bf16.msra.mxu1 %v18859_v5  ;;  %v18951_v5 = vld [vmem:[%s24638_s3 + $0x1064] ss:$16 sps:$4 sm:$0xff]  }
 0x494   :  { %15395 = vmatpush1.bf16.msra.mxu0 %v18862_v10  ;;  %14863 = vmatprep.subr.bf16.mxu1 %v18867_v37  ;;  %v18954_v10 = vld [vmem:[%s24638_s3 + $0x106c] ss:$16 sps:$4 sm:$0xff]   ;;  %v18949_v37 = vld [vmem:[%s24638_s3 + $0x1060] ss:$16 sps:$4 sm:$0xff]  }
 0x495   :  { %15396 = vmatprep.subr.bf16.mxu0 %v18870_v38  ;;  %v18952_v38 = vld [vmem:[%s24638_s3 + $0x1068] ss:$16 sps:$4 sm:$0xff]  }
 0x497   :  { %14864 = vmatpush1.bf16.msra.mxu1 %v18865_v45  ;;  %v18957_v45 = vld [vmem:[%s24638_s3 + $0x1084] ss:$16 sps:$4 sm:$0xff]  }
 0x498   :  { %15397 = vmatpush1.bf16.msra.mxu0 %v18868_v36  ;;  %14865 = vmatprep.subr.bf16.mxu1 %v18873_v55  ;;  %v18960_v36 = vld [vmem:[%s24638_s3 + $0x108c] ss:$16 sps:$4 sm:$0xff]   ;;  %v18955_v55 = vld [vmem:[%s24638_s3 + $0x1080] ss:$16 sps:$4 sm:$0xff]  }
 0x499   :  { %15398 = vmatprep.subr.bf16.mxu0 %v18876_v53  ;;  %v18958_v53 = vld [vmem:[%s24638_s3 + $0x1088] ss:$16 sps:$4 sm:$0xff]  }
 0x49b   :  { %14866 = vmatpush1.bf16.msra.mxu1 %v18871_v11  ;;  %v18963_v11 = vld [vmem:[%s24638_s3 + $0x10a4] ss:$16 sps:$4 sm:$0xff]  }
 0x49c   :  { %15399 = vmatpush1.bf16.msra.mxu0 %v18874_v1  ;;  %14867 = vmatprep.subr.bf16.mxu1 %v18879_v47  ;;  %v18966_v1 = vld [vmem:[%s24638_s3 + $0x10ac] ss:$16 sps:$4 sm:$0xff]   ;;  %v18961_v47 = vld [vmem:[%s24638_s3 + $0x10a0] ss:$16 sps:$4 sm:$0xff]  }
 0x49d   :  { %15400 = vmatprep.subr.bf16.mxu0 %v18882_v21  ;;  %v18964_v21 = vld [vmem:[%s24638_s3 + $0x10a8] ss:$16 sps:$4 sm:$0xff]  }
 0x49f   :  { %14868 = vmatpush1.bf16.msra.mxu1 %v18877_v20  ;;  %v18969_v20 = vld [vmem:[%s24638_s3 + $0x10c4] ss:$16 sps:$4 sm:$0xff]  }
 0x4a0   :  { %15401 = vmatpush1.bf16.msra.mxu0 %v18880_v31  ;;  %14869 = vmatprep.subr.bf16.mxu1 %v18885_v39  ;;  %v18972_v31 = vld [vmem:[%s24638_s3 + $0x10cc] ss:$16 sps:$4 sm:$0xff]   ;;  %v18967_v39 = vld [vmem:[%s24638_s3 + $0x10c0] ss:$16 sps:$4 sm:$0xff]  }
 0x4a1   :  { %15402 = vmatprep.subr.bf16.mxu0 %v18888_v62  ;;  %v18970_v62 = vld [vmem:[%s24638_s3 + $0x10c8] ss:$16 sps:$4 sm:$0xff]  }
 0x4a3   :  { %14870 = vmatpush1.bf16.msra.mxu1 %v18883_v0  ;;  %v18975_v0 = vld [vmem:[%s24638_s3 + $0x10e4] ss:$16 sps:$4 sm:$0xff]  }
 0x4a4   :  { %15403 = vmatpush1.bf16.msra.mxu0 %v18886_v19  ;;  %14871 = vmatprep.subr.bf16.mxu1 %v18891_v25  ;;  %v18978_v19 = vld [vmem:[%s24638_s3 + $0x10ec] ss:$16 sps:$4 sm:$0xff]   ;;  %v18973_v25 = vld [vmem:[%s24638_s3 + $0x10e0] ss:$16 sps:$4 sm:$0xff]  }
 0x4a5   :  { %15404 = vmatprep.subr.bf16.mxu0 %v18894_v33  ;;  %v18976_v33 = vld [vmem:[%s24638_s3 + $0x10e8] ss:$16 sps:$4 sm:$0xff]  }
 0x4a7   :  { %14872 = vmatpush1.bf16.msra.mxu1 %v18889_v40  ;;  %v18981_v40 = vld [vmem:[%s24638_s3 + $0x1104] ss:$16 sps:$4 sm:$0xff]  }
 0x4a8   :  { %15405 = vmatpush1.bf16.msra.mxu0 %v18892_v15  ;;  %14873 = vmatprep.subr.bf16.mxu1 %v18897_v54  ;;  %v18984_v15 = vld [vmem:[%s24638_s3 + $0x110c] ss:$16 sps:$4 sm:$0xff]   ;;  %v18979_v54 = vld [vmem:[%s24638_s3 + $0x1100] ss:$16 sps:$4 sm:$0xff]  }
 0x4a9   :  { %15406 = vmatprep.subr.bf16.mxu0 %v18900_v18  ;;  %v18982_v18 = vld [vmem:[%s24638_s3 + $0x1108] ss:$16 sps:$4 sm:$0xff]  }
 0x4ab   :  { %14874 = vmatpush1.bf16.msra.mxu1 %v18895_v56  ;;  %v18987_v56 = vld [vmem:[%s24638_s3 + $0x1124] ss:$16 sps:$4 sm:$0xff]  }
 0x4ac   :  { %15407 = vmatpush1.bf16.msra.mxu0 %v18898_v9  ;;  %14875 = vmatprep.subr.bf16.mxu1 %v18903_v59  ;;  %v18990_v9 = vld [vmem:[%s24638_s3 + $0x112c] ss:$16 sps:$4 sm:$0xff]   ;;  %v18985_v59 = vld [vmem:[%s24638_s3 + $0x1120] ss:$16 sps:$4 sm:$0xff]  }
 0x4ad   :  { %15408 = vmatprep.subr.bf16.mxu0 %v18906_v46  ;;  %v18988_v46 = vld [vmem:[%s24638_s3 + $0x1128] ss:$16 sps:$4 sm:$0xff]  }
 0x4af   :  { %14876 = vmatpush1.bf16.msra.mxu1 %v18901_v41  ;;  %v18993_v41 = vld [vmem:[%s24638_s3 + $0x1144] ss:$16 sps:$4 sm:$0xff]  }
 0x4b0   :  { %15409 = vmatpush1.bf16.msra.mxu0 %v18904_v4  ;;  %14877 = vmatprep.subr.bf16.mxu1 %v18909_v13  ;;  %v18996_v4 = vld [vmem:[%s24638_s3 + $0x114c] ss:$16 sps:$4 sm:$0xff]   ;;  %v18991_v13 = vld [vmem:[%s24638_s3 + $0x1140] ss:$16 sps:$4 sm:$0xff]  }
 0x4b1   :  { %15410 = vmatprep.subr.bf16.mxu0 %v18912_v17  ;;  %v18994_v17 = vld [vmem:[%s24638_s3 + $0x1148] ss:$16 sps:$4 sm:$0xff]  }
 0x4b3   :  { %14878 = vmatpush1.bf16.msra.mxu1 %v18907_v60  ;;  %v18999_v60 = vld [vmem:[%s24638_s3 + $0x1164] ss:$16 sps:$4 sm:$0xff]  }
 0x4b4   :  { %15411 = vmatpush1.bf16.msra.mxu0 %v18910_v23  ;;  %14879 = vmatprep.subr.bf16.mxu1 %v18915_v42  ;;  %v19002_v23 = vld [vmem:[%s24638_s3 + $0x116c] ss:$16 sps:$4 sm:$0xff]   ;;  %v18997_v42 = vld [vmem:[%s24638_s3 + $0x1160] ss:$16 sps:$4 sm:$0xff]  }
 0x4b5   :  { %15412 = vmatprep.subr.bf16.mxu0 %v18918_v63  ;;  %v19000_v63 = vld [vmem:[%s24638_s3 + $0x1168] ss:$16 sps:$4 sm:$0xff]  }
 0x4b7   :  { %14880 = vmatpush1.bf16.msra.mxu1 %v18913_v57  ;;  %v19005_v57 = vld [vmem:[%s24638_s3 + $0x1184] ss:$16 sps:$4 sm:$0xff]  }
 0x4b8   :  { %15413 = vmatpush1.bf16.msra.mxu0 %v18916_v50  ;;  %14881 = vmatprep.subr.bf16.mxu1 %v18921_v35  ;;  %v19008_v50 = vld [vmem:[%s24638_s3 + $0x118c] ss:$16 sps:$4 sm:$0xff]   ;;  %v19003_v35 = vld [vmem:[%s24638_s3 + $0x1180] ss:$16 sps:$4 sm:$0xff]  }
 0x4b9   :  { %15414 = vmatprep.subr.bf16.mxu0 %v18924_v52  ;;  %v19006_v52 = vld [vmem:[%s24638_s3 + $0x1188] ss:$16 sps:$4 sm:$0xff]  }
 0x4bb   :  { %14882 = vmatpush1.bf16.msra.mxu1 %v18919_v2  ;;  %v19011_v2 = vld [vmem:[%s24638_s3 + $0x11a4] ss:$16 sps:$4 sm:$0xff]  }
 0x4bc   :  { %15415 = vmatpush1.bf16.msra.mxu0 %v18922_v30  ;;  %14883 = vmatprep.subr.bf16.mxu1 %v18927_v24  ;;  %v19014_v30 = vld [vmem:[%s24638_s3 + $0x11ac] ss:$16 sps:$4 sm:$0xff]   ;;  %v19009_v24 = vld [vmem:[%s24638_s3 + $0x11a0] ss:$16 sps:$4 sm:$0xff]  }
 0x4bd   :  { %15416 = vmatprep.subr.bf16.mxu0 %v18930_v58  ;;  %v19012_v58 = vld [vmem:[%s24638_s3 + $0x11a8] ss:$16 sps:$4 sm:$0xff]  }
 0x4bf   :  { %14884 = vmatpush1.bf16.msra.mxu1 %v18925_v8  ;;  %v19017_v8 = vld [vmem:[%s24638_s3 + $0x11c4] ss:$16 sps:$4 sm:$0xff]  }
 0x4c0   :  { %15417 = vmatpush1.bf16.msra.mxu0 %v18928_v51  ;;  %14894 = vmatprep.subr.bf16.mxu1 %v18933_v28  ;;  %v19020_v51 = vld [vmem:[%s24638_s3 + $0x11cc] ss:$16 sps:$4 sm:$0xff]   ;;  %v19015_v28 = vld [vmem:[%s24638_s3 + $0x11c0] ss:$16 sps:$4 sm:$0xff]  }
 0x4c1   :  { %15427 = vmatprep.subr.bf16.mxu0 %v18936_v48  ;;  %v19018_v48 = vld [vmem:[%s24638_s3 + $0x11c8] ss:$16 sps:$4 sm:$0xff]  }
 0x4c2   :  { %14886 = vmatmul.mubr.bf16.vlgmr.msra.gmra.mrb[112].mxu1 %v10553_v49 }
 0x4c3   :  { %15419 = vmatmul.mubr.bf16.vlgmr.msra.gmra.mrb[140].mxu0 %v10553_v49  ;;  %14895 = vmatpush1.bf16.msra.mxu1 %v18931_v29  ;;  %v19026_v29 = vld [vmem:[%s24638_s3 + $0x11ec] ss:$16 sps:$4 sm:$0xff]   ;;  %v19021_v49 = vld [vmem:[%s24638_s3 + $0x11e0] ss:$16 sps:$4 sm:$0xff]  }
 0x4c4   :  { %14926 = vmatprep.mubr.bf16.mxu1 %v23677_v12  ;;  %15428 = vmatpush1.bf16.msra.mxu0 %v18934_v44  ;;  %v19024_v44 = vld [vmem:[%s24638_s3 + $0x11e8] ss:$16 sps:$4 sm:$0xff]  }
 0x4c5   :  { %15459 = vmatprep.mubr.bf16.mxu0 %v23677_v12  ;;  %14896 = vmatprep.subr.bf16.mxu1 %v18939_v32  ;;  %v19029_v32 = vld [vmem:[%s24638_s3 + $0x1204] ss:$16 sps:$4 sm:$0xff]  }
 0x4c6   :  { %15429 = vmatprep.subr.bf16.mxu0 %v18942_v43  ;;  %v19032_v43 = vld [vmem:[%s24638_s3 + $0x120c] ss:$16 sps:$4 sm:$0xff]  }
 0x4c7   :  { %14897 = vmatpush1.bf16.msra.mxu1 %v18937_v3  ;;  %v19027_v3 = vld [vmem:[%s24638_s3 + $0x1200] ss:$16 sps:$4 sm:$0xff]  }
 0x4c8   :  { %15430 = vmatpush1.bf16.msra.mxu0 %v18940_v34  ;;  %14898 = vmatprep.subr.bf16.mxu1 %v18945_v7  ;;  %v23869_v34 = vrot.slane %v23649_v14, %v19501_v22  ;;  %v19030_v7 = vld [vmem:[%s24638_s3 + $0x1208] ss:$16 sps:$4 sm:$0xff]   ;;  %v19038_v14 = vld [vmem:[%s24638_s3 + $0x122c] ss:$16 sps:$4 sm:$0xff]  }
 0x4c9   :  { %15431 = vmatprep.subr.bf16.mxu0 %v18948_v16  ;;  %v19035_v16 = vld [vmem:[%s24638_s3 + $0x1224] ss:$16 sps:$4 sm:$0xff]  }
 0x4cb   :  { %14899 = vmatpush1.bf16.msra.mxu1 %v18943_v27  ;;  %v10603_v27 = vcombine.high %v23677_v12, %v23677_v12  ;;  %v19041_v12 = vld [vmem:[%s24638_s3 + $0x1244] ss:$16 sps:$4 sm:$0xff]  }
 0x4cc   :  { %15432 = vmatpush1.bf16.msra.mxu0 %v18946_v61  ;;  %14900 = vmatprep.subr.bf16.mxu1 %v18951_v5  ;;  %v19033_v61 = vld [vmem:[%s24638_s3 + $0x1220] ss:$16 sps:$4 sm:$0xff]   ;;  %v19036_v5 = vld [vmem:[%s24638_s3 + $0x1228] ss:$16 sps:$4 sm:$0xff]  }
 0x4cd   :  { %15433 = vmatprep.subr.bf16.mxu0 %v18954_v10  ;;  %v19044_v10 = vld [vmem:[%s24638_s3 + $0x124c] ss:$16 sps:$4 sm:$0xff]  }
 0x4cf   :  { %14901 = vmatpush1.bf16.msra.mxu1 %v18949_v37  ;;  %v19039_v37 = vld [vmem:[%s24638_s3 + $0x1240] ss:$16 sps:$4 sm:$0xff]  }
 0x4d0   :  { %15434 = vmatpush1.bf16.msra.mxu0 %v18952_v38  ;;  %14902 = vmatprep.subr.bf16.mxu1 %v18957_v45  ;;  %v19042_v38 = vld [vmem:[%s24638_s3 + $0x1248] ss:$16 sps:$4 sm:$0xff]   ;;  %v19047_v45 = vld [vmem:[%s24638_s3 + $0x1264] ss:$16 sps:$4 sm:$0xff]  }
 0x4d1   :  { %15435 = vmatprep.subr.bf16.mxu0 %v18960_v36  ;;  %v19050_v36 = vld [vmem:[%s24638_s3 + $0x126c] ss:$16 sps:$4 sm:$0xff]  }
 0x4d3   :  { %14903 = vmatpush1.bf16.msra.mxu1 %v18955_v55  ;;  %v19045_v55 = vld [vmem:[%s24638_s3 + $0x1260] ss:$16 sps:$4 sm:$0xff]  }
 0x4d4   :  { %15436 = vmatpush1.bf16.msra.mxu0 %v18958_v53  ;;  %14904 = vmatprep.subr.bf16.mxu1 %v18963_v11  ;;  %v19048_v53 = vld [vmem:[%s24638_s3 + $0x1268] ss:$16 sps:$4 sm:$0xff]   ;;  %v19053_v11 = vld [vmem:[%s24638_s3 + $0x1284] ss:$16 sps:$4 sm:$0xff]  }
 0x4d5   :  { %15437 = vmatprep.subr.bf16.mxu0 %v18966_v1  ;;  %v19056_v1 = vld [vmem:[%s24638_s3 + $0x128c] ss:$16 sps:$4 sm:$0xff]  }
 0x4d7   :  { %14905 = vmatpush1.bf16.msra.mxu1 %v18961_v47  ;;  %v19051_v47 = vld [vmem:[%s24638_s3 + $0x1280] ss:$16 sps:$4 sm:$0xff]  }
 0x4d8   :  { %15438 = vmatpush1.bf16.msra.mxu0 %v18964_v21  ;;  %14906 = vmatprep.subr.bf16.mxu1 %v18969_v20  ;;  %v19054_v21 = vld [vmem:[%s24638_s3 + $0x1288] ss:$16 sps:$4 sm:$0xff]   ;;  %v19059_v20 = vld [vmem:[%s24638_s3 + $0x12a4] ss:$16 sps:$4 sm:$0xff]  }
 0x4d9   :  { %15439 = vmatprep.subr.bf16.mxu0 %v18972_v31  ;;  %v19062_v31 = vld [vmem:[%s24638_s3 + $0x12ac] ss:$16 sps:$4 sm:$0xff]  }
 0x4db   :  { %14907 = vmatpush1.bf16.msra.mxu1 %v18967_v39  ;;  %v19057_v39 = vld [vmem:[%s24638_s3 + $0x12a0] ss:$16 sps:$4 sm:$0xff]  }
 0x4dc   :  { %15440 = vmatpush1.bf16.msra.mxu0 %v18970_v62  ;;  %14908 = vmatprep.subr.bf16.mxu1 %v18975_v0  ;;  %v19060_v62 = vld [vmem:[%s24638_s3 + $0x12a8] ss:$16 sps:$4 sm:$0xff]   ;;  %v19065_v0 = vld [vmem:[%s24638_s3 + $0x12c4] ss:$16 sps:$4 sm:$0xff]  }
 0x4dd   :  { %15441 = vmatprep.subr.bf16.mxu0 %v18978_v19  ;;  %v19068_v19 = vld [vmem:[%s24638_s3 + $0x12cc] ss:$16 sps:$4 sm:$0xff]  }
 0x4df   :  { %14909 = vmatpush1.bf16.msra.mxu1 %v18973_v25  ;;  %v19063_v25 = vld [vmem:[%s24638_s3 + $0x12c0] ss:$16 sps:$4 sm:$0xff]  }
 0x4e0   :  { %15442 = vmatpush1.bf16.msra.mxu0 %v18976_v33  ;;  %14910 = vmatprep.subr.bf16.mxu1 %v18981_v40  ;;  %v19066_v33 = vld [vmem:[%s24638_s3 + $0x12c8] ss:$16 sps:$4 sm:$0xff]   ;;  %v19071_v40 = vld [vmem:[%s24638_s3 + $0x12e4] ss:$16 sps:$4 sm:$0xff]  }
 0x4e1   :  { %15443 = vmatprep.subr.bf16.mxu0 %v18984_v15  ;;  %v19074_v15 = vld [vmem:[%s24638_s3 + $0x12ec] ss:$16 sps:$4 sm:$0xff]  }
 0x4e3   :  { %14911 = vmatpush1.bf16.msra.mxu1 %v18979_v54  ;;  %v19069_v54 = vld [vmem:[%s24638_s3 + $0x12e0] ss:$16 sps:$4 sm:$0xff]  }
 0x4e4   :  { %15444 = vmatpush1.bf16.msra.mxu0 %v18982_v18  ;;  %14912 = vmatprep.subr.bf16.mxu1 %v18987_v56  ;;  %v19072_v18 = vld [vmem:[%s24638_s3 + $0x12e8] ss:$16 sps:$4 sm:$0xff]   ;;  %v19077_v56 = vld [vmem:[%s24638_s3 + $0x1304] ss:$16 sps:$4 sm:$0xff]  }
 0x4e5   :  { %15445 = vmatprep.subr.bf16.mxu0 %v18990_v9  ;;  %v19080_v9 = vld [vmem:[%s24638_s3 + $0x130c] ss:$16 sps:$4 sm:$0xff]  }
 0x4e7   :  { %14913 = vmatpush1.bf16.msra.mxu1 %v18985_v59  ;;  %v19075_v59 = vld [vmem:[%s24638_s3 + $0x1300] ss:$16 sps:$4 sm:$0xff]  }
 0x4e8   :  { %15446 = vmatpush1.bf16.msra.mxu0 %v18988_v46  ;;  %14914 = vmatprep.subr.bf16.mxu1 %v18993_v41  ;;  %v19078_v46 = vld [vmem:[%s24638_s3 + $0x1308] ss:$16 sps:$4 sm:$0xff]   ;;  %v19083_v41 = vld [vmem:[%s24638_s3 + $0x1324] ss:$16 sps:$4 sm:$0xff]  }
 0x4e9   :  { %15447 = vmatprep.subr.bf16.mxu0 %v18996_v4  ;;  %v19086_v4 = vld [vmem:[%s24638_s3 + $0x132c] ss:$16 sps:$4 sm:$0xff]  }
 0x4eb   :  { %14915 = vmatpush1.bf16.msra.mxu1 %v18991_v13  ;;  %v19081_v13 = vld [vmem:[%s24638_s3 + $0x1320] ss:$16 sps:$4 sm:$0xff]  }
 0x4ec   :  { %15448 = vmatpush1.bf16.msra.mxu0 %v18994_v17  ;;  %14916 = vmatprep.subr.bf16.mxu1 %v18999_v60  ;;  %v19084_v17 = vld [vmem:[%s24638_s3 + $0x1328] ss:$16 sps:$4 sm:$0xff]   ;;  %v19089_v60 = vld [vmem:[%s24638_s3 + $0x1344] ss:$16 sps:$4 sm:$0xff]  }
 0x4ed   :  { %15449 = vmatprep.subr.bf16.mxu0 %v19002_v23  ;;  %v19092_v23 = vld [vmem:[%s24638_s3 + $0x134c] ss:$16 sps:$4 sm:$0xff]  }
 0x4ef   :  { %14917 = vmatpush1.bf16.msra.mxu1 %v18997_v42  ;;  %v19087_v42 = vld [vmem:[%s24638_s3 + $0x1340] ss:$16 sps:$4 sm:$0xff]  }
 0x4f0   :  { %15450 = vmatpush1.bf16.msra.mxu0 %v19000_v63  ;;  %14918 = vmatprep.subr.bf16.mxu1 %v19005_v57  ;;  %v19090_v63 = vld [vmem:[%s24638_s3 + $0x1348] ss:$16 sps:$4 sm:$0xff]   ;;  %v19095_v57 = vld [vmem:[%s24638_s3 + $0x1364] ss:$16 sps:$4 sm:$0xff]  }
 0x4f1   :  { %15451 = vmatprep.subr.bf16.mxu0 %v19008_v50  ;;  %v19098_v50 = vld [vmem:[%s24638_s3 + $0x136c] ss:$16 sps:$4 sm:$0xff]  }
 0x4f3   :  { %14919 = vmatpush1.bf16.msra.mxu1 %v19003_v35  ;;  %v19093_v35 = vld [vmem:[%s24638_s3 + $0x1360] ss:$16 sps:$4 sm:$0xff]  }
 0x4f4   :  { %15452 = vmatpush1.bf16.msra.mxu0 %v19006_v52  ;;  %14920 = vmatprep.subr.bf16.mxu1 %v19011_v2  ;;  %v19096_v52 = vld [vmem:[%s24638_s3 + $0x1368] ss:$16 sps:$4 sm:$0xff]   ;;  %v19101_v2 = vld [vmem:[%s24638_s3 + $0x1384] ss:$16 sps:$4 sm:$0xff]  }
 0x4f5   :  { %15453 = vmatprep.subr.bf16.mxu0 %v19014_v30  ;;  %v19104_v30 = vld [vmem:[%s24638_s3 + $0x138c] ss:$16 sps:$4 sm:$0xff]  }
 0x4f7   :  { %14921 = vmatpush1.bf16.msra.mxu1 %v19009_v24  ;;  %v19099_v24 = vld [vmem:[%s24638_s3 + $0x1380] ss:$16 sps:$4 sm:$0xff]  }
 0x4f8   :  { %15454 = vmatpush1.bf16.msra.mxu0 %v19012_v58  ;;  %14922 = vmatprep.subr.bf16.mxu1 %v19017_v8  ;;  %v19102_v58 = vld [vmem:[%s24638_s3 + $0x1388] ss:$16 sps:$4 sm:$0xff]   ;;  %v19107_v8 = vld [vmem:[%s24638_s3 + $0x13a4] ss:$16 sps:$4 sm:$0xff]  }
 0x4f9   :  { %15455 = vmatprep.subr.bf16.mxu0 %v19020_v51  ;;  %v19110_v51 = vld [vmem:[%s24638_s3 + $0x13ac] ss:$16 sps:$4 sm:$0xff]  }
 0x4fb   :  { %14923 = vmatpush1.bf16.msra.mxu1 %v19015_v28  ;;  %v19105_v28 = vld [vmem:[%s24638_s3 + $0x13a0] ss:$16 sps:$4 sm:$0xff]  }
 0x4fc   :  { %15456 = vmatpush1.bf16.msra.mxu0 %v19018_v48  ;;  %14924 = vmatprep.subr.bf16.mxu1 %v19023_v26  ;;  %v19108_v48 = vld [vmem:[%s24638_s3 + $0x13a8] ss:$16 sps:$4 sm:$0xff]   ;;  %v19113_v26 = vld [vmem:[%s24638_s3 + $0x13c4] ss:$16 sps:$4 sm:$0xff]  }
 0x4fd   :  { %15457 = vmatprep.subr.bf16.mxu0 %v19026_v29  ;;  %v19116_v29 = vld [vmem:[%s24638_s3 + $0x13cc] ss:$16 sps:$4 sm:$0xff]  }
 0x4ff   :  { %14925 = vmatpush1.bf16.msra.mxu1 %v19021_v49  ;;  %v10556_v49 = vcombine.high %v23636_v6, %v23636_v6  ;;  %v19122_v6 = vld [vmem:[%s24638_s3 + $0x13ec] ss:$16 sps:$4 sm:$0xff]  }
 0x500   :  { %15458 = vmatpush1.bf16.msra.mxu0 %v19024_v44  ;;  %14935 = vmatprep.subr.bf16.mxu1 %v19029_v32  ;;  %v19111_v44 = vld [vmem:[%s24638_s3 + $0x13c0] ss:$16 sps:$4 sm:$0xff]   ;;  %v19114_v32 = vld [vmem:[%s24638_s3 + $0x13c8] ss:$16 sps:$4 sm:$0xff]  }
 0x501   :  { %15468 = vmatprep.subr.bf16.mxu0 %v19032_v43  ;;  %v19119_v43 = vld [vmem:[%s24638_s3 + $0x13e4] ss:$16 sps:$4 sm:$0xff]  }
 0x502   :  { %14927 = vmatmul.mubr.bf16.vlgmr.msra.gmra.mrb[112].mxu1 %v23869_v34 }
 0x503   :  { %15460 = vmatmul.mubr.bf16.vlgmr.msra.gmra.mrb[140].mxu0 %v23869_v34  ;;  %14936 = vmatpush1.bf16.msra.mxu1 %v19027_v3  ;;  %v24055_v3 = vrot.slane %v10556_v49, %v19501_v22  ;;  %v19204_v49 = vld [vmem:[%s24638_s3 + $0x15a4] ss:$16 sps:$4 sm:$0xff]  }
 0x504   :  { %14967 = vmatprep.mubr.bf16.mxu1 %v10603_v27  ;;  %15469 = vmatpush1.bf16.msra.mxu0 %v19030_v7  ;;  %v19117_v7 = vld [vmem:[%s24638_s3 + $0x13e0] ss:$16 sps:$4 sm:$0xff]  }
 0x505   :  { %15500 = vmatprep.mubr.bf16.mxu0 %v10603_v27  ;;  %14937 = vmatprep.subr.bf16.mxu1 %v19035_v16  ;;  %v19120_v16 = vld [vmem:[%s24638_s3 + $0x13e8] ss:$16 sps:$4 sm:$0xff]   ;;  %v19125_v27 = vld [vmem:[%s24638_s3 + $0x1404] ss:$16 sps:$4 sm:$0xff]  }
 0x506   :  { %15470 = vmatprep.subr.bf16.mxu0 %v19038_v14  ;;  %v19128_v14 = vld [vmem:[%s24638_s3 + $0x140c] ss:$16 sps:$4 sm:$0xff]  }
 0x507   :  { %14938 = vmatpush1.bf16.msra.mxu1 %v19033_v61  ;;  %v10572_v61 = vcombine.high %v24055_v3, %v24055_v3 }
 0x508   :  { %15471 = vmatpush1.bf16.msra.mxu0 %v19036_v5  ;;  %14939 = vmatprep.subr.bf16.mxu1 %v19041_v12  ;;  %v19123_v5 = vld [vmem:[%s24638_s3 + $0x1400] ss:$16 sps:$4 sm:$0xff]   ;;  %v10601_v12 = vcombine.high %v23869_v34, %v23869_v34 }
 0x509   :  { %15472 = vmatprep.subr.bf16.mxu0 %v19044_v10  ;;  %v19126_v10 = vld [vmem:[%s24638_s3 + $0x1408] ss:$16 sps:$4 sm:$0xff]   ;;  %v19130_v34 = vld [vmem:[%s24638_s3 + $0x1420] ss:$16 sps:$4 sm:$0xff]  }
 0x50b   :  { %14940 = vmatpush1.bf16.msra.mxu1 %v19039_v37  ;;  %v19132_v37 = vld [vmem:[%s24638_s3 + $0x1424] ss:$16 sps:$4 sm:$0xff]  }
 0x50c   :  { %15473 = vmatpush1.bf16.msra.mxu0 %v19042_v38  ;;  %14941 = vmatprep.subr.bf16.mxu1 %v19047_v45  ;;  %v24083_v38 = vrot.slane %v10572_v61, %v19501_v22  ;;  %v19135_v45 = vld [vmem:[%s24638_s3 + $0x142c] ss:$16 sps:$4 sm:$0xff]  }
 0x50d   :  { %15474 = vmatprep.subr.bf16.mxu0 %v19050_v36  ;;  %v19133_v36 = vld [vmem:[%s24638_s3 + $0x1428] ss:$16 sps:$4 sm:$0xff]   ;;  %v19219_v61 = vld [vmem:[%s24638_s3 + $0x15ec] ss:$16 sps:$4 sm:$0xff]  }
 0x50f   :  { %14942 = vmatpush1.bf16.msra.mxu1 %v19045_v55  ;;  %v19138_v55 = vld [vmem:[%s24638_s3 + $0x1444] ss:$16 sps:$4 sm:$0xff]  }
 0x510   :  { %15475 = vmatpush1.bf16.msra.mxu0 %v19048_v53  ;;  %14943 = vmatprep.subr.bf16.mxu1 %v19053_v11  ;;  %v19141_v53 = vld [vmem:[%s24638_s3 + $0x144c] ss:$16 sps:$4 sm:$0xff]   ;;  %v19136_v11 = vld [vmem:[%s24638_s3 + $0x1440] ss:$16 sps:$4 sm:$0xff]  }
 0x511   :  { %15476 = vmatprep.subr.bf16.mxu0 %v19056_v1  ;;  %v19139_v1 = vld [vmem:[%s24638_s3 + $0x1448] ss:$16 sps:$4 sm:$0xff]  }
 0x513   :  { %14944 = vmatpush1.bf16.msra.mxu1 %v19051_v47  ;;  %v19144_v47 = vld [vmem:[%s24638_s3 + $0x1464] ss:$16 sps:$4 sm:$0xff]  }
 0x514   :  { %15477 = vmatpush1.bf16.msra.mxu0 %v19054_v21  ;;  %14945 = vmatprep.subr.bf16.mxu1 %v19059_v20  ;;  %v19147_v21 = vld [vmem:[%s24638_s3 + $0x146c] ss:$16 sps:$4 sm:$0xff]   ;;  %v19142_v20 = vld [vmem:[%s24638_s3 + $0x1460] ss:$16 sps:$4 sm:$0xff]  }
 0x515   :  { %15478 = vmatprep.subr.bf16.mxu0 %v19062_v31  ;;  %v19145_v31 = vld [vmem:[%s24638_s3 + $0x1468] ss:$16 sps:$4 sm:$0xff]  }
 0x517   :  { %14946 = vmatpush1.bf16.msra.mxu1 %v19057_v39  ;;  %v19150_v39 = vld [vmem:[%s24638_s3 + $0x1484] ss:$16 sps:$4 sm:$0xff]  }
 0x518   :  { %15479 = vmatpush1.bf16.msra.mxu0 %v19060_v62  ;;  %14947 = vmatprep.subr.bf16.mxu1 %v19065_v0  ;;  %v19153_v62 = vld [vmem:[%s24638_s3 + $0x148c] ss:$16 sps:$4 sm:$0xff]   ;;  %v19148_v0 = vld [vmem:[%s24638_s3 + $0x1480] ss:$16 sps:$4 sm:$0xff]  }
 0x519   :  { %15480 = vmatprep.subr.bf16.mxu0 %v19068_v19  ;;  %v19151_v19 = vld [vmem:[%s24638_s3 + $0x1488] ss:$16 sps:$4 sm:$0xff]  }
 0x51b   :  { %14948 = vmatpush1.bf16.msra.mxu1 %v19063_v25  ;;  %v19156_v25 = vld [vmem:[%s24638_s3 + $0x14a4] ss:$16 sps:$4 sm:$0xff]  }
 0x51c   :  { %15481 = vmatpush1.bf16.msra.mxu0 %v19066_v33  ;;  %14949 = vmatprep.subr.bf16.mxu1 %v19071_v40  ;;  %v19159_v33 = vld [vmem:[%s24638_s3 + $0x14ac] ss:$16 sps:$4 sm:$0xff]   ;;  %v19154_v40 = vld [vmem:[%s24638_s3 + $0x14a0] ss:$16 sps:$4 sm:$0xff]  }
 0x51d   :  { %15482 = vmatprep.subr.bf16.mxu0 %v19074_v15  ;;  %v19157_v15 = vld [vmem:[%s24638_s3 + $0x14a8] ss:$16 sps:$4 sm:$0xff]  }
 0x51f   :  { %14950 = vmatpush1.bf16.msra.mxu1 %v19069_v54  ;;  %v19162_v54 = vld [vmem:[%s24638_s3 + $0x14c4] ss:$16 sps:$4 sm:$0xff]  }
 0x520   :  { %15483 = vmatpush1.bf16.msra.mxu0 %v19072_v18  ;;  %14951 = vmatprep.subr.bf16.mxu1 %v19077_v56  ;;  %v19165_v18 = vld [vmem:[%s24638_s3 + $0x14cc] ss:$16 sps:$4 sm:$0xff]   ;;  %v19160_v56 = vld [vmem:[%s24638_s3 + $0x14c0] ss:$16 sps:$4 sm:$0xff]  }
 0x521   :  { %15484 = vmatprep.subr.bf16.mxu0 %v19080_v9  ;;  %v19163_v9 = vld [vmem:[%s24638_s3 + $0x14c8] ss:$16 sps:$4 sm:$0xff]  }
 0x523   :  { %14952 = vmatpush1.bf16.msra.mxu1 %v19075_v59  ;;  %v19168_v59 = vld [vmem:[%s24638_s3 + $0x14e4] ss:$16 sps:$4 sm:$0xff]  }
 0x524   :  { %15485 = vmatpush1.bf16.msra.mxu0 %v19078_v46  ;;  %14953 = vmatprep.subr.bf16.mxu1 %v19083_v41  ;;  %v19171_v46 = vld [vmem:[%s24638_s3 + $0x14ec] ss:$16 sps:$4 sm:$0xff]   ;;  %v19166_v41 = vld [vmem:[%s24638_s3 + $0x14e0] ss:$16 sps:$4 sm:$0xff]  }
 0x525   :  { %15486 = vmatprep.subr.bf16.mxu0 %v19086_v4  ;;  %v19169_v4 = vld [vmem:[%s24638_s3 + $0x14e8] ss:$16 sps:$4 sm:$0xff]  }
 0x527   :  { %14954 = vmatpush1.bf16.msra.mxu1 %v19081_v13  ;;  %v19174_v13 = vld [vmem:[%s24638_s3 + $0x1504] ss:$16 sps:$4 sm:$0xff]  }
 0x528   :  { %15487 = vmatpush1.bf16.msra.mxu0 %v19084_v17  ;;  %14955 = vmatprep.subr.bf16.mxu1 %v19089_v60  ;;  %v19177_v17 = vld [vmem:[%s24638_s3 + $0x150c] ss:$16 sps:$4 sm:$0xff]   ;;  %v19172_v60 = vld [vmem:[%s24638_s3 + $0x1500] ss:$16 sps:$4 sm:$0xff]  }
 0x529   :  { %15488 = vmatprep.subr.bf16.mxu0 %v19092_v23  ;;  %v19175_v23 = vld [vmem:[%s24638_s3 + $0x1508] ss:$16 sps:$4 sm:$0xff]  }
 0x52b   :  { %14956 = vmatpush1.bf16.msra.mxu1 %v19087_v42  ;;  %v19180_v42 = vld [vmem:[%s24638_s3 + $0x1524] ss:$16 sps:$4 sm:$0xff]  }
 0x52c   :  { %15489 = vmatpush1.bf16.msra.mxu0 %v19090_v63  ;;  %14957 = vmatprep.subr.bf16.mxu1 %v19095_v57  ;;  %v19183_v63 = vld [vmem:[%s24638_s3 + $0x152c] ss:$16 sps:$4 sm:$0xff]   ;;  %v19178_v57 = vld [vmem:[%s24638_s3 + $0x1520] ss:$16 sps:$4 sm:$0xff]  }
 0x52d   :  { %15490 = vmatprep.subr.bf16.mxu0 %v19098_v50  ;;  %v19181_v50 = vld [vmem:[%s24638_s3 + $0x1528] ss:$16 sps:$4 sm:$0xff]  }
 0x52f   :  { %14958 = vmatpush1.bf16.msra.mxu1 %v19093_v35  ;;  %v19186_v35 = vld [vmem:[%s24638_s3 + $0x1544] ss:$16 sps:$4 sm:$0xff]  }
 0x530   :  { %15491 = vmatpush1.bf16.msra.mxu0 %v19096_v52  ;;  %14959 = vmatprep.subr.bf16.mxu1 %v19101_v2  ;;  %v19189_v52 = vld [vmem:[%s24638_s3 + $0x154c] ss:$16 sps:$4 sm:$0xff]   ;;  %v19184_v2 = vld [vmem:[%s24638_s3 + $0x1540] ss:$16 sps:$4 sm:$0xff]  }
 0x531   :  { %15492 = vmatprep.subr.bf16.mxu0 %v19104_v30  ;;  %v19187_v30 = vld [vmem:[%s24638_s3 + $0x1548] ss:$16 sps:$4 sm:$0xff]  }
 0x533   :  { %14960 = vmatpush1.bf16.msra.mxu1 %v19099_v24  ;;  %v19192_v24 = vld [vmem:[%s24638_s3 + $0x1564] ss:$16 sps:$4 sm:$0xff]  }
 0x534   :  { %15493 = vmatpush1.bf16.msra.mxu0 %v19102_v58  ;;  %14961 = vmatprep.subr.bf16.mxu1 %v19107_v8  ;;  %v19195_v58 = vld [vmem:[%s24638_s3 + $0x156c] ss:$16 sps:$4 sm:$0xff]   ;;  %v19190_v8 = vld [vmem:[%s24638_s3 + $0x1560] ss:$16 sps:$4 sm:$0xff]  }
 0x535   :  { %15494 = vmatprep.subr.bf16.mxu0 %v19110_v51  ;;  %v19193_v51 = vld [vmem:[%s24638_s3 + $0x1568] ss:$16 sps:$4 sm:$0xff]  }
 0x537   :  { %14962 = vmatpush1.bf16.msra.mxu1 %v19105_v28  ;;  %v19198_v28 = vld [vmem:[%s24638_s3 + $0x1584] ss:$16 sps:$4 sm:$0xff]  }
 0x538   :  { %15495 = vmatpush1.bf16.msra.mxu0 %v19108_v48  ;;  %14963 = vmatprep.subr.bf16.mxu1 %v19113_v26  ;;  %v19201_v48 = vld [vmem:[%s24638_s3 + $0x158c] ss:$16 sps:$4 sm:$0xff]   ;;  %v19196_v26 = vld [vmem:[%s24638_s3 + $0x1580] ss:$16 sps:$4 sm:$0xff]  }
 0x539   :  { %15496 = vmatprep.subr.bf16.mxu0 %v19116_v29  ;;  %v19199_v29 = vld [vmem:[%s24638_s3 + $0x1588] ss:$16 sps:$4 sm:$0xff]  }
 0x53b   :  { %14964 = vmatpush1.bf16.msra.mxu1 %v19111_v44  ;;  %v19207_v44 = vld [vmem:[%s24638_s3 + $0x15ac] ss:$16 sps:$4 sm:$0xff]  }
 0x53c   :  { %15497 = vmatpush1.bf16.msra.mxu0 %v19114_v32  ;;  %14965 = vmatprep.subr.bf16.mxu1 %v19119_v43  ;;  %v19202_v32 = vld [vmem:[%s24638_s3 + $0x15a0] ss:$16 sps:$4 sm:$0xff]   ;;  %v19205_v43 = vld [vmem:[%s24638_s3 + $0x15a8] ss:$16 sps:$4 sm:$0xff]  }
 0x53d   :  { %15498 = vmatprep.subr.bf16.mxu0 %v19122_v6  ;;  %v19210_v6 = vld [vmem:[%s24638_s3 + $0x15c4] ss:$16 sps:$4 sm:$0xff]  }
 0x53f   :  { %14966 = vmatpush1.bf16.msra.mxu1 %v19117_v7  ;;  %v19213_v7 = vld [vmem:[%s24638_s3 + $0x15cc] ss:$16 sps:$4 sm:$0xff]  }
 0x540   :  { %15499 = vmatpush1.bf16.msra.mxu0 %v19120_v16  ;;  %14976 = vmatprep.subr.bf16.mxu1 %v19125_v27  ;;  %v19208_v16 = vld [vmem:[%s24638_s3 + $0x15c0] ss:$16 sps:$4 sm:$0xff]   ;;  %v19211_v27 = vld [vmem:[%s24638_s3 + $0x15c8] ss:$16 sps:$4 sm:$0xff]  }
 0x541   :  { %15509 = vmatprep.subr.bf16.mxu0 %v19128_v14  ;;  %v19216_v14 = vld [vmem:[%s24638_s3 + $0x15e4] ss:$16 sps:$4 sm:$0xff]  }
 0x542   :  { %14968 = vmatmul.mubr.bf16.vlgmr.msra.gmra.mrb[112].mxu1 %v10601_v12 }
 0x543   :  { %15501 = vmatmul.mubr.bf16.vlgmr.msra.gmra.mrb[140].mxu0 %v10601_v12  ;;  %14977 = vmatpush1.bf16.msra.mxu1 %v19123_v5  ;;  %v19214_v5 = vld [vmem:[%s24638_s3 + $0x15e0] ss:$16 sps:$4 sm:$0xff]   ;;  %v19217_v12 = vld [vmem:[%s24638_s3 + $0x15e8] ss:$16 sps:$4 sm:$0xff]  }
 0x544   :  { %15008 = vmatprep.mubr.bf16.mxu1 %v24083_v38  ;;  %15510 = vmatpush1.bf16.msra.mxu0 %v19126_v10  ;;  %v19222_v10 = vld [vmem:[%s24638_s3 + $0x1604] ss:$16 sps:$4 sm:$0xff]  }
 0x545   :  { %15541 = vmatprep.mubr.bf16.mxu0 %v24083_v38  ;;  %14978 = vmatprep.subr.bf16.mxu1 %v19132_v37  ;;  %v19225_v37 = vld [vmem:[%s24638_s3 + $0x160c] ss:$16 sps:$4 sm:$0xff]  }
 0x546   :  { %15511 = vmatprep.subr.bf16.mxu0 %v19135_v45  ;;  %v19220_v45 = vld [vmem:[%s24638_s3 + $0x1600] ss:$16 sps:$4 sm:$0xff]  }
 0x547   :  { %14979 = vmatpush1.bf16.msra.mxu1 %v19130_v34  ;;  %v24275_v34 = vrot.slane %v24055_v3, %v19501_v22  ;;  %v19231_v3 = vld [vmem:[%s24638_s3 + $0x162c] ss:$16 sps:$4 sm:$0xff]  }
 0x548   :  { %15512 = vmatpush1.bf16.msra.mxu0 %v19133_v36  ;;  %14980 = vmatprep.subr.bf16.mxu1 %v19138_v55  ;;  %v19223_v36 = vld [vmem:[%s24638_s3 + $0x1608] ss:$16 sps:$4 sm:$0xff]   ;;  %v19228_v55 = vld [vmem:[%s24638_s3 + $0x1624] ss:$16 sps:$4 sm:$0xff]  }
 0x549   :  { %15513 = vmatprep.subr.bf16.mxu0 %v19141_v53  ;;  %v10604_v53 = vcombine.high %v24083_v38, %v24083_v38  ;;  %v19234_v38 = vld [vmem:[%s24638_s3 + $0x1644] ss:$16 sps:$4 sm:$0xff]  }
 0x54b   :  { %14981 = vmatpush1.bf16.msra.mxu1 %v19136_v11  ;;  %v19226_v11 = vld [vmem:[%s24638_s3 + $0x1620] ss:$16 sps:$4 sm:$0xff]  }
 0x54c   :  { %15514 = vmatpush1.bf16.msra.mxu0 %v19139_v1  ;;  %14982 = vmatprep.subr.bf16.mxu1 %v19144_v47  ;;  %v19229_v1 = vld [vmem:[%s24638_s3 + $0x1628] ss:$16 sps:$4 sm:$0xff]   ;;  %v19237_v47 = vld [vmem:[%s24638_s3 + $0x164c] ss:$16 sps:$4 sm:$0xff]  }
 0x54d   :  { %15515 = vmatprep.subr.bf16.mxu0 %v19147_v21  ;;  %v19232_v21 = vld [vmem:[%s24638_s3 + $0x1640] ss:$16 sps:$4 sm:$0xff]  }
 0x54f   :  { %14983 = vmatpush1.bf16.msra.mxu1 %v19142_v20  ;;  %v19235_v20 = vld [vmem:[%s24638_s3 + $0x1648] ss:$16 sps:$4 sm:$0xff]  }
 0x550   :  { %15516 = vmatpush1.bf16.msra.mxu0 %v19145_v31  ;;  %14984 = vmatprep.subr.bf16.mxu1 %v19150_v39  ;;  %v19240_v31 = vld [vmem:[%s24638_s3 + $0x1664] ss:$16 sps:$4 sm:$0xff]   ;;  %v19243_v39 = vld [vmem:[%s24638_s3 + $0x166c] ss:$16 sps:$4 sm:$0xff]  }
 0x551   :  { %15517 = vmatprep.subr.bf16.mxu0 %v19153_v62  ;;  %v19238_v62 = vld [vmem:[%s24638_s3 + $0x1660] ss:$16 sps:$4 sm:$0xff]  }
 0x553   :  { %14985 = vmatpush1.bf16.msra.mxu1 %v19148_v0  ;;  %v19241_v0 = vld [vmem:[%s24638_s3 + $0x1668] ss:$16 sps:$4 sm:$0xff]  }
 0x554   :  { %15518 = vmatpush1.bf16.msra.mxu0 %v19151_v19  ;;  %14986 = vmatprep.subr.bf16.mxu1 %v19156_v25  ;;  %v19246_v19 = vld [vmem:[%s24638_s3 + $0x1684] ss:$16 sps:$4 sm:$0xff]   ;;  %v19249_v25 = vld [vmem:[%s24638_s3 + $0x168c] ss:$16 sps:$4 sm:$0xff]  }
 0x555   :  { %15519 = vmatprep.subr.bf16.mxu0 %v19159_v33  ;;  %v19244_v33 = vld [vmem:[%s24638_s3 + $0x1680] ss:$16 sps:$4 sm:$0xff]  }
 0x557   :  { %14987 = vmatpush1.bf16.msra.mxu1 %v19154_v40  ;;  %v19247_v40 = vld [vmem:[%s24638_s3 + $0x1688] ss:$16 sps:$4 sm:$0xff]  }
 0x558   :  { %15520 = vmatpush1.bf16.msra.mxu0 %v19157_v15  ;;  %14988 = vmatprep.subr.bf16.mxu1 %v19162_v54  ;;  %v19252_v15 = vld [vmem:[%s24638_s3 + $0x16a4] ss:$16 sps:$4 sm:$0xff]   ;;  %v19255_v54 = vld [vmem:[%s24638_s3 + $0x16ac] ss:$16 sps:$4 sm:$0xff]  }
 0x559   :  { %15521 = vmatprep.subr.bf16.mxu0 %v19165_v18  ;;  %v19250_v18 = vld [vmem:[%s24638_s3 + $0x16a0] ss:$16 sps:$4 sm:$0xff]  }
 0x55b   :  { %14989 = vmatpush1.bf16.msra.mxu1 %v19160_v56  ;;  %v19253_v56 = vld [vmem:[%s24638_s3 + $0x16a8] ss:$16 sps:$4 sm:$0xff]  }
 0x55c   :  { %15522 = vmatpush1.bf16.msra.mxu0 %v19163_v9  ;;  %14990 = vmatprep.subr.bf16.mxu1 %v19168_v59  ;;  %v19258_v9 = vld [vmem:[%s24638_s3 + $0x16c4] ss:$16 sps:$4 sm:$0xff]   ;;  %v19261_v59 = vld [vmem:[%s24638_s3 + $0x16cc] ss:$16 sps:$4 sm:$0xff]  }
 0x55d   :  { %15523 = vmatprep.subr.bf16.mxu0 %v19171_v46  ;;  %v19256_v46 = vld [vmem:[%s24638_s3 + $0x16c0] ss:$16 sps:$4 sm:$0xff]  }
 0x55f   :  { %14991 = vmatpush1.bf16.msra.mxu1 %v19166_v41  ;;  %v19259_v41 = vld [vmem:[%s24638_s3 + $0x16c8] ss:$16 sps:$4 sm:$0xff]  }
 0x560   :  { %15524 = vmatpush1.bf16.msra.mxu0 %v19169_v4  ;;  %14992 = vmatprep.subr.bf16.mxu1 %v19174_v13  ;;  %v19264_v4 = vld [vmem:[%s24638_s3 + $0x16e4] ss:$16 sps:$4 sm:$0xff]   ;;  %v19267_v13 = vld [vmem:[%s24638_s3 + $0x16ec] ss:$16 sps:$4 sm:$0xff]  }
 0x561   :  { %15525 = vmatprep.subr.bf16.mxu0 %v19177_v17  ;;  %v19262_v17 = vld [vmem:[%s24638_s3 + $0x16e0] ss:$16 sps:$4 sm:$0xff]  }
 0x563   :  { %14993 = vmatpush1.bf16.msra.mxu1 %v19172_v60  ;;  %v19265_v60 = vld [vmem:[%s24638_s3 + $0x16e8] ss:$16 sps:$4 sm:$0xff]  }
 0x564   :  { %15526 = vmatpush1.bf16.msra.mxu0 %v19175_v23  ;;  %14994 = vmatprep.subr.bf16.mxu1 %v19180_v42  ;;  %v19270_v23 = vld [vmem:[%s24638_s3 + $0x1704] ss:$16 sps:$4 sm:$0xff]   ;;  %v19273_v42 = vld [vmem:[%s24638_s3 + $0x170c] ss:$16 sps:$4 sm:$0xff]  }
 0x565   :  { %15527 = vmatprep.subr.bf16.mxu0 %v19183_v63  ;;  %v19268_v63 = vld [vmem:[%s24638_s3 + $0x1700] ss:$16 sps:$4 sm:$0xff]  }
 0x567   :  { %14995 = vmatpush1.bf16.msra.mxu1 %v19178_v57  ;;  %v19271_v57 = vld [vmem:[%s24638_s3 + $0x1708] ss:$16 sps:$4 sm:$0xff]  }
 0x568   :  { %15528 = vmatpush1.bf16.msra.mxu0 %v19181_v50  ;;  %14996 = vmatprep.subr.bf16.mxu1 %v19186_v35  ;;  %v19276_v50 = vld [vmem:[%s24638_s3 + $0x1724] ss:$16 sps:$4 sm:$0xff]   ;;  %v19279_v35 = vld [vmem:[%s24638_s3 + $0x172c] ss:$16 sps:$4 sm:$0xff]  }
 0x569   :  { %15529 = vmatprep.subr.bf16.mxu0 %v19189_v52  ;;  %v19274_v52 = vld [vmem:[%s24638_s3 + $0x1720] ss:$16 sps:$4 sm:$0xff]  }
 0x56b   :  { %14997 = vmatpush1.bf16.msra.mxu1 %v19184_v2  ;;  %v19277_v2 = vld [vmem:[%s24638_s3 + $0x1728] ss:$16 sps:$4 sm:$0xff]  }
 0x56c   :  { %15530 = vmatpush1.bf16.msra.mxu0 %v19187_v30  ;;  %14998 = vmatprep.subr.bf16.mxu1 %v19192_v24  ;;  %v19282_v30 = vld [vmem:[%s24638_s3 + $0x1744] ss:$16 sps:$4 sm:$0xff]   ;;  %v19285_v24 = vld [vmem:[%s24638_s3 + $0x174c] ss:$16 sps:$4 sm:$0xff]  }
 0x56d   :  { %15531 = vmatprep.subr.bf16.mxu0 %v19195_v58  ;;  %v19280_v58 = vld [vmem:[%s24638_s3 + $0x1740] ss:$16 sps:$4 sm:$0xff]  }
 0x56f   :  { %14999 = vmatpush1.bf16.msra.mxu1 %v19190_v8  ;;  %v19283_v8 = vld [vmem:[%s24638_s3 + $0x1748] ss:$16 sps:$4 sm:$0xff]  }
 0x570   :  { %15532 = vmatpush1.bf16.msra.mxu0 %v19193_v51  ;;  %15000 = vmatprep.subr.bf16.mxu1 %v19198_v28  ;;  %v19288_v51 = vld [vmem:[%s24638_s3 + $0x1764] ss:$16 sps:$4 sm:$0xff]   ;;  %v19291_v28 = vld [vmem:[%s24638_s3 + $0x176c] ss:$16 sps:$4 sm:$0xff]  }
 0x571   :  { %15533 = vmatprep.subr.bf16.mxu0 %v19201_v48  ;;  %v19286_v48 = vld [vmem:[%s24638_s3 + $0x1760] ss:$16 sps:$4 sm:$0xff]  }
 0x573   :  { %15001 = vmatpush1.bf16.msra.mxu1 %v19196_v26  ;;  %v19289_v26 = vld [vmem:[%s24638_s3 + $0x1768] ss:$16 sps:$4 sm:$0xff]  }
 0x574   :  { %15534 = vmatpush1.bf16.msra.mxu0 %v19199_v29  ;;  %15002 = vmatprep.subr.bf16.mxu1 %v19204_v49  ;;  %v19294_v29 = vld [vmem:[%s24638_s3 + $0x1784] ss:$16 sps:$4 sm:$0xff]   ;;  %v19297_v49 = vld [vmem:[%s24638_s3 + $0x178c] ss:$16 sps:$4 sm:$0xff]  }
 0x575   :  { %15535 = vmatprep.subr.bf16.mxu0 %v19207_v44  ;;  %v19292_v44 = vld [vmem:[%s24638_s3 + $0x1780] ss:$16 sps:$4 sm:$0xff]  }
 0x577   :  { %15003 = vmatpush1.bf16.msra.mxu1 %v19202_v32  ;;  %v19295_v32 = vld [vmem:[%s24638_s3 + $0x1788] ss:$16 sps:$4 sm:$0xff]  }
 0x578   :  { %15536 = vmatpush1.bf16.msra.mxu0 %v19205_v43  ;;  %15004 = vmatprep.subr.bf16.mxu1 %v19210_v6  ;;  %v19300_v43 = vld [vmem:[%s24638_s3 + $0x17a4] ss:$16 sps:$4 sm:$0xff]   ;;  %v19303_v6 = vld [vmem:[%s24638_s3 + $0x17ac] ss:$16 sps:$4 sm:$0xff]  }
 0x579   :  { %15537 = vmatprep.subr.bf16.mxu0 %v19213_v7  ;;  %v19298_v7 = vld [vmem:[%s24638_s3 + $0x17a0] ss:$16 sps:$4 sm:$0xff]  }
 0x57b   :  { %15005 = vmatpush1.bf16.msra.mxu1 %v19208_v16  ;;  %v19301_v16 = vld [vmem:[%s24638_s3 + $0x17a8] ss:$16 sps:$4 sm:$0xff]  }
 0x57c   :  { %15538 = vmatpush1.bf16.msra.mxu0 %v19211_v27  ;;  %15006 = vmatprep.subr.bf16.mxu1 %v19216_v14  ;;  %v19306_v27 = vld [vmem:[%s24638_s3 + $0x17c4] ss:$16 sps:$4 sm:$0xff]   ;;  %v19309_v14 = vld [vmem:[%s24638_s3 + $0x17cc] ss:$16 sps:$4 sm:$0xff]  }
 0x57d   :  { %15539 = vmatprep.subr.bf16.mxu0 %v19219_v61  ;;  %v19304_v61 = vld [vmem:[%s24638_s3 + $0x17c0] ss:$16 sps:$4 sm:$0xff]  }
 0x57f   :  { %15007 = vmatpush1.bf16.msra.mxu1 %v19214_v5  ;;  %v19307_v5 = vld [vmem:[%s24638_s3 + $0x17c8] ss:$16 sps:$4 sm:$0xff]  }
 0x580   :  { %15540 = vmatpush1.bf16.msra.mxu0 %v19217_v12  ;;  %15017 = vmatprep.subr.bf16.mxu1 %v19222_v10  ;;  %v19312_v12 = vld [vmem:[%s24638_s3 + $0x17e4] ss:$16 sps:$4 sm:$0xff]   ;;  %v19315_v10 = vld [vmem:[%s24638_s3 + $0x17ec] ss:$16 sps:$4 sm:$0xff]  }
 0x581   :  { %15550 = vmatprep.subr.bf16.mxu0 %v19225_v37  ;;  %v19310_v37 = vld [vmem:[%s24638_s3 + $0x17e0] ss:$16 sps:$4 sm:$0xff]  }
 0x582   :  { %15009 = vmatmul.mubr.bf16.vlgmr.msra.gmra.mrb[112].mxu1 %v24275_v34 }
 0x583   :  { %15542 = vmatmul.mubr.bf16.vlgmr.msra.gmra.mrb[140].mxu0 %v24275_v34  ;;  %15018 = vmatpush1.bf16.msra.mxu1 %v19220_v45  ;;  %v19313_v45 = vld [vmem:[%s24638_s3 + $0x17e8] ss:$16 sps:$4 sm:$0xff]  }
 0x584   :  { %15049 = vmatprep.mubr.bf16.mxu1 %v10604_v53  ;;  %15551 = vmatpush1.bf16.msra.mxu0 %v19223_v36  ;;  %v19318_v36 = vld [vmem:[%s24638_s3 + $0x1804] ss:$16 sps:$4 sm:$0xff]  }
 0x585   :  { %15582 = vmatprep.mubr.bf16.mxu0 %v10604_v53  ;;  %15019 = vmatprep.subr.bf16.mxu1 %v19228_v55  ;;  %v19321_v55 = vld [vmem:[%s24638_s3 + $0x180c] ss:$16 sps:$4 sm:$0xff]   ;;  %v19316_v53 = vld [vmem:[%s24638_s3 + $0x1800] ss:$16 sps:$4 sm:$0xff]  }
 0x586   :  { %15552 = vmatprep.subr.bf16.mxu0 %v19231_v3  ;;  %v10602_v3 = vcombine.high %v24275_v34, %v24275_v34  ;;  %v19322_v34 = vld [vmem:[%s24638_s3 + $0x1820] ss:$16 sps:$4 sm:$0xff]  }
 0x587   :  { %15020 = vmatpush1.bf16.msra.mxu1 %v19226_v11  ;;  %v19319_v11 = vld [vmem:[%s24638_s3 + $0x1808] ss:$16 sps:$4 sm:$0xff]  }
 0x588   :  { %15553 = vmatpush1.bf16.msra.mxu0 %v19229_v1  ;;  %15021 = vmatprep.subr.bf16.mxu1 %v19234_v38  ;;  %v19324_v1 = vld [vmem:[%s24638_s3 + $0x1824] ss:$16 sps:$4 sm:$0xff]   ;;  %v19327_v38 = vld [vmem:[%s24638_s3 + $0x182c] ss:$16 sps:$4 sm:$0xff]  }
 0x589   :  { %15554 = vmatprep.subr.bf16.mxu0 %v19237_v47  ;;  %v19325_v47 = vld [vmem:[%s24638_s3 + $0x1828] ss:$16 sps:$4 sm:$0xff]  }
 0x58b   :  { %15022 = vmatpush1.bf16.msra.mxu1 %v19232_v21  ;;  %v19330_v21 = vld [vmem:[%s24638_s3 + $0x1844] ss:$16 sps:$4 sm:$0xff]  }
 0x58c   :  { %15555 = vmatpush1.bf16.msra.mxu0 %v19235_v20  ;;  %15023 = vmatprep.subr.bf16.mxu1 %v19240_v31  ;;  %v19333_v20 = vld [vmem:[%s24638_s3 + $0x184c] ss:$16 sps:$4 sm:$0xff]   ;;  %v19403_v31 = vmov 0  }
 0x58d   :  { %15556 = vmatprep.subr.bf16.mxu0 %v19243_v39  ;;  %v19328_v39 = vld [vmem:[%s24638_s3 + $0x1840] ss:$16 sps:$4 sm:$0xff]  }
 0x58f   :  { %15024 = vmatpush1.bf16.msra.mxu1 %v19238_v62  ;;  %v19331_v62 = vld [vmem:[%s24638_s3 + $0x1848] ss:$16 sps:$4 sm:$0xff]  }
 0x590   :  { %15557 = vmatpush1.bf16.msra.mxu0 %v19241_v0  ;;  %15025 = vmatprep.subr.bf16.mxu1 %v19246_v19  ;;  %v19336_v0 = vld [vmem:[%s24638_s3 + $0x1864] ss:$16 sps:$4 sm:$0xff]   ;;  %v19339_v19 = vld [vmem:[%s24638_s3 + $0x186c] ss:$16 sps:$4 sm:$0xff]  }
 0x591   :  { %15558 = vmatprep.subr.bf16.mxu0 %v19249_v25  ;;  %v19334_v25 = vld [vmem:[%s24638_s3 + $0x1860] ss:$16 sps:$4 sm:$0xff]  }
 0x593   :  { %15026 = vmatpush1.bf16.msra.mxu1 %v19244_v33  ;;  %v19337_v33 = vld [vmem:[%s24638_s3 + $0x1868] ss:$16 sps:$4 sm:$0xff]  }
 0x594   :  { %15559 = vmatpush1.bf16.msra.mxu0 %v19247_v40  ;;  %15027 = vmatprep.subr.bf16.mxu1 %v19252_v15  ;;  %v19340_v40 = vld [vmem:[%s24640_s5 + $0x40] sm:$0xff]   ;;  %v16733_v15 = vld.sshfl [vmem:[#allocation2 + $0x18] sm:$0x1 pattern:$0x75316420] }
 0x595   :  { %15560 = vmatprep.subr.bf16.mxu0 %v19255_v54  ;;  %v19341_v54 = vld [vmem:[%s24640_s5] sm:$0xff]  }
 0x597   :  { %15028 = vmatpush1.bf16.msra.mxu1 %v19250_v18  ;;  %v10618_v18 = vrot.slane %v16733_v15, %v19501_v22  ;;  %v19345_v22 = vld [vmem:[%s24640_s5 + $0x10] sm:$0xff]  }
 0x598   :  { %15561 = vmatpush1.bf16.msra.mxu0 %v19253_v56  ;;  %15029 = vmatprep.subr.bf16.mxu1 %v19258_v9  ;;  %v19342_v56 = vld [vmem:[%s24640_s5 + $0x48] sm:$0xff]  }
 0x599   :  { %15562 = vmatprep.subr.bf16.mxu0 %v19261_v59  ;;  %v19343_v9 = vld [vmem:[%s24640_s5 + $0x8] sm:$0xff]   ;;  %v19344_v59 = vld [vmem:[%s24640_s5 + $0x50] sm:$0xff]  }
 0x59b   :  { %15030 = vmatpush1.bf16.msra.mxu1 %v19256_v46  ;;  %v19346_v46 = vld [vmem:[%s24640_s5 + $0x58] sm:$0xff]  }
 0x59c   :  { %15563 = vmatpush1.bf16.msra.mxu0 %v19259_v41  ;;  %15031 = vmatprep.subr.bf16.mxu1 %v19264_v4  ;;  %v19347_v41 = vld [vmem:[%s24640_s5 + $0x18] sm:$0xff]   ;;  %v19348_v4 = vld [vmem:[%s24640_s5 + $0x60] sm:$0xff]  }
 0x59d   :  { %15564 = vmatprep.subr.bf16.mxu0 %v19267_v13  ;;  %v19349_v13 = vld [vmem:[%s24640_s5 + $0x20] sm:$0xff]  }
 0x59f   :  { %15032 = vmatpush1.bf16.msra.mxu1 %v19262_v17  ;;  %v19350_v17 = vld [vmem:[%s24640_s5 + $0x68] sm:$0xff]  }
 0x5a0   :  { %15565 = vmatpush1.bf16.msra.mxu0 %v19265_v60  ;;  %15033 = vmatprep.subr.bf16.mxu1 %v19270_v23  ;;  %v19351_v60 = vld [vmem:[%s24640_s5 + $0x28] sm:$0xff]   ;;  %v19352_v23 = vld [vmem:[%s24640_s5 + $0x70] sm:$0xff]  }
 0x5a1   :  { %15566 = vmatprep.subr.bf16.mxu0 %v19273_v42  ;;  %v19353_v42 = vld [vmem:[%s24640_s5 + $0x30] sm:$0xff]  }
 0x5a3   :  { %15034 = vmatpush1.bf16.msra.mxu1 %v19268_v63  ;;  %v19354_v63 = vld [vmem:[%s24640_s5 + $0x78] sm:$0xff]  }
 0x5a4   :  { %15567 = vmatpush1.bf16.msra.mxu0 %v19271_v57  ;;  %15035 = vmatprep.subr.bf16.mxu1 %v19276_v50  ;;  %v19355_v57 = vld [vmem:[%s24640_s5 + $0x38] sm:$0xff]   ;;  %v19356_v50 = vld [vmem:[%s24640_s5 + $0xc0] sm:$0xff]  }
 0x5a5   :  { %15568 = vmatprep.subr.bf16.mxu0 %v19279_v35  ;;  %v24698_v35 = vld [vmem:[#allocation6_spill] sm:$0xff] }
 0x5a7   :  { %15036 = vmatpush1.bf16.msra.mxu1 %v19274_v52  ;;  %v10436_v52 = vsub.s32 0, %v24698_v35 }
 0x5a8   :  { %15569 = vmatpush1.bf16.msra.mxu0 %v19277_v2  ;;  %15037 = vmatprep.subr.bf16.mxu1 %v19282_v30  ;;  %v10432_v2 = vld [vmem:[%s24639_s4] sm:$0xf]  ;;  %v10440_v30 = vsub.s32 1, %v24698_v35 }
 0x5a9   :  { %15570 = vmatprep.subr.bf16.mxu0 %v19285_v24  ;;  %v10448_v24 = vsub.s32 3, %v24698_v35 }
 0x5ab   :  { %15038 = vmatpush1.bf16.msra.mxu1 %v19280_v58  ;;  %v10437_v58 = vrot.slane %v10432_v2, %v10436_v52 }
 0x5ac   :  { %15571 = vmatpush1.bf16.msra.mxu0 %v19283_v8  ;;  %15039 = vmatprep.subr.bf16.mxu1 %v19288_v51  ;;  %v10441_v8 = vrot.slane %v10432_v2, %v10440_v30  ;;  %v10449_v51 = vrot.slane %v10432_v2, %v10448_v24 }
 0x5ad   :  { %15572 = vmatprep.subr.bf16.mxu0 %v19291_v28 }
 0x5af   :  { %15040 = vmatpush1.bf16.msra.mxu1 %v19286_v48 }
 0x5b0   :  { %15573 = vmatpush1.bf16.msra.mxu0 %v19289_v26  ;;  %15041 = vmatprep.subr.bf16.mxu1 %v19294_v29 }
 0x5b1   :  { %15574 = vmatprep.subr.bf16.mxu0 %v19297_v49 }
 0x5b3   :  { %15042 = vmatpush1.bf16.msra.mxu1 %v19292_v44 }
 0x5b4   :  { %15575 = vmatpush1.bf16.msra.mxu0 %v19295_v32  ;;  %15043 = vmatprep.subr.bf16.mxu1 %v19300_v43 }
 0x5b5   :  { %15576 = vmatprep.subr.bf16.mxu0 %v19303_v6 }
 0x5b7   :  { %15044 = vmatpush1.bf16.msra.mxu1 %v19298_v7 }
 0x5b8   :  { %15577 = vmatpush1.bf16.msra.mxu0 %v19301_v16  ;;  %15045 = vmatprep.subr.bf16.mxu1 %v19306_v27 }
 0x5b9   :  { %15578 = vmatprep.subr.bf16.mxu0 %v19309_v14 }
 0x5bb   :  { %15046 = vmatpush1.bf16.msra.mxu1 %v19304_v61 }
 0x5bc   :  { %15579 = vmatpush1.bf16.msra.mxu0 %v19307_v5  ;;  %15047 = vmatprep.subr.bf16.mxu1 %v19312_v12  ;;  %v19357_v12 = vld [vmem:[%s24640_s5 + $0x80] sm:$0xff]  }
 0x5bd   :  { %15580 = vmatprep.subr.bf16.mxu0 %v19315_v10 }
 0x5bf   :  { %15048 = vmatpush1.bf16.msra.mxu1 %v19310_v37  ;;  %v19358_v37 = vld [vmem:[%s24640_s5 + $0xc8] sm:$0xff]  }
 0x5c0   :  { %15581 = vmatpush1.bf16.msra.mxu0 %v19313_v45  ;;  %15058 = vmatprep.subr.bf16.mxu1 %v19318_v36  ;;  %v19359_v36 = vld [vmem:[%s24640_s5 + $0x88] sm:$0xff]  }
 0x5c1   :  { %15591 = vmatprep.subr.bf16.mxu0 %v19321_v55  ;;  %v19360_v55 = vld [vmem:[%s24640_s5 + $0xd0] sm:$0xff]  }
 0x5c2   :  { %15050 = vmatmul.mubr.bf16.vlgmr.msra.gmra.mrb[112].mxu1 %v10602_v3 }
 0x5c3   :  { %15583 = vmatmul.mubr.bf16.vlgmr.msra.gmra.mrb[140].mxu0 %v10602_v3  ;;  %15059 = vmatpush1.bf16.msra.mxu1 %v19316_v53  ;;  %v19361_v53 = vld [vmem:[%s24640_s5 + $0x90] sm:$0xff]   ;;  %v19362_v3 = vld [vmem:[%s24640_s5 + $0xd8] sm:$0xff]  }
 0x5c4   :  { %15592 = vmatpush1.bf16.msra.mxu0 %v19319_v11  ;;  %15060 = vmatprep.subr.bf16.mxu1 %v19324_v1  ;;  %v19363_v11 = vld [vmem:[%s24640_s5 + $0x98] sm:$0xff]   ;;  %v19364_v1 = vld [vmem:[%s24640_s5 + $0xe0] sm:$0xff]  }
 0x5c5   :  { %15593 = vmatprep.subr.bf16.mxu0 %v19327_v38  ;;  %15090 = vmatprep.mubr.bf16.mxu1 %v19403_v31  ;;  %v19365_v38 = vld [vmem:[%s24640_s5 + $0xa0] sm:$0xff]  }
 0x5c6   :  { %15623 = vmatprep.mubr.bf16.mxu0 %v19403_v31  ;;  %v19368_v31 = vld [vmem:[%s24640_s5 + $0xf0] sm:$0xff]  }
 0x5c7   :  { %15061 = vmatpush1.bf16.msra.mxu1 %v19322_v34  ;;  %v10444_v34 = vsub.s32 2, %v24698_v35 }
 0x5c8   :  { %15594 = vmatpush1.bf16.msra.mxu0 %v19325_v47  ;;  %15062 = vmatprep.subr.bf16.mxu1 %v19330_v21  ;;  %v19366_v47 = vld [vmem:[%s24640_s5 + $0xe8] sm:$0xff]  }
 0x5c9   :  { %15595 = vmatprep.subr.bf16.mxu0 %v19333_v20  ;;  %v19367_v21 = vld [vmem:[%s24640_s5 + $0xa8] sm:$0xff]   ;;  %v10445_v20 = vrot.slane %v10432_v2, %v10444_v34 }
 0x5cb   :  { %15063 = vmatpush1.bf16.msra.mxu1 %v19328_v39  ;;  %v19369_v39 = vld [vmem:[%s24640_s5 + $0xb0] sm:$0xff]  }
 0x5cc   :  { %15596 = vmatpush1.bf16.msra.mxu0 %v19331_v62  ;;  %15064 = vmatprep.subr.bf16.mxu1 %v19336_v0  ;;  %v19370_v0 = vld [vmem:[%s24640_s5 + $0xf8] sm:$0xff]  }
 0x5cd   :  { %15597 = vmatprep.subr.bf16.mxu0 %v19339_v19  ;;  %v19371_v19 = vld [vmem:[%s24640_s5 + $0xb8] sm:$0xff]   ;;  %s19375_s5 = scalar_lea.vmem %s15992_s27, 32 }
 0x5ce   :  { %p19376_p0 = scmp.ne.s32.totalorder %s15992_s27, %s19375_s5  ;;  %p19381_p2 = scmp.lt.s32.totalorder %s19375_s5, %s19375_s5 }
 0x5cf   :  { %15065 = vmatpush1.bf16.msra.mxu1 %v19334_v25 }
 0x5d0   :  { %15598 = vmatpush1.bf16.msra.mxu0 %v19337_v33  ;;  %17652 = vmatprep.subr.bf16.mxu1 %v19340_v40  ;;  %p19382_p3 = por %p19381_p2, %p19380_p1 }
 0x5d2   :  { %17518 = vmatmul.mubr.msk.bf16.vlgmr.msra.gmra.mrb[112].mxu1 %vm902_vm1, %v10618_v18  ;;  %p19383_p4 = pnand %p19382_p3, %p19376_p0 }
 0x5d3   :  { %17519 = vmatmul.mubr.msk.bf16.vlgmr.msra.gmra.mrb[140].mxu0 %vm902_vm1, %v10618_v18  ;;  %17653 = vmatpush3.bf16.msra.mxu1 %v19341_v54 }
 0x5d4   :  { %17654 = vmatprep.subr.bf16.mxu1 %v19342_v56 }
 0x5d7   :  { %17655 = vmatpush3.bf16.msra.mxu1 %v19343_v9  ;;  %v17520_v9 = vld [vmem:[%s24641_s6] ss:$0 sm:$0xff] }
 0x5d8   :  { %17656 = vmatprep.subr.bf16.mxu1 %v19344_v59 }
 0x5db   :  { %17657 = vmatpush3.bf16.msra.mxu1 %v19345_v22 }
 0x5dc   :  { %17658 = vmatprep.subr.bf16.mxu1 %v19346_v46 }
 0x5df   :  { %17659 = vmatpush3.bf16.msra.mxu1 %v19347_v41 }
 0x5e0   :  { %17660 = vmatprep.subr.bf16.mxu1 %v19348_v4 }
 0x5e3   :  { %17661 = vmatpush3.bf16.msra.mxu1 %v19349_v13 }
 0x5e4   :  { %17662 = vmatprep.subr.bf16.mxu1 %v19350_v17 }
 0x5e7   :  { %17663 = vmatpush3.bf16.msra.mxu1 %v19351_v60 }
 0x5e8   :  { %17664 = vmatprep.subr.bf16.mxu1 %v19352_v23 }
 0x5eb   :  { %17665 = vmatpush3.bf16.msra.mxu1 %v19353_v42 }
 0x5ec   :  { %17666 = vmatprep.subr.bf16.mxu1 %v19354_v63 }
 0x5ef   :  { %17667 = vmatpush3.bf16.msra.mxu1 %v19355_v57 }
 0x5f0   :  { %17674 = vmatprep.subr.bf16.mxu1 %v19356_v50 }
 0x6a5   :  { %v15092_v28 = vpop.f32.mrb[112].mxu1 }
 0x6a6   :  { %v18020_v48 = vadd.f32 %v15092_v28, %v10437_v58  ;;  %v15625_v26 = vpop.f32.mrb[140].mxu0  ;;  %v15094_v29 = vpop.f32.mrb[113].mxu1 }
 0x6a7   :  { %v18021_v49 = vadd.f32 %v15094_v29, %v10441_v8  ;;  %v15627_v44 = vpop.f32.mrb[141].mxu0  ;;  %v15096_v32 = vpop.f32.mrb[114].mxu1  ;;  %v18022_v62 = vadd.f32 %v15625_v26, %v10445_v20 }
 0x6a8   :  { %v15632_v43 = vmax.f32 %v18020_v48, 0.0  ;;  %v18023_v6 = vadd.f32 %v15627_v44, %v10449_v51  ;;  %v15629_v7 = vpop.f32.mrb[142].mxu0  ;;  %v15097_v16 = vpop.f32.mrb[115].mxu1 }
 0x6a9   :  { %v15633_v27 = vmax.f32 %v18021_v49, 0.0  ;;  %v15630_v14 = vpop.f32.mrb[143].mxu0  ;;  %v15634_v25 = vmax.f32 %v18022_v62, 0.0 }
 0x6aa   :  { %v15635_v61 = vmax.f32 %v18023_v6, 0.0  ;;  %v15636_v10 = vpack.c.bf16 %v15632_v43, %v15632_v43 }
 0x6ab   :  { %v15637_v5 = vpack.c.bf16 %v15633_v27, %v15633_v27  ;;  %v15638_v33 = vpack.c.bf16 %v15634_v25, %v15634_v25 }
 0x6ac   :  { %v15639_v45 = vpack.c.bf16 %v15635_v61, %v15635_v61 }
 0x6ad   :  { %15935 = vmatprep.mubr.bf16.mxu1 %v15637_v5 }
 0x6ae   :  { %15936 = vmatmul.mubr.bf16.vlgmr.msra.gmra.mrb[116].mxu1 %v15636_v10 }
 0x6af   :  { %17675 = vmatpush3.bf16.msra.mxu1 %v19357_v12  ;;  %15975 = vmatprep.mubr.bf16.mxu1 %v15639_v45 }
 0x6b0   :  { %17676 = vmatprep.subr.bf16.mxu1 %v19358_v37 }
 0x6b3   :  { %17677 = vmatpush3.bf16.msra.mxu1 %v19359_v36 }
 0x6b4   :  { %17678 = vmatprep.subr.bf16.mxu1 %v19360_v55 }
 0x6b7   :  { %17679 = vmatpush3.bf16.msra.mxu1 %v19361_v53 }
 0x6b8   :  { %17680 = vmatprep.subr.bf16.mxu1 %v19362_v3 }
 0x6bb   :  { %17681 = vmatpush3.bf16.msra.mxu1 %v19363_v11 }
 0x6bc   :  { %17682 = vmatprep.subr.bf16.mxu1 %v19364_v1 }
 0x6bf   :  { %17683 = vmatpush3.bf16.msra.mxu1 %v19365_v38 }
 0x6c0   :  { %17684 = vmatprep.subr.bf16.mxu1 %v19366_v47 }
 0x6c3   :  { %17685 = vmatpush3.bf16.msra.mxu1 %v19367_v21 }
 0x6c4   :  { %17686 = vmatprep.subr.bf16.mxu1 %v19368_v31 }
 0x6c7   :  { %17687 = vmatpush3.bf16.msra.mxu1 %v19369_v39 }
 0x6c8   :  { %17688 = vmatprep.subr.bf16.mxu1 %v19370_v0 }
 0x6cb   :  { %17689 = vmatpush3.bf16.msra.mxu1 %v19371_v19 }
 0x6ce   :  { %15976 = vmatmul.mubr.bf16.vlgmr.msra.gmra.mrb[120].mxu1 %v15638_v33 }
 0x781   :  { %v17668_v40 = vpop.f32.mrb[116].mxu1 }
 0x782   :  { %v17669_v15 = vpop.f32.mrb[117].mxu1 }
 0x783   :  { %v17670_v54 = vadd.f32 %v17669_v15, %v17668_v40  ;;  %v17671_v18 = vpop.f32.mrb[118].mxu1 }
 0x784   :  { %v17672_v56 = vpop.f32.mrb[119].mxu1 }
 0x785   :  { %v15938_v46 = vadd.f32 %v17670_v54, %v17520_v9 }
 0x7a1   :  { %v17690_v59 = vpop.f32.mrb[120].mxu1 }
 0x7a2   :  { %v17691_v22 = vpop.f32.mrb[121].mxu1 }
 0x7a3   :  { %v17692_v41 = vadd.f32 %v17691_v22, %v17690_v59  ;;  %v17693_v4 = vpop.f32.mrb[122].mxu1 }
 0x7a4   :  { %v17694_v13 = vpop.f32.mrb[123].mxu1 }
 0x7a5   :  { %v15978_v17 = vadd.f32 %v17692_v41, %v15938_v46 }
 0x7a7   :  { %15984 = vst.msk [vmem:[#allocation3] sm:$0x3] %vm15983_vm4, %v15978_v17 }
 0x7a8   :  { %19386 = shalt.err (!%p19383_p4)
}
 0x7a9   :  { %s19387_s29 = scalar_lea.hbm %s24642_s7, 32 }
 0x7aa   :  { %p19388_p5 = scmp.ne.s32.totalorder %s24642_s7, %s19387_s29  ;;  %p19391_p6 = scmp.lt.u32.totalorder %s19387_s29, %s24642_s7 }
 0x7ac   :  { %p19393_p7 = pnand %p19391_p6, %p19388_p5 }
 0x7ae   :  { %19396 = shalt.err (!%p19393_p7)
}
 0x7af   :  { %15994 = dma.vmem_to_hbm [thread:$0]  %s15992_s27, 32, %s24642_s7, [#allocation4]  }
 0x7b0   :  { %19397 = dma.done.wait [#allocation4], 32  }
 0x7b1   :  { %19398 = vsyncadd [#allocation4], 4294967264 }
 0x7b2   :  { %15998 = vsyncpa [#allocation4], 1 }

</bundles_post_ra>
